<compile_context>
chip_gen: v5e
topology: v5e:2x2
jax: 0.10.0
libtpu: 0.0.40
codegen_flags: <defaults>
</compile_context>

<pallas_src>
import functools

import jax
import jax.numpy as jnp
from jax.experimental import pallas as pl
from jax.experimental.pallas import tpu as pltpu


def _round_up(x, m):
    return ((x + m - 1) // m) * m


def _pick_tile(dim, candidates):
    # Candidates ordered to prefer 256-aligned tiles (fills the 256-wide MXU on
    # v6e/v7x); 128-based fallbacks remain fine for v5e's 4x128x128 MXU.
    for c in candidates:
        if dim % c == 0:
            return c
    return dim


def _itemsize(dtype):
    return 2 if dtype == jnp.bfloat16 else 4


# ----------------------------------------------------------------------------
# Pallas kernel 1: fused 5x5 / stride-2 conv + folded-BN shift + ReLU
#   (input pre-packed 2x2-pixels-into-channels, so all taps are unit-stride)
# ----------------------------------------------------------------------------
def _conv_row_kernel(r0_ref, r1_ref, r2_ref, w_ref, shift_ref, o_ref, acc_ref):
    # r*_ref : (1, 1, Ws, 4*Cin) bf16  -- packed super-rows r, r+1, r+2
    # w_ref  : (9, 4*Cin, Coutp) bf16  -- super-kernel weights (BN scale folded)
    # shift  : (1, Coutp) f32          -- folded BN shift
    # o_ref  : (1, 1, OW, Coutp)       -- one output row
    ow = o_ref.shape[2]
    acc_ref[...] = jnp.zeros_like(acc_ref)
    rows = (r0_ref, r1_ref, r2_ref)
    for i in range(3):                       # super-row taps (unrolled)
        row = rows[i][0, 0]                  # (Ws, 4*Cin)
        for j in range(3):                   # super-col taps (unrolled)
            acc_ref[...] += jnp.dot(row[j:j + ow, :], w_ref[i * 3 + j],
                                    preferred_element_type=jnp.float32)
    y = acc_ref[...] + shift_ref[...]
    o_ref[0, 0] = jnp.maximum(y, 0.0).astype(o_ref.dtype)


def conv5x5_s2_bn_relu(xs, w_sup, shift):
    """xs: (N, OH+2, OW+2, 4*Cin) bf16 packed+padded input,
    w_sup: (9, 4*Cin, Coutp) bf16, shift: (1, Coutp) f32
    -> (N, OH, OW, Coutp) bf16."""
    n, hs, ws, c4 = xs.shape
    _, _, coutp = w_sup.shape
    oh, ow = hs - 2, ws - 2
    flops = 2 * n * oh * ow * 9 * c4 * coutp
    bytes_accessed = (3 * n * oh * ws * c4 * 2            # 3 row streams (bf16)
                      + w_sup.size * 2 + shift.size * 4
                      + n * oh * ow * coutp * 2)
    return pl.pallas_call(
        _conv_row_kernel,
        out_shape=jax.ShapeDtypeStruct((n, oh, ow, coutp), jnp.bfloat16),
        grid=(n, oh),
        in_specs=[
            # Overlapping row windows expressed as 3 element-offset row specs.
            pl.BlockSpec((1, 1, ws, c4), lambda b, r: (b, r, 0, 0)),
            pl.BlockSpec((1, 1, ws, c4), lambda b, r: (b, r + 1, 0, 0)),
            pl.BlockSpec((1, 1, ws, c4), lambda b, r: (b, r + 2, 0, 0)),
            pl.BlockSpec((9, c4, coutp), lambda b, r: (0, 0, 0)),
            pl.BlockSpec((1, coutp), lambda b, r: (0, 0)),
        ],
        out_specs=pl.BlockSpec((1, 1, ow, coutp), lambda b, r: (b, r, 0, 0)),
        scratch_shapes=[pltpu.VMEM((ow, coutp), jnp.float32)],
        compiler_params=pltpu.CompilerParams(
            dimension_semantics=("parallel", "parallel"),
            vmem_limit_bytes=32 * 1024 * 1024),
        cost_estimate=pl.CostEstimate(flops=flops, transcendentals=0,
                                      bytes_accessed=bytes_accessed),
    )(xs, xs, xs, w_sup, shift)


# ----------------------------------------------------------------------------
# Pallas kernel 2: tiled fused GEMM  Y = relu?((X @ W) + shift)
#   (BN scale pre-folded into W; f32 accumulator; reduction axis last)
# ----------------------------------------------------------------------------
def _gemm_kernel(apply_relu, x_ref, w_ref, shift_ref, o_ref, acc_ref):
    @pl.when(pl.program_id(2) == 0)
    def _():
        acc_ref[...] = jnp.zeros_like(acc_ref)

    acc_ref[...] += jnp.dot(x_ref[...], w_ref[...],
                            preferred_element_type=jnp.float32)

    @pl.when(pl.program_id(2) == pl.num_programs(2) - 1)
    def _():
        y = acc_ref[...] + shift_ref[...]
        if apply_relu:
            y = jnp.maximum(y, 0.0)
        o_ref[...] = y.astype(o_ref.dtype)


def fused_gemm(x, w, shift, *, apply_relu, out_dtype=jnp.float32):
    """x: (M, K), w: (K, N) bf16, shift: (1, N) f32 -> (M, N).
    M multiple of 16; K, N multiples of 128 (callers pre-pad)."""
    m, k = x.shape
    k2, n = w.shape
    assert k2 == k and m % 16 == 0 and k % 128 == 0 and n % 128 == 0
    tm = _pick_tile(m, (256, 128, 64, 32, 16))
    tn = _pick_tile(n, (512, 256, 128))
    tk = _pick_tile(k, (512, 256, 128))
    grid = (m // tm, n // tn, k // tk)
    flops = 2 * m * k * n
    bytes_accessed = (m * k * 2 + k * n * 2 + n * 4 + m * n * _itemsize(out_dtype))
    kernel = functools.partial(_gemm_kernel, apply_relu)
    return pl.pallas_call(
        kernel,
        out_shape=jax.ShapeDtypeStruct((m, n), out_dtype),
        grid=grid,
        in_specs=[
            pl.BlockSpec((tm, tk), lambda i, j, kk: (i, kk)),
            pl.BlockSpec((tk, tn), lambda i, j, kk: (kk, j)),
            pl.BlockSpec((1, tn), lambda i, j, kk: (0, j)),
        ],
        out_specs=pl.BlockSpec((tm, tn), lambda i, j, kk: (i, j)),
        scratch_shapes=[pltpu.VMEM((tm, tn), jnp.float32)],
        compiler_params=pltpu.CompilerParams(
            dimension_semantics=("parallel", "parallel", "arbitrary"),
            vmem_limit_bytes=32 * 1024 * 1024),
        cost_estimate=pl.CostEstimate(flops=flops, transcendentals=0,
                                      bytes_accessed=bytes_accessed),
    )(x.astype(jnp.bfloat16), w, shift)


# ----------------------------------------------------------------------------
# Glue (plain JAX): 2x2-pixel packing (pad by 2, group pixel parity -> channels)
# ----------------------------------------------------------------------------
def _pack2x2(x_nhwc, cin):
    n, h, w, _ = x_nhwc.shape
    assert h % 2 == 0 and w % 2 == 0
    x = x_nhwc[..., :cin]                                 # drop channel padding
    xp = jnp.pad(x, ((0, 0), (2, 2), (2, 2), (0, 0)))
    hs, ws = (h + 4) // 2, (w + 4) // 2
    xs = xp.reshape(n, hs, 2, ws, 2, cin)
    xs = jnp.transpose(xs, (0, 1, 3, 2, 4, 5))            # (n, hs, ws, di, dj, c)
    return xs.reshape(n, hs, ws, 4 * cin)


def _fold_bn(gamma, beta, mean, var, eps=1e-6):
    s = gamma / jnp.sqrt(var + eps)
    return s, beta - mean * s


# ----------------------------------------------------------------------------
# Raw parameters (deterministic, synthetic, PyTorch layout)
# ----------------------------------------------------------------------------
def init_params(key, nc, nz, image_size):
    ks = jax.random.split(key, 32)
    nrm = lambda k, shp, std: std * jax.random.normal(k, shp, jnp.float32)
    p = {}
    chans = [nc, 64, 128, 256]
    for li in range(3):
        cin, cout = chans[li], chans[li + 1]
        p[f"conv{li}_w"] = nrm(ks[4 * li + 0], (cout, cin, 5, 5), 0.05)
        p[f"bn{li}_gamma"] = 1.0 + nrm(ks[4 * li + 1], (cout,), 0.1)
        p[f"bn{li}_beta"] = nrm(ks[4 * li + 2], (cout,), 0.1)
        p[f"bn{li}_mean"] = nrm(ks[4 * li + 3], (cout,), 0.1)
        p[f"bn{li}_var"] = 0.9 + 0.1 * jnp.abs(
            jax.random.normal(ks[12 + li], (cout,), jnp.float32))
    end_w = image_size // 8
    start_latent = 256 * end_w * end_w
    p["fc0_w"] = nrm(ks[16], (2048, start_latent), 0.02)   # PyTorch (out, in)
    p["fc0_b"] = nrm(ks[17], (2048,), 0.02)
    p["bn1d_gamma"] = 1.0 + nrm(ks[18], (2048,), 0.1)
    p["bn1d_beta"] = nrm(ks[19], (2048,), 0.1)
    p["bn1d_mean"] = nrm(ks[20], (2048,), 0.1)
    p["bn1d_var"] = 0.9 + 0.1 * jnp.abs(
        jax.random.normal(ks[21], (2048,), jnp.float32))
    p["mu_w"] = nrm(ks[22], (nz, 2048), 0.02)
    p["mu_b"] = nrm(ks[23], (nz,), 0.02)
    p["lv_w"] = nrm(ks[24], (nz, 2048), 0.02)
    p["lv_b"] = nrm(ks[25], (nz,), 0.02)
    return p


# ----------------------------------------------------------------------------
# One-time parameter prep (outside the jitted hot path): BN fold into weights,
# super-kernel layout, flatten-order permutation, padding, bf16 casts.
# ----------------------------------------------------------------------------
def prepare_params(raw, nc, nz, image_size):
    assert image_size % 8 == 0, "image_size must be divisible by 8"
    prep = {}
    chans = [nc, 64, 128, 256]
    for li in range(3):
        cin, cout = chans[li], chans[li + 1]
        coutp = _round_up(cout, 128)
        s, t = _fold_bn(raw[f"bn{li}_gamma"], raw[f"bn{li}_beta"],
                        raw[f"bn{li}_mean"], raw[f"bn{li}_var"])
        w = raw[f"conv{li}_w"] * s[:, None, None, None]    # fold BN scale (f32)
        # 5x5 stride-2 -> 3x3 stride-1 super-kernel over 2x2-packed channels:
        # pad taps to 6x6 (kh/kw = 5 rows are zero), split each spatial axis
        # into (super-tap, parity) and reorder to (i, j, di, dj, cin, cout).
        wp = jnp.pad(w, ((0, 0), (0, 0), (0, 1), (0, 1)))   # (O, I, 6, 6)
        wp = wp.reshape(cout, cin, 3, 2, 3, 2)              # (O, I, i, di, j, dj)
        wsup = jnp.transpose(wp, (2, 4, 3, 5, 1, 0))         # (i, j, di, dj, I, O)
        wsup = wsup.reshape(9, 4 * cin, cout)
        wsup = jnp.pad(wsup, ((0, 0), (0, 0), (0, coutp - cout)))
        prep[f"conv{li}_w"] = wsup.astype(jnp.bfloat16)
        prep[f"conv{li}_shift"] = jnp.pad(t, (0, coutp - cout)).reshape(1, coutp)

    # fc0: permute weight rows once so a plain NHWC flatten of the conv output
    # matches PyTorch's NCHW .view() semantics; fold the BN1d scale in too.
    end_w = image_size // 8
    start_latent = 256 * end_w * end_w
    s, t = _fold_bn(raw["bn1d_gamma"], raw["bn1d_beta"],
                    raw["bn1d_mean"], raw["bn1d_var"])
    wfc = raw["fc0_w"].reshape(2048, 256, end_w, end_w)     # (O, C, H, W)
    wfc = jnp.transpose(wfc, (2, 3, 1, 0)).reshape(start_latent, 2048)
    wfc = wfc * s[None, :]
    prep["fc0_w"] = wfc.astype(jnp.bfloat16)
    prep["fc0_shift"] = (s * raw["fc0_b"] + t).reshape(1, 2048)

    # heads: [mu | logvar] concatenated, N padded to 128 for lane-dense stores.
    n2 = 2 * nz
    n2_pad = _round_up(max(n2, 128), 128)
    wh = jnp.concatenate([raw["mu_w"].T, raw["lv_w"].T], axis=1)  # (2048, 2*nz)
    prep["heads_w"] = jnp.pad(wh, ((0, 0), (0, n2_pad - n2))).astype(jnp.bfloat16)
    bh = jnp.concatenate([raw["mu_b"], raw["lv_b"]])
    prep["heads_b"] = jnp.pad(bh, (0, n2_pad - n2)).reshape(1, n2_pad)
    return prep


# ----------------------------------------------------------------------------
# Forward pass (Pallas hot path)
# ----------------------------------------------------------------------------
def variational_encoder_forward(prep, x_nchw, nc, nz, image_size):
    x = jnp.transpose(x_nchw, (0, 2, 3, 1)).astype(jnp.bfloat16)   # NCHW -> NHWC
    chans = [nc, 64, 128, 256]
    for li in range(3):
        xs = _pack2x2(x, chans[li])
        x = conv5x5_s2_bn_relu(xs, prep[f"conv{li}_w"], prep[f"conv{li}_shift"])

    # conv2 output channel dim is exactly 256 -> NHWC flatten matches the
    # pre-permuted fc0 weight rows; no activation transpose needed.
    batch = x.shape[0]
    flat = x.reshape(batch, -1)
    m_pad = _round_up(batch, 16)              # bf16 sublane tile (16, 128)
    if m_pad > batch:
        flat = jnp.pad(flat, ((0, m_pad - batch), (0, 0)))

    # Un-fused FC stage (small-batch regime): fc0 GEMM gets a parallel N axis
    # (megacore-friendly weight streaming); the tiny head GEMM follows.
    h = fused_gemm(flat, prep["fc0_w"], prep["fc0_shift"],
                   apply_relu=True, out_dtype=jnp.bfloat16)
    out = fused_gemm(h, prep["heads_w"], prep["heads_b"],
                     apply_relu=False, out_dtype=jnp.float32)
    out = out[:batch]
    return out[:, :nz], out[:, nz:2 * nz]


# ----------------------------------------------------------------------------
# Pure-JAX f32 reference (same eval-mode BN semantics) for correctness check
# ----------------------------------------------------------------------------
def reference_forward(params, x_nchw, nz):
    x = x_nchw
    for li in range(3):
        y = jax.lax.conv_general_dilated(
            x, params[f"conv{li}_w"], (2, 2), ((2, 2), (2, 2)),
            dimension_numbers=("NCHW", "OIHW", "NCHW"))
        s, b = _fold_bn(params[f"bn{li}_gamma"], params[f"bn{li}_beta"],
                        params[f"bn{li}_mean"], params[f"bn{li}_var"])
        x = jnp.maximum(y * s[None, :, None, None] + b[None, :, None, None], 0.0)
    flat = x.reshape(x.shape[0], -1)
    h = flat @ params["fc0_w"].T + params["fc0_b"]
    s, b = _fold_bn(params["bn1d_gamma"], params["bn1d_beta"],
                    params["bn1d_mean"], params["bn1d_var"])
    h = jnp.maximum(h * s + b, 0.0)
    mu = h @ params["mu_w"].T + params["mu_b"]
    lv = h @ params["lv_w"].T + params["lv_b"]
    return mu, lv


if __name__ == "__main__":
    cfg = {"nc": 4, "nz": 8, "image_size": 16}
    batch = 2

    raw_params = init_params(jax.random.PRNGKey(42), cfg["nc"], cfg["nz"],
                             cfg["image_size"])
    x = jax.random.normal(
        jax.random.PRNGKey(0),
        (batch, cfg["nc"], cfg["image_size"], cfg["image_size"]), jnp.float32)

    # One-time weight prep (BN fold, super-kernel layout, padding, bf16 casts).
    prep = prepare_params(raw_params, cfg["nc"], cfg["nz"], cfg["image_size"])
    prep = jax.device_put(prep)

    fwd = jax.jit(functools.partial(
        variational_encoder_forward,
        nc=cfg["nc"], nz=cfg["nz"], image_size=cfg["image_size"]))

    mu, logvar = fwd(prep, x)
    jax.block_until_ready((mu, logvar))

    mu_ref, lv_ref = reference_forward(raw_params, x, cfg["nz"])
    assert mu.shape == (batch, cfg["nz"]) and logvar.shape == (batch, cfg["nz"])
    # bf16 MXU operands vs f32 reference -> modest tolerance.
    assert jnp.allclose(mu, mu_ref, rtol=5e-2, atol=5e-2), \
        f"mu mismatch: max abs err {jnp.max(jnp.abs(mu - mu_ref))}"
    assert jnp.allclose(logvar, lv_ref, rtol=5e-2, atol=5e-2), \
        f"logvar mismatch: max abs err {jnp.max(jnp.abs(logvar - lv_ref))}"

    print("KERNEL_OK")
</pallas_src>

<mosaic_0001>
module attributes {stable_mosaic.version = 11 : i64} {
  func.func @_conv_row_kernel(%arg0: i32, %arg1: i32, %arg2: memref<1x1x10x16xbf16, #tpu.memory_space<vmem>>, %arg3: memref<1x1x10x16xbf16, #tpu.memory_space<vmem>>, %arg4: memref<1x1x10x16xbf16, #tpu.memory_space<vmem>>, %arg5: memref<9x16x128xbf16, #tpu.memory_space<vmem>>, %arg6: memref<1x128xf32, #tpu.memory_space<vmem>>, %arg7: memref<1x1x8x128xbf16, #tpu.memory_space<vmem>>, %arg8: memref<8x128xf32, #tpu.memory_space<vmem>>) attributes {dimension_semantics = [#tpu.dimension_semantics<parallel>, #tpu.dimension_semantics<parallel>], iteration_bounds = array<i64: 2, 8>, scalar_prefetch = 0 : i64, scratch_operands = 1 : i64, tpu.core_type = #tpu.core_type<tc>, window_params = [{transform_indices = @transform_0, window_bounds = array<i64: 1, 1, 10, 16>}, {transform_indices = @transform_1, window_bounds = array<i64: 1, 1, 10, 16>}, {transform_indices = @transform_2, window_bounds = array<i64: 1, 1, 10, 16>}, {pipeline_mode = #tpu.pipeline_mode<synchronous>, transform_indices = @transform_3, window_bounds = array<i64: 9, 16, 128>}, {pipeline_mode = #tpu.pipeline_mode<synchronous>, transform_indices = @transform_4, window_bounds = array<i64: 1, 128>}, {transform_indices = @transform_5, window_bounds = array<i64: 1, 1, 8, 128>}]} {
    %cst = arith.constant 0.000000e+00 : f32
    %0 = vector.broadcast %cst : f32 to vector<8x128xf32>
    %c0 = arith.constant 0 : index
    %c0_0 = arith.constant 0 : index
    %1 = vector.load %arg8[%c0, %c0_0] : memref<8x128xf32, #tpu.memory_space<vmem>>, vector<8x128xf32>
    tpu.vector_store %arg8[%c0, %c0_0], %0 {strides = array<i32>} : memref<8x128xf32, #tpu.memory_space<vmem>>, vector<8x128xf32>,
    %c0_1 = arith.constant 0 : index
    %c0_2 = arith.constant 0 : index
    %c0_3 = arith.constant 0 : index
    %c0_4 = arith.constant 0 : index
    %2 = vector.load %arg2[%c0_1, %c0_2, %c0_3, %c0_4] : memref<1x1x10x16xbf16, #tpu.memory_space<vmem>>, vector<1x1x10x16xbf16>
    %3 = vector.shape_cast %2 : vector<1x1x10x16xbf16> to vector<10x16xbf16>
    %c0_5 = arith.constant 0 : index
    %c0_6 = arith.constant 0 : index
    %4 = vector.load %arg8[%c0_5, %c0_6] : memref<8x128xf32, #tpu.memory_space<vmem>>, vector<8x128xf32>
    %5 = vector.extract_strided_slice %3 {offsets = [0, 0], sizes = [8, 16], strides = [1, 1]} : vector<10x16xbf16> to vector<8x16xbf16>
    %c0_7 = arith.constant 0 : index
    %c0_8 = arith.constant 0 : index
    %c0_9 = arith.constant 0 : index
    %6 = vector.load %arg5[%c0_7, %c0_8, %c0_9] : memref<9x16x128xbf16, #tpu.memory_space<vmem>>, vector<1x16x128xbf16>
    %7 = vector.shape_cast %6 : vector<1x16x128xbf16> to vector<16x128xbf16>
    %cst_10 = arith.constant dense<0.000000e+00> : vector<8x128xf32>
    %8 = tpu.matmul %5, %7, %cst_10 {dimension_numbers = #tpu.dot_dimension_numbers<[1], [0], [0], [1], [0, 0, 1, 1], [], []>} : vector<8x16xbf16>, vector<16x128xbf16>, vector<8x128xf32> -> vector<8x128xf32>
    %9 = arith.addf %4, %8 : vector<8x128xf32>
    %c0_11 = arith.constant 0 : index
    %c0_12 = arith.constant 0 : index
    %10 = vector.load %arg8[%c0_11, %c0_12] : memref<8x128xf32, #tpu.memory_space<vmem>>, vector<8x128xf32>
    tpu.vector_store %arg8[%c0_11, %c0_12], %9 {strides = array<i32>} : memref<8x128xf32, #tpu.memory_space<vmem>>, vector<8x128xf32>,
    %c0_13 = arith.constant 0 : index
    %c0_14 = arith.constant 0 : index
    %11 = vector.load %arg8[%c0_13, %c0_14] : memref<8x128xf32, #tpu.memory_space<vmem>>, vector<8x128xf32>
    %12 = vector.extract_strided_slice %3 {offsets = [1, 0], sizes = [8, 16], strides = [1, 1]} : vector<10x16xbf16> to vector<8x16xbf16>
    %c1 = arith.constant 1 : index
    %c0_15 = arith.constant 0 : index
    %c0_16 = arith.constant 0 : index
    %13 = vector.load %arg5[%c1, %c0_15, %c0_16] : memref<9x16x128xbf16, #tpu.memory_space<vmem>>, vector<1x16x128xbf16>
    %14 = vector.shape_cast %13 : vector<1x16x128xbf16> to vector<16x128xbf16>
    %cst_17 = arith.constant dense<0.000000e+00> : vector<8x128xf32>
    %15 = tpu.matmul %12, %14, %cst_17 {dimension_numbers = #tpu.dot_dimension_numbers<[1], [0], [0], [1], [0, 0, 1, 1], [], []>} : vector<8x16xbf16>, vector<16x128xbf16>, vector<8x128xf32> -> vector<8x128xf32>
    %16 = arith.addf %11, %15 : vector<8x128xf32>
    %c0_18 = arith.constant 0 : index
    %c0_19 = arith.constant 0 : index
    %17 = vector.load %arg8[%c0_18, %c0_19] : memref<8x128xf32, #tpu.memory_space<vmem>>, vector<8x128xf32>
    tpu.vector_store %arg8[%c0_18, %c0_19], %16 {strides = array<i32>} : memref<8x128xf32, #tpu.memory_space<vmem>>, vector<8x128xf32>,
    %c0_20 = arith.constant 0 : index
    %c0_21 = arith.constant 0 : index
    %18 = vector.load %arg8[%c0_20, %c0_21] : memref<8x128xf32, #tpu.memory_space<vmem>>, vector<8x128xf32>
    %19 = vector.extract_strided_slice %3 {offsets = [2, 0], sizes = [8, 16], strides = [1, 1]} : vector<10x16xbf16> to vector<8x16xbf16>
    %c2 = arith.constant 2 : index
    %c0_22 = arith.constant 0 : index
    %c0_23 = arith.constant 0 : index
    %20 = vector.load %arg5[%c2, %c0_22, %c0_23] : memref<9x16x128xbf16, #tpu.memory_space<vmem>>, vector<1x16x128xbf16>
    %21 = vector.shape_cast %20 : vector<1x16x128xbf16> to vector<16x128xbf16>
    %cst_24 = arith.constant dense<0.000000e+00> : vector<8x128xf32>
    %22 = tpu.matmul %19, %21, %cst_24 {dimension_numbers = #tpu.dot_dimension_numbers<[1], [0], [0], [1], [0, 0, 1, 1], [], []>} : vector<8x16xbf16>, vector<16x128xbf16>, vector<8x128xf32> -> vector<8x128xf32>
    %23 = arith.addf %18, %22 : vector<8x128xf32>
    %c0_25 = arith.constant 0 : index
    %c0_26 = arith.constant 0 : index
    %24 = vector.load %arg8[%c0_25, %c0_26] : memref<8x128xf32, #tpu.memory_space<vmem>>, vector<8x128xf32>
    tpu.vector_store %arg8[%c0_25, %c0_26], %23 {strides = array<i32>} : memref<8x128xf32, #tpu.memory_space<vmem>>, vector<8x128xf32>,
    %c0_27 = arith.constant 0 : index
    %c0_28 = arith.constant 0 : index
    %c0_29 = arith.constant 0 : index
    %c0_30 = arith.constant 0 : index
    %25 = vector.load %arg3[%c0_27, %c0_28, %c0_29, %c0_30] : memref<1x1x10x16xbf16, #tpu.memory_space<vmem>>, vector<1x1x10x16xbf16>
    %26 = vector.shape_cast %25 : vector<1x1x10x16xbf16> to vector<10x16xbf16>
    %c0_31 = arith.constant 0 : index
    %c0_32 = arith.constant 0 : index
    %27 = vector.load %arg8[%c0_31, %c0_32] : memref<8x128xf32, #tpu.memory_space<vmem>>, vector<8x128xf32>
    %28 = vector.extract_strided_slice %26 {offsets = [0, 0], sizes = [8, 16], strides = [1, 1]} : vector<10x16xbf16> to vector<8x16xbf16>
    %c3 = arith.constant 3 : index
    %c0_33 = arith.constant 0 : index
    %c0_34 = arith.constant 0 : index
    %29 = vector.load %arg5[%c3, %c0_33, %c0_34] : memref<9x16x128xbf16, #tpu.memory_space<vmem>>, vector<1x16x128xbf16>
    %30 = vector.shape_cast %29 : vector<1x16x128xbf16> to vector<16x128xbf16>
    %cst_35 = arith.constant dense<0.000000e+00> : vector<8x128xf32>
    %31 = tpu.matmul %28, %30, %cst_35 {dimension_numbers = #tpu.dot_dimension_numbers<[1], [0], [0], [1], [0, 0, 1, 1], [], []>} : vector<8x16xbf16>, vector<16x128xbf16>, vector<8x128xf32> -> vector<8x128xf32>
    %32 = arith.addf %27, %31 : vector<8x128xf32>
    %c0_36 = arith.constant 0 : index
    %c0_37 = arith.constant 0 : index
    %33 = vector.load %arg8[%c0_36, %c0_37] : memref<8x128xf32, #tpu.memory_space<vmem>>, vector<8x128xf32>
    tpu.vector_store %arg8[%c0_36, %c0_37], %32 {strides = array<i32>} : memref<8x128xf32, #tpu.memory_space<vmem>>, vector<8x128xf32>,
    %c0_38 = arith.constant 0 : index
    %c0_39 = arith.constant 0 : index
    %34 = vector.load %arg8[%c0_38, %c0_39] : memref<8x128xf32, #tpu.memory_space<vmem>>, vector<8x128xf32>
    %35 = vector.extract_strided_slice %26 {offsets = [1, 0], sizes = [8, 16], strides = [1, 1]} : vector<10x16xbf16> to vector<8x16xbf16>
    %c4 = arith.constant 4 : index
    %c0_40 = arith.constant 0 : index
    %c0_41 = arith.constant 0 : index
    %36 = vector.load %arg5[%c4, %c0_40, %c0_41] : memref<9x16x128xbf16, #tpu.memory_space<vmem>>, vector<1x16x128xbf16>
    %37 = vector.shape_cast %36 : vector<1x16x128xbf16> to vector<16x128xbf16>
    %cst_42 = arith.constant dense<0.000000e+00> : vector<8x128xf32>
    %38 = tpu.matmul %35, %37, %cst_42 {dimension_numbers = #tpu.dot_dimension_numbers<[1], [0], [0], [1], [0, 0, 1, 1], [], []>} : vector<8x16xbf16>, vector<16x128xbf16>, vector<8x128xf32> -> vector<8x128xf32>
    %39 = arith.addf %34, %38 : vector<8x128xf32>
    %c0_43 = arith.constant 0 : index
    %c0_44 = arith.constant 0 : index
    %40 = vector.load %arg8[%c0_43, %c0_44] : memref<8x128xf32, #tpu.memory_space<vmem>>, vector<8x128xf32>
    tpu.vector_store %arg8[%c0_43, %c0_44], %39 {strides = array<i32>} : memref<8x128xf32, #tpu.memory_space<vmem>>, vector<8x128xf32>,
    %c0_45 = arith.constant 0 : index
    %c0_46 = arith.constant 0 : index
    %41 = vector.load %arg8[%c0_45, %c0_46] : memref<8x128xf32, #tpu.memory_space<vmem>>, vector<8x128xf32>
    %42 = vector.extract_strided_slice %26 {offsets = [2, 0], sizes = [8, 16], strides = [1, 1]} : vector<10x16xbf16> to vector<8x16xbf16>
    %c5 = arith.constant 5 : index
    %c0_47 = arith.constant 0 : index
    %c0_48 = arith.constant 0 : index
    %43 = vector.load %arg5[%c5, %c0_47, %c0_48] : memref<9x16x128xbf16, #tpu.memory_space<vmem>>, vector<1x16x128xbf16>
    %44 = vector.shape_cast %43 : vector<1x16x128xbf16> to vector<16x128xbf16>
    %cst_49 = arith.constant dense<0.000000e+00> : vector<8x128xf32>
    %45 = tpu.matmul %42, %44, %cst_49 {dimension_numbers = #tpu.dot_dimension_numbers<[1], [0], [0], [1], [0, 0, 1, 1], [], []>} : vector<8x16xbf16>, vector<16x128xbf16>, vector<8x128xf32> -> vector<8x128xf32>
    %46 = arith.addf %41, %45 : vector<8x128xf32>
    %c0_50 = arith.constant 0 : index
    %c0_51 = arith.constant 0 : index
    %47 = vector.load %arg8[%c0_50, %c0_51] : memref<8x128xf32, #tpu.memory_space<vmem>>, vector<8x128xf32>
    tpu.vector_store %arg8[%c0_50, %c0_51], %46 {strides = array<i32>} : memref<8x128xf32, #tpu.memory_space<vmem>>, vector<8x128xf32>,
    %c0_52 = arith.constant 0 : index
    %c0_53 = arith.constant 0 : index
    %c0_54 = arith.constant 0 : index
    %c0_55 = arith.constant 0 : index
    %48 = vector.load %arg4[%c0_52, %c0_53, %c0_54, %c0_55] : memref<1x1x10x16xbf16, #tpu.memory_space<vmem>>, vector<1x1x10x16xbf16>
    %49 = vector.shape_cast %48 : vector<1x1x10x16xbf16> to vector<10x16xbf16>
    %c0_56 = arith.constant 0 : index
    %c0_57 = arith.constant 0 : index
    %50 = vector.load %arg8[%c0_56, %c0_57] : memref<8x128xf32, #tpu.memory_space<vmem>>, vector<8x128xf32>
    %51 = vector.extract_strided_slice %49 {offsets = [0, 0], sizes = [8, 16], strides = [1, 1]} : vector<10x16xbf16> to vector<8x16xbf16>
    %c6 = arith.constant 6 : index
    %c0_58 = arith.constant 0 : index
    %c0_59 = arith.constant 0 : index
    %52 = vector.load %arg5[%c6, %c0_58, %c0_59] : memref<9x16x128xbf16, #tpu.memory_space<vmem>>, vector<1x16x128xbf16>
    %53 = vector.shape_cast %52 : vector<1x16x128xbf16> to vector<16x128xbf16>
    %cst_60 = arith.constant dense<0.000000e+00> : vector<8x128xf32>
    %54 = tpu.matmul %51, %53, %cst_60 {dimension_numbers = #tpu.dot_dimension_numbers<[1], [0], [0], [1], [0, 0, 1, 1], [], []>} : vector<8x16xbf16>, vector<16x128xbf16>, vector<8x128xf32> -> vector<8x128xf32>
    %55 = arith.addf %50, %54 : vector<8x128xf32>
    %c0_61 = arith.constant 0 : index
    %c0_62 = arith.constant 0 : index
    %56 = vector.load %arg8[%c0_61, %c0_62] : memref<8x128xf32, #tpu.memory_space<vmem>>, vector<8x128xf32>
    tpu.vector_store %arg8[%c0_61, %c0_62], %55 {strides = array<i32>} : memref<8x128xf32, #tpu.memory_space<vmem>>, vector<8x128xf32>,
    %c0_63 = arith.constant 0 : index
    %c0_64 = arith.constant 0 : index
    %57 = vector.load %arg8[%c0_63, %c0_64] : memref<8x128xf32, #tpu.memory_space<vmem>>, vector<8x128xf32>
    %58 = vector.extract_strided_slice %49 {offsets = [1, 0], sizes = [8, 16], strides = [1, 1]} : vector<10x16xbf16> to vector<8x16xbf16>
    %c7 = arith.constant 7 : index
    %c0_65 = arith.constant 0 : index
    %c0_66 = arith.constant 0 : index
    %59 = vector.load %arg5[%c7, %c0_65, %c0_66] : memref<9x16x128xbf16, #tpu.memory_space<vmem>>, vector<1x16x128xbf16>
    %60 = vector.shape_cast %59 : vector<1x16x128xbf16> to vector<16x128xbf16>
    %cst_67 = arith.constant dense<0.000000e+00> : vector<8x128xf32>
    %61 = tpu.matmul %58, %60, %cst_67 {dimension_numbers = #tpu.dot_dimension_numbers<[1], [0], [0], [1], [0, 0, 1, 1], [], []>} : vector<8x16xbf16>, vector<16x128xbf16>, vector<8x128xf32> -> vector<8x128xf32>
    %62 = arith.addf %57, %61 : vector<8x128xf32>
    %c0_68 = arith.constant 0 : index
    %c0_69 = arith.constant 0 : index
    %63 = vector.load %arg8[%c0_68, %c0_69] : memref<8x128xf32, #tpu.memory_space<vmem>>, vector<8x128xf32>
    tpu.vector_store %arg8[%c0_68, %c0_69], %62 {strides = array<i32>} : memref<8x128xf32, #tpu.memory_space<vmem>>, vector<8x128xf32>,
    %c0_70 = arith.constant 0 : index
    %c0_71 = arith.constant 0 : index
    %64 = vector.load %arg8[%c0_70, %c0_71] : memref<8x128xf32, #tpu.memory_space<vmem>>, vector<8x128xf32>
    %65 = vector.extract_strided_slice %49 {offsets = [2, 0], sizes = [8, 16], strides = [1, 1]} : vector<10x16xbf16> to vector<8x16xbf16>
    %c8 = arith.constant 8 : index
    %c0_72 = arith.constant 0 : index
    %c0_73 = arith.constant 0 : index
    %66 = vector.load %arg5[%c8, %c0_72, %c0_73] : memref<9x16x128xbf16, #tpu.memory_space<vmem>>, vector<1x16x128xbf16>
    %67 = vector.shape_cast %66 : vector<1x16x128xbf16> to vector<16x128xbf16>
    %cst_74 = arith.constant dense<0.000000e+00> : vector<8x128xf32>
    %68 = tpu.matmul %65, %67, %cst_74 {dimension_numbers = #tpu.dot_dimension_numbers<[1], [0], [0], [1], [0, 0, 1, 1], [], []>} : vector<8x16xbf16>, vector<16x128xbf16>, vector<8x128xf32> -> vector<8x128xf32>
    %69 = arith.addf %64, %68 : vector<8x128xf32>
    %c0_75 = arith.constant 0 : index
    %c0_76 = arith.constant 0 : index
    %70 = vector.load %arg8[%c0_75, %c0_76] : memref<8x128xf32, #tpu.memory_space<vmem>>, vector<8x128xf32>
    tpu.vector_store %arg8[%c0_75, %c0_76], %69 {strides = array<i32>} : memref<8x128xf32, #tpu.memory_space<vmem>>, vector<8x128xf32>,
    %c0_77 = arith.constant 0 : index
    %c0_78 = arith.constant 0 : index
    %71 = vector.load %arg8[%c0_77, %c0_78] : memref<8x128xf32, #tpu.memory_space<vmem>>, vector<8x128xf32>
    %c0_79 = arith.constant 0 : index
    %c0_80 = arith.constant 0 : index
    %72 = vector.load %arg6[%c0_79, %c0_80] : memref<1x128xf32, #tpu.memory_space<vmem>>, vector<1x128xf32>
    %73 = vector.broadcast %72 : vector<1x128xf32> to vector<8x128xf32>
    %74 = arith.addf %71, %73 : vector<8x128xf32>
    %cst_81 = arith.constant 0.000000e+00 : f32
    %75 = vector.broadcast %cst_81 : f32 to vector<8x128xf32>
    %76 = arith.maximumf %74, %75 : vector<8x128xf32>
    %77 = arith.truncf %76 : vector<8x128xf32> to vector<8x128xbf16>
    %c0_82 = arith.constant 0 : index
    %c0_83 = arith.constant 0 : index
    %c0_84 = arith.constant 0 : index
    %c0_85 = arith.constant 0 : index
    %78 = vector.load %arg7[%c0_82, %c0_83, %c0_84, %c0_85] : memref<1x1x8x128xbf16, #tpu.memory_space<vmem>>, vector<1x1x8x128xbf16>
    %79 = vector.shape_cast %78 : vector<1x1x8x128xbf16> to vector<8x128xbf16>
    %80 = vector.shape_cast %77 : vector<8x128xbf16> to vector<1x1x8x128xbf16>
    tpu.vector_store %arg7[%c0_82, %c0_83, %c0_84, %c0_85], %80 {strides = array<i32>} : memref<1x1x8x128xbf16, #tpu.memory_space<vmem>>, vector<1x1x8x128xbf16>,
    return
  }
  func.func @transform_0(%arg0: i32, %arg1: i32) -> (i32, i32, i32, i32) {
    %c0_i32 = arith.constant 0 : i32
    %c0_i32_0 = arith.constant 0 : i32
    %c0_i32_1 = arith.constant 0 : i32
    return %arg0, %arg1, %c0_i32, %c0_i32_0 : i32, i32, i32, i32
  }
  func.func @transform_1(%arg0: i32, %arg1: i32) -> (i32, i32, i32, i32) {
    %c1_i32 = arith.constant 1 : i32
    %0 = arith.addi %arg1, %c1_i32 : i32
    %c0_i32 = arith.constant 0 : i32
    %c0_i32_0 = arith.constant 0 : i32
    %c0_i32_1 = arith.constant 0 : i32
    return %arg0, %0, %c0_i32, %c0_i32_0 : i32, i32, i32, i32
  }
  func.func @transform_2(%arg0: i32, %arg1: i32) -> (i32, i32, i32, i32) {
    %c2_i32 = arith.constant 2 : i32
    %0 = arith.addi %arg1, %c2_i32 : i32
    %c0_i32 = arith.constant 0 : i32
    %c0_i32_0 = arith.constant 0 : i32
    %c0_i32_1 = arith.constant 0 : i32
    return %arg0, %0, %c0_i32, %c0_i32_0 : i32, i32, i32, i32
  }
  func.func @transform_3(%arg0: i32, %arg1: i32) -> (i32, i32, i32) {
    %c0_i32 = arith.constant 0 : i32
    %c0_i32_0 = arith.constant 0 : i32
    %c0_i32_1 = arith.constant 0 : i32
    %c0_i32_2 = arith.constant 0 : i32
    return %c0_i32, %c0_i32_0, %c0_i32_1 : i32, i32, i32
  }
  func.func @transform_4(%arg0: i32, %arg1: i32) -> (i32, i32) {
    %c0_i32 = arith.constant 0 : i32
    %c0_i32_0 = arith.constant 0 : i32
    %c0_i32_1 = arith.constant 0 : i32
    return %c0_i32, %c0_i32_0 : i32, i32
  }
  func.func @transform_5(%arg0: i32, %arg1: i32) -> (i32, i32, i32, i32) {
    %c0_i32 = arith.constant 0 : i32
    %c0_i32_0 = arith.constant 0 : i32
    %c0_i32_1 = arith.constant 0 : i32
    return %arg0, %arg1, %c0_i32, %c0_i32_0 : i32, i32, i32, i32
  }
}

module attributes {stable_mosaic.version = 11 : i64} {
  func.func @_conv_row_kernel(%arg0: i32, %arg1: i32, %arg2: memref<1x1x6x256xbf16, #tpu.memory_space<vmem>>, %arg3: memref<1x1x6x256xbf16, #tpu.memory_space<vmem>>, %arg4: memref<1x1x6x256xbf16, #tpu.memory_space<vmem>>, %arg5: memref<9x256x128xbf16, #tpu.memory_space<vmem>>, %arg6: memref<1x128xf32, #tpu.memory_space<vmem>>, %arg7: memref<1x1x4x128xbf16, #tpu.memory_space<vmem>>, %arg8: memref<4x128xf32, #tpu.memory_space<vmem>>) attributes {dimension_semantics = [#tpu.dimension_semantics<parallel>, #tpu.dimension_semantics<parallel>], iteration_bounds = array<i64: 2, 4>, scalar_prefetch = 0 : i64, scratch_operands = 1 : i64, tpu.core_type = #tpu.core_type<tc>, window_params = [{transform_indices = @transform_0, window_bounds = array<i64: 1, 1, 6, 256>}, {transform_indices = @transform_1, window_bounds = array<i64: 1, 1, 6, 256>}, {transform_indices = @transform_2, window_bounds = array<i64: 1, 1, 6, 256>}, {pipeline_mode = #tpu.pipeline_mode<synchronous>, transform_indices = @transform_3, window_bounds = array<i64: 9, 256, 128>}, {pipeline_mode = #tpu.pipeline_mode<synchronous>, transform_indices = @transform_4, window_bounds = array<i64: 1, 128>}, {transform_indices = @transform_5, window_bounds = array<i64: 1, 1, 4, 128>}]} {
    %cst = arith.constant 0.000000e+00 : f32
    %0 = vector.broadcast %cst : f32 to vector<4x128xf32>
    %c0 = arith.constant 0 : index
    %c0_0 = arith.constant 0 : index
    %1 = vector.load %arg8[%c0, %c0_0] : memref<4x128xf32, #tpu.memory_space<vmem>>, vector<4x128xf32>
    tpu.vector_store %arg8[%c0, %c0_0], %0 {strides = array<i32>} : memref<4x128xf32, #tpu.memory_space<vmem>>, vector<4x128xf32>,
    %c0_1 = arith.constant 0 : index
    %c0_2 = arith.constant 0 : index
    %c0_3 = arith.constant 0 : index
    %c0_4 = arith.constant 0 : index
    %2 = vector.load %arg2[%c0_1, %c0_2, %c0_3, %c0_4] : memref<1x1x6x256xbf16, #tpu.memory_space<vmem>>, vector<1x1x6x256xbf16>
    %3 = vector.shape_cast %2 : vector<1x1x6x256xbf16> to vector<6x256xbf16>
    %c0_5 = arith.constant 0 : index
    %c0_6 = arith.constant 0 : index
    %4 = vector.load %arg8[%c0_5, %c0_6] : memref<4x128xf32, #tpu.memory_space<vmem>>, vector<4x128xf32>
    %5 = vector.extract_strided_slice %3 {offsets = [0, 0], sizes = [4, 256], strides = [1, 1]} : vector<6x256xbf16> to vector<4x256xbf16>
    %c0_7 = arith.constant 0 : index
    %c0_8 = arith.constant 0 : index
    %c0_9 = arith.constant 0 : index
    %6 = vector.load %arg5[%c0_7, %c0_8, %c0_9] : memref<9x256x128xbf16, #tpu.memory_space<vmem>>, vector<1x256x128xbf16>
    %7 = vector.shape_cast %6 : vector<1x256x128xbf16> to vector<256x128xbf16>
    %cst_10 = arith.constant dense<0.000000e+00> : vector<4x128xf32>
    %8 = tpu.matmul %5, %7, %cst_10 {dimension_numbers = #tpu.dot_dimension_numbers<[1], [0], [0], [1], [0, 0, 1, 1], [], []>} : vector<4x256xbf16>, vector<256x128xbf16>, vector<4x128xf32> -> vector<4x128xf32>
    %9 = arith.addf %4, %8 : vector<4x128xf32>
    %c0_11 = arith.constant 0 : index
    %c0_12 = arith.constant 0 : index
    %10 = vector.load %arg8[%c0_11, %c0_12] : memref<4x128xf32, #tpu.memory_space<vmem>>, vector<4x128xf32>
    tpu.vector_store %arg8[%c0_11, %c0_12], %9 {strides = array<i32>} : memref<4x128xf32, #tpu.memory_space<vmem>>, vector<4x128xf32>,
    %c0_13 = arith.constant 0 : index
    %c0_14 = arith.constant 0 : index
    %11 = vector.load %arg8[%c0_13, %c0_14] : memref<4x128xf32, #tpu.memory_space<vmem>>, vector<4x128xf32>
    %12 = vector.extract_strided_slice %3 {offsets = [1, 0], sizes = [4, 256], strides = [1, 1]} : vector<6x256xbf16> to vector<4x256xbf16>
    %c1 = arith.constant 1 : index
    %c0_15 = arith.constant 0 : index
    %c0_16 = arith.constant 0 : index
    %13 = vector.load %arg5[%c1, %c0_15, %c0_16] : memref<9x256x128xbf16, #tpu.memory_space<vmem>>, vector<1x256x128xbf16>
    %14 = vector.shape_cast %13 : vector<1x256x128xbf16> to vector<256x128xbf16>
    %cst_17 = arith.constant dense<0.000000e+00> : vector<4x128xf32>
    %15 = tpu.matmul %12, %14, %cst_17 {dimension_numbers = #tpu.dot_dimension_numbers<[1], [0], [0], [1], [0, 0, 1, 1], [], []>} : vector<4x256xbf16>, vector<256x128xbf16>, vector<4x128xf32> -> vector<4x128xf32>
    %16 = arith.addf %11, %15 : vector<4x128xf32>
    %c0_18 = arith.constant 0 : index
    %c0_19 = arith.constant 0 : index
    %17 = vector.load %arg8[%c0_18, %c0_19] : memref<4x128xf32, #tpu.memory_space<vmem>>, vector<4x128xf32>
    tpu.vector_store %arg8[%c0_18, %c0_19], %16 {strides = array<i32>} : memref<4x128xf32, #tpu.memory_space<vmem>>, vector<4x128xf32>,
    %c0_20 = arith.constant 0 : index
    %c0_21 = arith.constant 0 : index
    %18 = vector.load %arg8[%c0_20, %c0_21] : memref<4x128xf32, #tpu.memory_space<vmem>>, vector<4x128xf32>
    %19 = vector.extract_strided_slice %3 {offsets = [2, 0], sizes = [4, 256], strides = [1, 1]} : vector<6x256xbf16> to vector<4x256xbf16>
    %c2 = arith.constant 2 : index
    %c0_22 = arith.constant 0 : index
    %c0_23 = arith.constant 0 : index
    %20 = vector.load %arg5[%c2, %c0_22, %c0_23] : memref<9x256x128xbf16, #tpu.memory_space<vmem>>, vector<1x256x128xbf16>
    %21 = vector.shape_cast %20 : vector<1x256x128xbf16> to vector<256x128xbf16>
    %cst_24 = arith.constant dense<0.000000e+00> : vector<4x128xf32>
    %22 = tpu.matmul %19, %21, %cst_24 {dimension_numbers = #tpu.dot_dimension_numbers<[1], [0], [0], [1], [0, 0, 1, 1], [], []>} : vector<4x256xbf16>, vector<256x128xbf16>, vector<4x128xf32> -> vector<4x128xf32>
    %23 = arith.addf %18, %22 : vector<4x128xf32>
    %c0_25 = arith.constant 0 : index
    %c0_26 = arith.constant 0 : index
    %24 = vector.load %arg8[%c0_25, %c0_26] : memref<4x128xf32, #tpu.memory_space<vmem>>, vector<4x128xf32>
    tpu.vector_store %arg8[%c0_25, %c0_26], %23 {strides = array<i32>} : memref<4x128xf32, #tpu.memory_space<vmem>>, vector<4x128xf32>,
    %c0_27 = arith.constant 0 : index
    %c0_28 = arith.constant 0 : index
    %c0_29 = arith.constant 0 : index
    %c0_30 = arith.constant 0 : index
    %25 = vector.load %arg3[%c0_27, %c0_28, %c0_29, %c0_30] : memref<1x1x6x256xbf16, #tpu.memory_space<vmem>>, vector<1x1x6x256xbf16>
    %26 = vector.shape_cast %25 : vector<1x1x6x256xbf16> to vector<6x256xbf16>
    %c0_31 = arith.constant 0 : index
    %c0_32 = arith.constant 0 : index
    %27 = vector.load %arg8[%c0_31, %c0_32] : memref<4x128xf32, #tpu.memory_space<vmem>>, vector<4x128xf32>
    %28 = vector.extract_strided_slice %26 {offsets = [0, 0], sizes = [4, 256], strides = [1, 1]} : vector<6x256xbf16> to vector<4x256xbf16>
    %c3 = arith.constant 3 : index
    %c0_33 = arith.constant 0 : index
    %c0_34 = arith.constant 0 : index
    %29 = vector.load %arg5[%c3, %c0_33, %c0_34] : memref<9x256x128xbf16, #tpu.memory_space<vmem>>, vector<1x256x128xbf16>
    %30 = vector.shape_cast %29 : vector<1x256x128xbf16> to vector<256x128xbf16>
    %cst_35 = arith.constant dense<0.000000e+00> : vector<4x128xf32>
    %31 = tpu.matmul %28, %30, %cst_35 {dimension_numbers = #tpu.dot_dimension_numbers<[1], [0], [0], [1], [0, 0, 1, 1], [], []>} : vector<4x256xbf16>, vector<256x128xbf16>, vector<4x128xf32> -> vector<4x128xf32>
    %32 = arith.addf %27, %31 : vector<4x128xf32>
    %c0_36 = arith.constant 0 : index
    %c0_37 = arith.constant 0 : index
    %33 = vector.load %arg8[%c0_36, %c0_37] : memref<4x128xf32, #tpu.memory_space<vmem>>, vector<4x128xf32>
    tpu.vector_store %arg8[%c0_36, %c0_37], %32 {strides = array<i32>} : memref<4x128xf32, #tpu.memory_space<vmem>>, vector<4x128xf32>,
    %c0_38 = arith.constant 0 : index
    %c0_39 = arith.constant 0 : index
    %34 = vector.load %arg8[%c0_38, %c0_39] : memref<4x128xf32, #tpu.memory_space<vmem>>, vector<4x128xf32>
    %35 = vector.extract_strided_slice %26 {offsets = [1, 0], sizes = [4, 256], strides = [1, 1]} : vector<6x256xbf16> to vector<4x256xbf16>
    %c4 = arith.constant 4 : index
    %c0_40 = arith.constant 0 : index
    %c0_41 = arith.constant 0 : index
    %36 = vector.load %arg5[%c4, %c0_40, %c0_41] : memref<9x256x128xbf16, #tpu.memory_space<vmem>>, vector<1x256x128xbf16>
    %37 = vector.shape_cast %36 : vector<1x256x128xbf16> to vector<256x128xbf16>
    %cst_42 = arith.constant dense<0.000000e+00> : vector<4x128xf32>
    %38 = tpu.matmul %35, %37, %cst_42 {dimension_numbers = #tpu.dot_dimension_numbers<[1], [0], [0], [1], [0, 0, 1, 1], [], []>} : vector<4x256xbf16>, vector<256x128xbf16>, vector<4x128xf32> -> vector<4x128xf32>
    %39 = arith.addf %34, %38 : vector<4x128xf32>
    %c0_43 = arith.constant 0 : index
    %c0_44 = arith.constant 0 : index
    %40 = vector.load %arg8[%c0_43, %c0_44] : memref<4x128xf32, #tpu.memory_space<vmem>>, vector<4x128xf32>
    tpu.vector_store %arg8[%c0_43, %c0_44], %39 {strides = array<i32>} : memref<4x128xf32, #tpu.memory_space<vmem>>, vector<4x128xf32>,
    %c0_45 = arith.constant 0 : index
    %c0_46 = arith.constant 0 : index
    %41 = vector.load %arg8[%c0_45, %c0_46] : memref<4x128xf32, #tpu.memory_space<vmem>>, vector<4x128xf32>
    %42 = vector.extract_strided_slice %26 {offsets = [2, 0], sizes = [4, 256], strides = [1, 1]} : vector<6x256xbf16> to vector<4x256xbf16>
    %c5 = arith.constant 5 : index
    %c0_47 = arith.constant 0 : index
    %c0_48 = arith.constant 0 : index
    %43 = vector.load %arg5[%c5, %c0_47, %c0_48] : memref<9x256x128xbf16, #tpu.memory_space<vmem>>, vector<1x256x128xbf16>
    %44 = vector.shape_cast %43 : vector<1x256x128xbf16> to vector<256x128xbf16>
    %cst_49 = arith.constant dense<0.000000e+00> : vector<4x128xf32>
    %45 = tpu.matmul %42, %44, %cst_49 {dimension_numbers = #tpu.dot_dimension_numbers<[1], [0], [0], [1], [0, 0, 1, 1], [], []>} : vector<4x256xbf16>, vector<256x128xbf16>, vector<4x128xf32> -> vector<4x128xf32>
    %46 = arith.addf %41, %45 : vector<4x128xf32>
    %c0_50 = arith.constant 0 : index
    %c0_51 = arith.constant 0 : index
    %47 = vector.load %arg8[%c0_50, %c0_51] : memref<4x128xf32, #tpu.memory_space<vmem>>, vector<4x128xf32>
    tpu.vector_store %arg8[%c0_50, %c0_51], %46 {strides = array<i32>} : memref<4x128xf32, #tpu.memory_space<vmem>>, vector<4x128xf32>,
    %c0_52 = arith.constant 0 : index
    %c0_53 = arith.constant 0 : index
    %c0_54 = arith.constant 0 : index
    %c0_55 = arith.constant 0 : index
    %48 = vector.load %arg4[%c0_52, %c0_53, %c0_54, %c0_55] : memref<1x1x6x256xbf16, #tpu.memory_space<vmem>>, vector<1x1x6x256xbf16>
    %49 = vector.shape_cast %48 : vector<1x1x6x256xbf16> to vector<6x256xbf16>
    %c0_56 = arith.constant 0 : index
    %c0_57 = arith.constant 0 : index
    %50 = vector.load %arg8[%c0_56, %c0_57] : memref<4x128xf32, #tpu.memory_space<vmem>>, vector<4x128xf32>
    %51 = vector.extract_strided_slice %49 {offsets = [0, 0], sizes = [4, 256], strides = [1, 1]} : vector<6x256xbf16> to vector<4x256xbf16>
    %c6 = arith.constant 6 : index
    %c0_58 = arith.constant 0 : index
    %c0_59 = arith.constant 0 : index
    %52 = vector.load %arg5[%c6, %c0_58, %c0_59] : memref<9x256x128xbf16, #tpu.memory_space<vmem>>, vector<1x256x128xbf16>
    %53 = vector.shape_cast %52 : vector<1x256x128xbf16> to vector<256x128xbf16>
    %cst_60 = arith.constant dense<0.000000e+00> : vector<4x128xf32>
    %54 = tpu.matmul %51, %53, %cst_60 {dimension_numbers = #tpu.dot_dimension_numbers<[1], [0], [0], [1], [0, 0, 1, 1], [], []>} : vector<4x256xbf16>, vector<256x128xbf16>, vector<4x128xf32> -> vector<4x128xf32>
    %55 = arith.addf %50, %54 : vector<4x128xf32>
    %c0_61 = arith.constant 0 : index
    %c0_62 = arith.constant 0 : index
    %56 = vector.load %arg8[%c0_61, %c0_62] : memref<4x128xf32, #tpu.memory_space<vmem>>, vector<4x128xf32>
    tpu.vector_store %arg8[%c0_61, %c0_62], %55 {strides = array<i32>} : memref<4x128xf32, #tpu.memory_space<vmem>>, vector<4x128xf32>,
    %c0_63 = arith.constant 0 : index
    %c0_64 = arith.constant 0 : index
    %57 = vector.load %arg8[%c0_63, %c0_64] : memref<4x128xf32, #tpu.memory_space<vmem>>, vector<4x128xf32>
    %58 = vector.extract_strided_slice %49 {offsets = [1, 0], sizes = [4, 256], strides = [1, 1]} : vector<6x256xbf16> to vector<4x256xbf16>
    %c7 = arith.constant 7 : index
    %c0_65 = arith.constant 0 : index
    %c0_66 = arith.constant 0 : index
    %59 = vector.load %arg5[%c7, %c0_65, %c0_66] : memref<9x256x128xbf16, #tpu.memory_space<vmem>>, vector<1x256x128xbf16>
    %60 = vector.shape_cast %59 : vector<1x256x128xbf16> to vector<256x128xbf16>
    %cst_67 = arith.constant dense<0.000000e+00> : vector<4x128xf32>
    %61 = tpu.matmul %58, %60, %cst_67 {dimension_numbers = #tpu.dot_dimension_numbers<[1], [0], [0], [1], [0, 0, 1, 1], [], []>} : vector<4x256xbf16>, vector<256x128xbf16>, vector<4x128xf32> -> vector<4x128xf32>
    %62 = arith.addf %57, %61 : vector<4x128xf32>
    %c0_68 = arith.constant 0 : index
    %c0_69 = arith.constant 0 : index
    %63 = vector.load %arg8[%c0_68, %c0_69] : memref<4x128xf32, #tpu.memory_space<vmem>>, vector<4x128xf32>
    tpu.vector_store %arg8[%c0_68, %c0_69], %62 {strides = array<i32>} : memref<4x128xf32, #tpu.memory_space<vmem>>, vector<4x128xf32>,
    %c0_70 = arith.constant 0 : index
    %c0_71 = arith.constant 0 : index
    %64 = vector.load %arg8[%c0_70, %c0_71] : memref<4x128xf32, #tpu.memory_space<vmem>>, vector<4x128xf32>
    %65 = vector.extract_strided_slice %49 {offsets = [2, 0], sizes = [4, 256], strides = [1, 1]} : vector<6x256xbf16> to vector<4x256xbf16>
    %c8 = arith.constant 8 : index
    %c0_72 = arith.constant 0 : index
    %c0_73 = arith.constant 0 : index
    %66 = vector.load %arg5[%c8, %c0_72, %c0_73] : memref<9x256x128xbf16, #tpu.memory_space<vmem>>, vector<1x256x128xbf16>
    %67 = vector.shape_cast %66 : vector<1x256x128xbf16> to vector<256x128xbf16>
    %cst_74 = arith.constant dense<0.000000e+00> : vector<4x128xf32>
    %68 = tpu.matmul %65, %67, %cst_74 {dimension_numbers = #tpu.dot_dimension_numbers<[1], [0], [0], [1], [0, 0, 1, 1], [], []>} : vector<4x256xbf16>, vector<256x128xbf16>, vector<4x128xf32> -> vector<4x128xf32>
    %69 = arith.addf %64, %68 : vector<4x128xf32>
    %c0_75 = arith.constant 0 : index
    %c0_76 = arith.constant 0 : index
    %70 = vector.load %arg8[%c0_75, %c0_76] : memref<4x128xf32, #tpu.memory_space<vmem>>, vector<4x128xf32>
    tpu.vector_store %arg8[%c0_75, %c0_76], %69 {strides = array<i32>} : memref<4x128xf32, #tpu.memory_space<vmem>>, vector<4x128xf32>,
    %c0_77 = arith.constant 0 : index
    %c0_78 = arith.constant 0 : index
    %71 = vector.load %arg8[%c0_77, %c0_78] : memref<4x128xf32, #tpu.memory_space<vmem>>, vector<4x128xf32>
    %c0_79 = arith.constant 0 : index
    %c0_80 = arith.constant 0 : index
    %72 = vector.load %arg6[%c0_79, %c0_80] : memref<1x128xf32, #tpu.memory_space<vmem>>, vector<1x128xf32>
    %73 = vector.broadcast %72 : vector<1x128xf32> to vector<4x128xf32>
    %74 = arith.addf %71, %73 : vector<4x128xf32>
    %cst_81 = arith.constant 0.000000e+00 : f32
    %75 = vector.broadcast %cst_81 : f32 to vector<4x128xf32>
    %76 = arith.maximumf %74, %75 : vector<4x128xf32>
    %77 = arith.truncf %76 : vector<4x128xf32> to vector<4x128xbf16>
    %c0_82 = arith.constant 0 : index
    %c0_83 = arith.constant 0 : index
    %c0_84 = arith.constant 0 : index
    %c0_85 = arith.constant 0 : index
    %78 = vector.load %arg7[%c0_82, %c0_83, %c0_84, %c0_85] : memref<1x1x4x128xbf16, #tpu.memory_space<vmem>>, vector<1x1x4x128xbf16>
    %79 = vector.shape_cast %78 : vector<1x1x4x128xbf16> to vector<4x128xbf16>
    %80 = vector.shape_cast %77 : vector<4x128xbf16> to vector<1x1x4x128xbf16>
    tpu.vector_store %arg7[%c0_82, %c0_83, %c0_84, %c0_85], %80 {strides = array<i32>} : memref<1x1x4x128xbf16, #tpu.memory_space<vmem>>, vector<1x1x4x128xbf16>,
    return
  }
  func.func @transform_0(%arg0: i32, %arg1: i32) -> (i32, i32, i32, i32) {
    %c0_i32 = arith.constant 0 : i32
    %c0_i32_0 = arith.constant 0 : i32
    %c0_i32_1 = arith.constant 0 : i32
    return %arg0, %arg1, %c0_i32, %c0_i32_0 : i32, i32, i32, i32
  }
  func.func @transform_1(%arg0: i32, %arg1: i32) -> (i32, i32, i32, i32) {
    %c1_i32 = arith.constant 1 : i32
    %0 = arith.addi %arg1, %c1_i32 : i32
    %c0_i32 = arith.constant 0 : i32
    %c0_i32_0 = arith.constant 0 : i32
    %c0_i32_1 = arith.constant 0 : i32
    return %arg0, %0, %c0_i32, %c0_i32_0 : i32, i32, i32, i32
  }
  func.func @transform_2(%arg0: i32, %arg1: i32) -> (i32, i32, i32, i32) {
    %c2_i32 = arith.constant 2 : i32
    %0 = arith.addi %arg1, %c2_i32 : i32
    %c0_i32 = arith.constant 0 : i32
    %c0_i32_0 = arith.constant 0 : i32
    %c0_i32_1 = arith.constant 0 : i32
    return %arg0, %0, %c0_i32, %c0_i32_0 : i32, i32, i32, i32
  }
  func.func @transform_3(%arg0: i32, %arg1: i32) -> (i32, i32, i32) {
    %c0_i32 = arith.constant 0 : i32
    %c0_i32_0 = arith.constant 0 : i32
    %c0_i32_1 = arith.constant 0 : i32
    %c0_i32_2 = arith.constant 0 : i32
    return %c0_i32, %c0_i32_0, %c0_i32_1 : i32, i32, i32
  }
  func.func @transform_4(%arg0: i32, %arg1: i32) -> (i32, i32) {
    %c0_i32 = arith.constant 0 : i32
    %c0_i32_0 = arith.constant 0 : i32
    %c0_i32_1 = arith.constant 0 : i32
    return %c0_i32, %c0_i32_0 : i32, i32
  }
  func.func @transform_5(%arg0: i32, %arg1: i32) -> (i32, i32, i32, i32) {
    %c0_i32 = arith.constant 0 : i32
    %c0_i32_0 = arith.constant 0 : i32
    %c0_i32_1 = arith.constant 0 : i32
    return %arg0, %arg1, %c0_i32, %c0_i32_0 : i32, i32, i32, i32
  }
}

module attributes {stable_mosaic.version = 11 : i64} {
  func.func @_conv_row_kernel(%arg0: i32, %arg1: i32, %arg2: memref<1x1x4x512xbf16, #tpu.memory_space<vmem>>, %arg3: memref<1x1x4x512xbf16, #tpu.memory_space<vmem>>, %arg4: memref<1x1x4x512xbf16, #tpu.memory_space<vmem>>, %arg5: memref<9x512x256xbf16, #tpu.memory_space<vmem>>, %arg6: memref<1x256xf32, #tpu.memory_space<vmem>>, %arg7: memref<1x1x2x256xbf16, #tpu.memory_space<vmem>>, %arg8: memref<2x256xf32, #tpu.memory_space<vmem>>) attributes {dimension_semantics = [#tpu.dimension_semantics<parallel>, #tpu.dimension_semantics<parallel>], iteration_bounds = array<i64: 2, 2>, scalar_prefetch = 0 : i64, scratch_operands = 1 : i64, tpu.core_type = #tpu.core_type<tc>, window_params = [{transform_indices = @transform_0, window_bounds = array<i64: 1, 1, 4, 512>}, {transform_indices = @transform_1, window_bounds = array<i64: 1, 1, 4, 512>}, {transform_indices = @transform_2, window_bounds = array<i64: 1, 1, 4, 512>}, {pipeline_mode = #tpu.pipeline_mode<synchronous>, transform_indices = @transform_3, window_bounds = array<i64: 9, 512, 256>}, {pipeline_mode = #tpu.pipeline_mode<synchronous>, transform_indices = @transform_4, window_bounds = array<i64: 1, 256>}, {transform_indices = @transform_5, window_bounds = array<i64: 1, 1, 2, 256>}]} {
    %cst = arith.constant 0.000000e+00 : f32
    %0 = vector.broadcast %cst : f32 to vector<2x256xf32>
    %c0 = arith.constant 0 : index
    %c0_0 = arith.constant 0 : index
    %1 = vector.load %arg8[%c0, %c0_0] : memref<2x256xf32, #tpu.memory_space<vmem>>, vector<2x256xf32>
    tpu.vector_store %arg8[%c0, %c0_0], %0 {strides = array<i32>} : memref<2x256xf32, #tpu.memory_space<vmem>>, vector<2x256xf32>,
    %c0_1 = arith.constant 0 : index
    %c0_2 = arith.constant 0 : index
    %c0_3 = arith.constant 0 : index
    %c0_4 = arith.constant 0 : index
    %2 = vector.load %arg2[%c0_1, %c0_2, %c0_3, %c0_4] : memref<1x1x4x512xbf16, #tpu.memory_space<vmem>>, vector<1x1x4x512xbf16>
    %3 = vector.shape_cast %2 : vector<1x1x4x512xbf16> to vector<4x512xbf16>
    %c0_5 = arith.constant 0 : index
    %c0_6 = arith.constant 0 : index
    %4 = vector.load %arg8[%c0_5, %c0_6] : memref<2x256xf32, #tpu.memory_space<vmem>>, vector<2x256xf32>
    %5 = vector.extract_strided_slice %3 {offsets = [0, 0], sizes = [2, 512], strides = [1, 1]} : vector<4x512xbf16> to vector<2x512xbf16>
    %c0_7 = arith.constant 0 : index
    %c0_8 = arith.constant 0 : index
    %c0_9 = arith.constant 0 : index
    %6 = vector.load %arg5[%c0_7, %c0_8, %c0_9] : memref<9x512x256xbf16, #tpu.memory_space<vmem>>, vector<1x512x256xbf16>
    %7 = vector.shape_cast %6 : vector<1x512x256xbf16> to vector<512x256xbf16>
    %cst_10 = arith.constant dense<0.000000e+00> : vector<2x256xf32>
    %8 = tpu.matmul %5, %7, %cst_10 {dimension_numbers = #tpu.dot_dimension_numbers<[1], [0], [0], [1], [0, 0, 1, 1], [], []>} : vector<2x512xbf16>, vector<512x256xbf16>, vector<2x256xf32> -> vector<2x256xf32>
    %9 = arith.addf %4, %8 : vector<2x256xf32>
    %c0_11 = arith.constant 0 : index
    %c0_12 = arith.constant 0 : index
    %10 = vector.load %arg8[%c0_11, %c0_12] : memref<2x256xf32, #tpu.memory_space<vmem>>, vector<2x256xf32>
    tpu.vector_store %arg8[%c0_11, %c0_12], %9 {strides = array<i32>} : memref<2x256xf32, #tpu.memory_space<vmem>>, vector<2x256xf32>,
    %c0_13 = arith.constant 0 : index
    %c0_14 = arith.constant 0 : index
    %11 = vector.load %arg8[%c0_13, %c0_14] : memref<2x256xf32, #tpu.memory_space<vmem>>, vector<2x256xf32>
    %12 = vector.extract_strided_slice %3 {offsets = [1, 0], sizes = [2, 512], strides = [1, 1]} : vector<4x512xbf16> to vector<2x512xbf16>
    %c1 = arith.constant 1 : index
    %c0_15 = arith.constant 0 : index
    %c0_16 = arith.constant 0 : index
    %13 = vector.load %arg5[%c1, %c0_15, %c0_16] : memref<9x512x256xbf16, #tpu.memory_space<vmem>>, vector<1x512x256xbf16>
    %14 = vector.shape_cast %13 : vector<1x512x256xbf16> to vector<512x256xbf16>
    %cst_17 = arith.constant dense<0.000000e+00> : vector<2x256xf32>
    %15 = tpu.matmul %12, %14, %cst_17 {dimension_numbers = #tpu.dot_dimension_numbers<[1], [0], [0], [1], [0, 0, 1, 1], [], []>} : vector<2x512xbf16>, vector<512x256xbf16>, vector<2x256xf32> -> vector<2x256xf32>
    %16 = arith.addf %11, %15 : vector<2x256xf32>
    %c0_18 = arith.constant 0 : index
    %c0_19 = arith.constant 0 : index
    %17 = vector.load %arg8[%c0_18, %c0_19] : memref<2x256xf32, #tpu.memory_space<vmem>>, vector<2x256xf32>
    tpu.vector_store %arg8[%c0_18, %c0_19], %16 {strides = array<i32>} : memref<2x256xf32, #tpu.memory_space<vmem>>, vector<2x256xf32>,
    %c0_20 = arith.constant 0 : index
    %c0_21 = arith.constant 0 : index
    %18 = vector.load %arg8[%c0_20, %c0_21] : memref<2x256xf32, #tpu.memory_space<vmem>>, vector<2x256xf32>
    %19 = vector.extract_strided_slice %3 {offsets = [2, 0], sizes = [2, 512], strides = [1, 1]} : vector<4x512xbf16> to vector<2x512xbf16>
    %c2 = arith.constant 2 : index
    %c0_22 = arith.constant 0 : index
    %c0_23 = arith.constant 0 : index
    %20 = vector.load %arg5[%c2, %c0_22, %c0_23] : memref<9x512x256xbf16, #tpu.memory_space<vmem>>, vector<1x512x256xbf16>
    %21 = vector.shape_cast %20 : vector<1x512x256xbf16> to vector<512x256xbf16>
    %cst_24 = arith.constant dense<0.000000e+00> : vector<2x256xf32>
    %22 = tpu.matmul %19, %21, %cst_24 {dimension_numbers = #tpu.dot_dimension_numbers<[1], [0], [0], [1], [0, 0, 1, 1], [], []>} : vector<2x512xbf16>, vector<512x256xbf16>, vector<2x256xf32> -> vector<2x256xf32>
    %23 = arith.addf %18, %22 : vector<2x256xf32>
    %c0_25 = arith.constant 0 : index
    %c0_26 = arith.constant 0 : index
    %24 = vector.load %arg8[%c0_25, %c0_26] : memref<2x256xf32, #tpu.memory_space<vmem>>, vector<2x256xf32>
    tpu.vector_store %arg8[%c0_25, %c0_26], %23 {strides = array<i32>} : memref<2x256xf32, #tpu.memory_space<vmem>>, vector<2x256xf32>,
    %c0_27 = arith.constant 0 : index
    %c0_28 = arith.constant 0 : index
    %c0_29 = arith.constant 0 : index
    %c0_30 = arith.constant 0 : index
    %25 = vector.load %arg3[%c0_27, %c0_28, %c0_29, %c0_30] : memref<1x1x4x512xbf16, #tpu.memory_space<vmem>>, vector<1x1x4x512xbf16>
    %26 = vector.shape_cast %25 : vector<1x1x4x512xbf16> to vector<4x512xbf16>
    %c0_31 = arith.constant 0 : index
    %c0_32 = arith.constant 0 : index
    %27 = vector.load %arg8[%c0_31, %c0_32] : memref<2x256xf32, #tpu.memory_space<vmem>>, vector<2x256xf32>
    %28 = vector.extract_strided_slice %26 {offsets = [0, 0], sizes = [2, 512], strides = [1, 1]} : vector<4x512xbf16> to vector<2x512xbf16>
    %c3 = arith.constant 3 : index
    %c0_33 = arith.constant 0 : index
    %c0_34 = arith.constant 0 : index
    %29 = vector.load %arg5[%c3, %c0_33, %c0_34] : memref<9x512x256xbf16, #tpu.memory_space<vmem>>, vector<1x512x256xbf16>
    %30 = vector.shape_cast %29 : vector<1x512x256xbf16> to vector<512x256xbf16>
    %cst_35 = arith.constant dense<0.000000e+00> : vector<2x256xf32>
    %31 = tpu.matmul %28, %30, %cst_35 {dimension_numbers = #tpu.dot_dimension_numbers<[1], [0], [0], [1], [0, 0, 1, 1], [], []>} : vector<2x512xbf16>, vector<512x256xbf16>, vector<2x256xf32> -> vector<2x256xf32>
    %32 = arith.addf %27, %31 : vector<2x256xf32>
    %c0_36 = arith.constant 0 : index
    %c0_37 = arith.constant 0 : index
    %33 = vector.load %arg8[%c0_36, %c0_37] : memref<2x256xf32, #tpu.memory_space<vmem>>, vector<2x256xf32>
    tpu.vector_store %arg8[%c0_36, %c0_37], %32 {strides = array<i32>} : memref<2x256xf32, #tpu.memory_space<vmem>>, vector<2x256xf32>,
    %c0_38 = arith.constant 0 : index
    %c0_39 = arith.constant 0 : index
    %34 = vector.load %arg8[%c0_38, %c0_39] : memref<2x256xf32, #tpu.memory_space<vmem>>, vector<2x256xf32>
    %35 = vector.extract_strided_slice %26 {offsets = [1, 0], sizes = [2, 512], strides = [1, 1]} : vector<4x512xbf16> to vector<2x512xbf16>
    %c4 = arith.constant 4 : index
    %c0_40 = arith.constant 0 : index
    %c0_41 = arith.constant 0 : index
    %36 = vector.load %arg5[%c4, %c0_40, %c0_41] : memref<9x512x256xbf16, #tpu.memory_space<vmem>>, vector<1x512x256xbf16>
    %37 = vector.shape_cast %36 : vector<1x512x256xbf16> to vector<512x256xbf16>
    %cst_42 = arith.constant dense<0.000000e+00> : vector<2x256xf32>
    %38 = tpu.matmul %35, %37, %cst_42 {dimension_numbers = #tpu.dot_dimension_numbers<[1], [0], [0], [1], [0, 0, 1, 1], [], []>} : vector<2x512xbf16>, vector<512x256xbf16>, vector<2x256xf32> -> vector<2x256xf32>
    %39 = arith.addf %34, %38 : vector<2x256xf32>
    %c0_43 = arith.constant 0 : index
    %c0_44 = arith.constant 0 : index
    %40 = vector.load %arg8[%c0_43, %c0_44] : memref<2x256xf32, #tpu.memory_space<vmem>>, vector<2x256xf32>
    tpu.vector_store %arg8[%c0_43, %c0_44], %39 {strides = array<i32>} : memref<2x256xf32, #tpu.memory_space<vmem>>, vector<2x256xf32>,
    %c0_45 = arith.constant 0 : index
    %c0_46 = arith.constant 0 : index
    %41 = vector.load %arg8[%c0_45, %c0_46] : memref<2x256xf32, #tpu.memory_space<vmem>>, vector<2x256xf32>
    %42 = vector.extract_strided_slice %26 {offsets = [2, 0], sizes = [2, 512], strides = [1, 1]} : vector<4x512xbf16> to vector<2x512xbf16>
    %c5 = arith.constant 5 : index
    %c0_47 = arith.constant 0 : index
    %c0_48 = arith.constant 0 : index
    %43 = vector.load %arg5[%c5, %c0_47, %c0_48] : memref<9x512x256xbf16, #tpu.memory_space<vmem>>, vector<1x512x256xbf16>
    %44 = vector.shape_cast %43 : vector<1x512x256xbf16> to vector<512x256xbf16>
    %cst_49 = arith.constant dense<0.000000e+00> : vector<2x256xf32>
    %45 = tpu.matmul %42, %44, %cst_49 {dimension_numbers = #tpu.dot_dimension_numbers<[1], [0], [0], [1], [0, 0, 1, 1], [], []>} : vector<2x512xbf16>, vector<512x256xbf16>, vector<2x256xf32> -> vector<2x256xf32>
    %46 = arith.addf %41, %45 : vector<2x256xf32>
    %c0_50 = arith.constant 0 : index
    %c0_51 = arith.constant 0 : index
    %47 = vector.load %arg8[%c0_50, %c0_51] : memref<2x256xf32, #tpu.memory_space<vmem>>, vector<2x256xf32>
    tpu.vector_store %arg8[%c0_50, %c0_51], %46 {strides = array<i32>} : memref<2x256xf32, #tpu.memory_space<vmem>>, vector<2x256xf32>,
    %c0_52 = arith.constant 0 : index
    %c0_53 = arith.constant 0 : index
    %c0_54 = arith.constant 0 : index
    %c0_55 = arith.constant 0 : index
    %48 = vector.load %arg4[%c0_52, %c0_53, %c0_54, %c0_55] : memref<1x1x4x512xbf16, #tpu.memory_space<vmem>>, vector<1x1x4x512xbf16>
    %49 = vector.shape_cast %48 : vector<1x1x4x512xbf16> to vector<4x512xbf16>
    %c0_56 = arith.constant 0 : index
    %c0_57 = arith.constant 0 : index
    %50 = vector.load %arg8[%c0_56, %c0_57] : memref<2x256xf32, #tpu.memory_space<vmem>>, vector<2x256xf32>
    %51 = vector.extract_strided_slice %49 {offsets = [0, 0], sizes = [2, 512], strides = [1, 1]} : vector<4x512xbf16> to vector<2x512xbf16>
    %c6 = arith.constant 6 : index
    %c0_58 = arith.constant 0 : index
    %c0_59 = arith.constant 0 : index
    %52 = vector.load %arg5[%c6, %c0_58, %c0_59] : memref<9x512x256xbf16, #tpu.memory_space<vmem>>, vector<1x512x256xbf16>
    %53 = vector.shape_cast %52 : vector<1x512x256xbf16> to vector<512x256xbf16>
    %cst_60 = arith.constant dense<0.000000e+00> : vector<2x256xf32>
    %54 = tpu.matmul %51, %53, %cst_60 {dimension_numbers = #tpu.dot_dimension_numbers<[1], [0], [0], [1], [0, 0, 1, 1], [], []>} : vector<2x512xbf16>, vector<512x256xbf16>, vector<2x256xf32> -> vector<2x256xf32>
    %55 = arith.addf %50, %54 : vector<2x256xf32>
    %c0_61 = arith.constant 0 : index
    %c0_62 = arith.constant 0 : index
    %56 = vector.load %arg8[%c0_61, %c0_62] : memref<2x256xf32, #tpu.memory_space<vmem>>, vector<2x256xf32>
    tpu.vector_store %arg8[%c0_61, %c0_62], %55 {strides = array<i32>} : memref<2x256xf32, #tpu.memory_space<vmem>>, vector<2x256xf32>,
    %c0_63 = arith.constant 0 : index
    %c0_64 = arith.constant 0 : index
    %57 = vector.load %arg8[%c0_63, %c0_64] : memref<2x256xf32, #tpu.memory_space<vmem>>, vector<2x256xf32>
    %58 = vector.extract_strided_slice %49 {offsets = [1, 0], sizes = [2, 512], strides = [1, 1]} : vector<4x512xbf16> to vector<2x512xbf16>
    %c7 = arith.constant 7 : index
    %c0_65 = arith.constant 0 : index
    %c0_66 = arith.constant 0 : index
    %59 = vector.load %arg5[%c7, %c0_65, %c0_66] : memref<9x512x256xbf16, #tpu.memory_space<vmem>>, vector<1x512x256xbf16>
    %60 = vector.shape_cast %59 : vector<1x512x256xbf16> to vector<512x256xbf16>
    %cst_67 = arith.constant dense<0.000000e+00> : vector<2x256xf32>
    %61 = tpu.matmul %58, %60, %cst_67 {dimension_numbers = #tpu.dot_dimension_numbers<[1], [0], [0], [1], [0, 0, 1, 1], [], []>} : vector<2x512xbf16>, vector<512x256xbf16>, vector<2x256xf32> -> vector<2x256xf32>
    %62 = arith.addf %57, %61 : vector<2x256xf32>
    %c0_68 = arith.constant 0 : index
    %c0_69 = arith.constant 0 : index
    %63 = vector.load %arg8[%c0_68, %c0_69] : memref<2x256xf32, #tpu.memory_space<vmem>>, vector<2x256xf32>
    tpu.vector_store %arg8[%c0_68, %c0_69], %62 {strides = array<i32>} : memref<2x256xf32, #tpu.memory_space<vmem>>, vector<2x256xf32>,
    %c0_70 = arith.constant 0 : index
    %c0_71 = arith.constant 0 : index
    %64 = vector.load %arg8[%c0_70, %c0_71] : memref<2x256xf32, #tpu.memory_space<vmem>>, vector<2x256xf32>
    %65 = vector.extract_strided_slice %49 {offsets = [2, 0], sizes = [2, 512], strides = [1, 1]} : vector<4x512xbf16> to vector<2x512xbf16>
    %c8 = arith.constant 8 : index
    %c0_72 = arith.constant 0 : index
    %c0_73 = arith.constant 0 : index
    %66 = vector.load %arg5[%c8, %c0_72, %c0_73] : memref<9x512x256xbf16, #tpu.memory_space<vmem>>, vector<1x512x256xbf16>
    %67 = vector.shape_cast %66 : vector<1x512x256xbf16> to vector<512x256xbf16>
    %cst_74 = arith.constant dense<0.000000e+00> : vector<2x256xf32>
    %68 = tpu.matmul %65, %67, %cst_74 {dimension_numbers = #tpu.dot_dimension_numbers<[1], [0], [0], [1], [0, 0, 1, 1], [], []>} : vector<2x512xbf16>, vector<512x256xbf16>, vector<2x256xf32> -> vector<2x256xf32>
    %69 = arith.addf %64, %68 : vector<2x256xf32>
    %c0_75 = arith.constant 0 : index
    %c0_76 = arith.constant 0 : index
    %70 = vector.load %arg8[%c0_75, %c0_76] : memref<2x256xf32, #tpu.memory_space<vmem>>, vector<2x256xf32>
    tpu.vector_store %arg8[%c0_75, %c0_76], %69 {strides = array<i32>} : memref<2x256xf32, #tpu.memory_space<vmem>>, vector<2x256xf32>,
    %c0_77 = arith.constant 0 : index
    %c0_78 = arith.constant 0 : index
    %71 = vector.load %arg8[%c0_77, %c0_78] : memref<2x256xf32, #tpu.memory_space<vmem>>, vector<2x256xf32>
    %c0_79 = arith.constant 0 : index
    %c0_80 = arith.constant 0 : index
    %72 = vector.load %arg6[%c0_79, %c0_80] : memref<1x256xf32, #tpu.memory_space<vmem>>, vector<1x256xf32>
    %73 = vector.broadcast %72 : vector<1x256xf32> to vector<2x256xf32>
    %74 = arith.addf %71, %73 : vector<2x256xf32>
    %cst_81 = arith.constant 0.000000e+00 : f32
    %75 = vector.broadcast %cst_81 : f32 to vector<2x256xf32>
    %76 = arith.maximumf %74, %75 : vector<2x256xf32>
    %77 = arith.truncf %76 : vector<2x256xf32> to vector<2x256xbf16>
    %c0_82 = arith.constant 0 : index
    %c0_83 = arith.constant 0 : index
    %c0_84 = arith.constant 0 : index
    %c0_85 = arith.constant 0 : index
    %78 = vector.load %arg7[%c0_82, %c0_83, %c0_84, %c0_85] : memref<1x1x2x256xbf16, #tpu.memory_space<vmem>>, vector<1x1x2x256xbf16>
    %79 = vector.shape_cast %78 : vector<1x1x2x256xbf16> to vector<2x256xbf16>
    %80 = vector.shape_cast %77 : vector<2x256xbf16> to vector<1x1x2x256xbf16>
    tpu.vector_store %arg7[%c0_82, %c0_83, %c0_84, %c0_85], %80 {strides = array<i32>} : memref<1x1x2x256xbf16, #tpu.memory_space<vmem>>, vector<1x1x2x256xbf16>,
    return
  }
  func.func @transform_0(%arg0: i32, %arg1: i32) -> (i32, i32, i32, i32) {
    %c0_i32 = arith.constant 0 : i32
    %c0_i32_0 = arith.constant 0 : i32
    %c0_i32_1 = arith.constant 0 : i32
    return %arg0, %arg1, %c0_i32, %c0_i32_0 : i32, i32, i32, i32
  }
  func.func @transform_1(%arg0: i32, %arg1: i32) -> (i32, i32, i32, i32) {
    %c1_i32 = arith.constant 1 : i32
    %0 = arith.addi %arg1, %c1_i32 : i32
    %c0_i32 = arith.constant 0 : i32
    %c0_i32_0 = arith.constant 0 : i32
    %c0_i32_1 = arith.constant 0 : i32
    return %arg0, %0, %c0_i32, %c0_i32_0 : i32, i32, i32, i32
  }
  func.func @transform_2(%arg0: i32, %arg1: i32) -> (i32, i32, i32, i32) {
    %c2_i32 = arith.constant 2 : i32
    %0 = arith.addi %arg1, %c2_i32 : i32
    %c0_i32 = arith.constant 0 : i32
    %c0_i32_0 = arith.constant 0 : i32
    %c0_i32_1 = arith.constant 0 : i32
    return %arg0, %0, %c0_i32, %c0_i32_0 : i32, i32, i32, i32
  }
  func.func @transform_3(%arg0: i32, %arg1: i32) -> (i32, i32, i32) {
    %c0_i32 = arith.constant 0 : i32
    %c0_i32_0 = arith.constant 0 : i32
    %c0_i32_1 = arith.constant 0 : i32
    %c0_i32_2 = arith.constant 0 : i32
    return %c0_i32, %c0_i32_0, %c0_i32_1 : i32, i32, i32
  }
  func.func @transform_4(%arg0: i32, %arg1: i32) -> (i32, i32) {
    %c0_i32 = arith.constant 0 : i32
    %c0_i32_0 = arith.constant 0 : i32
    %c0_i32_1 = arith.constant 0 : i32
    return %c0_i32, %c0_i32_0 : i32, i32
  }
  func.func @transform_5(%arg0: i32, %arg1: i32) -> (i32, i32, i32, i32) {
    %c0_i32 = arith.constant 0 : i32
    %c0_i32_0 = arith.constant 0 : i32
    %c0_i32_1 = arith.constant 0 : i32
    return %arg0, %arg1, %c0_i32, %c0_i32_0 : i32, i32, i32, i32
  }
}

module attributes {stable_mosaic.version = 11 : i64} {
  func.func @_gemm_kernel(%arg0: i32, %arg1: i32, %arg2: i32, %arg3: memref<16x512xbf16, #tpu.memory_space<vmem>>, %arg4: memref<512x512xbf16, #tpu.memory_space<vmem>>, %arg5: memref<1x512xf32, #tpu.memory_space<vmem>>, %arg6: memref<16x512xbf16, #tpu.memory_space<vmem>>, %arg7: memref<16x512xf32, #tpu.memory_space<vmem>>) attributes {dimension_semantics = [#tpu.dimension_semantics<parallel>, #tpu.dimension_semantics<parallel>, #tpu.dimension_semantics<arbitrary>], iteration_bounds = array<i64: 1, 4, 2>, scalar_prefetch = 0 : i64, scratch_operands = 1 : i64, tpu.core_type = #tpu.core_type<tc>, window_params = [{transform_indices = @transform_0, window_bounds = array<i64: 16, 512>}, {transform_indices = @transform_1, window_bounds = array<i64: 512, 512>}, {transform_indices = @transform_2, window_bounds = array<i64: 1, 512>}, {transform_indices = @transform_3, window_bounds = array<i64: 16, 512>}]} {
    %c0_i32 = arith.constant 0 : i32
    %0 = arith.cmpi eq, %arg2, %c0_i32 : i32
    %1 = arith.extui %0 : i1 to i32
    %c0_i32_0 = arith.constant 0 : i32
    %2 = arith.cmpi ne, %1, %c0_i32_0 : i32
    scf.if %2 {
      %cst_9 = arith.constant 0.000000e+00 : f32
      %12 = vector.broadcast %cst_9 : f32 to vector<16x512xf32>
      %c0_10 = arith.constant 0 : index
      %c0_11 = arith.constant 0 : index
      %13 = vector.load %arg7[%c0_10, %c0_11] : memref<16x512xf32, #tpu.memory_space<vmem>>, vector<16x512xf32>
      tpu.vector_store %arg7[%c0_10, %c0_11], %12 {strides = array<i32>} : memref<16x512xf32, #tpu.memory_space<vmem>>, vector<16x512xf32>,
    } else {
    }
    %c0 = arith.constant 0 : index
    %c0_1 = arith.constant 0 : index
    %3 = vector.load %arg7[%c0, %c0_1] : memref<16x512xf32, #tpu.memory_space<vmem>>, vector<16x512xf32>
    %c0_2 = arith.constant 0 : index
    %c0_3 = arith.constant 0 : index
    %4 = vector.load %arg3[%c0_2, %c0_3] : memref<16x512xbf16, #tpu.memory_space<vmem>>, vector<16x512xbf16>
    %c0_4 = arith.constant 0 : index
    %c0_5 = arith.constant 0 : index
    %5 = vector.load %arg4[%c0_4, %c0_5] : memref<512x512xbf16, #tpu.memory_space<vmem>>, vector<512x512xbf16>
    %cst = arith.constant dense<0.000000e+00> : vector<16x512xf32>
    %6 = tpu.matmul %4, %5, %cst {dimension_numbers = #tpu.dot_dimension_numbers<[1], [0], [0], [1], [0, 0, 1, 1], [], []>} : vector<16x512xbf16>, vector<512x512xbf16>, vector<16x512xf32> -> vector<16x512xf32>
    %7 = arith.addf %3, %6 : vector<16x512xf32>
    %c0_6 = arith.constant 0 : index
    %c0_7 = arith.constant 0 : index
    %8 = vector.load %arg7[%c0_6, %c0_7] : memref<16x512xf32, #tpu.memory_space<vmem>>, vector<16x512xf32>
    tpu.vector_store %arg7[%c0_6, %c0_7], %7 {strides = array<i32>} : memref<16x512xf32, #tpu.memory_space<vmem>>, vector<16x512xf32>,
    %c1_i32 = arith.constant 1 : i32
    %9 = arith.cmpi eq, %arg2, %c1_i32 : i32
    %10 = arith.extui %9 : i1 to i32
    %c0_i32_8 = arith.constant 0 : i32
    %11 = arith.cmpi ne, %10, %c0_i32_8 : i32
    scf.if %11 {
      %c0_9 = arith.constant 0 : index
      %c0_10 = arith.constant 0 : index
      %12 = vector.load %arg7[%c0_9, %c0_10] : memref<16x512xf32, #tpu.memory_space<vmem>>, vector<16x512xf32>
      %c0_11 = arith.constant 0 : index
      %c0_12 = arith.constant 0 : index
      %13 = vector.load %arg5[%c0_11, %c0_12] : memref<1x512xf32, #tpu.memory_space<vmem>>, vector<1x512xf32>
      %14 = vector.broadcast %13 : vector<1x512xf32> to vector<16x512xf32>
      %15 = arith.addf %12, %14 : vector<16x512xf32>
      %cst_13 = arith.constant 0.000000e+00 : f32
      %16 = vector.broadcast %cst_13 : f32 to vector<16x512xf32>
      %17 = arith.maximumf %15, %16 : vector<16x512xf32>
      %18 = arith.truncf %17 : vector<16x512xf32> to vector<16x512xbf16>
      %c0_14 = arith.constant 0 : index
      %c0_15 = arith.constant 0 : index
      %19 = vector.load %arg6[%c0_14, %c0_15] : memref<16x512xbf16, #tpu.memory_space<vmem>>, vector<16x512xbf16>
      tpu.vector_store %arg6[%c0_14, %c0_15], %18 {strides = array<i32>} : memref<16x512xbf16, #tpu.memory_space<vmem>>, vector<16x512xbf16>,
    } else {
    }
    return
  }
  func.func @transform_0(%arg0: i32, %arg1: i32, %arg2: i32) -> (i32, i32) {
    %c0_i32 = arith.constant 0 : i32
    return %arg0, %arg2 : i32, i32
  }
  func.func @transform_1(%arg0: i32, %arg1: i32, %arg2: i32) -> (i32, i32) {
    %c0_i32 = arith.constant 0 : i32
    return %arg2, %arg1 : i32, i32
  }
  func.func @transform_2(%arg0: i32, %arg1: i32, %arg2: i32) -> (i32, i32) {
    %c0_i32 = arith.constant 0 : i32
    %c0_i32_0 = arith.constant 0 : i32
    return %c0_i32, %arg1 : i32, i32
  }
  func.func @transform_3(%arg0: i32, %arg1: i32, %arg2: i32) -> (i32, i32) {
    %c0_i32 = arith.constant 0 : i32
    return %arg0, %arg1 : i32, i32
  }
}

module attributes {stable_mosaic.version = 11 : i64} {
  func.func @_gemm_kernel(%arg0: i32, %arg1: i32, %arg2: i32, %arg3: memref<16x512xbf16, #tpu.memory_space<vmem>>, %arg4: memref<512x128xbf16, #tpu.memory_space<vmem>>, %arg5: memref<1x128xf32, #tpu.memory_space<vmem>>, %arg6: memref<16x128xf32, #tpu.memory_space<vmem>>, %arg7: memref<16x128xf32, #tpu.memory_space<vmem>>) attributes {dimension_semantics = [#tpu.dimension_semantics<parallel>, #tpu.dimension_semantics<parallel>, #tpu.dimension_semantics<arbitrary>], iteration_bounds = array<i64: 1, 1, 4>, scalar_prefetch = 0 : i64, scratch_operands = 1 : i64, tpu.core_type = #tpu.core_type<tc>, window_params = [{transform_indices = @transform_0, window_bounds = array<i64: 16, 512>}, {transform_indices = @transform_1, window_bounds = array<i64: 512, 128>}, {transform_indices = @transform_2, window_bounds = array<i64: 1, 128>}, {transform_indices = @transform_3, window_bounds = array<i64: 16, 128>}]} {
    %c0_i32 = arith.constant 0 : i32
    %0 = arith.cmpi eq, %arg2, %c0_i32 : i32
    %1 = arith.extui %0 : i1 to i32
    %c0_i32_0 = arith.constant 0 : i32
    %2 = arith.cmpi ne, %1, %c0_i32_0 : i32
    scf.if %2 {
      %cst_9 = arith.constant 0.000000e+00 : f32
      %12 = vector.broadcast %cst_9 : f32 to vector<16x128xf32>
      %c0_10 = arith.constant 0 : index
      %c0_11 = arith.constant 0 : index
      %13 = vector.load %arg7[%c0_10, %c0_11] : memref<16x128xf32, #tpu.memory_space<vmem>>, vector<16x128xf32>
      tpu.vector_store %arg7[%c0_10, %c0_11], %12 {strides = array<i32>} : memref<16x128xf32, #tpu.memory_space<vmem>>, vector<16x128xf32>,
    } else {
    }
    %c0 = arith.constant 0 : index
    %c0_1 = arith.constant 0 : index
    %3 = vector.load %arg7[%c0, %c0_1] : memref<16x128xf32, #tpu.memory_space<vmem>>, vector<16x128xf32>
    %c0_2 = arith.constant 0 : index
    %c0_3 = arith.constant 0 : index
    %4 = vector.load %arg3[%c0_2, %c0_3] : memref<16x512xbf16, #tpu.memory_space<vmem>>, vector<16x512xbf16>
    %c0_4 = arith.constant 0 : index
    %c0_5 = arith.constant 0 : index
    %5 = vector.load %arg4[%c0_4, %c0_5] : memref<512x128xbf16, #tpu.memory_space<vmem>>, vector<512x128xbf16>
    %cst = arith.constant dense<0.000000e+00> : vector<16x128xf32>
    %6 = tpu.matmul %4, %5, %cst {dimension_numbers = #tpu.dot_dimension_numbers<[1], [0], [0], [1], [0, 0, 1, 1], [], []>} : vector<16x512xbf16>, vector<512x128xbf16>, vector<16x128xf32> -> vector<16x128xf32>
    %7 = arith.addf %3, %6 : vector<16x128xf32>
    %c0_6 = arith.constant 0 : index
    %c0_7 = arith.constant 0 : index
    %8 = vector.load %arg7[%c0_6, %c0_7] : memref<16x128xf32, #tpu.memory_space<vmem>>, vector<16x128xf32>
    tpu.vector_store %arg7[%c0_6, %c0_7], %7 {strides = array<i32>} : memref<16x128xf32, #tpu.memory_space<vmem>>, vector<16x128xf32>,
    %c3_i32 = arith.constant 3 : i32
    %9 = arith.cmpi eq, %arg2, %c3_i32 : i32
    %10 = arith.extui %9 : i1 to i32
    %c0_i32_8 = arith.constant 0 : i32
    %11 = arith.cmpi ne, %10, %c0_i32_8 : i32
    scf.if %11 {
      %c0_9 = arith.constant 0 : index
      %c0_10 = arith.constant 0 : index
      %12 = vector.load %arg7[%c0_9, %c0_10] : memref<16x128xf32, #tpu.memory_space<vmem>>, vector<16x128xf32>
      %c0_11 = arith.constant 0 : index
      %c0_12 = arith.constant 0 : index
      %13 = vector.load %arg5[%c0_11, %c0_12] : memref<1x128xf32, #tpu.memory_space<vmem>>, vector<1x128xf32>
      %14 = vector.broadcast %13 : vector<1x128xf32> to vector<16x128xf32>
      %15 = arith.addf %12, %14 : vector<16x128xf32>
      %c0_13 = arith.constant 0 : index
      %c0_14 = arith.constant 0 : index
      %16 = vector.load %arg6[%c0_13, %c0_14] : memref<16x128xf32, #tpu.memory_space<vmem>>, vector<16x128xf32>
      tpu.vector_store %arg6[%c0_13, %c0_14], %15 {strides = array<i32>} : memref<16x128xf32, #tpu.memory_space<vmem>>, vector<16x128xf32>,
    } else {
    }
    return
  }
  func.func @transform_0(%arg0: i32, %arg1: i32, %arg2: i32) -> (i32, i32) {
    %c0_i32 = arith.constant 0 : i32
    return %arg0, %arg2 : i32, i32
  }
  func.func @transform_1(%arg0: i32, %arg1: i32, %arg2: i32) -> (i32, i32) {
    %c0_i32 = arith.constant 0 : i32
    return %arg2, %arg1 : i32, i32
  }
  func.func @transform_2(%arg0: i32, %arg1: i32, %arg2: i32) -> (i32, i32) {
    %c0_i32 = arith.constant 0 : i32
    %c0_i32_0 = arith.constant 0 : i32
    return %c0_i32, %arg1 : i32, i32
  }
  func.func @transform_3(%arg0: i32, %arg1: i32, %arg2: i32) -> (i32, i32) {
    %c0_i32 = arith.constant 0 : i32
    return %arg0, %arg1 : i32, i32
  }
}

</mosaic_0001>

<bundles_post_ra>
// kernel: variational_encoder_forward.5
= control target key start
LH: loop header
LB: loop body
LE: loop exit
PB: predicated region body
PF: predicated region fallthrough
CT: control target
= control target key end

     0   :  { %10 = vsyncpa [#allocation4], 0  ;;  %s1258_s0 = inlined_call_operand.vmem [shape: bf16[2,10,10,16], index: 0, kind: input, shape index: {}, may-alias: {0,1,2}]   ;;  %s1259_s1 = inlined_call_operand.vmem [shape: bf16[2,10,10,16], index: 1, kind: input, shape index: {}, may-alias: {0,1,2}]   ;;  %s1260_s2 = inlined_call_operand.vmem [shape: bf16[2,10,10,16], index: 2, kind: input, shape index: {}, may-alias: {0,1,2}]   ;;  %s1261_s3 = inlined_call_operand.hbm [shape: bf16[9,16,128], index: 3, kind: input, shape index: {}]   ;;  %s1262_s4 = inlined_call_operand.hbm [shape: f32[1,128], index: 4, kind: input, shape index: {}]   ;;  %s1263_s5 = inlined_call_operand.vmem [shape: bf16[2,8,8,128], index: 5, kind: output, shape index: {}]  }
   0x1   :  { %11 = vsyncpa [#allocation6], 0  ;;  %s1130_s18 = smov 0   ;;  %s1132_s19 = smov 0  }
   0x2   :  { %s1134_s20 = smov 0   ;;  %s1136_s21 = smov 0  }
   0x3   :  { %s1138_s22 = smov 0  }
   0x4 LB: > { %s835_s23 = sadd.s32 4294967295, %s1094_s22   ;;  %s26_s24 = sadd.s32 1, %s1086_s20  ;;  %s1094_s22 = sphi %s1138_s22, %s17_s22   ;;  %s1090_s21 = sphi %s1136_s21, %s1271_s21   ;;  %s1086_s20 = sphi %s1134_s20, %s1270_s20   ;;  %s1082_s19 = sphi %s1132_s19, %s1269_s19   ;;  %s1078_s18 = sphi %s1130_s18, %s1268_s18  }
   0x5   : > { %p27_p0 = scmp.ge.s32.totalorder %s26_s24, 8  ;;  %s29_s25 = sadd.s32 1, %s1090_s21 }
   0x6   : > { %p837_p1 = scmp.ge.s32.totalorder %s1094_s22, 1  ;;  %p192_p2 = scmp.lt.s32.totalorder %s1094_s22, 17 }
   0x7   : > { %s1273_s24 = smov (%p27_p0, %s26_s24), 0  ;;  %s1275_s25 = smov (!%p27_p0, %s29_s25), %s1090_s21 }
   0x8   : > { %p1163_p3 = pnand %p837_p1, %p192_p2  ;;  %p31_p4 = scmp.ge.s32.totalorder %s1275_s25, 2 }
   0x9   : > { %p1167_p5 = scmp.eq.s32.totalorder %s835_s23, 0  ;;  %s203_s30 = sshll.u32 %s1261_s3, 4  ;;  %s204_s30 = int_to_ptr.hbm [resolvable:$true] %s203_s30 }
   0xa   : > { %p932_p6 = pneg %p1163_p3  ;;  %s1277_s25 = smov (%p31_p4, %s1275_s25), 0 }
   0xb   : > { %s1096_s6 = smov [#allocation3]   ;;  %s1097_s8 = smov 64  }
   0xc   : > { %s205_s7 = sshll.u32 %s1096_s6, 4  ;;  %p933_p7 = pnand %p1167_p5, %p932_p6  ;;  %s206_s7 = int_to_ptr.vmem [resolvable:$true] %s205_s7 }
   0xd   : > { %s1098_s9 = smov 4   ;;  %s218_s12 = sshll.u32 %s1262_s4, 4  ;;  %s219_s12 = int_to_ptr.hbm [resolvable:$true] %s218_s12 }
   0xe   : > { %935 = dma.hbm_to_vmem [thread:$0]  (!%p933_p7), %s204_s30, 1152, %s206_s7, [#allocation4], %s1097_s8, %s1097_s8, %s1098_s9  }
   0xf   : > { %s1099_s13 = smov [#allocation5]   ;;  %273 = sbr.rel (%p1163_p3) target bundleno = 200 (0xc8), region = 40 }
  0x10   : > { %s220_s14 = sshll.u32 %s1099_s13, 4  ;;  %s221_s14 = int_to_ptr.vmem [resolvable:$true] %s220_s14 }
  0x11   : > { %938 = dma.hbm_to_vmem [thread:$0]  (!%p933_p7), %s219_s12, 16, %s221_s14, [#allocation6]  }
  0x14   : > { %1069 = dma.done.wait (%p1167_p5), [#allocation4], 1152  }
  0x15   : > { %1071 = vsyncadd (%p1167_p5), [#allocation4], 4294966144 }
  0x16   : > { %1073 = dma.done.wait (%p1167_p5), [#allocation6], 16  }
  0x17   : > { %1075 = vsyncadd (%p1167_p5), [#allocation6], 4294967280  ;;  %p334_p8 = scmp.lt.s32.totalorder %s1082_s19, 1  ;;  %p336_p9 = scmp.lt.s32.totalorder %s1078_s18, 9  ;;  %v912_v0 = vld [vmem:[#allocation3] sm:$0xff]  ;;  %v916_v1 = vld [vmem:[#allocation3 + $0x18] sm:$0xff] }
  0x18   : > { %s354_s15 = sadd.s32 2, %s1078_s18  ;;  %s343_s16 = sadd.s32 1, %s1078_s18  ;;  %v914_v2 = vld [vmem:[#allocation3 + $0x10] sm:$0xff]  ;;  %vm386_vm0 = vcmask 130048   ;;  %v917_v3 = vld [vmem:[#allocation3 + $0x20] sm:$0xff]  ;;  %v913_v4 = vld [vmem:[#allocation3 + $0x8] sm:$0xff]  ;;  %397 = vmatpush.bf16.msra.mxu0 %v912_v0  ;;  %496 = vmatpush.bf16.msra.mxu3 %v916_v1 }
  0x19   : > { %s1279_s19 = smov (!%p334_p8, %s1082_s19), 1  ;;  %p1204_p10 = scmp.lt.s32.totalorder %s354_s15, 9  ;;  %v920_v5 = vld [vmem:[#allocation3 + $0x30] sm:$0xff]  ;;  %v921_v8 = vld [vmem:[#allocation3 + $0x38] sm:$0xff]  ;;  %466 = vmatpush.bf16.msra.mxu2 %v914_v2  ;;  %v918_v10 = vld [vmem:[#allocation3 + $0x28] sm:$0xff]  ;;  %437 = vmatpush.bf16.msra.mxu1 %v913_v4 }
  0x1a   : > { %s337_s17 = scalar_select %p336_p9, %s1078_s18, 9  ;;  %v922_v11 = vld [vmem:[#allocation3 + $0x40] sm:$0xff]  ;;  %v987_v57 = vld [vmem:[#allocation5] ss:$0 sm:$0xff] }
  0x1b   : > { %s1202_s23 = smul.u32 20, %s1279_s19  ;;  %p1209_p11 = scmp.lt.s32.totalorder %s343_s16, 9 }
  0x1c   : > { %s844_s26 = sshll.u32 %s337_s17, 1  ;;  %s1281_s15 = smov (!%p1204_p10, %s354_s15), 9  ;;  %536 = vmatpush.bf16.msrb.mxu0 %v917_v3  ;;  %635 = vmatpush.bf16.msrb.mxu3 %v921_v8 }
  0x1d   : > { %s340_s28 = sadd.s32 %s1202_s23, %s844_s26  ;;  %s1283_s16 = smov (!%p1209_p11, %s343_s16), 9  ;;  %595 = vmatpush.bf16.msrb.mxu2 %v920_v5  ;;  %565 = vmatpush.bf16.msrb.mxu1 %v918_v10 }
  0x1e   : > { %s845_s30 = sshll.u32 %s340_s28, 2  ;;  %s848_s9 = sshll.u32 %s1281_s15, 1 }
  0x1f   : > { %s342_s8 = scalar_lea.vmem %s1258_s0, %s845_s30  ;;  %s361_s10 = sadd.s32 %s1202_s23, %s848_s9 }
  0x20   : > { %v375_v6 = vld [vmem:[%s342_s8] sm:$0xf]  ;;  %v911_v9 = vld [vmem:[%s342_s8] sm:$0x10]  ;;  %s846_s11 = sshll.u32 %s1283_s16, 1  ;;  %s849_s12 = sshll.u32 %s361_s10, 2 }
  0x21   : > { %v859_v7 = vld [vmem:[%s342_s8] sm:$0xf]  ;;  %856 = vmatmul.msk.bf16.vlgmr.msra.gmra.mxu0 %vm386_vm0, %v375_v6  ;;  %s350_s13 = sadd.s32 %s1202_s23, %s846_s11  ;;  %s363_s26 = scalar_lea.vmem %s1260_s2, %s849_s12 }
  0x22   : > { %v860_v12 = vor.u32 %v911_v9, %v859_v7  ;;  %664 = vmatpush.bf16.msra.mxu0 %v922_v11  ;;  %s847_s15 = sshll.u32 %s350_s13, 2  ;;  %v897_v17 = vld [vmem:[%s363_s26] sm:$0xf]  ;;  %v919_v18 = vld [vmem:[%s363_s26] sm:$0x10]  ;;  %p367_p12 = scmp.lt.s32.totalorder %s1078_s18, 7 }
  0x23   : > { %s352_s29 = scalar_lea.vmem %s1259_s1, %s847_s15  ;;  %v898_v24 = vor.u32 %v919_v18, %v897_v17  ;;  %v573_v32 = vld [vmem:[%s363_s26] sm:$0xf]  ;;  %s850_s16 = sshll.u32 %s1279_s19, 3 }
  0x24   : > { %v449_v13 = vrot.slane %v860_v12, 1  ;;  %v415_v14 = vshrl.u32 %v860_v12, 16  ;;  %v417_v15 = vshll.u32 %v860_v12, 16  ;;  %v474_v19 = vld [vmem:[%s352_s29] sm:$0xf]  ;;  %s1285_s18 = smov (!%p367_p12, %s1078_s18), 7 }
  0x25   : > { %v878_v20 = vld [vmem:[%s352_s29] sm:$0xf]  ;;  %v915_v21 = vld [vmem:[%s352_s29] sm:$0x10]  ;;  %875 = vmatmul.msk.bf16.vlgmr.msra.gmra.mxu3 %vm386_vm0, %v474_v19  ;;  %v615_v28 = vshll.u32 %v898_v24, 16  ;;  %v613_v30 = vshrl.u32 %v898_v24, 16  ;;  %s370_s23 = sadd.s32 %s850_s16, %s1285_s18 }
  0x26   : > { %870 = vmatmul.msk.bf16.vlgmr.msra.gmra.mxu2 %vm386_vm0, %v449_v13  ;;  %v419_v16 = vrot.slane %v417_v15, 1  ;;  %v879_v22 = vor.u32 %v915_v21, %v878_v20  ;;  %v647_v35 = vrot.slane %v898_v24, 1  ;;  %s851_s30 = sshll.u32 %s370_s23, 2 }
  0x27   : > { %v617_v31 = vrot.slane %v615_v28, 1  ;;  %s372_s8 = scalar_lea.vmem %s1263_s5, %s851_s30 }
  0x28   : > { %v420_v23 = vor.u32 %v419_v16, %v415_v14  ;;  %v516_v25 = vshll.u32 %v879_v22, 16  ;;  %v514_v26 = vshrl.u32 %v879_v22, 16  ;;  %v548_v34 = vrot.slane %v879_v22, 1 }
  0x29   : > { %v618_v33 = vor.u32 %v617_v31, %v613_v30 }
  0x2a   : > { %865 = vmatmul.msk.bf16.vlgmr.msra.gmra.mxu1 %vm386_vm0, %v420_v23  ;;  %v518_v27 = vrot.slane %v516_v25, 1 }
  0x2c   : > { %v519_v29 = vor.u32 %v518_v27, %v514_v26 }
  0x31   : > { %884 = vmatmul.msk.bf16.vlgmr.msrb.gmra.mxu0 %vm386_vm0, %v519_v29 }
  0x35   : > { %903 = vmatmul.msk.bf16.vlgmr.msrb.gmra.mxu3 %vm386_vm0, %v618_v33 }
  0x36   : > { %894 = vmatmul.msk.bf16.vlgmr.msrb.gmra.mxu2 %vm386_vm0, %v573_v32 }
  0x3a   : > { %889 = vmatmul.msk.bf16.vlgmr.msrb.gmra.mxu1 %vm386_vm0, %v548_v34 }
  0x41   : > { %908 = vmatmul.msk.bf16.vlgmr.msra.gmra.mxu0 %vm386_vm0, %v647_v35 }
  0x9e   : > { %v399_v36 = vpop.f32.mrf.mxu0 }
  0xa6   : > { %v401_v38 = vpop.f32.mrf.mxu0 }
  0xa7   : > { %v439_v37 = vpop.f32.mrf.mxu1 }
  0xa8   : > { %v498_v40 = vpop.f32.mrf.mxu3  ;;  %v443_v41 = vadd.f32 %v439_v37, %v399_v36 }
  0xa9   : > { %v468_v39 = vpop.f32.mrf.mxu2 }
  0xaa   : > { %v472_v43 = vadd.f32 %v468_v39, %v443_v41 }
  0xac   : > { %v502_v47 = vadd.f32 %v498_v40, %v472_v43 }
  0xae   : > { %v538_v44 = vpop.f32.mrf.mxu0 }
  0xaf   : > { %v441_v42 = vpop.f32.mrf.mxu1  ;;  %v542_v48 = vadd.f32 %v538_v44, %v502_v47 }
  0xb0   : > { %v500_v46 = vpop.f32.mrf.mxu3 }
  0xb1   : > { %v470_v45 = vpop.f32.mrf.mxu2 }
  0xb6   : > { %v540_v51 = vpop.f32.mrf.mxu0 }
  0xb7   : > { %v567_v49 = vpop.f32.mrf.mxu1 }
  0xb8   : > { %v571_v50 = vadd.f32 %v567_v49, %v542_v48  ;;  %v637_v53 = vpop.f32.mrf.mxu3 }
  0xb9   : > { %v597_v52 = vpop.f32.mrf.mxu2 }
  0xba   : > { %v601_v54 = vadd.f32 %v597_v52, %v571_v50 }
  0xbc   : > { %v641_v56 = vadd.f32 %v637_v53, %v601_v54 }
  0xbe   : > { %v666_v58 = vpop.f32.mrf.mxu0 }
  0xbf   : > { %v569_v55 = vpop.f32.mrf.mxu1  ;;  %v670_v60 = vadd.f32 %v666_v58, %v641_v56 }
  0xc0   : > { %v639_v61 = vpop.f32.mrf.mxu3 }
  0xc1   : > { %v599_v59 = vpop.f32.mrf.mxu2  ;;  %v677_v62 = vadd.f32 %v987_v57, %v670_v60 }
  0xc3   : > { %v678_v63 = vmax.f32 %v677_v62, 0.0 }
  0xc5   : > { %v679_v0 = vpack.c.bf16 %v678_v63, %v678_v63 }
  0xc6   : > { %v668_v1 = vpop.f32.mrf.mxu0 }
  0xc7   : > { %680 = vst [vmem:[%s372_s8] sm:$0xf] %v679_v0 }
  0xc8 PF: > { %s17_s22 = sadd.s32 1, %s1094_s22   ;;  %s1268_s18 = smov %s1086_s20 }
  0xc9   : > { %p14_p13 = scmp.ge.s32.totalorder %s17_s22, 18   ;;  %s1269_s19 = smov %s1090_s21 }
  0xca   : > { %s1270_s20 = smov %s1273_s24  ;;  %s1271_s21 = smov %s1277_s25 }
  0xcb   :  { %16 = sbr.rel (!%p14_p13) target bundleno = 4 (0x4), region = 93 }
  0xd0   :  { %708 = vsyncpa [#allocation4], 1 }
  0xd1   :  { %710 = vsyncpa [#allocation4 + $0x1], 1 }
  0xd2   :  { %711 = vsyncpa [#allocation6], 1 }

// kernel: variational_encoder_forward.6
= control target key start
LH: loop header
LB: loop body
LE: loop exit
PB: predicated region body
PF: predicated region fallthrough
CT: control target
= control target key end

     0   :  { %10 = vsyncpa [#allocation4], 0  ;;  %s3136_s0 = inlined_call_operand.vmem [shape: bf16[2,6,6,256], index: 0, kind: input, shape index: {}, may-alias: {0,1,2}]   ;;  %s3137_s1 = inlined_call_operand.vmem [shape: bf16[2,6,6,256], index: 1, kind: input, shape index: {}, may-alias: {0,1,2}]   ;;  %s3138_s2 = inlined_call_operand.vmem [shape: bf16[2,6,6,256], index: 2, kind: input, shape index: {}, may-alias: {0,1,2}]   ;;  %s3139_s3 = inlined_call_operand.hbm [shape: bf16[9,256,128], index: 3, kind: input, shape index: {}]   ;;  %s3140_s4 = inlined_call_operand.hbm [shape: f32[1,128], index: 4, kind: input, shape index: {}]   ;;  %s3141_s5 = inlined_call_operand.vmem [shape: bf16[2,4,4,128], index: 5, kind: output, shape index: {}]  }
   0x1   :  { %11 = vsyncpa [#allocation6], 0  ;;  %s2990_s18 = smov 0   ;;  %s2992_s19 = smov 0  }
   0x2   :  { %s2994_s20 = smov 0   ;;  %s2996_s21 = smov 0  }
   0x3   :  { %s2998_s22 = smov 0  }
   0x4 LB: > { %s2042_s23 = sadd.s32 4294967295, %s2953_s22   ;;  %s26_s24 = sadd.s32 1, %s2945_s20  ;;  %s2953_s22 = sphi %s2998_s22, %s17_s22   ;;  %s2949_s21 = sphi %s2996_s21, %s3147_s21   ;;  %s2945_s20 = sphi %s2994_s20, %s3146_s20   ;;  %s2941_s19 = sphi %s2992_s19, %s3145_s19   ;;  %s2937_s18 = sphi %s2990_s18, %s3144_s18  }
   0x5   : > { %p27_p0 = scmp.ge.s32.totalorder %s26_s24, 4  ;;  %s29_s25 = sadd.s32 1, %s2949_s21 }
   0x6   : > { %p2044_p1 = scmp.ge.s32.totalorder %s2953_s22, 1  ;;  %p192_p2 = scmp.lt.s32.totalorder %s2953_s22, 9 }
   0x7   : > { %s3149_s24 = smov (%p27_p0, %s26_s24), 0  ;;  %s3151_s25 = smov (!%p27_p0, %s29_s25), %s2949_s21 }
   0x8   : > { %p3023_p3 = pnand %p2044_p1, %p192_p2  ;;  %p31_p4 = scmp.ge.s32.totalorder %s3151_s25, 2 }
   0x9   : > { %p3027_p5 = scmp.eq.s32.totalorder %s2042_s23, 0  ;;  %s203_s30 = sshll.u32 %s3139_s3, 4  ;;  %s204_s30 = int_to_ptr.hbm [resolvable:$true] %s203_s30 }
   0xa   : > { %p2790_p6 = pneg %p3023_p3  ;;  %s3153_s25 = smov (%p31_p4, %s3151_s25), 0 }
   0xb   : > { %s2955_s6 = smov [#allocation3]   ;;  %s2956_s8 = smov 64  }
   0xc   : > { %s205_s7 = sshll.u32 %s2955_s6, 4  ;;  %p2791_p7 = pnand %p3027_p5, %p2790_p6  ;;  %s206_s7 = int_to_ptr.vmem [resolvable:$true] %s205_s7 }
   0xd   : > { %s2957_s9 = smov 4   ;;  %s218_s12 = sshll.u32 %s3140_s4, 4  ;;  %s219_s12 = int_to_ptr.hbm [resolvable:$true] %s218_s12 }
   0xe   : > { %2793 = dma.hbm_to_vmem [thread:$0]  (!%p2791_p7), %s204_s30, 18432, %s206_s7, [#allocation4], %s2956_s8, %s2956_s8, %s2957_s9  }
   0xf   : > { %s2958_s13 = smov [#allocation5]   ;;  %273 = sbr.rel (%p3023_p3) target bundleno = 329 (0x149), region = 40 }
  0x10   : > { %s220_s14 = sshll.u32 %s2958_s13, 4  ;;  %s221_s14 = int_to_ptr.vmem [resolvable:$true] %s220_s14 }
  0x11   : > { %2796 = dma.hbm_to_vmem [thread:$0]  (!%p2791_p7), %s219_s12, 16, %s221_s14, [#allocation6]  }
  0x14   : > { %2928 = dma.done.wait (%p3027_p5), [#allocation4], 18432  }
  0x15   : > { %2930 = vsyncadd (%p3027_p5), [#allocation4], 4294948864 }
  0x16   : > { %2932 = dma.done.wait (%p3027_p5), [#allocation6], 16  }
  0x17   : > { %2934 = vsyncadd (%p3027_p5), [#allocation6], 4294967280  ;;  %p334_p8 = scmp.lt.s32.totalorder %s2941_s19, 1  ;;  %p336_p9 = scmp.lt.s32.totalorder %s2937_s18, 5  ;;  %v2644_v0 = vld [vmem:[#allocation3 + $0x38] sm:$0xff]  ;;  %v2643_v4 = vld [vmem:[#allocation3 + $0x30] sm:$0xff] }
  0x18   : > { %v2652_v1 = vld [vmem:[#allocation3 + $0x78] sm:$0xff]  ;;  %511 = vmatpush.bf16.msra.mxu0 %v2644_v0  ;;  %v2651_v5 = vld [vmem:[#allocation3 + $0x70] sm:$0xff]  ;;  %v2642_v8 = vld [vmem:[#allocation3 + $0x28] sm:$0xff]  ;;  %s343_s30 = sadd.s32 1, %s2937_s18  ;;  %s354_s12 = sadd.s32 2, %s2937_s18 }
  0x19   : > { %v2660_v2 = vld [vmem:[#allocation3 + $0xb8] sm:$0xff]  ;;  %s3155_s19 = smov (!%p334_p8, %s2941_s19), 1  ;;  %524 = vmatpush.bf16.msra.mxu1 %v2652_v1  ;;  %v2659_v6 = vld [vmem:[#allocation3 + $0xb0] sm:$0xff]  ;;  %v2650_v9 = vld [vmem:[#allocation3 + $0x68] sm:$0xff]  ;;  %p346_p10 = scmp.lt.s32.totalorder %s343_s30, 5 }
  0x1a   : > { %v2668_v3 = vld [vmem:[#allocation3 + $0xf8] sm:$0xff]  ;;  %s337_s15 = scalar_select %p336_p9, %s2937_s18, 5  ;;  %685 = vmatpush.bf16.msra.mxu2 %v2660_v2  ;;  %v2667_v7 = vld [vmem:[#allocation3 + $0xf0] sm:$0xff]  ;;  %v2658_v10 = vld [vmem:[#allocation3 + $0xa8] sm:$0xff] }
  0x1b   : > { %698 = vmatpush.bf16.msra.mxu3 %v2668_v3  ;;  %s3060_s16 = smul.u32 12, %s3155_s19  ;;  %v2666_v11 = vld [vmem:[#allocation3 + $0xe8] sm:$0xff]  ;;  %v2641_v12 = vld [vmem:[#allocation3 + $0x20] sm:$0xff]  ;;  %v2640_v16 = vld [vmem:[#allocation3 + $0x18] sm:$0xff]  ;;  %s3157_s30 = smov (!%p346_p10, %s343_s30), 5 }
  0x1c   : > { %512 = vmatpush.bf16.msra.mxu0 %v2643_v4  ;;  %s2051_s17 = sshll.u32 %s337_s15, 1  ;;  %v2649_v13 = vld [vmem:[#allocation3 + $0x60] sm:$0xff]  ;;  %v2648_v17 = vld [vmem:[#allocation3 + $0x58] sm:$0xff]  ;;  %v2639_v20 = vld [vmem:[#allocation3 + $0x10] sm:$0xff]  ;;  %s2053_s6 = sshll.u32 %s3157_s30, 1 }
  0x1d   : > { %525 = vmatpush.bf16.msra.mxu1 %v2651_v5  ;;  %s340_s23 = sadd.s32 %s3060_s16, %s2051_s17  ;;  %v2657_v14 = vld [vmem:[#allocation3 + $0xa0] sm:$0xff]  ;;  %v2656_v18 = vld [vmem:[#allocation3 + $0x98] sm:$0xff]  ;;  %v2647_v21 = vld [vmem:[#allocation3 + $0x50] sm:$0xff]  ;;  %s350_s7 = sadd.s32 %s3060_s16, %s2053_s6 }
  0x1e   : > { %686 = vmatpush.bf16.msra.mxu2 %v2659_v6  ;;  %v2665_v15 = vld [vmem:[#allocation3 + $0xe0] sm:$0xff]  ;;  %s2052_s26 = sshll.u32 %s340_s23, 2  ;;  %v2664_v19 = vld [vmem:[#allocation3 + $0xd8] sm:$0xff]  ;;  %v2655_v23 = vld [vmem:[#allocation3 + $0x90] sm:$0xff]  ;;  %s2054_s8 = sshll.u32 %s350_s7, 2 }
  0x1f   : > { %699 = vmatpush.bf16.msra.mxu3 %v2667_v7  ;;  %s342_s29 = scalar_lea.vmem %s3136_s0, %s2052_s26  ;;  %v2663_v24 = vld [vmem:[#allocation3 + $0xd0] sm:$0xff]  ;;  %v2638_v27 = vld [vmem:[#allocation3 + $0x8] sm:$0xff]  ;;  %v2637_v33 = vld [vmem:[#allocation3] sm:$0xff]  ;;  %s352_s11 = scalar_lea.vmem %s3137_s1, %s2054_s8 }
  0x20   : > { %513 = vmatpush.bf16.msra.mxu0 %v2642_v8  ;;  %v374_v22 = vld [vmem:[%s342_s29] sm:$0x77]  ;;  %v2646_v28 = vld [vmem:[#allocation3 + $0x48] sm:$0xff]  ;;  %v2675_v47 = vld [vmem:[#allocation3 + $0x130] sm:$0xff]  ;;  %p357_p11 = scmp.lt.s32.totalorder %s354_s12, 5  ;;  %p367_p12 = scmp.lt.s32.totalorder %s2937_s18, 3 }
  0x21   : > { %526 = vmatpush.bf16.msra.mxu1 %v2650_v9  ;;  %v409_v25 = vunpack.c.l.b16 %v374_v22  ;;  %v410_v26 = vunpack.c.h.b16 %v374_v22  ;;  %v2654_v29 = vld [vmem:[#allocation3 + $0x88] sm:$0xff]  ;;  %v2645_v34 = vld [vmem:[#allocation3 + $0x40] sm:$0xff]  ;;  %v2676_v37 = vld [vmem:[#allocation3 + $0x138] sm:$0xff]  ;;  %s2057_s26 = sshll.u32 %s3155_s19, 2 }
  0x22   : > { %687 = vmatpush.bf16.msra.mxu2 %v2658_v10  ;;  %v2662_v30 = vld [vmem:[#allocation3 + $0xc8] sm:$0xff]  ;;  %v2684_v38 = vld [vmem:[#allocation3 + $0x178] sm:$0xff]  ;;  %v2653_v39 = vld [vmem:[#allocation3 + $0x80] sm:$0xff]  ;;  %s3159_s12 = smov (!%p357_p11, %s354_s12), 5  ;;  %s3161_s18 = smov (!%p367_p12, %s2937_s18), 3 }
  0x23   : > { %700 = vmatpush.bf16.msra.mxu3 %v2666_v11  ;;  %v3066_v31 = vpack.c.b16 %v409_v25, %v409_v25  ;;  %v3068_v32 = vpack.c.b16 %v410_v26, %v410_v26  ;;  %v2661_v40 = vld [vmem:[#allocation3 + $0xc0] sm:$0xff]  ;;  %v2692_v45 = vld [vmem:[#allocation3 + $0x1b8] sm:$0xff]  ;;  %v2683_v48 = vld [vmem:[#allocation3 + $0x170] sm:$0xff]  ;;  %s2055_s13 = sshll.u32 %s3159_s12, 1  ;;  %s370_s27 = sadd.s32 %s2057_s26, %s3161_s18 }
  0x24   : > { %514 = vmatpush.bf16.msra.mxu0 %v2641_v12  ;;  %v2700_v46 = vld [vmem:[#allocation3 + $0x1f8] sm:$0xff]  ;;  %v2691_v51 = vld [vmem:[#allocation3 + $0x1b0] sm:$0xff]  ;;  %v2674_v53 = vld [vmem:[#allocation3 + $0x128] sm:$0xff]  ;;  %s361_s14 = sadd.s32 %s3060_s16, %s2055_s13  ;;  %s2058_s28 = sshll.u32 %s370_s27, 1 }
  0x25   : > { %527 = vmatpush.bf16.msra.mxu1 %v2649_v13  ;;  %v576_v35 = vshll.u32 %v3066_v31, 16  ;;  %v583_v36 = vshll.u32 %v3068_v32, 16  ;;  %v574_v41 = vshrl.u32 %v3066_v31, 16  ;;  %v581_v43 = vshrl.u32 %v3068_v32, 16  ;;  %v2699_v52 = vld [vmem:[#allocation3 + $0x1f0] sm:$0xff]  ;;  %v2682_v54 = vld [vmem:[#allocation3 + $0x168] sm:$0xff]  ;;  %s372_s6 = scalar_lea.vmem %s3141_s5, %s2058_s28 }
  0x26   : > { %688 = vmatpush.bf16.msra.mxu2 %v2657_v14  ;;  %v2690_v55 = vld [vmem:[#allocation3 + $0x1a8] sm:$0xff]  ;;  %v2673_v57 = vld [vmem:[#allocation3 + $0x120] sm:$0xff]  ;;  %v2672_v61 = vld [vmem:[#allocation3 + $0x118] sm:$0xff]  ;;  %s2056_s15 = sshll.u32 %s361_s14, 2 }
  0x27   : > { %701 = vmatpush.bf16.msra.mxu3 %v2665_v15  ;;  %v578_v42 = vrot.slane %v576_v35, 1  ;;  %v585_v44 = vrot.slane %v583_v36, 1  ;;  %v2698_v56 = vld [vmem:[#allocation3 + $0x1e8] sm:$0xff]  ;;  %v2681_v58 = vld [vmem:[#allocation3 + $0x160] sm:$0xff]  ;;  %v2680_v62 = vld [vmem:[#allocation3 + $0x158] sm:$0xff]  ;;  %s363_s16 = scalar_lea.vmem %s3138_s2, %s2056_s15 }
  0x28   : > { %515 = vmatpush.bf16.msra.mxu0 %v2640_v16  ;;  %v2689_v59 = vld [vmem:[#allocation3 + $0x1a0] sm:$0xff]  ;;  %v2688_v63 = vld [vmem:[#allocation3 + $0x198] sm:$0xff]  ;;  %v2671_v1 = vld [vmem:[#allocation3 + $0x110] sm:$0xff] }
  0x29   : > { %528 = vmatpush.bf16.msra.mxu1 %v2648_v17  ;;  %v579_v49 = vor.u32 %v578_v42, %v574_v41  ;;  %v586_v50 = vor.u32 %v585_v44, %v581_v43  ;;  %v2697_v60 = vld [vmem:[#allocation3 + $0x1e0] sm:$0xff]  ;;  %v2696_v0 = vld [vmem:[#allocation3 + $0x1d8] sm:$0xff]  ;;  %v2679_v2 = vld [vmem:[#allocation3 + $0x150] sm:$0xff] }
  0x2a   : > { %689 = vmatpush.bf16.msra.mxu2 %v2656_v18  ;;  %v2687_v3 = vld [vmem:[#allocation3 + $0x190] sm:$0xff]  ;;  %v2670_v5 = vld [vmem:[#allocation3 + $0x108] sm:$0xff]  ;;  %v875_v9 = vld [vmem:[%s352_s11] sm:$0x77] }
  0x2b   : > { %702 = vmatpush.bf16.msra.mxu3 %v2664_v19  ;;  %v2695_v4 = vld [vmem:[#allocation3 + $0x1d0] sm:$0xff]  ;;  %v2678_v6 = vld [vmem:[#allocation3 + $0x148] sm:$0xff]  ;;  %v2669_v10 = vld [vmem:[#allocation3 + $0x100] sm:$0xff]  ;;  %v911_v16 = vunpack.c.l.b16 %v875_v9  ;;  %v912_v17 = vunpack.c.h.b16 %v875_v9 }
  0x2c   : > { %516 = vmatpush.bf16.msra.mxu0 %v2639_v20  ;;  %v2686_v7 = vld [vmem:[#allocation3 + $0x188] sm:$0xff]  ;;  %v2677_v11 = vld [vmem:[#allocation3 + $0x140] sm:$0xff]  ;;  %v2708_v12 = vld [vmem:[#allocation3 + $0x238] sm:$0xff]  ;;  %v747_v20 = vrot.slane %v3066_v31, 1 }
  0x2d   : > { %529 = vmatpush.bf16.msra.mxu1 %v2647_v21  ;;  %v2694_v8 = vld [vmem:[#allocation3 + $0x1c8] sm:$0xff]  ;;  %v2716_v13 = vld [vmem:[#allocation3 + $0x278] sm:$0xff]  ;;  %v2685_v14 = vld [vmem:[#allocation3 + $0x180] sm:$0xff]  ;;  %v748_v21 = vrot.slane %v3068_v32, 1  ;;  %v3085_v25 = vpack.c.b16 %v912_v17, %v912_v17 }
  0x2e   : > { %690 = vmatpush.bf16.msra.mxu2 %v2655_v23  ;;  %v2693_v15 = vld [vmem:[#allocation3 + $0x1c0] sm:$0xff]  ;;  %v2724_v18 = vld [vmem:[#allocation3 + $0x2b8] sm:$0xff]  ;;  %v2707_v22 = vld [vmem:[#allocation3 + $0x230] sm:$0xff] }
  0x2f   : > { %703 = vmatpush.bf16.msra.mxu3 %v2663_v24  ;;  %v2732_v19 = vld [vmem:[#allocation3 + $0x2f8] sm:$0xff]  ;;  %v2715_v23 = vld [vmem:[#allocation3 + $0x270] sm:$0xff]  ;;  %v3083_v24 = vpack.c.b16 %v911_v16, %v911_v16  ;;  %v2729_v35 = vld [vmem:[#allocation3 + $0x2e0] sm:$0xff] }
  0x30   : > { %517 = vmatpush.bf16.msra.mxu0 %v2638_v27  ;;  %v2723_v26 = vld [vmem:[#allocation3 + $0x2b0] sm:$0xff]  ;;  %v2704_v36 = vld [vmem:[#allocation3 + $0x218] sm:$0xff]  ;;  %v2702_v44 = vld [vmem:[#allocation3 + $0x208] sm:$0xff] }
  0x31   : > { %530 = vmatpush.bf16.msra.mxu1 %v2646_v28  ;;  %v2731_v27 = vld [vmem:[#allocation3 + $0x2f0] sm:$0xff]  ;;  %v2706_v28 = vld [vmem:[#allocation3 + $0x228] sm:$0xff]  ;;  %v2744_v16 = vld [vmem:[#allocation3 + $0x358] sm:$0xff] }
  0x32   : > { %691 = vmatpush.bf16.msra.mxu2 %v2654_v29  ;;  %v2714_v29 = vld [vmem:[#allocation3 + $0x268] sm:$0xff]  ;;  %v2711_v41 = vld [vmem:[#allocation3 + $0x250] sm:$0xff]  ;;  %v2752_v17 = vld [vmem:[#allocation3 + $0x398] sm:$0xff] }
  0x33   : > { %704 = vmatpush.bf16.msra.mxu3 %v2662_v30  ;;  %v2722_v30 = vld [vmem:[#allocation3 + $0x2a8] sm:$0xff]  ;;  %v2719_v42 = vld [vmem:[#allocation3 + $0x290] sm:$0xff] }
  0x34   : > { %518 = vmatpush.bf16.msra.mxu0 %v2637_v33  ;;  %v2713_v33 = vld [vmem:[#allocation3 + $0x260] sm:$0xff]  ;;  %v2727_v43 = vld [vmem:[#allocation3 + $0x2d0] sm:$0xff]  ;;  %v2762_v9 = vld [vmem:[#allocation3 + $0x3e8] sm:$0xff] }
  0x35   : > { %531 = vmatpush.bf16.msra.mxu1 %v2645_v34  ;;  %v2721_v34 = vld [vmem:[#allocation3 + $0x2a0] sm:$0xff] }
  0x36   : > { %692 = vmatpush.bf16.msra.mxu2 %v2653_v39  ;;  %v2728_v39 = vld [vmem:[#allocation3 + $0x2d8] sm:$0xff] }
  0x37   : > { %705 = vmatpush.bf16.msra.mxu3 %v2661_v40  ;;  %519 = vmatmul.bf16.vlgmr.msra.gmra.mxu0 %v3066_v31  ;;  %v2730_v31 = vld [vmem:[#allocation3 + $0x2e8] sm:$0xff]  ;;  %v2703_v40 = vld [vmem:[#allocation3 + $0x210] sm:$0xff] }
  0x38   : > { %847 = vmatpush.bf16.msrb.mxu0 %v2676_v37  ;;  %532 = vmatmul.bf16.vlgmr.msra.gmra.mxu1 %v3068_v32  ;;  %v2705_v32 = vld [vmem:[#allocation3 + $0x220] sm:$0xff]  ;;  %v2712_v37 = vld [vmem:[#allocation3 + $0x258] sm:$0xff] }
  0x39   : > { %860 = vmatpush.bf16.msrb.mxu1 %v2684_v38  ;;  %693 = vmatmul.bf16.vlgmr.msra.gmra.mxu2 %v579_v49  ;;  %v2720_v38 = vld [vmem:[#allocation3 + $0x298] sm:$0xff]  ;;  %v2726_v49 = vld [vmem:[#allocation3 + $0x2c8] sm:$0xff] }
  0x3a   : > { %1013 = vmatpush.bf16.msrb.mxu2 %v2692_v45  ;;  %706 = vmatmul.bf16.vlgmr.msra.gmra.mxu3 %v586_v50  ;;  %v2710_v45 = vld [vmem:[#allocation3 + $0x248] sm:$0xff]  ;;  %v2701_v50 = vld [vmem:[#allocation3 + $0x200] sm:$0xff] }
  0x3b   : > { %1026 = vmatpush.bf16.msrb.mxu3 %v2700_v46  ;;  %v1078_v46 = vshll.u32 %v3083_v24, 16 }
  0x3c   : > { %848 = vmatpush.bf16.msrb.mxu0 %v2675_v47  ;;  %v1085_v47 = vshll.u32 %v3085_v25, 16 }
  0x3d   : > { %861 = vmatpush.bf16.msrb.mxu1 %v2683_v48  ;;  %v2718_v48 = vld [vmem:[#allocation3 + $0x288] sm:$0xff] }
  0x3e   : > { %1014 = vmatpush.bf16.msrb.mxu2 %v2691_v51  ;;  %v2709_v51 = vld [vmem:[#allocation3 + $0x240] sm:$0xff] }
  0x3f   : > { %1027 = vmatpush.bf16.msrb.mxu3 %v2699_v52  ;;  %v1076_v52 = vshrl.u32 %v3083_v24, 16 }
  0x40   : > { %849 = vmatpush.bf16.msrb.mxu0 %v2674_v53  ;;  %v1080_v53 = vrot.slane %v1078_v46, 1 }
  0x41   : > { %862 = vmatpush.bf16.msrb.mxu1 %v2682_v54  ;;  %v1083_v54 = vshrl.u32 %v3085_v25, 16 }
  0x42   : > { %1015 = vmatpush.bf16.msrb.mxu2 %v2690_v55  ;;  %v1087_v55 = vrot.slane %v1085_v47, 1  ;;  %v2770_v47 = vld [vmem:[#allocation3 + $0x428] sm:$0xff] }
  0x43   : > { %1028 = vmatpush.bf16.msrb.mxu3 %v2698_v56  ;;  %v2740_v56 = vld [vmem:[#allocation3 + $0x338] sm:$0xff] }
  0x44   : > { %850 = vmatpush.bf16.msrb.mxu0 %v2673_v57  ;;  %v2748_v57 = vld [vmem:[#allocation3 + $0x378] sm:$0xff] }
  0x45   : > { %863 = vmatpush.bf16.msrb.mxu1 %v2681_v58  ;;  %v2717_v58 = vld [vmem:[#allocation3 + $0x280] sm:$0xff] }
  0x46   : > { %1016 = vmatpush.bf16.msrb.mxu2 %v2689_v59  ;;  %v2725_v59 = vld [vmem:[#allocation3 + $0x2c0] sm:$0xff] }
  0x47   : > { %1029 = vmatpush.bf16.msrb.mxu3 %v2697_v60  ;;  %v2756_v60 = vld [vmem:[#allocation3 + $0x3b8] sm:$0xff] }
  0x48   : > { %851 = vmatpush.bf16.msrb.mxu0 %v2672_v61  ;;  %v2764_v61 = vld [vmem:[#allocation3 + $0x3f8] sm:$0xff] }
  0x49   : > { %864 = vmatpush.bf16.msrb.mxu1 %v2680_v62  ;;  %v1081_v62 = vor.u32 %v1080_v53, %v1076_v52  ;;  %v2768_v52 = vld [vmem:[#allocation3 + $0x418] sm:$0xff] }
  0x4a   : > { %1017 = vmatpush.bf16.msrb.mxu2 %v2688_v63  ;;  %v1088_v63 = vor.u32 %v1087_v55, %v1083_v54  ;;  %v2776_v53 = vld [vmem:[#allocation3 + $0x458] sm:$0xff]  ;;  %v2767_v54 = vld [vmem:[#allocation3 + $0x410] sm:$0xff] }
  0x4b   : > { %1030 = vmatpush.bf16.msrb.mxu3 %v2696_v0  ;;  %v2739_v0 = vld [vmem:[#allocation3 + $0x330] sm:$0xff] }
  0x4c   : > { %852 = vmatpush.bf16.msrb.mxu0 %v2671_v1  ;;  %v2747_v1 = vld [vmem:[#allocation3 + $0x370] sm:$0xff] }
  0x4d   : > { %865 = vmatpush.bf16.msrb.mxu1 %v2679_v2  ;;  %v1249_v2 = vrot.slane %v3083_v24, 1  ;;  %v2775_v55 = vld [vmem:[#allocation3 + $0x450] sm:$0xff] }
  0x4e   : > { %1018 = vmatpush.bf16.msrb.mxu2 %v2687_v3  ;;  %v1250_v3 = vrot.slane %v3085_v25, 1 }
  0x4f   : > { %1031 = vmatpush.bf16.msrb.mxu3 %v2695_v4  ;;  %v2755_v4 = vld [vmem:[#allocation3 + $0x3b0] sm:$0xff] }
  0x50   : > { %853 = vmatpush.bf16.msrb.mxu0 %v2670_v5  ;;  %v2763_v5 = vld [vmem:[#allocation3 + $0x3f0] sm:$0xff] }
  0x51   : > { %866 = vmatpush.bf16.msrb.mxu1 %v2678_v6  ;;  %v2738_v6 = vld [vmem:[#allocation3 + $0x328] sm:$0xff] }
  0x52   : > { %1019 = vmatpush.bf16.msrb.mxu2 %v2686_v7  ;;  %v2746_v7 = vld [vmem:[#allocation3 + $0x368] sm:$0xff] }
  0x53   : > { %1032 = vmatpush.bf16.msrb.mxu3 %v2694_v8  ;;  %v2754_v8 = vld [vmem:[#allocation3 + $0x3a8] sm:$0xff] }
  0x54   : > { %854 = vmatpush.bf16.msrb.mxu0 %v2669_v10  ;;  %v2737_v10 = vld [vmem:[#allocation3 + $0x320] sm:$0xff] }
  0x55   : > { %867 = vmatpush.bf16.msrb.mxu1 %v2677_v11  ;;  %v2745_v11 = vld [vmem:[#allocation3 + $0x360] sm:$0xff] }
  0x56   : > { %1020 = vmatpush.bf16.msrb.mxu2 %v2685_v14  ;;  %v1377_v14 = vld [vmem:[%s363_s16] sm:$0x77] }
  0x57   : > { %1033 = vmatpush.bf16.msrb.mxu3 %v2693_v15  ;;  %855 = vmatmul.bf16.vlgmr.msrb.gmra.mxu0 %v747_v20  ;;  %v2736_v15 = vld [vmem:[#allocation3 + $0x318] sm:$0xff]  ;;  %v1414_v20 = vunpack.c.h.b16 %v1377_v14 }
  0x58   : > { %1187 = vmatpush.bf16.msra.mxu0 %v2708_v12  ;;  %868 = vmatmul.bf16.vlgmr.msrb.gmra.mxu1 %v748_v21  ;;  %v2753_v12 = vld [vmem:[#allocation3 + $0x3a0] sm:$0xff]  ;;  %v2735_v21 = vld [vmem:[#allocation3 + $0x310] sm:$0xff] }
  0x59   : > { %1200 = vmatpush.bf16.msra.mxu1 %v2716_v13  ;;  %1021 = vmatmul.bf16.vlgmr.msrb.gmra.mxu2 %v3083_v24  ;;  %v2761_v13 = vld [vmem:[#allocation3 + $0x3e0] sm:$0xff]  ;;  %v2759_v24 = vld [vmem:[#allocation3 + $0x3d0] sm:$0xff] }
  0x5a   : > { %1349 = vmatpush.bf16.msra.mxu2 %v2724_v18  ;;  %1034 = vmatmul.bf16.vlgmr.msrb.gmra.mxu3 %v3085_v25  ;;  %v2760_v18 = vld [vmem:[#allocation3 + $0x3d8] sm:$0xff] }
  0x5b   : > { %1362 = vmatpush.bf16.msra.mxu3 %v2732_v19  ;;  %v1413_v19 = vunpack.c.l.b16 %v1377_v14 }
  0x5c   : > { %1188 = vmatpush.bf16.msra.mxu0 %v2707_v22  ;;  %v2743_v22 = vld [vmem:[#allocation3 + $0x350] sm:$0xff] }
  0x5d   : > { %1201 = vmatpush.bf16.msra.mxu1 %v2715_v23  ;;  %v2751_v23 = vld [vmem:[#allocation3 + $0x390] sm:$0xff]  ;;  %v3103_v25 = vpack.c.b16 %v1413_v19, %v1413_v19 }
  0x5e   : > { %1350 = vmatpush.bf16.msra.mxu2 %v2723_v26  ;;  %v3105_v26 = vpack.c.b16 %v1414_v20, %v1414_v20 }
  0x5f   : > { %1363 = vmatpush.bf16.msra.mxu3 %v2731_v27  ;;  %v2734_v27 = vld [vmem:[#allocation3 + $0x308] sm:$0xff] }
  0x60   : > { %1189 = vmatpush.bf16.msra.mxu0 %v2706_v28  ;;  %v2742_v28 = vld [vmem:[#allocation3 + $0x348] sm:$0xff] }
  0x61   : > { %1202 = vmatpush.bf16.msra.mxu1 %v2714_v29  ;;  %v2750_v29 = vld [vmem:[#allocation3 + $0x388] sm:$0xff] }
  0x62   : > { %1351 = vmatpush.bf16.msra.mxu2 %v2722_v30  ;;  %v2758_v30 = vld [vmem:[#allocation3 + $0x3c8] sm:$0xff] }
  0x63   : > { %1364 = vmatpush.bf16.msra.mxu3 %v2730_v31  ;;  %v1580_v31 = vshll.u32 %v3103_v25, 16 }
  0x64   : > { %1190 = vmatpush.bf16.msra.mxu0 %v2705_v32  ;;  %v1587_v32 = vshll.u32 %v3105_v26, 16 }
  0x65   : > { %1203 = vmatpush.bf16.msra.mxu1 %v2713_v33  ;;  %v2733_v33 = vld [vmem:[#allocation3 + $0x300] sm:$0xff] }
  0x66   : > { %1352 = vmatpush.bf16.msra.mxu2 %v2721_v34  ;;  %v2741_v34 = vld [vmem:[#allocation3 + $0x340] sm:$0xff] }
  0x67   : > { %1365 = vmatpush.bf16.msra.mxu3 %v2729_v35  ;;  %v2772_v35 = vld [vmem:[#allocation3 + $0x438] sm:$0xff] }
  0x68   : > { %1191 = vmatpush.bf16.msra.mxu0 %v2704_v36  ;;  %v2780_v36 = vld [vmem:[#allocation3 + $0x478] sm:$0xff] }
  0x69   : > { %1204 = vmatpush.bf16.msra.mxu1 %v2712_v37  ;;  %v2749_v37 = vld [vmem:[#allocation3 + $0x380] sm:$0xff] }
  0x6a   : > { %1353 = vmatpush.bf16.msra.mxu2 %v2720_v38  ;;  %v2757_v38 = vld [vmem:[#allocation3 + $0x3c0] sm:$0xff] }
  0x6b   : > { %1366 = vmatpush.bf16.msra.mxu3 %v2728_v39  ;;  %v1578_v39 = vshrl.u32 %v3103_v25, 16 }
  0x6c   : > { %1192 = vmatpush.bf16.msra.mxu0 %v2703_v40  ;;  %v1582_v40 = vrot.slane %v1580_v31, 1 }
  0x6d   : > { %1205 = vmatpush.bf16.msra.mxu1 %v2711_v41  ;;  %v1585_v41 = vshrl.u32 %v3105_v26, 16 }
  0x6e   : > { %1354 = vmatpush.bf16.msra.mxu2 %v2719_v42  ;;  %v1589_v42 = vrot.slane %v1587_v32, 1 }
  0x6f   : > { %1367 = vmatpush.bf16.msra.mxu3 %v2727_v43  ;;  %v2771_v43 = vld [vmem:[#allocation3 + $0x430] sm:$0xff] }
  0x70   : > { %1193 = vmatpush.bf16.msra.mxu0 %v2702_v44  ;;  %v2779_v44 = vld [vmem:[#allocation3 + $0x470] sm:$0xff]  ;;  %v1590_v46 = vor.u32 %v1589_v42, %v1585_v41 }
  0x71   : > { %1206 = vmatpush.bf16.msra.mxu1 %v2710_v45  ;;  %v1583_v45 = vor.u32 %v1582_v40, %v1578_v39 }
  0x72   : > { %1355 = vmatpush.bf16.msra.mxu2 %v2718_v48  ;;  %v2778_v48 = vld [vmem:[#allocation3 + $0x468] sm:$0xff] }
  0x73   : > { %1368 = vmatpush.bf16.msra.mxu3 %v2726_v49  ;;  %v2769_v49 = vld [vmem:[#allocation3 + $0x420] sm:$0xff] }
  0x74   : > { %1194 = vmatpush.bf16.msra.mxu0 %v2701_v50  ;;  %v2777_v50 = vld [vmem:[#allocation3 + $0x460] sm:$0xff] }
  0x75   : > { %1207 = vmatpush.bf16.msra.mxu1 %v2709_v51  ;;  %v2959_v51 = vmov 0.0  }
  0x76   : > { %1356 = vmatpush.bf16.msra.mxu2 %v2717_v58  ;;  %373 = vst [vmem:[#allocation2] sm:$0xf] %v2959_v51  ;;  %v2765_v58 = vld [vmem:[#allocation3 + $0x400] sm:$0xff] }
  0x77   : > { %1369 = vmatpush.bf16.msra.mxu3 %v2725_v59  ;;  %1195 = vmatmul.bf16.vlgmr.msra.gmra.mxu0 %v1081_v62  ;;  %v2773_v59 = vld [vmem:[#allocation3 + $0x440] sm:$0xff] }
  0x78   : > { %1515 = vmatpush.bf16.msrb.mxu0 %v2740_v56  ;;  %1208 = vmatmul.bf16.vlgmr.msra.gmra.mxu1 %v1088_v63  ;;  %v2766_v56 = vld [vmem:[#allocation3 + $0x408] sm:$0xff] }
  0x79   : > { %1528 = vmatpush.bf16.msrb.mxu1 %v2748_v57  ;;  %1357 = vmatmul.bf16.vlgmr.msra.gmra.mxu2 %v1249_v2  ;;  %v2774_v57 = vld [vmem:[#allocation3 + $0x448] sm:$0xff] }
  0x7a   : > { %1689 = vmatpush.bf16.msrb.mxu2 %v2756_v60  ;;  %1370 = vmatmul.bf16.vlgmr.msra.gmra.mxu3 %v1250_v3  ;;  %v1751_v60 = vrot.slane %v3103_v25, 1 }
  0x7b   : > { %1702 = vmatpush.bf16.msrb.mxu3 %v2764_v61  ;;  %v1752_v61 = vrot.slane %v3105_v26, 1 }
  0x7c   : > { %1516 = vmatpush.bf16.msrb.mxu0 %v2739_v0 }
  0x7d   : > { %1529 = vmatpush.bf16.msrb.mxu1 %v2747_v1  ;;  %v375_v63 = vld [vmem:[#allocation2] sm:$0xf] }
  0x7e   : > { %1690 = vmatpush.bf16.msrb.mxu2 %v2755_v4 }
  0x7f   : > { %1703 = vmatpush.bf16.msrb.mxu3 %v2763_v5 }
  0x80   : > { %1517 = vmatpush.bf16.msrb.mxu0 %v2738_v6 }
  0x81   : > { %1530 = vmatpush.bf16.msrb.mxu1 %v2746_v7 }
  0x82   : > { %1691 = vmatpush.bf16.msrb.mxu2 %v2754_v8 }
  0x83   : > { %1704 = vmatpush.bf16.msrb.mxu3 %v2762_v9 }
  0x84   : > { %1518 = vmatpush.bf16.msrb.mxu0 %v2737_v10 }
  0x85   : > { %1531 = vmatpush.bf16.msrb.mxu1 %v2745_v11 }
  0x86   : > { %1692 = vmatpush.bf16.msrb.mxu2 %v2753_v12 }
  0x87   : > { %1705 = vmatpush.bf16.msrb.mxu3 %v2761_v13 }
  0x88   : > { %1519 = vmatpush.bf16.msrb.mxu0 %v2736_v15 }
  0x89   : > { %1532 = vmatpush.bf16.msrb.mxu1 %v2744_v16 }
  0x8a   : > { %1693 = vmatpush.bf16.msrb.mxu2 %v2752_v17 }
  0x8b   : > { %1706 = vmatpush.bf16.msrb.mxu3 %v2760_v18 }
  0x8c   : > { %1520 = vmatpush.bf16.msrb.mxu0 %v2735_v21 }
  0x8d   : > { %1533 = vmatpush.bf16.msrb.mxu1 %v2743_v22 }
  0x8e   : > { %1694 = vmatpush.bf16.msrb.mxu2 %v2751_v23 }
  0x8f   : > { %1707 = vmatpush.bf16.msrb.mxu3 %v2759_v24 }
  0x90   : > { %1521 = vmatpush.bf16.msrb.mxu0 %v2734_v27 }
  0x91   : > { %1534 = vmatpush.bf16.msrb.mxu1 %v2742_v28 }
  0x92   : > { %1695 = vmatpush.bf16.msrb.mxu2 %v2750_v29 }
  0x93   : > { %1708 = vmatpush.bf16.msrb.mxu3 %v2758_v30 }
  0x94   : > { %1522 = vmatpush.bf16.msrb.mxu0 %v2733_v33 }
  0x95   : > { %1535 = vmatpush.bf16.msrb.mxu1 %v2741_v34 }
  0x96   : > { %1696 = vmatpush.bf16.msrb.mxu2 %v2749_v37 }
  0x97   : > { %1709 = vmatpush.bf16.msrb.mxu3 %v2757_v38  ;;  %1523 = vmatmul.bf16.vlgmr.msrb.gmra.mxu0 %v3103_v25 }
  0x98   : > { %1851 = vmatpush.bf16.msra.mxu0 %v2772_v35  ;;  %1536 = vmatmul.bf16.vlgmr.msrb.gmra.mxu1 %v3105_v26 }
  0x99   : > { %1864 = vmatpush.bf16.msra.mxu1 %v2780_v36  ;;  %1697 = vmatmul.bf16.vlgmr.msrb.gmra.mxu2 %v1583_v45 }
  0x9a   : > { %1710 = vmatmul.bf16.vlgmr.msrb.gmra.mxu3 %v1590_v46 }
  0x9c   : > { %1852 = vmatpush.bf16.msra.mxu0 %v2771_v43 }
  0x9d   : > { %1865 = vmatpush.bf16.msra.mxu1 %v2779_v44 }
  0xa0   : > { %1853 = vmatpush.bf16.msra.mxu0 %v2770_v47 }
  0xa1   : > { %1866 = vmatpush.bf16.msra.mxu1 %v2778_v48 }
  0xa4   : > { %1854 = vmatpush.bf16.msra.mxu0 %v2769_v49 }
  0xa5   : > { %1867 = vmatpush.bf16.msra.mxu1 %v2777_v50 }
  0xa8   : > { %1855 = vmatpush.bf16.msra.mxu0 %v2768_v52 }
  0xa9   : > { %1868 = vmatpush.bf16.msra.mxu1 %v2776_v53 }
  0xac   : > { %1856 = vmatpush.bf16.msra.mxu0 %v2767_v54 }
  0xad   : > { %1869 = vmatpush.bf16.msra.mxu1 %v2775_v55 }
  0xb0   : > { %1857 = vmatpush.bf16.msra.mxu0 %v2766_v56 }
  0xb1   : > { %1870 = vmatpush.bf16.msra.mxu1 %v2774_v57 }
  0xb4   : > { %1858 = vmatpush.bf16.msra.mxu0 %v2765_v58  ;;  %v520_v62 = vpop.f32.mrf.mxu0 }
  0xb5   : > { %1871 = vmatpush.bf16.msra.mxu1 %v2773_v59  ;;  %v533_v0 = vpop.f32.mrf.mxu1 }
  0xb6   : > { %v534_v1 = vadd.f32 %v533_v0, %v520_v62 }
  0xb7   : > { %1859 = vmatmul.bf16.vlgmr.msra.gmra.mxu0 %v1751_v60 }
  0xb8   : > { %1872 = vmatmul.bf16.vlgmr.msra.gmra.mxu1 %v1752_v61  ;;  %v537_v2 = vadd.f32 %v534_v1, %v375_v63  ;;  %v2846_v61 = vld [vmem:[#allocation5] ss:$0 sm:$0xff] }
  0xba   : > { %538 = vst [vmem:[#allocation2] sm:$0xf] %v537_v2 }
  0xbc   : > { %v522_v3 = vpop.f32.mrf.mxu0  ;;  %v694_v5 = vpop.f32.mrf.mxu2 }
  0xbd   : > { %v535_v4 = vpop.f32.mrf.mxu1  ;;  %v707_v6 = vpop.f32.mrf.mxu3 }
  0xbe   : > { %v708_v7 = vadd.f32 %v707_v6, %v694_v5 }
  0xc1   : > { %v539_v8 = vld [vmem:[#allocation2] sm:$0xf] }
  0xc2   : > { %v711_v9 = vadd.f32 %v708_v7, %v539_v8 }
  0xc4   : > { %712 = vst [vmem:[#allocation2] sm:$0xf] %v711_v9  ;;  %v696_v10 = vpop.f32.mrf.mxu2 }
  0xc5   : > { %v709_v11 = vpop.f32.mrf.mxu3 }
  0xcb   : > { %v713_v13 = vld [vmem:[#allocation2] sm:$0xf] }
  0xd4   : > { %v856_v12 = vpop.f32.mrf.mxu0 }
  0xd5   : > { %v869_v14 = vpop.f32.mrf.mxu1 }
  0xd6   : > { %v870_v15 = vadd.f32 %v869_v14, %v856_v12 }
  0xd8   : > { %v873_v16 = vadd.f32 %v870_v15, %v713_v13 }
  0xda   : > { %874 = vst [vmem:[#allocation2] sm:$0xf] %v873_v16 }
  0xdc   : > { %v858_v17 = vpop.f32.mrf.mxu0  ;;  %v1022_v19 = vpop.f32.mrf.mxu2 }
  0xdd   : > { %v871_v18 = vpop.f32.mrf.mxu1  ;;  %v1035_v20 = vpop.f32.mrf.mxu3 }
  0xde   : > { %v1036_v21 = vadd.f32 %v1035_v20, %v1022_v19 }
  0xe1   : > { %v876_v22 = vld [vmem:[#allocation2] sm:$0xf] }
  0xe2   : > { %v1039_v23 = vadd.f32 %v1036_v21, %v876_v22 }
  0xe4   : > { %1040 = vst [vmem:[#allocation2] sm:$0xf] %v1039_v23  ;;  %v1024_v24 = vpop.f32.mrf.mxu2 }
  0xe5   : > { %v1037_v25 = vpop.f32.mrf.mxu3 }
  0xeb   : > { %v1041_v27 = vld [vmem:[#allocation2] sm:$0xf] }
  0xf4   : > { %v1196_v26 = vpop.f32.mrf.mxu0 }
  0xf5   : > { %v1209_v28 = vpop.f32.mrf.mxu1 }
  0xf6   : > { %v1210_v29 = vadd.f32 %v1209_v28, %v1196_v26 }
  0xf8   : > { %v1213_v30 = vadd.f32 %v1210_v29, %v1041_v27 }
  0xfa   : > { %1214 = vst [vmem:[#allocation2] sm:$0xf] %v1213_v30 }
  0xfc   : > { %v1198_v31 = vpop.f32.mrf.mxu0  ;;  %v1358_v33 = vpop.f32.mrf.mxu2 }
  0xfd   : > { %v1211_v32 = vpop.f32.mrf.mxu1  ;;  %v1371_v34 = vpop.f32.mrf.mxu3 }
  0xfe   : > { %v1372_v35 = vadd.f32 %v1371_v34, %v1358_v33 }
 0x101   : > { %v1215_v36 = vld [vmem:[#allocation2] sm:$0xf] }
 0x102   : > { %v1375_v37 = vadd.f32 %v1372_v35, %v1215_v36 }
 0x104   : > { %1376 = vst [vmem:[#allocation2] sm:$0xf] %v1375_v37  ;;  %v1360_v38 = vpop.f32.mrf.mxu2 }
 0x105   : > { %v1373_v39 = vpop.f32.mrf.mxu3 }
 0x10b   : > { %v1378_v41 = vld [vmem:[#allocation2] sm:$0xf] }
 0x114   : > { %v1524_v40 = vpop.f32.mrf.mxu0 }
 0x115   : > { %v1537_v42 = vpop.f32.mrf.mxu1 }
 0x116   : > { %v1538_v43 = vadd.f32 %v1537_v42, %v1524_v40 }
 0x118   : > { %v1541_v44 = vadd.f32 %v1538_v43, %v1378_v41 }
 0x11a   : > { %1542 = vst [vmem:[#allocation2] sm:$0xf] %v1541_v44 }
 0x11c   : > { %v1526_v45 = vpop.f32.mrf.mxu0  ;;  %v1698_v47 = vpop.f32.mrf.mxu2 }
 0x11d   : > { %v1539_v46 = vpop.f32.mrf.mxu1  ;;  %v1711_v48 = vpop.f32.mrf.mxu3 }
 0x11e   : > { %v1712_v49 = vadd.f32 %v1711_v48, %v1698_v47 }
 0x121   : > { %v1543_v50 = vld [vmem:[#allocation2] sm:$0xf] }
 0x122   : > { %v1715_v51 = vadd.f32 %v1712_v49, %v1543_v50 }
 0x124   : > { %1716 = vst [vmem:[#allocation2] sm:$0xf] %v1715_v51  ;;  %v1700_v52 = vpop.f32.mrf.mxu2 }
 0x125   : > { %v1713_v53 = vpop.f32.mrf.mxu3 }
 0x12b   : > { %v1717_v57 = vld [vmem:[#allocation2] sm:$0xf] }
 0x134   : > { %v1860_v54 = vpop.f32.mrf.mxu0 }
 0x135   : > { %v1873_v55 = vpop.f32.mrf.mxu1 }
 0x136   : > { %v1874_v56 = vadd.f32 %v1873_v55, %v1860_v54 }
 0x138   : > { %v1877_v58 = vadd.f32 %v1874_v56, %v1717_v57 }
 0x13a   : > { %1878 = vst [vmem:[#allocation2] sm:$0xf] %v1877_v58 }
 0x13c   : > { %v1862_v59 = vpop.f32.mrf.mxu0 }
 0x13d   : > { %v1875_v60 = vpop.f32.mrf.mxu1 }
 0x141   : > { %v1879_v62 = vld [vmem:[#allocation2] sm:$0xf] }
 0x142   : > { %v1884_v63 = vadd.f32 %v2846_v61, %v1879_v62 }
 0x144   : > { %v1885_v0 = vmax.f32 %v1884_v63, 0.0 }
 0x146   : > { %v1886_v1 = vpack.c.bf16 %v1885_v0, %v1885_v0 }
 0x148   : > { %1887 = vst [vmem:[%s372_s6] sm:$0x3] %v1886_v1 }
 0x149 PF: > { %s17_s22 = sadd.s32 1, %s2953_s22   ;;  %s3144_s18 = smov %s2945_s20 }
 0x14a   : > { %p14_p13 = scmp.ge.s32.totalorder %s17_s22, 10   ;;  %s3145_s19 = smov %s2949_s21 }
 0x14b   : > { %s3146_s20 = smov %s3149_s24  ;;  %s3147_s21 = smov %s3153_s25 }
 0x14c   :  { %16 = sbr.rel (!%p14_p13) target bundleno = 4 (0x4), region = 93 }
 0x151   :  { %1915 = vsyncpa [#allocation4], 1 }
 0x152   :  { %1917 = vsyncpa [#allocation4 + $0x1], 1 }
 0x153   :  { %1918 = vsyncpa [#allocation6], 1 }

// kernel: variational_encoder_forward.9
= control target key start
LH: loop header
LB: loop body
LE: loop exit
PB: predicated region body
PF: predicated region fallthrough
CT: control target
= control target key end

     0   :  { %s1053_s12 = smov 0   ;;  %s1055_s13 = smov 0   ;;  %s1173_s0 = inlined_call_operand.vmem [shape: bf16[16,2048], index: 0, kind: input, shape index: {}]   ;;  %s1174_s1 = inlined_call_operand.vmem [shape: bf16[2048,128], index: 1, kind: input, shape index: {}]   ;;  %s1175_s2 = inlined_call_operand.vmem [shape: f32[1,128], index: 2, kind: input, shape index: {}]   ;;  %s1176_s3 = inlined_call_operand.vmem [shape: f32[16,128], index: 3, kind: output, shape index: {}]  }
   0x1   :  { %s1057_s14 = smov 0   ;;  %s1059_s15 = smov 0  }
   0x2   :  { %s1061_s16 = smov 0  }
   0x3 LB: > { %s25_s17 = sadd.s32 1, %s1026_s15  ;;  %p48_p1 = scmp.ne.s32.totalorder %s1018_s13, %s1014_s12  ;;  %s1030_s16 = sphi %s1061_s16, %s13_s16   ;;  %s1026_s15 = sphi %s1059_s15, %s1180_s15   ;;  %s1022_s14 = sphi %s1057_s14, %s1179_s14   ;;  %s1018_s13 = sphi %s1055_s13, %s1178_s13   ;;  %s1014_s12 = sphi %s1053_s12, %s1177_s12  }
   0x4   : > { %p26_p0 = scmp.ge.s32.totalorder %s25_s17, 4  ;;  %p49_p2 = scmp.eq.s32.totalorder %s1030_s16, 0 }
   0x5   : > { %s41_s19 = sadd.s32 1, %s1018_s13  ;;  %p755_p5 = scmp.ge.s32.totalorder %s1030_s16, 4 }
   0x6   : > { %s1182_s17 = smov (%p26_p0, %s25_s17), 0  ;;  %p50_p3 = por %p49_p2, %p48_p1 }
   0x7   : > { %s37_s18 = ssub.s32 %s1026_s15, %s1182_s17  ;;  %162 = sbr.rel (%p755_p5) target bundleno = 20 (0x14), region = 20 }
   0x8   : > { %p39_p4 = scmp.eq.s32.totalorder %s37_s18, 0 }
   0xa   : > { %s1088_s20 = scalar_select %p39_p4, %s1018_s13, %s41_s19  }
   0xc   : > { %165 = sbr.rel (!%p50_p3) target bundleno = 20 (0x14), region = 24  ;;  %s167_s21 = sand.u32 (%p50_p3), 1, %s1018_s13  }
   0xd   : > { %s913_s22 = sshll.u32 (%p50_p3), %s1026_s15, 4  ;;  %s756_s23 = sshll.u32 (%p50_p3), %s167_s21, 5 }
   0xe   : > { %s175_s26 = scalar_lea.vmem (%p50_p3), %s1173_s0, %s913_s22  ;;  %s169_s27 = scalar_lea.vmem (%p50_p3), [#allocation3], %s756_s23 }
   0xf   : > { %v188_v0 = vld [vmem:[%s175_s26] sm:$0xff] (%p50_p3)  ;;  %v190_v1 = vld [vmem:[%s175_s26 + $0x8] sm:$0xff] (%p50_p3) }
  0x10   : > { %v192_v2 = vld [vmem:[%s175_s26 + $0x40] sm:$0xff] (%p50_p3)  ;;  %189 = vst [vmem:[%s169_s27] sm:$0xff] (%p50_p3), %v188_v0  ;;  %v194_v3 = vld [vmem:[%s175_s26 + $0x48] sm:$0xff] (%p50_p3) }
  0x11   : > { %191 = vst [vmem:[%s169_s27 + $0x8] sm:$0xff] %v190_v1 }
  0x12   : > { %193 = vst [vmem:[%s169_s27 + $0x10] sm:$0xff] %v192_v2 }
  0x13   : > { %195 = vst [vmem:[%s169_s27 + $0x18] sm:$0xff] %v194_v3 }
  0x14 PF: > { %p759_p6 = scmp.ge.s32.totalorder %s1030_s16, 1  ;;  %p212_p7 = scmp.lt.s32.totalorder %s1030_s16, 5 }
  0x16   : > { %p213_p8 = pnand %p759_p6, %p212_p7 }
  0x17   : > { %s219_s28 = sand.u32 (!%p213_p8), 1, %s1014_s12   ;;  %s761_s29 = sshll.u32 (!%p213_p8), %s1022_s14, 6 }
  0x18   : > { %216 = sbr.rel (%p213_p8) target bundleno = 228 (0xe4), region = 51  ;;  %s760_s30 = sshll.u32 (!%p213_p8), %s219_s28, 5 }
  0x19   : > { %p259_p9 = scmp.lt.s32.totalorder (!%p213_p8), %s761_s29, 255  ;;  %s1105_s8 = scalar_lea.vmem (!%p213_p8), [#allocation3], %s760_s30 }
  0x1a   : > { %p763_p10 = scmp.ne.s32.totalorder (!%p213_p8), %s1022_s14, 0 }
  0x1d   : > { %s1184_s29 = smov (!%p259_p9, %s761_s29), 255  ;;  %282 = sbr.rel (%p763_p10) target bundleno = 37 (0x25), region = 59 }
  0x1e   : > { %s762_s4 = sshll.u32 %s1184_s29, 2 }
  0x1f   : > { %s1103_s7 = scalar_lea.vmem %s1174_s1, %s762_s4 }
  0x22   : > { %v1032_v4 = vmov 0.0  }
  0x23   : > { %283 = vst [vmem:[#allocation2] sm:$0xff] %v1032_v4 }
  0x24   : > { %284 = vst [vmem:[#allocation2 + $0x8] sm:$0xff] %v1032_v4 }
  0x25 PF: > { %v925_v5 = vld [vmem:[%s1103_s7 + $0x38] sm:$0xff]  ;;  %v924_v9 = vld [vmem:[%s1103_s7 + $0x30] sm:$0xff]  ;;  %v923_v13 = vld [vmem:[%s1103_s7 + $0x28] sm:$0xff]  ;;  %p908_p11 = scmp.ne.s32.totalorder %s1022_s14, 3 }
  0x26   : > { %v933_v6 = vld [vmem:[%s1103_s7 + $0x78] sm:$0xff]  ;;  %567 = vmatpush.bf16.msra.mxu0 %v925_v5  ;;  %v932_v10 = vld [vmem:[%s1103_s7 + $0x70] sm:$0xff]  ;;  %v931_v14 = vld [vmem:[%s1103_s7 + $0x68] sm:$0xff] }
  0x27   : > { %v941_v7 = vld [vmem:[%s1103_s7 + $0xb8] sm:$0xff]  ;;  %581 = vmatpush.bf16.msra.mxu1 %v933_v6  ;;  %v940_v11 = vld [vmem:[%s1103_s7 + $0xb0] sm:$0xff]  ;;  %v939_v15 = vld [vmem:[%s1103_s7 + $0xa8] sm:$0xff] }
  0x28   : > { %v949_v8 = vld [vmem:[%s1103_s7 + $0xf8] sm:$0xff]  ;;  %595 = vmatpush.bf16.msra.mxu2 %v941_v7  ;;  %v948_v12 = vld [vmem:[%s1103_s7 + $0xf0] sm:$0xff]  ;;  %v947_v16 = vld [vmem:[%s1103_s7 + $0xe8] sm:$0xff] }
  0x29   : > { %609 = vmatpush.bf16.msra.mxu3 %v949_v8  ;;  %v922_v17 = vld [vmem:[%s1103_s7 + $0x20] sm:$0xff]  ;;  %v921_v21 = vld [vmem:[%s1103_s7 + $0x18] sm:$0xff]  ;;  %v920_v25 = vld [vmem:[%s1103_s7 + $0x10] sm:$0xff] }
  0x2a   : > { %568 = vmatpush.bf16.msra.mxu0 %v924_v9  ;;  %v930_v18 = vld [vmem:[%s1103_s7 + $0x60] sm:$0xff]  ;;  %v929_v22 = vld [vmem:[%s1103_s7 + $0x58] sm:$0xff]  ;;  %v928_v26 = vld [vmem:[%s1103_s7 + $0x50] sm:$0xff] }
  0x2b   : > { %582 = vmatpush.bf16.msra.mxu1 %v932_v10  ;;  %v938_v19 = vld [vmem:[%s1103_s7 + $0xa0] sm:$0xff]  ;;  %v937_v23 = vld [vmem:[%s1103_s7 + $0x98] sm:$0xff]  ;;  %v936_v27 = vld [vmem:[%s1103_s7 + $0x90] sm:$0xff] }
  0x2c   : > { %596 = vmatpush.bf16.msra.mxu2 %v940_v11  ;;  %v946_v20 = vld [vmem:[%s1103_s7 + $0xe0] sm:$0xff]  ;;  %v945_v24 = vld [vmem:[%s1103_s7 + $0xd8] sm:$0xff]  ;;  %v944_v28 = vld [vmem:[%s1103_s7 + $0xd0] sm:$0xff] }
  0x2d   : > { %610 = vmatpush.bf16.msra.mxu3 %v948_v12  ;;  %v919_v29 = vld [vmem:[%s1103_s7 + $0x8] sm:$0xff]  ;;  %v918_v33 = vld [vmem:[%s1103_s7] sm:$0xff]  ;;  %v766_v37 = vld [vmem:[%s1105_s8] sm:$0xf] }
  0x2e   : > { %569 = vmatpush.bf16.msra.mxu0 %v923_v13  ;;  %v927_v30 = vld [vmem:[%s1103_s7 + $0x48] sm:$0xff]  ;;  %v926_v34 = vld [vmem:[%s1103_s7 + $0x40] sm:$0xff]  ;;  %v914_v39 = vld [vmem:[%s1105_s8 + $0x4] sm:$0xf] }
  0x2f   : > { %583 = vmatpush.bf16.msra.mxu1 %v931_v14  ;;  %v935_v31 = vld [vmem:[%s1103_s7 + $0x88] sm:$0xff]  ;;  %v934_v35 = vld [vmem:[%s1103_s7 + $0x80] sm:$0xff]  ;;  %v774_v41 = vld [vmem:[%s1105_s8 + $0x8] sm:$0xf] }
  0x30   : > { %597 = vmatpush.bf16.msra.mxu2 %v939_v15  ;;  %v943_v32 = vld [vmem:[%s1103_s7 + $0xc8] sm:$0xff]  ;;  %v942_v36 = vld [vmem:[%s1103_s7 + $0xc0] sm:$0xff]  ;;  %v915_v43 = vld [vmem:[%s1105_s8 + $0xc] sm:$0xf] }
  0x31   : > { %611 = vmatpush.bf16.msra.mxu3 %v947_v16  ;;  %v916_v38 = vld [vmem:[%s1105_s8 + $0xc] sm:$0xf0]  ;;  %v768_v40 = vld [vmem:[%s1105_s8 + $0x10] sm:$0xf0]  ;;  %v917_v42 = vld [vmem:[%s1105_s8 + $0x14] sm:$0xf0] }
  0x32   : > { %570 = vmatpush.bf16.msra.mxu0 %v922_v17  ;;  %v776_v44 = vld [vmem:[%s1105_s8 + $0x18] sm:$0xf0]  ;;  %v767_v45 = vor.u32 %v916_v38, %v766_v37  ;;  %v771_v46 = vor.u32 %v914_v39, %v768_v40  ;;  %v775_v47 = vor.u32 %v917_v42, %v774_v41  ;;  %v285_v55 = vld [vmem:[#allocation2] sm:$0xff] }
  0x33   : > { %584 = vmatpush.bf16.msra.mxu1 %v930_v18  ;;  %v779_v48 = vor.u32 %v915_v43, %v776_v44  ;;  %v286_v63 = vld [vmem:[#allocation2 + $0x8] sm:$0xff] }
  0x34   : > { %598 = vmatpush.bf16.msra.mxu2 %v938_v19 }
  0x35   : > { %612 = vmatpush.bf16.msra.mxu3 %v946_v20 }
  0x36   : > { %571 = vmatpush.bf16.msra.mxu0 %v921_v21 }
  0x37   : > { %585 = vmatpush.bf16.msra.mxu1 %v929_v22 }
  0x38   : > { %599 = vmatpush.bf16.msra.mxu2 %v937_v23 }
  0x39   : > { %613 = vmatpush.bf16.msra.mxu3 %v945_v24 }
  0x3a   : > { %572 = vmatpush.bf16.msra.mxu0 %v920_v25 }
  0x3b   : > { %586 = vmatpush.bf16.msra.mxu1 %v928_v26 }
  0x3c   : > { %600 = vmatpush.bf16.msra.mxu2 %v936_v27 }
  0x3d   : > { %614 = vmatpush.bf16.msra.mxu3 %v944_v28 }
  0x3e   : > { %573 = vmatpush.bf16.msra.mxu0 %v919_v29 }
  0x3f   : > { %587 = vmatpush.bf16.msra.mxu1 %v927_v30 }
  0x40   : > { %601 = vmatpush.bf16.msra.mxu2 %v935_v31 }
  0x41   : > { %615 = vmatpush.bf16.msra.mxu3 %v943_v32 }
  0x42   : > { %574 = vmatpush.bf16.msra.mxu0 %v918_v33 }
  0x43   : > { %588 = vmatpush.bf16.msra.mxu1 %v926_v34 }
  0x44   : > { %602 = vmatpush.bf16.msra.mxu2 %v934_v35 }
  0x45   : > { %616 = vmatpush.bf16.msra.mxu3 %v942_v36  ;;  %575 = vmatmul.bf16.vlgmr.msra.gmra.mxu0 %v767_v45 }
  0x46   : > { %589 = vmatmul.bf16.vlgmr.msra.gmra.mxu1 %v771_v46 }
  0x47   : > { %603 = vmatmul.bf16.vlgmr.msra.gmra.mxu2 %v775_v47 }
  0x48   : > { %617 = vmatmul.bf16.vlgmr.msra.gmra.mxu3 %v779_v48 }
  0xc2   : > { %v576_v49 = vpop.f32.mrf.mxu0 }
  0xc3   : > { %v590_v50 = vpop.f32.mrf.mxu1 }
  0xc4   : > { %v591_v51 = vadd.f32 %v590_v50, %v576_v49 }
  0xca   : > { %v604_v52 = vpop.f32.mrf.mxu2  ;;  %v578_v57 = vpop.f32.mrf.mxu0 }
  0xcb   : > { %v618_v53 = vpop.f32.mrf.mxu3  ;;  %v605_v54 = vadd.f32 %v604_v52, %v591_v51  ;;  %v592_v58 = vpop.f32.mrf.mxu1 }
  0xcc   : > { %v593_v60 = vadd.f32 %v592_v58, %v578_v57 }
  0xcd   : > { %v619_v56 = vadd.f32 %v618_v53, %v605_v54 }
  0xcf   : > { %v623_v59 = vadd.f32 %v619_v56, %v285_v55 }
  0xd1   : > { %625 = vst [vmem:[#allocation2] sm:$0xff] %v623_v59 }
  0xd2   : > { %v606_v61 = vpop.f32.mrf.mxu2 }
  0xd3   : > { %v607_v62 = vadd.f32 %v606_v61, %v593_v60  ;;  %v620_v0 = vpop.f32.mrf.mxu3 }
  0xd5   : > { %v621_v1 = vadd.f32 %v620_v0, %v607_v62  ;;  %630 = sbr.rel (%p908_p11) target bundleno = 228 (0xe4), region = 63 }
  0xd7   : > { %v624_v2 = vadd.f32 %v621_v1, %v286_v63 }
  0xd9   : > { %626 = vst [vmem:[#allocation2 + $0x8] sm:$0xff] %v624_v2 }
  0xda   : > { %v631_v3 = vld [vmem:[#allocation2] sm:$0xff] }
  0xdb   : > { %v991_v4 = vld [vmem:[%s1175_s2] ss:$0 sm:$0xff] }
  0xdc   : > { %v637_v6 = vadd.f32 %v991_v4, %v631_v3 }
  0xde   : > { %639 = vst [vmem:[%s1176_s3] sm:$0xff] %v637_v6 }
  0xe0   : > { %v632_v5 = vld [vmem:[#allocation2 + $0x8] sm:$0xff] }
  0xe1   : > { %v638_v7 = vadd.f32 %v991_v4, %v632_v5 }
  0xe3   : > { %640 = vst [vmem:[%s1176_s3 + $0x8] sm:$0xff] %v638_v7 }
  0xe4 PF: > { %s13_s16 = sadd.s32 1, %s1030_s16   ;;  %s1177_s12 = smov %s1018_s13 }
  0xe5   : > { %p10_p12 = scmp.ge.s32.totalorder %s13_s16, 6   ;;  %s1178_s13 = smov %s1088_s20 }
  0xe6   : > { %s1179_s14 = smov %s1026_s15  ;;  %s1180_s15 = smov %s1182_s17 }
  0xe7   :  { %12 = sbr.rel (!%p10_p12) target bundleno = 3 (0x3), region = 104 }

// kernel: variational_encoder_forward.8
= control target key start
LH: loop header
LB: loop body
LE: loop exit
PB: predicated region body
PF: predicated region fallthrough
CT: control target
= control target key end

     0   :  { %s3401_s0 = inlined_call_operand.vmem [shape: bf16[16,1024], index: 0, kind: input, shape index: {}]   ;;  %s3402_s1 = inlined_call_operand.vmem [shape: bf16[1024,2048], index: 1, kind: input, shape index: {}]   ;;  %s3403_s2 = inlined_call_operand.vmem [shape: f32[1,2048], index: 2, kind: input, shape index: {}]   ;;  %s3404_s3 = inlined_call_operand.vmem [shape: bf16[16,2048], index: 3, kind: output, shape index: {}]  }
   0x1   :  { %3406 = sst [smem:[#allocation7_spill]] %s3401_s0 }
   0x2   :  { %3407 = sst [smem:[#allocation8_spill]] %s3402_s1 }
   0x3   :  { %s2667_s12 = smov 0   ;;  %s2669_s13 = smov 0  }
   0x4   :  { %s2671_s14 = smov 0   ;;  %s2673_s15 = smov 0  }
   0x5   :  { %s2675_s16 = smov 0   ;;  %s2677_s17 = smov 0  }
   0x6   :  { %s2679_s18 = smov 0   ;;  %s2681_s19 = smov 0  }
   0x7   :  { %s2683_s20 = smov 0   ;;  %s2685_s21 = smov 0  }
   0x8   :  { %s2687_s22 = smov 0  }
   0x9 LB: > { %s1782_s23 = sadd.s32 4294967295, %s2644_s22   ;;  %s25_s24 = sadd.s32 1, %s2636_s20  ;;  %s2644_s22 = sphi %s2687_s22, %s13_s22   ;;  %s2640_s21 = sphi %s2685_s21, %s3424_s21   ;;  %s2636_s20 = sphi %s2683_s20, %s3423_s20   ;;  %s2632_s19 = sphi %s2681_s19, %s3422_s19   ;;  %s2628_s18 = sphi %s2679_s18, %s3421_s18   ;;  %s2624_s17 = sphi %s2677_s17, %s3420_s17   ;;  %s2620_s16 = sphi %s2675_s16, %s3419_s16   ;;  %s2616_s15 = sphi %s2673_s15, %s3418_s15   ;;  %s2612_s14 = sphi %s2671_s14, %s3417_s14   ;;  %s2608_s13 = sphi %s2669_s13, %s3416_s13   ;;  %s2604_s12 = sphi %s2667_s12, %s3415_s12  }
   0xa   : > { %p26_p0 = scmp.ge.s32.totalorder %s25_s24, 2  ;;  %s28_s25 = sadd.s32 1, %s2640_s21 }
   0xb   : > { %s41_s26 = sadd.s32 1, %s2624_s17  ;;  %p48_p1 = scmp.ne.s32.totalorder %s2624_s17, %s2620_s16 }
   0xc   : > { %s3426_s24 = smov (%p26_p0, %s25_s24), 0  ;;  %s3428_s25 = smov (!%p26_p0, %s28_s25), %s2640_s21 }
   0xd   : > { %s37_s27 = ssub.s32 %s2636_s20, %s3426_s24  ;;  %p49_p2 = scmp.eq.s32.totalorder %s2644_s22, 0 }
   0xe   : > { %p30_p3 = scmp.ge.s32.totalorder %s3428_s25, 4  ;;  %p39_p4 = scmp.eq.s32.totalorder %s37_s27, 0 }
   0xf   : > { %p2734_p5 = por %p49_p2, %p48_p1  ;;  %s69_s29 = sadd.s32 1, %s2616_s15 }
  0x10   : > { %s3430_s25 = smov (%p30_p3, %s3428_s25), 0  ;;  %p76_p6 = scmp.ne.s32.totalorder %s2616_s15, %s2612_s14 }
  0x11   : > { %3409 = sst [smem:[#allocation6_spill]] %s3430_s25  ;;  %s65_s4 = ssub.s32 %s2640_s21, %s3430_s25 }
  0x12   : > { %s2742_s30 = scalar_select %p39_p4, %s2624_s17, %s41_s26  }
  0x13   : > { %s66_s5 = sor.u32 %s65_s4, %s37_s27  ;;  %p121_p7 = scmp.eq.s32.totalorder %s65_s4, 0 }
  0x14   : > { %p67_p8 = scmp.eq.s32.totalorder %s66_s5, 0  ;;  %p2748_p9 = por %p76_p6, %p49_p2 }
  0x15   : > { %s123_s7 = sadd.s32 1, %s2608_s13  ;;  %p133_p10 = scmp.ne.s32.totalorder %s2608_s13, %s2604_s12 }
  0x16   : > { %s2756_s8 = scalar_select %p67_p8, %s2616_s15, %s69_s29  }
  0x17   : > { %s2759_s9 = scalar_select %p121_p7, %s2608_s13, %s123_s7  }
  0x18   : > { %p134_p11 = scmp.eq.s32.totalorder %s1782_s23, 7  ;;  %p1785_p13 = scmp.ge.s32.totalorder %s2644_s22, 8 }
  0x1a   : > { %p2761_p12 = por %p134_p11, %p133_p10  ;;  %156 = sbr.rel (%p1785_p13) target bundleno = 183 (0xb7), region = 16 }
  0x1f   : > { %159 = sbr.rel (!%p2734_p5) target bundleno = 45 (0x2d), region = 20  ;;  %s161_s11 = sand.u32 (%p2734_p5), 1, %s2624_s17  }
  0x20   : > { %s2334_s26 = sshll.u32 (%p2734_p5), %s2636_s20, 4  ;;  %s1786_s27 = sshll.u32 (%p2734_p5), %s161_s11, 5 }
  0x21   : > { %s3412_s0 = sld [smem:[#allocation7_spill]] (%p2734_p5)  ;;  %s163_s23 = scalar_lea.vmem (%p2734_p5), [#allocation3], %s1786_s27 }
  0x27   : > { %s169_s5 = scalar_lea.vmem %s3412_s0, %s2334_s26 }
  0x28   : > { %v182_v0 = vld [vmem:[%s169_s5] sm:$0xff]  ;;  %v184_v1 = vld [vmem:[%s169_s5 + $0x8] sm:$0xff] }
  0x29   : > { %v186_v2 = vld [vmem:[%s169_s5 + $0x20] sm:$0xff]  ;;  %183 = vst [vmem:[%s163_s23] sm:$0xff] %v182_v0  ;;  %v188_v3 = vld [vmem:[%s169_s5 + $0x28] sm:$0xff] }
  0x2a   : > { %185 = vst [vmem:[%s163_s23 + $0x8] sm:$0xff] %v184_v1 }
  0x2b   : > { %187 = vst [vmem:[%s163_s23 + $0x10] sm:$0xff] %v186_v2 }
  0x2c   : > { %189 = vst [vmem:[%s163_s23 + $0x18] sm:$0xff] %v188_v3 }
  0x2d PF: > { %195 = sbr.rel (!%p2748_p9) target bundleno = 183 (0xb7), region = 43  ;;  %s197_s28 = sand.u32 (%p2748_p9), 1, %s2616_s15  }
  0x2e   : > { %s1791_s7 = sshll.u32 (%p2748_p9), %s2640_s21, 2  ;;  %s1789_s11 = sshll.u32 (%p2748_p9), %s197_s28, 10 }
  0x2f   : > { %s2335_s26 = sshll.u32 (%p2748_p9), %s2636_s20, 10  ;;  %s3413_s1 = sld [smem:[#allocation8_spill]] (%p2748_p9) }
  0x30   : > { %s203_s29 = sadd.s32 (%p2748_p9), %s2335_s26, %s1791_s7  ;;  %s2786_s6 = scalar_lea.vmem (%p2748_p9), [#allocation4], %s1789_s11 }
  0x31   : > { %s1793_s4 = sshll.u32 (%p2748_p9), %s203_s29, 2 }
  0x35   : > { %s2781_s5 = scalar_lea.vmem %s3413_s1, %s1793_s4 }
  0x36   : > { %v218_v4 = vld [vmem:[%s2781_s5] sm:$0xff]  ;;  %v220_v5 = vld [vmem:[%s2781_s5 + $0x8] sm:$0xff] }
  0x37   : > { %v222_v6 = vld [vmem:[%s2781_s5 + $0x40] sm:$0xff]  ;;  %219 = vst [vmem:[%s2786_s6] sm:$0xff] %v218_v4  ;;  %v224_v7 = vld [vmem:[%s2781_s5 + $0x48] sm:$0xff] }
  0x38   : > { %221 = vst [vmem:[%s2786_s6 + $0x8] sm:$0xff] %v220_v5  ;;  %v226_v8 = vld [vmem:[%s2781_s5 + $0x80] sm:$0xff]  ;;  %v228_v9 = vld [vmem:[%s2781_s5 + $0x88] sm:$0xff] }
  0x39   : > { %223 = vst [vmem:[%s2786_s6 + $0x10] sm:$0xff] %v222_v6  ;;  %v230_v10 = vld [vmem:[%s2781_s5 + $0xc0] sm:$0xff]  ;;  %v232_v11 = vld [vmem:[%s2781_s5 + $0xc8] sm:$0xff] }
  0x3a   : > { %225 = vst [vmem:[%s2786_s6 + $0x18] sm:$0xff] %v224_v7  ;;  %v234_v12 = vld [vmem:[%s2781_s5 + $0x100] sm:$0xff]  ;;  %v236_v13 = vld [vmem:[%s2781_s5 + $0x108] sm:$0xff] }
  0x3b   : > { %227 = vst [vmem:[%s2786_s6 + $0x20] sm:$0xff] %v226_v8  ;;  %v238_v14 = vld [vmem:[%s2781_s5 + $0x140] sm:$0xff]  ;;  %v240_v15 = vld [vmem:[%s2781_s5 + $0x148] sm:$0xff] }
  0x3c   : > { %229 = vst [vmem:[%s2786_s6 + $0x28] sm:$0xff] %v228_v9  ;;  %v242_v16 = vld [vmem:[%s2781_s5 + $0x180] sm:$0xff]  ;;  %v244_v17 = vld [vmem:[%s2781_s5 + $0x188] sm:$0xff] }
  0x3d   : > { %231 = vst [vmem:[%s2786_s6 + $0x30] sm:$0xff] %v230_v10  ;;  %v246_v18 = vld [vmem:[%s2781_s5 + $0x1c0] sm:$0xff]  ;;  %v248_v19 = vld [vmem:[%s2781_s5 + $0x1c8] sm:$0xff] }
  0x3e   : > { %233 = vst [vmem:[%s2786_s6 + $0x38] sm:$0xff] %v232_v11  ;;  %v250_v20 = vld [vmem:[%s2781_s5 + $0x200] sm:$0xff]  ;;  %v252_v21 = vld [vmem:[%s2781_s5 + $0x208] sm:$0xff] }
  0x3f   : > { %235 = vst [vmem:[%s2786_s6 + $0x40] sm:$0xff] %v234_v12  ;;  %v254_v22 = vld [vmem:[%s2781_s5 + $0x240] sm:$0xff]  ;;  %v256_v23 = vld [vmem:[%s2781_s5 + $0x248] sm:$0xff] }
  0x40   : > { %237 = vst [vmem:[%s2786_s6 + $0x48] sm:$0xff] %v236_v13  ;;  %v258_v24 = vld [vmem:[%s2781_s5 + $0x280] sm:$0xff]  ;;  %v260_v25 = vld [vmem:[%s2781_s5 + $0x288] sm:$0xff] }
  0x41   : > { %239 = vst [vmem:[%s2786_s6 + $0x50] sm:$0xff] %v238_v14  ;;  %v262_v26 = vld [vmem:[%s2781_s5 + $0x2c0] sm:$0xff]  ;;  %v264_v27 = vld [vmem:[%s2781_s5 + $0x2c8] sm:$0xff] }
  0x42   : > { %241 = vst [vmem:[%s2786_s6 + $0x58] sm:$0xff] %v240_v15  ;;  %v266_v28 = vld [vmem:[%s2781_s5 + $0x300] sm:$0xff]  ;;  %v268_v29 = vld [vmem:[%s2781_s5 + $0x308] sm:$0xff] }
  0x43   : > { %243 = vst [vmem:[%s2786_s6 + $0x60] sm:$0xff] %v242_v16  ;;  %v270_v30 = vld [vmem:[%s2781_s5 + $0x340] sm:$0xff]  ;;  %v272_v31 = vld [vmem:[%s2781_s5 + $0x348] sm:$0xff] }
  0x44   : > { %245 = vst [vmem:[%s2786_s6 + $0x68] sm:$0xff] %v244_v17  ;;  %v274_v32 = vld [vmem:[%s2781_s5 + $0x380] sm:$0xff]  ;;  %v276_v33 = vld [vmem:[%s2781_s5 + $0x388] sm:$0xff] }
  0x45   : > { %247 = vst [vmem:[%s2786_s6 + $0x70] sm:$0xff] %v246_v18  ;;  %v278_v34 = vld [vmem:[%s2781_s5 + $0x3c0] sm:$0xff]  ;;  %v280_v35 = vld [vmem:[%s2781_s5 + $0x3c8] sm:$0xff] }
  0x46   : > { %249 = vst [vmem:[%s2786_s6 + $0x78] sm:$0xff] %v248_v19  ;;  %v282_v36 = vld [vmem:[%s2781_s5 + $0x400] sm:$0xff]  ;;  %v284_v37 = vld [vmem:[%s2781_s5 + $0x408] sm:$0xff] }
  0x47   : > { %251 = vst [vmem:[%s2786_s6 + $0x80] sm:$0xff] %v250_v20  ;;  %v286_v38 = vld [vmem:[%s2781_s5 + $0x440] sm:$0xff]  ;;  %v288_v39 = vld [vmem:[%s2781_s5 + $0x448] sm:$0xff] }
  0x48   : > { %253 = vst [vmem:[%s2786_s6 + $0x88] sm:$0xff] %v252_v21  ;;  %v290_v40 = vld [vmem:[%s2781_s5 + $0x480] sm:$0xff]  ;;  %v292_v41 = vld [vmem:[%s2781_s5 + $0x488] sm:$0xff] }
  0x49   : > { %255 = vst [vmem:[%s2786_s6 + $0x90] sm:$0xff] %v254_v22  ;;  %v294_v42 = vld [vmem:[%s2781_s5 + $0x4c0] sm:$0xff]  ;;  %v296_v43 = vld [vmem:[%s2781_s5 + $0x4c8] sm:$0xff] }
  0x4a   : > { %257 = vst [vmem:[%s2786_s6 + $0x98] sm:$0xff] %v256_v23  ;;  %v298_v44 = vld [vmem:[%s2781_s5 + $0x500] sm:$0xff]  ;;  %v300_v45 = vld [vmem:[%s2781_s5 + $0x508] sm:$0xff] }
  0x4b   : > { %259 = vst [vmem:[%s2786_s6 + $0xa0] sm:$0xff] %v258_v24  ;;  %v302_v46 = vld [vmem:[%s2781_s5 + $0x540] sm:$0xff]  ;;  %v304_v47 = vld [vmem:[%s2781_s5 + $0x548] sm:$0xff] }
  0x4c   : > { %261 = vst [vmem:[%s2786_s6 + $0xa8] sm:$0xff] %v260_v25  ;;  %v306_v48 = vld [vmem:[%s2781_s5 + $0x580] sm:$0xff]  ;;  %v308_v49 = vld [vmem:[%s2781_s5 + $0x588] sm:$0xff] }
  0x4d   : > { %263 = vst [vmem:[%s2786_s6 + $0xb0] sm:$0xff] %v262_v26  ;;  %v310_v50 = vld [vmem:[%s2781_s5 + $0x5c0] sm:$0xff]  ;;  %v312_v51 = vld [vmem:[%s2781_s5 + $0x5c8] sm:$0xff] }
  0x4e   : > { %265 = vst [vmem:[%s2786_s6 + $0xb8] sm:$0xff] %v264_v27  ;;  %v314_v52 = vld [vmem:[%s2781_s5 + $0x600] sm:$0xff]  ;;  %v316_v53 = vld [vmem:[%s2781_s5 + $0x608] sm:$0xff] }
  0x4f   : > { %267 = vst [vmem:[%s2786_s6 + $0xc0] sm:$0xff] %v266_v28  ;;  %v318_v54 = vld [vmem:[%s2781_s5 + $0x640] sm:$0xff]  ;;  %v320_v55 = vld [vmem:[%s2781_s5 + $0x648] sm:$0xff] }
  0x50   : > { %269 = vst [vmem:[%s2786_s6 + $0xc8] sm:$0xff] %v268_v29  ;;  %v322_v56 = vld [vmem:[%s2781_s5 + $0x680] sm:$0xff]  ;;  %v324_v57 = vld [vmem:[%s2781_s5 + $0x688] sm:$0xff] }
  0x51   : > { %271 = vst [vmem:[%s2786_s6 + $0xd0] sm:$0xff] %v270_v30  ;;  %v326_v58 = vld [vmem:[%s2781_s5 + $0x6c0] sm:$0xff]  ;;  %v328_v59 = vld [vmem:[%s2781_s5 + $0x6c8] sm:$0xff] }
  0x52   : > { %273 = vst [vmem:[%s2786_s6 + $0xd8] sm:$0xff] %v272_v31  ;;  %v330_v60 = vld [vmem:[%s2781_s5 + $0x700] sm:$0xff]  ;;  %v332_v61 = vld [vmem:[%s2781_s5 + $0x708] sm:$0xff] }
  0x53   : > { %275 = vst [vmem:[%s2786_s6 + $0xe0] sm:$0xff] %v274_v32  ;;  %v334_v62 = vld [vmem:[%s2781_s5 + $0x740] sm:$0xff]  ;;  %v336_v63 = vld [vmem:[%s2781_s5 + $0x748] sm:$0xff] }
  0x54   : > { %277 = vst [vmem:[%s2786_s6 + $0xe8] sm:$0xff] %v276_v33  ;;  %v338_v0 = vld [vmem:[%s2781_s5 + $0x780] sm:$0xff]  ;;  %v340_v1 = vld [vmem:[%s2781_s5 + $0x788] sm:$0xff] }
  0x55   : > { %279 = vst [vmem:[%s2786_s6 + $0xf0] sm:$0xff] %v278_v34  ;;  %v342_v2 = vld [vmem:[%s2781_s5 + $0x7c0] sm:$0xff]  ;;  %v344_v3 = vld [vmem:[%s2781_s5 + $0x7c8] sm:$0xff] }
  0x56   : > { %281 = vst [vmem:[%s2786_s6 + $0xf8] sm:$0xff] %v280_v35  ;;  %v346_v4 = vld [vmem:[%s2781_s5 + $0x800] sm:$0xff]  ;;  %v348_v5 = vld [vmem:[%s2781_s5 + $0x808] sm:$0xff] }
  0x57   : > { %283 = vst [vmem:[%s2786_s6 + $0x100] sm:$0xff] %v282_v36  ;;  %v350_v6 = vld [vmem:[%s2781_s5 + $0x840] sm:$0xff]  ;;  %v352_v7 = vld [vmem:[%s2781_s5 + $0x848] sm:$0xff] }
  0x58   : > { %285 = vst [vmem:[%s2786_s6 + $0x108] sm:$0xff] %v284_v37  ;;  %v354_v8 = vld [vmem:[%s2781_s5 + $0x880] sm:$0xff]  ;;  %v356_v9 = vld [vmem:[%s2781_s5 + $0x888] sm:$0xff] }
  0x59   : > { %287 = vst [vmem:[%s2786_s6 + $0x110] sm:$0xff] %v286_v38  ;;  %v358_v10 = vld [vmem:[%s2781_s5 + $0x8c0] sm:$0xff]  ;;  %v360_v11 = vld [vmem:[%s2781_s5 + $0x8c8] sm:$0xff] }
  0x5a   : > { %289 = vst [vmem:[%s2786_s6 + $0x118] sm:$0xff] %v288_v39  ;;  %v362_v12 = vld [vmem:[%s2781_s5 + $0x900] sm:$0xff]  ;;  %v364_v13 = vld [vmem:[%s2781_s5 + $0x908] sm:$0xff] }
  0x5b   : > { %291 = vst [vmem:[%s2786_s6 + $0x120] sm:$0xff] %v290_v40  ;;  %v366_v14 = vld [vmem:[%s2781_s5 + $0x940] sm:$0xff]  ;;  %v368_v15 = vld [vmem:[%s2781_s5 + $0x948] sm:$0xff] }
  0x5c   : > { %293 = vst [vmem:[%s2786_s6 + $0x128] sm:$0xff] %v292_v41  ;;  %v370_v16 = vld [vmem:[%s2781_s5 + $0x980] sm:$0xff]  ;;  %v372_v17 = vld [vmem:[%s2781_s5 + $0x988] sm:$0xff] }
  0x5d   : > { %295 = vst [vmem:[%s2786_s6 + $0x130] sm:$0xff] %v294_v42  ;;  %v374_v18 = vld [vmem:[%s2781_s5 + $0x9c0] sm:$0xff]  ;;  %v376_v19 = vld [vmem:[%s2781_s5 + $0x9c8] sm:$0xff] }
  0x5e   : > { %297 = vst [vmem:[%s2786_s6 + $0x138] sm:$0xff] %v296_v43  ;;  %v378_v20 = vld [vmem:[%s2781_s5 + $0xa00] sm:$0xff]  ;;  %v380_v21 = vld [vmem:[%s2781_s5 + $0xa08] sm:$0xff] }
  0x5f   : > { %299 = vst [vmem:[%s2786_s6 + $0x140] sm:$0xff] %v298_v44  ;;  %v382_v22 = vld [vmem:[%s2781_s5 + $0xa40] sm:$0xff]  ;;  %v384_v23 = vld [vmem:[%s2781_s5 + $0xa48] sm:$0xff] }
  0x60   : > { %301 = vst [vmem:[%s2786_s6 + $0x148] sm:$0xff] %v300_v45  ;;  %v386_v24 = vld [vmem:[%s2781_s5 + $0xa80] sm:$0xff]  ;;  %v388_v25 = vld [vmem:[%s2781_s5 + $0xa88] sm:$0xff] }
  0x61   : > { %303 = vst [vmem:[%s2786_s6 + $0x150] sm:$0xff] %v302_v46  ;;  %v390_v26 = vld [vmem:[%s2781_s5 + $0xac0] sm:$0xff]  ;;  %v392_v27 = vld [vmem:[%s2781_s5 + $0xac8] sm:$0xff] }
  0x62   : > { %305 = vst [vmem:[%s2786_s6 + $0x158] sm:$0xff] %v304_v47  ;;  %v394_v28 = vld [vmem:[%s2781_s5 + $0xb00] sm:$0xff]  ;;  %v396_v29 = vld [vmem:[%s2781_s5 + $0xb08] sm:$0xff] }
  0x63   : > { %307 = vst [vmem:[%s2786_s6 + $0x160] sm:$0xff] %v306_v48  ;;  %v398_v30 = vld [vmem:[%s2781_s5 + $0xb40] sm:$0xff]  ;;  %v400_v31 = vld [vmem:[%s2781_s5 + $0xb48] sm:$0xff] }
  0x64   : > { %309 = vst [vmem:[%s2786_s6 + $0x168] sm:$0xff] %v308_v49  ;;  %v402_v32 = vld [vmem:[%s2781_s5 + $0xb80] sm:$0xff]  ;;  %v404_v33 = vld [vmem:[%s2781_s5 + $0xb88] sm:$0xff] }
  0x65   : > { %311 = vst [vmem:[%s2786_s6 + $0x170] sm:$0xff] %v310_v50  ;;  %v406_v34 = vld [vmem:[%s2781_s5 + $0xbc0] sm:$0xff]  ;;  %v408_v35 = vld [vmem:[%s2781_s5 + $0xbc8] sm:$0xff] }
  0x66   : > { %313 = vst [vmem:[%s2786_s6 + $0x178] sm:$0xff] %v312_v51  ;;  %v410_v36 = vld [vmem:[%s2781_s5 + $0xc00] sm:$0xff]  ;;  %v412_v37 = vld [vmem:[%s2781_s5 + $0xc08] sm:$0xff] }
  0x67   : > { %315 = vst [vmem:[%s2786_s6 + $0x180] sm:$0xff] %v314_v52  ;;  %v414_v38 = vld [vmem:[%s2781_s5 + $0xc40] sm:$0xff]  ;;  %v416_v39 = vld [vmem:[%s2781_s5 + $0xc48] sm:$0xff] }
  0x68   : > { %317 = vst [vmem:[%s2786_s6 + $0x188] sm:$0xff] %v316_v53  ;;  %v418_v40 = vld [vmem:[%s2781_s5 + $0xc80] sm:$0xff]  ;;  %v420_v41 = vld [vmem:[%s2781_s5 + $0xc88] sm:$0xff] }
  0x69   : > { %319 = vst [vmem:[%s2786_s6 + $0x190] sm:$0xff] %v318_v54  ;;  %v422_v42 = vld [vmem:[%s2781_s5 + $0xcc0] sm:$0xff]  ;;  %v424_v43 = vld [vmem:[%s2781_s5 + $0xcc8] sm:$0xff] }
  0x6a   : > { %321 = vst [vmem:[%s2786_s6 + $0x198] sm:$0xff] %v320_v55  ;;  %v426_v44 = vld [vmem:[%s2781_s5 + $0xd00] sm:$0xff]  ;;  %v428_v45 = vld [vmem:[%s2781_s5 + $0xd08] sm:$0xff] }
  0x6b   : > { %323 = vst [vmem:[%s2786_s6 + $0x1a0] sm:$0xff] %v322_v56  ;;  %v430_v46 = vld [vmem:[%s2781_s5 + $0xd40] sm:$0xff]  ;;  %v432_v47 = vld [vmem:[%s2781_s5 + $0xd48] sm:$0xff] }
  0x6c   : > { %325 = vst [vmem:[%s2786_s6 + $0x1a8] sm:$0xff] %v324_v57  ;;  %v434_v48 = vld [vmem:[%s2781_s5 + $0xd80] sm:$0xff]  ;;  %v436_v49 = vld [vmem:[%s2781_s5 + $0xd88] sm:$0xff] }
  0x6d   : > { %327 = vst [vmem:[%s2786_s6 + $0x1b0] sm:$0xff] %v326_v58  ;;  %v438_v50 = vld [vmem:[%s2781_s5 + $0xdc0] sm:$0xff]  ;;  %v440_v51 = vld [vmem:[%s2781_s5 + $0xdc8] sm:$0xff] }
  0x6e   : > { %329 = vst [vmem:[%s2786_s6 + $0x1b8] sm:$0xff] %v328_v59  ;;  %v442_v52 = vld [vmem:[%s2781_s5 + $0xe00] sm:$0xff]  ;;  %v444_v53 = vld [vmem:[%s2781_s5 + $0xe08] sm:$0xff] }
  0x6f   : > { %331 = vst [vmem:[%s2786_s6 + $0x1c0] sm:$0xff] %v330_v60  ;;  %v446_v54 = vld [vmem:[%s2781_s5 + $0xe40] sm:$0xff]  ;;  %v448_v55 = vld [vmem:[%s2781_s5 + $0xe48] sm:$0xff] }
  0x70   : > { %333 = vst [vmem:[%s2786_s6 + $0x1c8] sm:$0xff] %v332_v61  ;;  %v450_v56 = vld [vmem:[%s2781_s5 + $0xe80] sm:$0xff]  ;;  %v452_v57 = vld [vmem:[%s2781_s5 + $0xe88] sm:$0xff] }
  0x71   : > { %335 = vst [vmem:[%s2786_s6 + $0x1d0] sm:$0xff] %v334_v62  ;;  %v454_v58 = vld [vmem:[%s2781_s5 + $0xec0] sm:$0xff]  ;;  %v456_v59 = vld [vmem:[%s2781_s5 + $0xec8] sm:$0xff] }
  0x72   : > { %337 = vst [vmem:[%s2786_s6 + $0x1d8] sm:$0xff] %v336_v63  ;;  %v458_v60 = vld [vmem:[%s2781_s5 + $0xf00] sm:$0xff]  ;;  %v460_v61 = vld [vmem:[%s2781_s5 + $0xf08] sm:$0xff] }
  0x73   : > { %339 = vst [vmem:[%s2786_s6 + $0x1e0] sm:$0xff] %v338_v0  ;;  %v462_v62 = vld [vmem:[%s2781_s5 + $0xf40] sm:$0xff]  ;;  %v464_v63 = vld [vmem:[%s2781_s5 + $0xf48] sm:$0xff] }
  0x74   : > { %341 = vst [vmem:[%s2786_s6 + $0x1e8] sm:$0xff] %v340_v1  ;;  %v466_v0 = vld [vmem:[%s2781_s5 + $0xf80] sm:$0xff]  ;;  %v468_v1 = vld [vmem:[%s2781_s5 + $0xf88] sm:$0xff] }
  0x75   : > { %343 = vst [vmem:[%s2786_s6 + $0x1f0] sm:$0xff] %v342_v2  ;;  %v470_v2 = vld [vmem:[%s2781_s5 + $0xfc0] sm:$0xff] }
  0x76   : > { %345 = vst [vmem:[%s2786_s6 + $0x1f8] sm:$0xff] %v344_v3  ;;  %v472_v3 = vld [vmem:[%s2781_s5 + $0xfc8] sm:$0xff] }
  0x77   : > { %347 = vst [vmem:[%s2786_s6 + $0x200] sm:$0xff] %v346_v4 }
  0x78   : > { %349 = vst [vmem:[%s2786_s6 + $0x208] sm:$0xff] %v348_v5 }
  0x79   : > { %351 = vst [vmem:[%s2786_s6 + $0x210] sm:$0xff] %v350_v6 }
  0x7a   : > { %353 = vst [vmem:[%s2786_s6 + $0x218] sm:$0xff] %v352_v7 }
  0x7b   : > { %355 = vst [vmem:[%s2786_s6 + $0x220] sm:$0xff] %v354_v8 }
  0x7c   : > { %357 = vst [vmem:[%s2786_s6 + $0x228] sm:$0xff] %v356_v9 }
  0x7d   : > { %359 = vst [vmem:[%s2786_s6 + $0x230] sm:$0xff] %v358_v10 }
  0x7e   : > { %361 = vst [vmem:[%s2786_s6 + $0x238] sm:$0xff] %v360_v11 }
  0x7f   : > { %363 = vst [vmem:[%s2786_s6 + $0x240] sm:$0xff] %v362_v12 }
  0x80   : > { %365 = vst [vmem:[%s2786_s6 + $0x248] sm:$0xff] %v364_v13 }
  0x81   : > { %367 = vst [vmem:[%s2786_s6 + $0x250] sm:$0xff] %v366_v14 }
  0x82   : > { %369 = vst [vmem:[%s2786_s6 + $0x258] sm:$0xff] %v368_v15 }
  0x83   : > { %371 = vst [vmem:[%s2786_s6 + $0x260] sm:$0xff] %v370_v16 }
  0x84   : > { %373 = vst [vmem:[%s2786_s6 + $0x268] sm:$0xff] %v372_v17 }
  0x85   : > { %375 = vst [vmem:[%s2786_s6 + $0x270] sm:$0xff] %v374_v18 }
  0x86   : > { %377 = vst [vmem:[%s2786_s6 + $0x278] sm:$0xff] %v376_v19 }
  0x87   : > { %379 = vst [vmem:[%s2786_s6 + $0x280] sm:$0xff] %v378_v20 }
  0x88   : > { %381 = vst [vmem:[%s2786_s6 + $0x288] sm:$0xff] %v380_v21 }
  0x89   : > { %383 = vst [vmem:[%s2786_s6 + $0x290] sm:$0xff] %v382_v22 }
  0x8a   : > { %385 = vst [vmem:[%s2786_s6 + $0x298] sm:$0xff] %v384_v23 }
  0x8b   : > { %387 = vst [vmem:[%s2786_s6 + $0x2a0] sm:$0xff] %v386_v24 }
  0x8c   : > { %389 = vst [vmem:[%s2786_s6 + $0x2a8] sm:$0xff] %v388_v25 }
  0x8d   : > { %391 = vst [vmem:[%s2786_s6 + $0x2b0] sm:$0xff] %v390_v26 }
  0x8e   : > { %393 = vst [vmem:[%s2786_s6 + $0x2b8] sm:$0xff] %v392_v27 }
  0x8f   : > { %395 = vst [vmem:[%s2786_s6 + $0x2c0] sm:$0xff] %v394_v28 }
  0x90   : > { %397 = vst [vmem:[%s2786_s6 + $0x2c8] sm:$0xff] %v396_v29 }
  0x91   : > { %399 = vst [vmem:[%s2786_s6 + $0x2d0] sm:$0xff] %v398_v30 }
  0x92   : > { %401 = vst [vmem:[%s2786_s6 + $0x2d8] sm:$0xff] %v400_v31 }
  0x93   : > { %403 = vst [vmem:[%s2786_s6 + $0x2e0] sm:$0xff] %v402_v32 }
  0x94   : > { %405 = vst [vmem:[%s2786_s6 + $0x2e8] sm:$0xff] %v404_v33 }
  0x95   : > { %407 = vst [vmem:[%s2786_s6 + $0x2f0] sm:$0xff] %v406_v34 }
  0x96   : > { %409 = vst [vmem:[%s2786_s6 + $0x2f8] sm:$0xff] %v408_v35 }
  0x97   : > { %411 = vst [vmem:[%s2786_s6 + $0x300] sm:$0xff] %v410_v36 }
  0x98   : > { %413 = vst [vmem:[%s2786_s6 + $0x308] sm:$0xff] %v412_v37 }
  0x99   : > { %415 = vst [vmem:[%s2786_s6 + $0x310] sm:$0xff] %v414_v38 }
  0x9a   : > { %417 = vst [vmem:[%s2786_s6 + $0x318] sm:$0xff] %v416_v39 }
  0x9b   : > { %419 = vst [vmem:[%s2786_s6 + $0x320] sm:$0xff] %v418_v40 }
  0x9c   : > { %421 = vst [vmem:[%s2786_s6 + $0x328] sm:$0xff] %v420_v41 }
  0x9d   : > { %423 = vst [vmem:[%s2786_s6 + $0x330] sm:$0xff] %v422_v42 }
  0x9e   : > { %425 = vst [vmem:[%s2786_s6 + $0x338] sm:$0xff] %v424_v43 }
  0x9f   : > { %427 = vst [vmem:[%s2786_s6 + $0x340] sm:$0xff] %v426_v44 }
  0xa0   : > { %429 = vst [vmem:[%s2786_s6 + $0x348] sm:$0xff] %v428_v45 }
  0xa1   : > { %431 = vst [vmem:[%s2786_s6 + $0x350] sm:$0xff] %v430_v46 }
  0xa2   : > { %433 = vst [vmem:[%s2786_s6 + $0x358] sm:$0xff] %v432_v47 }
  0xa3   : > { %435 = vst [vmem:[%s2786_s6 + $0x360] sm:$0xff] %v434_v48 }
  0xa4   : > { %437 = vst [vmem:[%s2786_s6 + $0x368] sm:$0xff] %v436_v49 }
  0xa5   : > { %439 = vst [vmem:[%s2786_s6 + $0x370] sm:$0xff] %v438_v50 }
  0xa6   : > { %441 = vst [vmem:[%s2786_s6 + $0x378] sm:$0xff] %v440_v51 }
  0xa7   : > { %443 = vst [vmem:[%s2786_s6 + $0x380] sm:$0xff] %v442_v52 }
  0xa8   : > { %445 = vst [vmem:[%s2786_s6 + $0x388] sm:$0xff] %v444_v53 }
  0xa9   : > { %447 = vst [vmem:[%s2786_s6 + $0x390] sm:$0xff] %v446_v54 }
  0xaa   : > { %449 = vst [vmem:[%s2786_s6 + $0x398] sm:$0xff] %v448_v55 }
  0xab   : > { %451 = vst [vmem:[%s2786_s6 + $0x3a0] sm:$0xff] %v450_v56 }
  0xac   : > { %453 = vst [vmem:[%s2786_s6 + $0x3a8] sm:$0xff] %v452_v57 }
  0xad   : > { %455 = vst [vmem:[%s2786_s6 + $0x3b0] sm:$0xff] %v454_v58 }
  0xae   : > { %457 = vst [vmem:[%s2786_s6 + $0x3b8] sm:$0xff] %v456_v59 }
  0xaf   : > { %459 = vst [vmem:[%s2786_s6 + $0x3c0] sm:$0xff] %v458_v60 }
  0xb0   : > { %461 = vst [vmem:[%s2786_s6 + $0x3c8] sm:$0xff] %v460_v61 }
  0xb1   : > { %463 = vst [vmem:[%s2786_s6 + $0x3d0] sm:$0xff] %v462_v62 }
  0xb2   : > { %465 = vst [vmem:[%s2786_s6 + $0x3d8] sm:$0xff] %v464_v63 }
  0xb3   : > { %467 = vst [vmem:[%s2786_s6 + $0x3e0] sm:$0xff] %v466_v0 }
  0xb4   : > { %469 = vst [vmem:[%s2786_s6 + $0x3e8] sm:$0xff] %v468_v1 }
  0xb5   : > { %471 = vst [vmem:[%s2786_s6 + $0x3f0] sm:$0xff] %v470_v2 }
  0xb6   : > { %473 = vst [vmem:[%s2786_s6 + $0x3f8] sm:$0xff] %v472_v3 }
  0xb7 PF: > { %p1794_p0 = scmp.ge.s32.totalorder %s2644_s22, 1  ;;  %p486_p1 = scmp.lt.s32.totalorder %s2644_s22, 9 }
  0xb9   : > { %p487_p2 = pnand %p1794_p0, %p486_p1 }
  0xba   : > { %s493_s0 = sand.u32 (!%p487_p2), 1, %s2620_s16   ;;  %s500_s23 = sand.u32 (!%p487_p2), 1, %s2612_s14  }
  0xbb   : > { %490 = sbr.rel (%p487_p2) target bundleno = 509 (0x1fd), region = 70  ;;  %s1795_s28 = sshll.u32 (!%p487_p2), %s493_s0, 5 }
  0xbc   : > { %s1796_s7 = sshll.u32 (!%p487_p2), %s500_s23, 10  ;;  %s527_s11 = sand.u32 (!%p487_p2), 1, %s2604_s12  }
  0xbd   : > { %s1798_s26 = sshll.u32 (!%p487_p2), %s2632_s19, 2  ;;  %s1797_s29 = sshll.u32 (!%p487_p2), %s527_s11, 5 }
  0xbe   : > { %p535_p3 = scmp.lt.s32.totalorder (!%p487_p2), %s1798_s26, 15  ;;  %s3053_s6 = scalar_lea.vmem (!%p487_p2), [#allocation3], %s1795_s28 }
  0xbf   : > { %s3055_s1 = scalar_lea.vmem (!%p487_p2), [#allocation4], %s1796_s7  ;;  %s3057_s25 = scalar_lea.vmem (!%p487_p2), [#allocation5], %s1797_s29 }
  0xc0   : > { %s3432_s26 = smov (!%p535_p3, %s1798_s26), 15  ;;  %p1799_p4 = scmp.ne.s32.totalorder %s2628_s18, 0 }
  0xc1   : > { %s537_s5 = scalar_lea.vmem %s3403_s2, %s3432_s26 }
  0xc2   : > { %544 = sbr.rel (%p1799_p4) target bundleno = 208 (0xd0), region = 82 }
  0xc7   : > { %v2646_v4 = vmov 0.0  }
  0xc8   : > { %545 = vst [vmem:[#allocation2 + $0x30] sm:$0xff] %v2646_v4 }
  0xc9   : > { %546 = vst [vmem:[#allocation2] sm:$0xff] %v2646_v4 }
  0xca   : > { %547 = vst [vmem:[#allocation2 + $0x18] sm:$0xff] %v2646_v4 }
  0xcb   : > { %548 = vst [vmem:[#allocation2 + $0x10] sm:$0xff] %v2646_v4 }
  0xcc   : > { %549 = vst [vmem:[#allocation2 + $0x8] sm:$0xff] %v2646_v4 }
  0xcd   : > { %550 = vst [vmem:[#allocation2 + $0x20] sm:$0xff] %v2646_v4 }
  0xce   : > { %551 = vst [vmem:[#allocation2 + $0x28] sm:$0xff] %v2646_v4 }
  0xcf   : > { %552 = vst [vmem:[#allocation2 + $0x38] sm:$0xff] %v2646_v4 }
  0xd0 PF: > { %v1930_v5 = vld [vmem:[%s3055_s1 + $0xe0] sm:$0xf]  ;;  %v2370_v6 = vld [vmem:[%s3055_s1 + $0xec] sm:$0xf0]  ;;  %p2328_p5 = scmp.ne.s32.totalorder %s2628_s18, 1 }
  0xd1   : > { %v2058_v7 = vld [vmem:[%s3055_s1 + $0x1e0] sm:$0xf]  ;;  %v1931_v8 = vor.u32 %v2370_v6, %v1930_v5  ;;  %v2402_v9 = vld [vmem:[%s3055_s1 + $0x1ec] sm:$0xf0] }
  0xd2   : > { %v2186_v10 = vld [vmem:[%s3055_s1 + $0x2e0] sm:$0xf]  ;;  %v2434_v11 = vld [vmem:[%s3055_s1 + $0x2ec] sm:$0xf0]  ;;  %v2059_v12 = vor.u32 %v2402_v9, %v2058_v7 }
  0xd3   : > { %v2187_v13 = vor.u32 %v2434_v11, %v2186_v10  ;;  %v2314_v14 = vld [vmem:[%s3055_s1 + $0x3e0] sm:$0xf]  ;;  %v2466_v15 = vld [vmem:[%s3055_s1 + $0x3ec] sm:$0xf0]  ;;  %1353 = vmatpush.bf16.msra.mxu0 %v1931_v8 }
  0xd4   : > { %v1914_v16 = vld [vmem:[%s3055_s1 + $0xc0] sm:$0xf]  ;;  %v2315_v17 = vor.u32 %v2466_v15, %v2314_v14  ;;  %v2366_v18 = vld [vmem:[%s3055_s1 + $0xcc] sm:$0xf0]  ;;  %1367 = vmatpush.bf16.msra.mxu1 %v2059_v12 }
  0xd5   : > { %v2042_v19 = vld [vmem:[%s3055_s1 + $0x1c0] sm:$0xf]  ;;  %v2398_v20 = vld [vmem:[%s3055_s1 + $0x1cc] sm:$0xf0]  ;;  %1381 = vmatpush.bf16.msra.mxu2 %v2187_v13  ;;  %v1915_v21 = vor.u32 %v2366_v18, %v1914_v16 }
  0xd6   : > { %v2043_v22 = vor.u32 %v2398_v20, %v2042_v19  ;;  %v2170_v23 = vld [vmem:[%s3055_s1 + $0x2c0] sm:$0xf]  ;;  %v2430_v24 = vld [vmem:[%s3055_s1 + $0x2cc] sm:$0xf0]  ;;  %1395 = vmatpush.bf16.msra.mxu3 %v2315_v17 }
  0xd7   : > { %v2298_v25 = vld [vmem:[%s3055_s1 + $0x3c0] sm:$0xf]  ;;  %v2171_v26 = vor.u32 %v2430_v24, %v2170_v23  ;;  %v2462_v27 = vld [vmem:[%s3055_s1 + $0x3cc] sm:$0xf0]  ;;  %1354 = vmatpush.bf16.msra.mxu0 %v1915_v21 }
  0xd8   : > { %v1898_v28 = vld [vmem:[%s3055_s1 + $0xa0] sm:$0xf]  ;;  %v2362_v29 = vld [vmem:[%s3055_s1 + $0xac] sm:$0xf0]  ;;  %v2299_v30 = vor.u32 %v2462_v27, %v2298_v25  ;;  %1368 = vmatpush.bf16.msra.mxu1 %v2043_v22 }
  0xd9   : > { %v2026_v31 = vld [vmem:[%s3055_s1 + $0x1a0] sm:$0xf]  ;;  %v2394_v32 = vld [vmem:[%s3055_s1 + $0x1ac] sm:$0xf0]  ;;  %v1899_v34 = vor.u32 %v2362_v29, %v1898_v28  ;;  %1382 = vmatpush.bf16.msra.mxu2 %v2171_v26 }
  0xda   : > { %v2154_v33 = vld [vmem:[%s3055_s1 + $0x2a0] sm:$0xf]  ;;  %v2426_v35 = vld [vmem:[%s3055_s1 + $0x2ac] sm:$0xf0]  ;;  %v2027_v38 = vor.u32 %v2394_v32, %v2026_v31  ;;  %1396 = vmatpush.bf16.msra.mxu3 %v2299_v30 }
  0xdb   : > { %v2282_v36 = vld [vmem:[%s3055_s1 + $0x3a0] sm:$0xf]  ;;  %v2458_v37 = vld [vmem:[%s3055_s1 + $0x3ac] sm:$0xf0]  ;;  %v2155_v39 = vor.u32 %v2426_v35, %v2154_v33  ;;  %1355 = vmatpush.bf16.msra.mxu0 %v1899_v34  ;;  %v2368_v33 = vld [vmem:[%s3055_s1 + $0xe4] sm:$0xf] }
  0xdc   : > { %v1882_v40 = vld [vmem:[%s3055_s1 + $0x80] sm:$0xf]  ;;  %v2358_v41 = vld [vmem:[%s3055_s1 + $0x8c] sm:$0xf0]  ;;  %v2283_v43 = vor.u32 %v2458_v37, %v2282_v36  ;;  %1369 = vmatpush.bf16.msra.mxu1 %v2027_v38  ;;  %v1932_v34 = vld [vmem:[%s3055_s1 + $0xf0] sm:$0xf0] }
  0xdd   : > { %v2010_v42 = vld [vmem:[%s3055_s1 + $0x180] sm:$0xf]  ;;  %v2390_v44 = vld [vmem:[%s3055_s1 + $0x18c] sm:$0xf0]  ;;  %v1883_v49 = vor.u32 %v2358_v41, %v1882_v40  ;;  %1383 = vmatpush.bf16.msra.mxu2 %v2155_v39  ;;  %v2400_v35 = vld [vmem:[%s3055_s1 + $0x1e4] sm:$0xf] }
  0xde   : > { %v2138_v45 = vld [vmem:[%s3055_s1 + $0x280] sm:$0xf]  ;;  %v2422_v46 = vld [vmem:[%s3055_s1 + $0x28c] sm:$0xf0]  ;;  %v2011_v50 = vor.u32 %v2390_v44, %v2010_v42  ;;  %1397 = vmatpush.bf16.msra.mxu3 %v2283_v43  ;;  %v2060_v37 = vld [vmem:[%s3055_s1 + $0x1f0] sm:$0xf0] }
  0xdf   : > { %v2266_v47 = vld [vmem:[%s3055_s1 + $0x380] sm:$0xf]  ;;  %v2454_v48 = vld [vmem:[%s3055_s1 + $0x38c] sm:$0xf0]  ;;  %v2139_v51 = vor.u32 %v2422_v46, %v2138_v45  ;;  %1356 = vmatpush.bf16.msra.mxu0 %v1883_v49  ;;  %v2432_v38 = vld [vmem:[%s3055_s1 + $0x2e4] sm:$0xf]  ;;  %v1935_v45 = vor.u32 %v2368_v33, %v1932_v34  ;;  %v2063_v46 = vor.u32 %v2400_v35, %v2060_v37 }
  0xe0   : > { %v1866_v52 = vld [vmem:[%s3055_s1 + $0x60] sm:$0xf]  ;;  %v2354_v53 = vld [vmem:[%s3055_s1 + $0x6c] sm:$0xf0]  ;;  %v2267_v55 = vor.u32 %v2454_v48, %v2266_v47  ;;  %1370 = vmatpush.bf16.msra.mxu1 %v2011_v50  ;;  %v2188_v39 = vld [vmem:[%s3055_s1 + $0x2f0] sm:$0xf0] }
  0xe1   : > { %v1994_v54 = vld [vmem:[%s3055_s1 + $0x160] sm:$0xf]  ;;  %v2386_v56 = vld [vmem:[%s3055_s1 + $0x16c] sm:$0xf0]  ;;  %v1867_v61 = vor.u32 %v2354_v53, %v1866_v52  ;;  %1384 = vmatpush.bf16.msra.mxu2 %v2139_v51  ;;  %v2464_v42 = vld [vmem:[%s3055_s1 + $0x3e4] sm:$0xf]  ;;  %v2191_v47 = vor.u32 %v2432_v38, %v2188_v39 }
  0xe2   : > { %v2122_v57 = vld [vmem:[%s3055_s1 + $0x260] sm:$0xf]  ;;  %v2418_v58 = vld [vmem:[%s3055_s1 + $0x26c] sm:$0xf0]  ;;  %v1995_v62 = vor.u32 %v2386_v56, %v1994_v54  ;;  %1398 = vmatpush.bf16.msra.mxu3 %v2267_v55  ;;  %v2316_v43 = vld [vmem:[%s3055_s1 + $0x3f0] sm:$0xf0] }
  0xe3   : > { %v2250_v59 = vld [vmem:[%s3055_s1 + $0x360] sm:$0xf]  ;;  %v2450_v60 = vld [vmem:[%s3055_s1 + $0x36c] sm:$0xf0]  ;;  %v2123_v63 = vor.u32 %v2418_v58, %v2122_v57  ;;  %1357 = vmatpush.bf16.msra.mxu0 %v1867_v61  ;;  %v2364_v48 = vld [vmem:[%s3055_s1 + $0xc4] sm:$0xf]  ;;  %v2319_v51 = vor.u32 %v2464_v42, %v2316_v43 }
  0xe4   : > { %v1850_v0 = vld [vmem:[%s3055_s1 + $0x40] sm:$0xf]  ;;  %v2350_v1 = vld [vmem:[%s3055_s1 + $0x4c] sm:$0xf0]  ;;  %v2251_v3 = vor.u32 %v2450_v60, %v2250_v59  ;;  %1371 = vmatpush.bf16.msra.mxu1 %v1995_v62  ;;  %v1916_v49 = vld [vmem:[%s3055_s1 + $0xd0] sm:$0xf0] }
  0xe5   : > { %v1978_v2 = vld [vmem:[%s3055_s1 + $0x140] sm:$0xf]  ;;  %v2382_v4 = vld [vmem:[%s3055_s1 + $0x14c] sm:$0xf0]  ;;  %v1851_v9 = vor.u32 %v2350_v1, %v1850_v0  ;;  %1385 = vmatpush.bf16.msra.mxu2 %v2123_v63  ;;  %v2396_v50 = vld [vmem:[%s3055_s1 + $0x1c4] sm:$0xf]  ;;  %v1919_v57 = vor.u32 %v2364_v48, %v1916_v49 }
  0xe6   : > { %v2106_v5 = vld [vmem:[%s3055_s1 + $0x240] sm:$0xf]  ;;  %v2414_v6 = vld [vmem:[%s3055_s1 + $0x24c] sm:$0xf0]  ;;  %v1979_v10 = vor.u32 %v2382_v4, %v1978_v2  ;;  %1399 = vmatpush.bf16.msra.mxu3 %v2251_v3  ;;  %v2044_v52 = vld [vmem:[%s3055_s1 + $0x1d0] sm:$0xf0] }
  0xe7   : > { %v2234_v7 = vld [vmem:[%s3055_s1 + $0x340] sm:$0xf]  ;;  %v2446_v8 = vld [vmem:[%s3055_s1 + $0x34c] sm:$0xf0]  ;;  %v2107_v11 = vor.u32 %v2414_v6, %v2106_v5  ;;  %1358 = vmatpush.bf16.msra.mxu0 %v1851_v9  ;;  %v2428_v53 = vld [vmem:[%s3055_s1 + $0x2c4] sm:$0xf]  ;;  %v2047_v58 = vor.u32 %v2396_v50, %v2044_v52 }
  0xe8   : > { %v1834_v12 = vld [vmem:[%s3055_s1 + $0x20] sm:$0xf]  ;;  %v2346_v13 = vld [vmem:[%s3055_s1 + $0x2c] sm:$0xf0]  ;;  %v2235_v15 = vor.u32 %v2446_v8, %v2234_v7  ;;  %1372 = vmatpush.bf16.msra.mxu1 %v1979_v10  ;;  %v2172_v54 = vld [vmem:[%s3055_s1 + $0x2d0] sm:$0xf0] }
  0xe9   : > { %v1962_v14 = vld [vmem:[%s3055_s1 + $0x120] sm:$0xf]  ;;  %v2378_v16 = vld [vmem:[%s3055_s1 + $0x12c] sm:$0xf0]  ;;  %v1835_v21 = vor.u32 %v2346_v13, %v1834_v12  ;;  %1386 = vmatpush.bf16.msra.mxu2 %v2107_v11  ;;  %v2460_v55 = vld [vmem:[%s3055_s1 + $0x3c4] sm:$0xf]  ;;  %v2175_v59 = vor.u32 %v2428_v53, %v2172_v54 }
  0xea   : > { %v2090_v17 = vld [vmem:[%s3055_s1 + $0x220] sm:$0xf]  ;;  %v2410_v18 = vld [vmem:[%s3055_s1 + $0x22c] sm:$0xf0]  ;;  %v1963_v24 = vor.u32 %v2378_v16, %v1962_v14  ;;  %1400 = vmatpush.bf16.msra.mxu3 %v2235_v15  ;;  %v2300_v56 = vld [vmem:[%s3055_s1 + $0x3d0] sm:$0xf0] }
  0xeb   : > { %v2218_v19 = vld [vmem:[%s3055_s1 + $0x320] sm:$0xf]  ;;  %v2442_v20 = vld [vmem:[%s3055_s1 + $0x32c] sm:$0xf0]  ;;  %v2091_v25 = vor.u32 %v2410_v18, %v2090_v17  ;;  %1359 = vmatpush.bf16.msra.mxu0 %v1835_v21  ;;  %v2360_v60 = vld [vmem:[%s3055_s1 + $0xa4] sm:$0xf]  ;;  %v2303_v63 = vor.u32 %v2460_v55, %v2300_v56 }
  0xec   : > { %v1818_v22 = vld [vmem:[%s3055_s1] sm:$0xf]  ;;  %v2342_v23 = vld [vmem:[%s3055_s1 + $0xc] sm:$0xf0]  ;;  %v2219_v29 = vor.u32 %v2442_v20, %v2218_v19  ;;  %1373 = vmatpush.bf16.msra.mxu1 %v1963_v24  ;;  %v1900_v61 = vld [vmem:[%s3055_s1 + $0xb0] sm:$0xf0] }
  0xed   : > { %v1946_v26 = vld [vmem:[%s3055_s1 + $0x100] sm:$0xf]  ;;  %v2374_v27 = vld [vmem:[%s3055_s1 + $0x10c] sm:$0xf0]  ;;  %v1819_v36 = vor.u32 %v2342_v23, %v1818_v22  ;;  %1387 = vmatpush.bf16.msra.mxu2 %v2091_v25  ;;  %v2392_v62 = vld [vmem:[%s3055_s1 + $0x1a4] sm:$0xf]  ;;  %v1903_v6 = vor.u32 %v2360_v60, %v1900_v61 }
  0xee   : > { %v2074_v28 = vld [vmem:[%s3055_s1 + $0x200] sm:$0xf]  ;;  %v2406_v30 = vld [vmem:[%s3055_s1 + $0x20c] sm:$0xf0]  ;;  %v1947_v40 = vor.u32 %v2374_v27, %v1946_v26  ;;  %1401 = vmatpush.bf16.msra.mxu3 %v2219_v29  ;;  %v2028_v0 = vld [vmem:[%s3055_s1 + $0x1b0] sm:$0xf0] }
  0xef   : > { %v2202_v31 = vld [vmem:[%s3055_s1 + $0x300] sm:$0xf]  ;;  %v2438_v32 = vld [vmem:[%s3055_s1 + $0x30c] sm:$0xf0]  ;;  %v2075_v41 = vor.u32 %v2406_v30, %v2074_v28  ;;  %1360 = vmatpush.bf16.msra.mxu0 %v1819_v36  ;;  %v2424_v1 = vld [vmem:[%s3055_s1 + $0x2a4] sm:$0xf]  ;;  %v2031_v10 = vor.u32 %v2392_v62, %v2028_v0 }
  0xf0   : > { %v2203_v44 = vor.u32 %v2438_v32, %v2202_v31  ;;  %1374 = vmatpush.bf16.msra.mxu1 %v1947_v40  ;;  %v2156_v2 = vld [vmem:[%s3055_s1 + $0x2b0] sm:$0xf0]  ;;  %v2456_v3 = vld [vmem:[%s3055_s1 + $0x3a4] sm:$0xf]  ;;  %v1810_v8 = vld [vmem:[%s3053_s6 + $0x8] sm:$0xf] }
  0xf1   : > { %1388 = vmatpush.bf16.msra.mxu2 %v2075_v41  ;;  %v2284_v4 = vld [vmem:[%s3055_s1 + $0x3b0] sm:$0xf0]  ;;  %v2356_v5 = vld [vmem:[%s3055_s1 + $0x84] sm:$0xf]  ;;  %v2339_v9 = vld [vmem:[%s3053_s6 + $0x14] sm:$0xf0]  ;;  %v2159_v11 = vor.u32 %v2424_v1, %v2156_v2 }
  0xf2   : > { %1402 = vmatpush.bf16.msra.mxu3 %v2203_v44  ;;  %v1884_v7 = vld [vmem:[%s3055_s1 + $0x90] sm:$0xf0]  ;;  %v2388_v12 = vld [vmem:[%s3055_s1 + $0x184] sm:$0xf]  ;;  %v3153_v13 = vor.u32 %v2339_v9, %v1810_v8  ;;  %v2337_v14 = vld [vmem:[%s3053_s6 + $0xc] sm:$0xf]  ;;  %v2287_v16 = vor.u32 %v2456_v3, %v2284_v4 }
  0xf3   : > { %1409 = vmatpush.bf16.msrb.mxu0 %v1935_v45  ;;  %v1812_v15 = vld [vmem:[%s3053_s6 + $0x18] sm:$0xf0]  ;;  %v2012_v17 = vld [vmem:[%s3055_s1 + $0x190] sm:$0xf0]  ;;  %v2420_v18 = vld [vmem:[%s3055_s1 + $0x284] sm:$0xf]  ;;  %v1887_v24 = vor.u32 %v2356_v5, %v1884_v7 }
  0xf4   : > { %1423 = vmatpush.bf16.msrb.mxu1 %v2063_v46  ;;  %v2140_v19 = vld [vmem:[%s3055_s1 + $0x290] sm:$0xf0]  ;;  %v3160_v20 = vor.u32 %v2337_v14, %v1812_v15  ;;  %v2452_v21 = vld [vmem:[%s3055_s1 + $0x384] sm:$0xf]  ;;  %1389 = vmatmul.bf16.vlgmr.msra.gmra.mxu2 %v3153_v13  ;;  %v1802_v26 = vld [vmem:[%s3053_s6] sm:$0xf]  ;;  %v2015_v28 = vor.u32 %v2388_v12, %v2012_v17 }
  0xf5   : > { %1437 = vmatpush.bf16.msrb.mxu2 %v2191_v47  ;;  %v2268_v22 = vld [vmem:[%s3055_s1 + $0x390] sm:$0xf0]  ;;  %v2352_v23 = vld [vmem:[%s3055_s1 + $0x64] sm:$0xf]  ;;  %v2338_v27 = vld [vmem:[%s3053_s6 + $0xc] sm:$0xf0]  ;;  %v2143_v29 = vor.u32 %v2420_v18, %v2140_v19 }
  0xf6   : > { %1451 = vmatpush.bf16.msrb.mxu3 %v2319_v51  ;;  %v1868_v25 = vld [vmem:[%s3055_s1 + $0x70] sm:$0xf0]  ;;  %v2384_v30 = vld [vmem:[%s3055_s1 + $0x164] sm:$0xf]  ;;  %v3171_v31 = vor.u32 %v2338_v27, %v1802_v26  ;;  %v2271_v34 = vor.u32 %v2452_v21, %v2268_v22  ;;  %v1938_v14 = vld [vmem:[%s3055_s1 + $0xe8] sm:$0xf] }
  0xf7   : > { %1410 = vmatpush.bf16.msrb.mxu0 %v1919_v57  ;;  %1403 = vmatmul.bf16.vlgmr.msra.gmra.mxu3 %v3160_v20  ;;  %v2336_v32 = vld [vmem:[%s3053_s6 + $0x4] sm:$0xf]  ;;  %v1804_v33 = vld [vmem:[%s3053_s6 + $0x10] sm:$0xf0]  ;;  %v1871_v41 = vor.u32 %v2352_v23, %v1868_v25  ;;  %v2371_v15 = vld [vmem:[%s3055_s1 + $0xf4] sm:$0xf0] }
  0xf8   : > { %1424 = vmatpush.bf16.msrb.mxu1 %v2047_v58  ;;  %v1996_v35 = vld [vmem:[%s3055_s1 + $0x170] sm:$0xf0]  ;;  %v2416_v36 = vld [vmem:[%s3055_s1 + $0x264] sm:$0xf]  ;;  %v3178_v38 = vor.u32 %v2336_v32, %v1804_v33  ;;  %1361 = vmatmul.bf16.vlgmr.msra.gmra.mxu0 %v3171_v31  ;;  %v2403_v18 = vld [vmem:[%s3055_s1 + $0x1f4] sm:$0xf0]  ;;  %v1939_v27 = vor.u32 %v2371_v15, %v1938_v14 }
  0xf9   : > { %1438 = vmatpush.bf16.msrb.mxu2 %v2175_v59  ;;  %v2124_v37 = vld [vmem:[%s3055_s1 + $0x270] sm:$0xf0]  ;;  %v2448_v39 = vld [vmem:[%s3055_s1 + $0x364] sm:$0xf]  ;;  %v1999_v42 = vor.u32 %v2384_v30, %v1996_v35  ;;  %v2194_v19 = vld [vmem:[%s3055_s1 + $0x2e8] sm:$0xf] }
  0xfa   : > { %1452 = vmatpush.bf16.msrb.mxu3 %v2303_v63  ;;  %v2252_v40 = vld [vmem:[%s3055_s1 + $0x370] sm:$0xf0]  ;;  %1375 = vmatmul.bf16.vlgmr.msra.gmra.mxu1 %v3178_v38  ;;  %v2127_v43 = vor.u32 %v2416_v36, %v2124_v37  ;;  %v2348_v44 = vld [vmem:[%s3055_s1 + $0x44] sm:$0xf]  ;;  %v2435_v21 = vld [vmem:[%s3055_s1 + $0x2f4] sm:$0xf0] }
  0xfb   : > { %1411 = vmatpush.bf16.msrb.mxu0 %v1903_v6  ;;  %v1852_v45 = vld [vmem:[%s3055_s1 + $0x50] sm:$0xf0]  ;;  %v2380_v46 = vld [vmem:[%s3055_s1 + $0x144] sm:$0xf]  ;;  %v2255_v47 = vor.u32 %v2448_v39, %v2252_v40  ;;  %v2467_v25 = vld [vmem:[%s3055_s1 + $0x3f4] sm:$0xf0] }
  0xfc   : > { %1425 = vmatpush.bf16.msrb.mxu1 %v2031_v10  ;;  %v1980_v48 = vld [vmem:[%s3055_s1 + $0x150] sm:$0xf0]  ;;  %v2412_v49 = vld [vmem:[%s3055_s1 + $0x244] sm:$0xf]  ;;  %v1855_v53 = vor.u32 %v2348_v44, %v1852_v45  ;;  %v1922_v30 = vld [vmem:[%s3055_s1 + $0xc8] sm:$0xf] }
  0xfd   : > { %1439 = vmatpush.bf16.msrb.mxu2 %v2159_v11  ;;  %v2108_v50 = vld [vmem:[%s3055_s1 + $0x250] sm:$0xf0]  ;;  %v2444_v51 = vld [vmem:[%s3055_s1 + $0x344] sm:$0xf]  ;;  %v1983_v54 = vor.u32 %v2380_v46, %v1980_v48  ;;  %v2367_v32 = vld [vmem:[%s3055_s1 + $0xd4] sm:$0xf0] }
  0xfe   : > { %1453 = vmatpush.bf16.msrb.mxu3 %v2287_v16  ;;  %v2236_v52 = vld [vmem:[%s3055_s1 + $0x350] sm:$0xf0]  ;;  %v2111_v55 = vor.u32 %v2412_v49, %v2108_v50  ;;  %v2344_v56 = vld [vmem:[%s3055_s1 + $0x24] sm:$0xf]  ;;  %v2066_v16 = vld [vmem:[%s3055_s1 + $0x1e8] sm:$0xf] }
  0xff   : > { %1412 = vmatpush.bf16.msrb.mxu0 %v1887_v24  ;;  %v1836_v57 = vld [vmem:[%s3055_s1 + $0x30] sm:$0xf0]  ;;  %v2376_v58 = vld [vmem:[%s3055_s1 + $0x124] sm:$0xf]  ;;  %v2239_v59 = vor.u32 %v2444_v51, %v2236_v52  ;;  %v2322_v24 = vld [vmem:[%s3055_s1 + $0x3e8] sm:$0xf] }
 0x100   : > { %1426 = vmatpush.bf16.msrb.mxu1 %v2015_v28  ;;  %v1964_v60 = vld [vmem:[%s3055_s1 + $0x130] sm:$0xf0]  ;;  %v2408_v61 = vld [vmem:[%s3055_s1 + $0x224] sm:$0xf]  ;;  %v1839_v1 = vor.u32 %v2344_v56, %v1836_v57  ;;  %v2067_v28 = vor.u32 %v2403_v18, %v2066_v16  ;;  %v2050_v33 = vld [vmem:[%s3055_s1 + $0x1c8] sm:$0xf] }
 0x101   : > { %1440 = vmatpush.bf16.msrb.mxu2 %v2143_v29  ;;  %v2092_v62 = vld [vmem:[%s3055_s1 + $0x230] sm:$0xf0]  ;;  %v2440_v63 = vld [vmem:[%s3055_s1 + $0x324] sm:$0xf]  ;;  %v1967_v4 = vor.u32 %v2376_v58, %v1964_v60  ;;  %v2195_v29 = vor.u32 %v2435_v21, %v2194_v19  ;;  %v2399_v35 = vld [vmem:[%s3055_s1 + $0x1d4] sm:$0xf0] }
 0x102   : > { %1454 = vmatpush.bf16.msrb.mxu3 %v2271_v34  ;;  %v2220_v0 = vld [vmem:[%s3055_s1 + $0x330] sm:$0xf0]  ;;  %v2340_v2 = vld [vmem:[%s3055_s1 + $0x4] sm:$0xf]  ;;  %v2095_v5 = vor.u32 %v2408_v61, %v2092_v62  ;;  %v2323_v34 = vor.u32 %v2467_v25, %v2322_v24  ;;  %v2178_v36 = vld [vmem:[%s3055_s1 + $0x2c8] sm:$0xf] }
 0x103   : > { %1413 = vmatpush.bf16.msrb.mxu0 %v1871_v41  ;;  %v1820_v3 = vld [vmem:[%s3055_s1 + $0x10] sm:$0xf0]  ;;  %v2372_v6 = vld [vmem:[%s3055_s1 + $0x104] sm:$0xf]  ;;  %v2223_v9 = vor.u32 %v2440_v63, %v2220_v0  ;;  %v2431_v37 = vld [vmem:[%s3055_s1 + $0x2d4] sm:$0xf0]  ;;  %v1923_v41 = vor.u32 %v2367_v32, %v1922_v30 }
 0x104   : > { %1427 = vmatpush.bf16.msrb.mxu1 %v1999_v42  ;;  %v1948_v7 = vld [vmem:[%s3055_s1 + $0x110] sm:$0xf0]  ;;  %v2404_v8 = vld [vmem:[%s3055_s1 + $0x204] sm:$0xf]  ;;  %v1823_v17 = vor.u32 %v2340_v2, %v1820_v3  ;;  %v2306_v39 = vld [vmem:[%s3055_s1 + $0x3c8] sm:$0xf]  ;;  %v2051_v42 = vor.u32 %v2399_v35, %v2050_v33 }
 0x105   : > { %1441 = vmatpush.bf16.msrb.mxu2 %v2127_v43  ;;  %v2076_v10 = vld [vmem:[%s3055_s1 + $0x210] sm:$0xf0]  ;;  %v2436_v11 = vld [vmem:[%s3055_s1 + $0x304] sm:$0xf]  ;;  %v1951_v22 = vor.u32 %v2372_v6, %v1948_v7  ;;  %v2463_v40 = vld [vmem:[%s3055_s1 + $0x3d4] sm:$0xf0]  ;;  %v2179_v43 = vor.u32 %v2431_v37, %v2178_v36 }
 0x106   : > { %1455 = vmatpush.bf16.msrb.mxu3 %v2255_v47  ;;  %v2204_v12 = vld [vmem:[%s3055_s1 + $0x310] sm:$0xf0]  ;;  %v2079_v23 = vor.u32 %v2404_v8, %v2076_v10  ;;  %v1906_v44 = vld [vmem:[%s3055_s1 + $0xa8] sm:$0xf]  ;;  %v2363_v45 = vld [vmem:[%s3055_s1 + $0xb4] sm:$0xf0]  ;;  %v2307_v47 = vor.u32 %v2463_v40, %v2306_v39 }
 0x107   : > { %1414 = vmatpush.bf16.msrb.mxu0 %v1855_v53  ;;  %v2207_v26 = vor.u32 %v2436_v11, %v2204_v12  ;;  %v2034_v46 = vld [vmem:[%s3055_s1 + $0x1a8] sm:$0xf]  ;;  %v2395_v48 = vld [vmem:[%s3055_s1 + $0x1b4] sm:$0xf0]  ;;  %v1907_v53 = vor.u32 %v2363_v45, %v1906_v44 }
 0x108   : > { %1428 = vmatpush.bf16.msrb.mxu1 %v1983_v54  ;;  %v2162_v49 = vld [vmem:[%s3055_s1 + $0x2a8] sm:$0xf]  ;;  %v2427_v50 = vld [vmem:[%s3055_s1 + $0x2b4] sm:$0xf0]  ;;  %v2035_v54 = vor.u32 %v2395_v48, %v2034_v46 }
 0x109   : > { %1442 = vmatpush.bf16.msrb.mxu2 %v2111_v55  ;;  %v2290_v51 = vld [vmem:[%s3055_s1 + $0x3a8] sm:$0xf]  ;;  %v2459_v52 = vld [vmem:[%s3055_s1 + $0x3b4] sm:$0xf0]  ;;  %v2163_v55 = vor.u32 %v2427_v50, %v2162_v49 }
 0x10a   : > { %1456 = vmatpush.bf16.msrb.mxu3 %v2239_v59  ;;  %v1890_v56 = vld [vmem:[%s3055_s1 + $0x88] sm:$0xf]  ;;  %v2359_v57 = vld [vmem:[%s3055_s1 + $0x94] sm:$0xf0]  ;;  %v2291_v59 = vor.u32 %v2459_v52, %v2290_v51 }
 0x10b   : > { %1415 = vmatpush.bf16.msrb.mxu0 %v1839_v1  ;;  %v2018_v58 = vld [vmem:[%s3055_s1 + $0x188] sm:$0xf]  ;;  %v2391_v60 = vld [vmem:[%s3055_s1 + $0x194] sm:$0xf0]  ;;  %v1891_v1 = vor.u32 %v2359_v57, %v1890_v56  ;;  %v2068_v57 = vld [vmem:[%s3055_s1 + $0x1f8] sm:$0xf0] }
 0x10c   : > { %1429 = vmatpush.bf16.msrb.mxu1 %v1967_v4  ;;  %v2146_v61 = vld [vmem:[%s3055_s1 + $0x288] sm:$0xf]  ;;  %v2423_v62 = vld [vmem:[%s3055_s1 + $0x294] sm:$0xf0]  ;;  %v2019_v2 = vor.u32 %v2391_v60, %v2018_v58  ;;  %v2433_v58 = vld [vmem:[%s3055_s1 + $0x2ec] sm:$0xf] }
 0x10d   : > { %1443 = vmatpush.bf16.msrb.mxu2 %v2095_v5  ;;  %v2274_v63 = vld [vmem:[%s3055_s1 + $0x388] sm:$0xf]  ;;  %v2455_v0 = vld [vmem:[%s3055_s1 + $0x394] sm:$0xf0]  ;;  %v2147_v3 = vor.u32 %v2423_v62, %v2146_v61  ;;  %v2465_v62 = vld [vmem:[%s3055_s1 + $0x3ec] sm:$0xf] }
 0x10e   : > { %1457 = vmatpush.bf16.msrb.mxu3 %v2223_v9  ;;  %v1874_v4 = vld [vmem:[%s3055_s1 + $0x68] sm:$0xf]  ;;  %v2355_v5 = vld [vmem:[%s3055_s1 + $0x74] sm:$0xf0]  ;;  %v2275_v7 = vor.u32 %v2455_v0, %v2274_v63  ;;  %v2324_v63 = vld [vmem:[%s3055_s1 + $0x3f8] sm:$0xf0] }
 0x10f   : > { %1416 = vmatpush.bf16.msrb.mxu0 %v1823_v17  ;;  %v2002_v6 = vld [vmem:[%s3055_s1 + $0x168] sm:$0xf]  ;;  %v2387_v8 = vld [vmem:[%s3055_s1 + $0x174] sm:$0xf0]  ;;  %v1875_v14 = vor.u32 %v2355_v5, %v1874_v4  ;;  %v2365_v4 = vld [vmem:[%s3055_s1 + $0xcc] sm:$0xf] }
 0x110   : > { %1430 = vmatpush.bf16.msrb.mxu1 %v1951_v22  ;;  %v2130_v9 = vld [vmem:[%s3055_s1 + $0x268] sm:$0xf]  ;;  %v2419_v10 = vld [vmem:[%s3055_s1 + $0x274] sm:$0xf0]  ;;  %v2003_v15 = vor.u32 %v2387_v8, %v2002_v6  ;;  %v1924_v5 = vld [vmem:[%s3055_s1 + $0xd8] sm:$0xf0] }
 0x111   : > { %1444 = vmatpush.bf16.msrb.mxu2 %v2079_v23  ;;  %v2258_v11 = vld [vmem:[%s3055_s1 + $0x368] sm:$0xf]  ;;  %v2451_v12 = vld [vmem:[%s3055_s1 + $0x374] sm:$0xf0]  ;;  %v2131_v16 = vor.u32 %v2419_v10, %v2130_v9  ;;  %v2397_v6 = vld [vmem:[%s3055_s1 + $0x1cc] sm:$0xf] }
 0x112   : > { %1458 = vmatpush.bf16.msrb.mxu3 %v2207_v26  ;;  %1417 = vmatmul.bf16.vlgmr.msrb.gmra.mxu0 %v3171_v31  ;;  %v1858_v17 = vld [vmem:[%s3055_s1 + $0x48] sm:$0xf]  ;;  %v2351_v18 = vld [vmem:[%s3055_s1 + $0x54] sm:$0xf0]  ;;  %v2259_v21 = vor.u32 %v2451_v12, %v2258_v11  ;;  %v2052_v8 = vld [vmem:[%s3055_s1 + $0x1d8] sm:$0xf0] }
 0x113   : > { %1465 = vmatpush.bf16.msra.mxu0 %v1939_v27  ;;  %1431 = vmatmul.bf16.vlgmr.msrb.gmra.mxu1 %v3178_v38  ;;  %v1986_v19 = vld [vmem:[%s3055_s1 + $0x148] sm:$0xf]  ;;  %v2383_v22 = vld [vmem:[%s3055_s1 + $0x154] sm:$0xf0]  ;;  %v1859_v27 = vor.u32 %v2351_v18, %v1858_v17  ;;  %v2429_v9 = vld [vmem:[%s3055_s1 + $0x2cc] sm:$0xf] }
 0x114   : > { %1479 = vmatpush.bf16.msra.mxu1 %v2067_v28  ;;  %1445 = vmatmul.bf16.vlgmr.msrb.gmra.mxu2 %v3153_v13  ;;  %v2114_v23 = vld [vmem:[%s3055_s1 + $0x248] sm:$0xf]  ;;  %v2415_v24 = vld [vmem:[%s3055_s1 + $0x254] sm:$0xf0]  ;;  %v1987_v28 = vor.u32 %v2383_v22, %v1986_v19  ;;  %v2180_v10 = vld [vmem:[%s3055_s1 + $0x2d8] sm:$0xf0] }
 0x115   : > { %1493 = vmatpush.bf16.msra.mxu2 %v2195_v29  ;;  %1459 = vmatmul.bf16.vlgmr.msrb.gmra.mxu3 %v3160_v20  ;;  %v2242_v25 = vld [vmem:[%s3055_s1 + $0x348] sm:$0xf]  ;;  %v2447_v26 = vld [vmem:[%s3055_s1 + $0x354] sm:$0xf0]  ;;  %v2115_v29 = vor.u32 %v2415_v24, %v2114_v23  ;;  %v2461_v11 = vld [vmem:[%s3055_s1 + $0x3cc] sm:$0xf] }
 0x116   : > { %1507 = vmatpush.bf16.msra.mxu3 %v2323_v34  ;;  %v1842_v30 = vld [vmem:[%s3055_s1 + $0x28] sm:$0xf]  ;;  %v2347_v32 = vld [vmem:[%s3055_s1 + $0x34] sm:$0xf0]  ;;  %v2243_v34 = vor.u32 %v2447_v26, %v2242_v25  ;;  %v2308_v12 = vld [vmem:[%s3055_s1 + $0x3d8] sm:$0xf0] }
 0x117   : > { %1466 = vmatpush.bf16.msra.mxu0 %v1923_v41  ;;  %v1970_v33 = vld [vmem:[%s3055_s1 + $0x128] sm:$0xf]  ;;  %v2379_v35 = vld [vmem:[%s3055_s1 + $0x134] sm:$0xf0]  ;;  %v1843_v41 = vor.u32 %v2347_v32, %v1842_v30  ;;  %v2361_v17 = vld [vmem:[%s3055_s1 + $0xac] sm:$0xf] }
 0x118   : > { %1480 = vmatpush.bf16.msra.mxu1 %v2051_v42  ;;  %v2098_v36 = vld [vmem:[%s3055_s1 + $0x228] sm:$0xf]  ;;  %v2411_v37 = vld [vmem:[%s3055_s1 + $0x234] sm:$0xf0]  ;;  %v1971_v44 = vor.u32 %v2379_v35, %v1970_v33  ;;  %v1908_v18 = vld [vmem:[%s3055_s1 + $0xb8] sm:$0xf0] }
 0x119   : > { %1494 = vmatpush.bf16.msra.mxu2 %v2179_v43  ;;  %v2226_v39 = vld [vmem:[%s3055_s1 + $0x328] sm:$0xf]  ;;  %v2443_v40 = vld [vmem:[%s3055_s1 + $0x334] sm:$0xf0]  ;;  %v2099_v45 = vor.u32 %v2411_v37, %v2098_v36  ;;  %v2393_v19 = vld [vmem:[%s3055_s1 + $0x1ac] sm:$0xf] }
 0x11a   : > { %1508 = vmatpush.bf16.msra.mxu3 %v2307_v47  ;;  %v1826_v42 = vld [vmem:[%s3055_s1 + $0x8] sm:$0xf]  ;;  %v2343_v43 = vld [vmem:[%s3055_s1 + $0x14] sm:$0xf0]  ;;  %v2227_v49 = vor.u32 %v2443_v40, %v2226_v39  ;;  %v2036_v22 = vld [vmem:[%s3055_s1 + $0x1b8] sm:$0xf0] }
 0x11b   : > { %1467 = vmatpush.bf16.msra.mxu0 %v1907_v53  ;;  %v1954_v46 = vld [vmem:[%s3055_s1 + $0x108] sm:$0xf]  ;;  %v2375_v47 = vld [vmem:[%s3055_s1 + $0x114] sm:$0xf0]  ;;  %v2369_v53 = vld [vmem:[%s3055_s1 + $0xec] sm:$0xf]  ;;  %v1827_v56 = vor.u32 %v2343_v43, %v1826_v42 }
 0x11c   : > { %1481 = vmatpush.bf16.msra.mxu1 %v2035_v54  ;;  %v2082_v48 = vld [vmem:[%s3055_s1 + $0x208] sm:$0xf]  ;;  %v2407_v50 = vld [vmem:[%s3055_s1 + $0x214] sm:$0xf0]  ;;  %v1940_v54 = vld [vmem:[%s3055_s1 + $0xf8] sm:$0xf0]  ;;  %v1955_v60 = vor.u32 %v2375_v47, %v1954_v46 }
 0x11d   : > { %1495 = vmatpush.bf16.msra.mxu2 %v2163_v55  ;;  %v2210_v51 = vld [vmem:[%s3055_s1 + $0x308] sm:$0xf]  ;;  %v2439_v52 = vld [vmem:[%s3055_s1 + $0x314] sm:$0xf0]  ;;  %v2401_v55 = vld [vmem:[%s3055_s1 + $0x1ec] sm:$0xf]  ;;  %v2083_v61 = vor.u32 %v2407_v50, %v2082_v48 }
 0x11e   : > { %1509 = vmatpush.bf16.msra.mxu3 %v2291_v59  ;;  %v2196_v59 = vld [vmem:[%s3055_s1 + $0x2f8] sm:$0xf0]  ;;  %v2211_v0 = vor.u32 %v2439_v52, %v2210_v51  ;;  %v2425_v23 = vld [vmem:[%s3055_s1 + $0x2ac] sm:$0xf] }
 0x11f   : > { %1468 = vmatpush.bf16.msra.mxu0 %v1891_v1  ;;  %v1943_v1 = vor.u32 %v2369_v53, %v1940_v54  ;;  %v2164_v24 = vld [vmem:[%s3055_s1 + $0x2b8] sm:$0xf0]  ;;  %v2457_v25 = vld [vmem:[%s3055_s1 + $0x3ac] sm:$0xf] }
 0x120   : > { %1482 = vmatpush.bf16.msra.mxu1 %v2019_v2  ;;  %v2071_v2 = vor.u32 %v2401_v55, %v2068_v57  ;;  %v2292_v26 = vld [vmem:[%s3055_s1 + $0x3b8] sm:$0xf0]  ;;  %v2357_v30 = vld [vmem:[%s3055_s1 + $0x8c] sm:$0xf] }
 0x121   : > { %1496 = vmatpush.bf16.msra.mxu2 %v2147_v3  ;;  %v2199_v3 = vor.u32 %v2433_v58, %v2196_v59  ;;  %v1892_v32 = vld [vmem:[%s3055_s1 + $0x98] sm:$0xf0]  ;;  %v2389_v33 = vld [vmem:[%s3055_s1 + $0x18c] sm:$0xf] }
 0x122   : > { %1510 = vmatpush.bf16.msra.mxu3 %v2275_v7  ;;  %v2327_v7 = vor.u32 %v2465_v62, %v2324_v63  ;;  %v2020_v35 = vld [vmem:[%s3055_s1 + $0x198] sm:$0xf0]  ;;  %v2421_v36 = vld [vmem:[%s3055_s1 + $0x28c] sm:$0xf] }
 0x123   : > { %1469 = vmatpush.bf16.msra.mxu0 %v1875_v14  ;;  %v1927_v14 = vor.u32 %v2365_v4, %v1924_v5  ;;  %v2148_v37 = vld [vmem:[%s3055_s1 + $0x298] sm:$0xf0]  ;;  %v2453_v39 = vld [vmem:[%s3055_s1 + $0x38c] sm:$0xf]  ;;  %v2023_v42 = vor.u32 %v2389_v33, %v2020_v35 }
 0x124   : > { %1483 = vmatpush.bf16.msra.mxu1 %v2003_v15  ;;  %v2055_v15 = vor.u32 %v2397_v6, %v2052_v8  ;;  %v2276_v40 = vld [vmem:[%s3055_s1 + $0x398] sm:$0xf0]  ;;  %v2151_v43 = vor.u32 %v2421_v36, %v2148_v37  ;;  %v2385_v46 = vld [vmem:[%s3055_s1 + $0x16c] sm:$0xf] }
 0x125   : > { %1497 = vmatpush.bf16.msra.mxu2 %v2131_v16  ;;  %v2183_v16 = vor.u32 %v2429_v9, %v2180_v10  ;;  %v2279_v47 = vor.u32 %v2453_v39, %v2276_v40  ;;  %v2004_v48 = vld [vmem:[%s3055_s1 + $0x178] sm:$0xf0]  ;;  %v2449_v51 = vld [vmem:[%s3055_s1 + $0x36c] sm:$0xf]  ;;  %v553_v39 = vld [vmem:[#allocation2 + $0x30] sm:$0xff] }
 0x126   : > { %1511 = vmatpush.bf16.msra.mxu3 %v2259_v21  ;;  %v2311_v21 = vor.u32 %v2461_v11, %v2308_v12  ;;  %v2132_v50 = vld [vmem:[%s3055_s1 + $0x278] sm:$0xf0]  ;;  %v2007_v54 = vor.u32 %v2385_v46, %v2004_v48  ;;  %v2381_v58 = vld [vmem:[%s3055_s1 + $0x14c] sm:$0xf] }
 0x127   : > { %1470 = vmatpush.bf16.msra.mxu0 %v1859_v27  ;;  %v1911_v27 = vor.u32 %v2361_v17, %v1908_v18  ;;  %v2260_v52 = vld [vmem:[%s3055_s1 + $0x378] sm:$0xf0]  ;;  %v2445_v63 = vld [vmem:[%s3055_s1 + $0x34c] sm:$0xf] }
 0x128   : > { %1484 = vmatpush.bf16.msra.mxu1 %v1987_v28  ;;  %v2039_v28 = vor.u32 %v2393_v19, %v2036_v22  ;;  %v1860_v57 = vld [vmem:[%s3055_s1 + $0x58] sm:$0xf0]  ;;  %v2263_v59 = vor.u32 %v2449_v51, %v2260_v52  ;;  %v2345_v4 = vld [vmem:[%s3055_s1 + $0x2c] sm:$0xf] }
 0x129   : > { %1498 = vmatpush.bf16.msra.mxu2 %v2115_v29  ;;  %v2167_v29 = vor.u32 %v2425_v23, %v2164_v24  ;;  %v2116_v62 = vld [vmem:[%s3055_s1 + $0x258] sm:$0xf0]  ;;  %v2377_v6 = vld [vmem:[%s3055_s1 + $0x12c] sm:$0xf] }
 0x12a   : > { %1512 = vmatpush.bf16.msra.mxu3 %v2243_v34  ;;  %v2295_v34 = vor.u32 %v2457_v25, %v2292_v26  ;;  %v1844_v5 = vld [vmem:[%s3055_s1 + $0x38] sm:$0xf0]  ;;  %v2409_v9 = vld [vmem:[%s3055_s1 + $0x22c] sm:$0xf] }
 0x12b   : > { %1471 = vmatpush.bf16.msra.mxu0 %v1843_v41  ;;  %v1895_v41 = vor.u32 %v2357_v30, %v1892_v32  ;;  %v1972_v8 = vld [vmem:[%s3055_s1 + $0x138] sm:$0xf0]  ;;  %v2441_v11 = vld [vmem:[%s3055_s1 + $0x32c] sm:$0xf] }
 0x12c   : > { %1485 = vmatpush.bf16.msra.mxu1 %v1971_v44  ;;  %v2353_v44 = vld [vmem:[%s3055_s1 + $0x6c] sm:$0xf]  ;;  %v2100_v10 = vld [vmem:[%s3055_s1 + $0x238] sm:$0xf0] }
 0x12d   : > { %1499 = vmatpush.bf16.msra.mxu2 %v2099_v45  ;;  %v1876_v45 = vld [vmem:[%s3055_s1 + $0x78] sm:$0xf0]  ;;  %v2341_v17 = vld [vmem:[%s3055_s1 + $0xc] sm:$0xf] }
 0x12e   : > { %1513 = vmatpush.bf16.msra.mxu3 %v2227_v49  ;;  %v2417_v49 = vld [vmem:[%s3055_s1 + $0x26c] sm:$0xf]  ;;  %v1879_v53 = vor.u32 %v2353_v44, %v1876_v45  ;;  %v2228_v12 = vld [vmem:[%s3055_s1 + $0x338] sm:$0xf0] }
 0x12f   : > { %1472 = vmatpush.bf16.msra.mxu0 %v1827_v56  ;;  %v2135_v55 = vor.u32 %v2417_v49, %v2132_v50  ;;  %v2349_v56 = vld [vmem:[%s3055_s1 + $0x4c] sm:$0xf]  ;;  %v1828_v18 = vld [vmem:[%s3055_s1 + $0x18] sm:$0xf0] }
 0x130   : > { %1486 = vmatpush.bf16.msra.mxu1 %v1955_v60  ;;  %v1988_v60 = vld [vmem:[%s3055_s1 + $0x158] sm:$0xf0]  ;;  %v2373_v19 = vld [vmem:[%s3055_s1 + $0x10c] sm:$0xf] }
 0x131   : > { %1500 = vmatpush.bf16.msra.mxu2 %v2083_v61  ;;  %v2413_v61 = vld [vmem:[%s3055_s1 + $0x24c] sm:$0xf]  ;;  %v1956_v22 = vld [vmem:[%s3055_s1 + $0x118] sm:$0xf0] }
 0x132   : > { %1514 = vmatpush.bf16.msra.mxu3 %v2211_v0  ;;  %1473 = vmatmul.bf16.vlgmr.msra.gmra.mxu0 %v3171_v31  ;;  %v2244_v0 = vld [vmem:[%s3055_s1 + $0x358] sm:$0xf0]  ;;  %v2405_v23 = vld [vmem:[%s3055_s1 + $0x20c] sm:$0xf] }
 0x133   : > { %1521 = vmatpush.bf16.msrb.mxu0 %v1943_v1  ;;  %1487 = vmatmul.bf16.vlgmr.msra.gmra.mxu1 %v3178_v38  ;;  %v1863_v1 = vor.u32 %v2349_v56, %v1860_v57  ;;  %v2084_v24 = vld [vmem:[%s3055_s1 + $0x218] sm:$0xf0]  ;;  %v2437_v25 = vld [vmem:[%s3055_s1 + $0x30c] sm:$0xf] }
 0x134   : > { %1535 = vmatpush.bf16.msrb.mxu1 %v2071_v2  ;;  %1501 = vmatmul.bf16.vlgmr.msra.gmra.mxu2 %v3153_v13  ;;  %v1991_v2 = vor.u32 %v2381_v58, %v1988_v60  ;;  %v2212_v26 = vld [vmem:[%s3055_s1 + $0x318] sm:$0xf0]  ;;  %v557_v46 = vld [vmem:[#allocation2 + $0x8] sm:$0xff] }
 0x135   : > { %1549 = vmatpush.bf16.msrb.mxu2 %v2199_v3  ;;  %1515 = vmatmul.bf16.vlgmr.msra.gmra.mxu3 %v3160_v20  ;;  %v2119_v3 = vor.u32 %v2413_v61, %v2116_v62  ;;  %v2215_v30 = vor.u32 %v2437_v25, %v2212_v26  ;;  %v558_v62 = vld [vmem:[#allocation2 + $0x20] sm:$0xff] }
 0x136   : > { %1563 = vmatpush.bf16.msrb.mxu3 %v2327_v7  ;;  %v2247_v7 = vor.u32 %v2445_v63, %v2244_v0 }
 0x137   : > { %1522 = vmatpush.bf16.msrb.mxu0 %v1927_v14  ;;  %v1847_v14 = vor.u32 %v2345_v4, %v1844_v5 }
 0x138   : > { %1536 = vmatpush.bf16.msrb.mxu1 %v2055_v15  ;;  %v1975_v15 = vor.u32 %v2377_v6, %v1972_v8 }
 0x139   : > { %1550 = vmatpush.bf16.msrb.mxu2 %v2183_v16  ;;  %v2103_v16 = vor.u32 %v2409_v9, %v2100_v10 }
 0x13a   : > { %1564 = vmatpush.bf16.msrb.mxu3 %v2311_v21  ;;  %v2231_v21 = vor.u32 %v2441_v11, %v2228_v12 }
 0x13b   : > { %1523 = vmatpush.bf16.msrb.mxu0 %v1911_v27  ;;  %v1831_v27 = vor.u32 %v2341_v17, %v1828_v18  ;;  %v559_v17 = vld [vmem:[#allocation2 + $0x28] sm:$0xff] }
 0x13c   : > { %1537 = vmatpush.bf16.msrb.mxu1 %v2039_v28  ;;  %v1959_v28 = vor.u32 %v2373_v19, %v1956_v22 }
 0x13d   : > { %1551 = vmatpush.bf16.msrb.mxu2 %v2167_v29  ;;  %v2087_v29 = vor.u32 %v2405_v23, %v2084_v24 }
 0x13e   : > { %1565 = vmatpush.bf16.msrb.mxu3 %v2295_v34 }
 0x13f   : > { %1524 = vmatpush.bf16.msrb.mxu0 %v1895_v41 }
 0x140   : > { %1538 = vmatpush.bf16.msrb.mxu1 %v2023_v42 }
 0x141   : > { %1552 = vmatpush.bf16.msrb.mxu2 %v2151_v43 }
 0x142   : > { %1566 = vmatpush.bf16.msrb.mxu3 %v2279_v47 }
 0x143   : > { %1525 = vmatpush.bf16.msrb.mxu0 %v1879_v53  ;;  %v554_v53 = vld [vmem:[#allocation2] sm:$0xff] }
 0x144   : > { %1539 = vmatpush.bf16.msrb.mxu1 %v2007_v54 }
 0x145   : > { %1553 = vmatpush.bf16.msrb.mxu2 %v2135_v55 }
 0x146   : > { %1567 = vmatpush.bf16.msrb.mxu3 %v2263_v59 }
 0x147   : > { %1526 = vmatpush.bf16.msrb.mxu0 %v1863_v1 }
 0x148   : > { %1540 = vmatpush.bf16.msrb.mxu1 %v1991_v2 }
 0x149   : > { %1554 = vmatpush.bf16.msrb.mxu2 %v2119_v3 }
 0x14a   : > { %1568 = vmatpush.bf16.msrb.mxu3 %v2247_v7  ;;  %v555_v7 = vld [vmem:[#allocation2 + $0x18] sm:$0xff] }
 0x14b   : > { %1527 = vmatpush.bf16.msrb.mxu0 %v1847_v14 }
 0x14c   : > { %1541 = vmatpush.bf16.msrb.mxu1 %v1975_v15 }
 0x14d   : > { %1555 = vmatpush.bf16.msrb.mxu2 %v2103_v16 }
 0x14e   : > { %1569 = vmatpush.bf16.msrb.mxu3 %v2231_v21 }
 0x14f   : > { %1528 = vmatpush.bf16.msrb.mxu0 %v1831_v27  ;;  %v556_v27 = vld [vmem:[#allocation2 + $0x10] sm:$0xff] }
 0x150   : > { %1542 = vmatpush.bf16.msrb.mxu1 %v1959_v28 }
 0x151   : > { %1556 = vmatpush.bf16.msrb.mxu2 %v2087_v29 }
 0x152   : > { %1570 = vmatpush.bf16.msrb.mxu3 %v2215_v30  ;;  %1529 = vmatmul.bf16.vlgmr.msrb.gmra.mxu0 %v3171_v31 }
 0x153   : > { %1543 = vmatmul.bf16.vlgmr.msrb.gmra.mxu1 %v3178_v38 }
 0x154   : > { %1557 = vmatmul.bf16.vlgmr.msrb.gmra.mxu2 %v3153_v13 }
 0x155   : > { %1571 = vmatmul.bf16.vlgmr.msrb.gmra.mxu3 %v3160_v20 }
 0x175   : > { %v1362_v32 = vpop.f32.mrf.mxu0 }
 0x177   : > { %v1376_v33 = vpop.f32.mrf.mxu1  ;;  %v1390_v35 = vpop.f32.mrf.mxu2 }
 0x178   : > { %v1377_v34 = vadd.f32 %v1376_v33, %v1362_v32 }
 0x17a   : > { %v1404_v36 = vpop.f32.mrf.mxu3  ;;  %v1391_v37 = vadd.f32 %v1390_v35, %v1377_v34 }
 0x17c   : > { %v1405_v40 = vadd.f32 %v1404_v36, %v1391_v37  ;;  %v560_v36 = vld [vmem:[#allocation2 + $0x38] sm:$0xff] }
 0x17d   : > { %v1364_v42 = vpop.f32.mrf.mxu0 }
 0x17e   : > { %v1577_v41 = vadd.f32 %v1405_v40, %v553_v39 }
 0x17f   : > { %v1378_v43 = vpop.f32.mrf.mxu1  ;;  %v1392_v31 = vpop.f32.mrf.mxu2 }
 0x180   : > { %1585 = vst [vmem:[#allocation2 + $0x30] sm:$0xff] %v1577_v41  ;;  %v1379_v44 = vadd.f32 %v1378_v43, %v1364_v42 }
 0x182   : > { %v1406_v45 = vpop.f32.mrf.mxu3  ;;  %v1393_v38 = vadd.f32 %v1392_v31, %v1379_v44 }
 0x184   : > { %v1407_v13 = vadd.f32 %v1406_v45, %v1393_v38 }
 0x186   : > { %v1581_v47 = vadd.f32 %v1407_v13, %v557_v46 }
 0x188   : > { %1589 = vst [vmem:[#allocation2 + $0x8] sm:$0xff] %v1581_v47 }
 0x18f   : > { %v1418_v20 = vpop.f32.mrf.mxu0 }
 0x190   : > { %v1432_v48 = vpop.f32.mrf.mxu1 }
 0x191   : > { %v1433_v49 = vadd.f32 %v1432_v48, %v1418_v20 }
 0x197   : > { %v1446_v50 = vpop.f32.mrf.mxu2  ;;  %v1420_v55 = vpop.f32.mrf.mxu0 }
 0x198   : > { %v1447_v51 = vadd.f32 %v1446_v50, %v1433_v49  ;;  %v1460_v52 = vpop.f32.mrf.mxu3  ;;  %v1434_v56 = vpop.f32.mrf.mxu1 }
 0x199   : > { %v1435_v58 = vadd.f32 %v1434_v56, %v1420_v55 }
 0x19a   : > { %v1461_v54 = vadd.f32 %v1460_v52, %v1447_v51 }
 0x19c   : > { %v1578_v57 = vadd.f32 %v1461_v54, %v554_v53 }
 0x19e   : > { %1586 = vst [vmem:[#allocation2] sm:$0xff] %v1578_v57 }
 0x19f   : > { %v1448_v59 = vpop.f32.mrf.mxu2 }
 0x1a0   : > { %v1449_v60 = vadd.f32 %v1448_v59, %v1435_v58  ;;  %v1462_v61 = vpop.f32.mrf.mxu3 }
 0x1a2   : > { %v1463_v63 = vadd.f32 %v1462_v61, %v1449_v60 }
 0x1a4   : > { %v1582_v0 = vadd.f32 %v1463_v63, %v558_v62 }
 0x1a6   : > { %1590 = vst [vmem:[#allocation2 + $0x20] sm:$0xff] %v1582_v0 }
 0x1af   : > { %v1474_v1 = vpop.f32.mrf.mxu0 }
 0x1b0   : > { %v1488_v2 = vpop.f32.mrf.mxu1 }
 0x1b1   : > { %v1489_v3 = vadd.f32 %v1488_v2, %v1474_v1 }
 0x1b7   : > { %v1502_v4 = vpop.f32.mrf.mxu2  ;;  %v1476_v9 = vpop.f32.mrf.mxu0 }
 0x1b8   : > { %v1503_v5 = vadd.f32 %v1502_v4, %v1489_v3  ;;  %v1516_v6 = vpop.f32.mrf.mxu3  ;;  %v1490_v10 = vpop.f32.mrf.mxu1 }
 0x1b9   : > { %v1491_v12 = vadd.f32 %v1490_v10, %v1476_v9 }
 0x1ba   : > { %v1517_v8 = vadd.f32 %v1516_v6, %v1503_v5 }
 0x1bc   : > { %v1579_v11 = vadd.f32 %v1517_v8, %v555_v7 }
 0x1be   : > { %1587 = vst [vmem:[#allocation2 + $0x18] sm:$0xff] %v1579_v11 }
 0x1bf   : > { %v1504_v14 = vpop.f32.mrf.mxu2 }
 0x1c0   : > { %v1505_v15 = vadd.f32 %v1504_v14, %v1491_v12  ;;  %v1518_v16 = vpop.f32.mrf.mxu3 }
 0x1c2   : > { %v1519_v18 = vadd.f32 %v1518_v16, %v1505_v15 }
 0x1c4   : > { %v1583_v19 = vadd.f32 %v1519_v18, %v559_v17 }
 0x1c6   : > { %1591 = vst [vmem:[#allocation2 + $0x28] sm:$0xff] %v1583_v19 }
 0x1cf   : > { %v1530_v21 = vpop.f32.mrf.mxu0 }
 0x1d0   : > { %v1544_v22 = vpop.f32.mrf.mxu1 }
 0x1d1   : > { %v1545_v23 = vadd.f32 %v1544_v22, %v1530_v21 }
 0x1d7   : > { %v1558_v24 = vpop.f32.mrf.mxu2  ;;  %v1532_v29 = vpop.f32.mrf.mxu0 }
 0x1d8   : > { %v1559_v25 = vadd.f32 %v1558_v24, %v1545_v23  ;;  %v1572_v26 = vpop.f32.mrf.mxu3  ;;  %v1546_v30 = vpop.f32.mrf.mxu1 }
 0x1d9   : > { %v1547_v33 = vadd.f32 %v1546_v30, %v1532_v29 }
 0x1da   : > { %v1573_v28 = vadd.f32 %v1572_v26, %v1559_v25 }
 0x1dc   : > { %v1580_v32 = vadd.f32 %v1573_v28, %v556_v27 }
 0x1de   : > { %1588 = vst [vmem:[#allocation2 + $0x10] sm:$0xff] %v1580_v32 }
 0x1df   : > { %v1560_v34 = vpop.f32.mrf.mxu2 }
 0x1e0   : > { %v1561_v35 = vadd.f32 %v1560_v34, %v1547_v33  ;;  %v1574_v37 = vpop.f32.mrf.mxu3 }
 0x1e2   : > { %v1575_v39 = vadd.f32 %v1574_v37, %v1561_v35  ;;  %1596 = sbr.rel (%p2328_p5) target bundleno = 501 (0x1f5), region = 86 }
 0x1e4   : > { %v1584_v40 = vadd.f32 %v1575_v39, %v560_v36 }
 0x1e6   : > { %1592 = vst [vmem:[#allocation2 + $0x38] sm:$0xff] %v1584_v40 }
 0x1e7   : > { %v1597_v41 = vld [vmem:[#allocation2 + $0x30] sm:$0xff]  ;;  %v1598_v42 = vld [vmem:[#allocation2] sm:$0xff]  ;;  %v1599_v45 = vld [vmem:[#allocation2 + $0x18] sm:$0xff] }
 0x1e8   : > { %v1605_v43 = vld [vmem:[%s537_s5] sm:$0xf]  ;;  %v1600_v38 = vld [vmem:[#allocation2 + $0x10] sm:$0xff]  ;;  %v1601_v47 = vld [vmem:[#allocation2 + $0x8] sm:$0xff] }
 0x1e9   : > { %v1607_v44 = vperm.slane %v1605_v43, 0  ;;  %v1608_v31 = vperm.slane %v1605_v43, 1  ;;  %v1609_v46 = vperm.slane %v1605_v43, 2  ;;  %v1610_v13 = vperm.slane %v1605_v43, 3  ;;  %v1602_v20 = vld [vmem:[#allocation2 + $0x20] sm:$0xff]  ;;  %v1603_v48 = vld [vmem:[#allocation2 + $0x28] sm:$0xff] }
 0x1eb   : > { %v1615_v49 = vadd.f32 %v1607_v44, %v1597_v41  ;;  %v1616_v50 = vadd.f32 %v1608_v31, %v1598_v42  ;;  %v1617_v51 = vadd.f32 %v1609_v46, %v1599_v45  ;;  %v1618_v52 = vadd.f32 %v1610_v13, %v1600_v38 }
 0x1ec   : > { %v1619_v54 = vadd.f32 %v1607_v44, %v1601_v47  ;;  %v1620_v55 = vadd.f32 %v1608_v31, %v1602_v20  ;;  %v1621_v56 = vadd.f32 %v1609_v46, %v1603_v48 }
 0x1ed   : > { %v1604_v53 = vld [vmem:[#allocation2 + $0x38] sm:$0xff]  ;;  %v1623_v58 = vmax.f32 %v1615_v49, 0.0  ;;  %v1624_v59 = vmax.f32 %v1616_v50, 0.0  ;;  %v1625_v60 = vmax.f32 %v1617_v51, 0.0  ;;  %v1626_v61 = vmax.f32 %v1618_v52, 0.0 }
 0x1ee   : > { %v1622_v57 = vadd.f32 %v1610_v13, %v1604_v53  ;;  %v1627_v62 = vmax.f32 %v1619_v54, 0.0  ;;  %v1628_v63 = vmax.f32 %v1620_v55, 0.0  ;;  %v1629_v0 = vmax.f32 %v1621_v56, 0.0 }
 0x1ef   : > { %v1631_v2 = vpack.c.bf16 %v1624_v59, %v1623_v58  ;;  %v1632_v3 = vpack.c.bf16 %v1626_v61, %v1625_v60 }
 0x1f0   : > { %v1630_v1 = vmax.f32 %v1622_v57, 0.0  ;;  %v1633_v4 = vpack.c.bf16 %v1628_v63, %v1627_v62 }
 0x1f1   : > { %1635 = vst [vmem:[%s3057_s25] sm:$0xff] %v1631_v2 }
 0x1f2   : > { %v1634_v5 = vpack.c.bf16 %v1630_v1, %v1629_v0  ;;  %1636 = vst [vmem:[%s3057_s25 + $0x8] sm:$0xff] %v1632_v3 }
 0x1f3   : > { %1637 = vst [vmem:[%s3057_s25 + $0x10] sm:$0xff] %v1633_v4 }
 0x1f4   : > { %1638 = vst [vmem:[%s3057_s25 + $0x18] sm:$0xff] %v1634_v5 }
 0x1f5 PF: > { %1645 = sbr.rel (!%p2761_p12) target bundleno = 509 (0x1fd), region = 90  ;;  %s2468_s14 = sshll.u32 (%p2761_p12), %s2632_s19, 4 }
 0x1f6   : > { %s1651_s0 = scalar_lea.vmem (%p2761_p12), %s3404_s3, %s2468_s14 }
 0x1f8   : > { %v1664_v6 = vld [vmem:[%s3057_s25] sm:$0xff] (%p2761_p12) }
 0x1f9   : > { %v1666_v7 = vld [vmem:[%s3057_s25 + $0x8] sm:$0xff] (%p2761_p12)  ;;  %1665 = vst [vmem:[%s1651_s0] sm:$0xff] (%p2761_p12), %v1664_v6 }
 0x1fa   : > { %v1668_v8 = vld [vmem:[%s3057_s25 + $0x10] sm:$0xff]  ;;  %1667 = vst [vmem:[%s1651_s0 + $0x8] sm:$0xff] %v1666_v7 }
 0x1fb   : > { %v1670_v9 = vld [vmem:[%s3057_s25 + $0x18] sm:$0xff]  ;;  %1669 = vst [vmem:[%s1651_s0 + $0x40] sm:$0xff] %v1668_v8 }
 0x1fc   : > { %1671 = vst [vmem:[%s1651_s0 + $0x48] sm:$0xff] %v1670_v9 }
 0x1fd PF: > { %s13_s22 = sadd.s32 1, %s2644_s22   ;;  %s3414_s10 = sld [smem:[#allocation6_spill]] }
 0x1fe   : > { %p10_p6 = scmp.ge.s32.totalorder %s13_s22, 10   ;;  %s3415_s12 = smov %s2608_s13 }
 0x1ff   : > { %s3416_s13 = smov %s2759_s9  ;;  %s3417_s14 = smov %s2616_s15 }
 0x200   : > { %s3418_s15 = smov %s2756_s8  ;;  %s3419_s16 = smov %s2624_s17 }
 0x201   : > { %s3420_s17 = smov %s2742_s30  ;;  %s3421_s18 = smov %s2636_s20 }
 0x202   : > { %s3422_s19 = smov %s2640_s21  ;;  %s3423_s20 = smov %s3426_s24 }
 0x203   : > { %s3424_s21 = smov %s3414_s10  ;;  %12 = sbr.rel (!%p10_p6) target bundleno = 9 (0x9), region = 155 }

// kernel: variational_encoder_forward.7
= control target key start
LH: loop header
LB: loop body
LE: loop exit
PB: predicated region body
PF: predicated region fallthrough
CT: control target
= control target key end

     0   :  { %10 = vsyncpa [#allocation4], 0  ;;  %s8793_s0 = inlined_call_operand.vmem [shape: bf16[2,4,4,512], index: 0, kind: input, shape index: {}, may-alias: {0,1,2}]   ;;  %s8794_s1 = inlined_call_operand.vmem [shape: bf16[2,4,4,512], index: 1, kind: input, shape index: {}, may-alias: {0,1,2}]   ;;  %s8795_s2 = inlined_call_operand.vmem [shape: bf16[2,4,4,512], index: 2, kind: input, shape index: {}, may-alias: {0,1,2}]   ;;  %s8796_s3 = inlined_call_operand.hbm [shape: bf16[9,512,256], index: 3, kind: input, shape index: {}]   ;;  %s8797_s4 = inlined_call_operand.hbm [shape: f32[1,256], index: 4, kind: input, shape index: {}]   ;;  %s8798_s5 = inlined_call_operand.vmem [shape: bf16[2,2,2,256], index: 5, kind: output, shape index: {}]  }
   0x1   :  { %11 = vsyncpa [#allocation6], 0  ;;  %s8318_s18 = smov 0   ;;  %s8320_s19 = smov 0  }
   0x2   :  { %s8322_s20 = smov 0   ;;  %s8324_s21 = smov 0  }
   0x3   :  { %s8326_s22 = smov 0  }
   0x4 LB: > { %s5209_s23 = sadd.s32 4294967295, %s8281_s22   ;;  %s26_s24 = sadd.s32 1, %s8273_s20  ;;  %s8281_s22 = sphi %s8326_s22, %s17_s22   ;;  %s8277_s21 = sphi %s8324_s21, %s8806_s21   ;;  %s8273_s20 = sphi %s8322_s20, %s8805_s20   ;;  %s8269_s19 = sphi %s8320_s19, %s8804_s19   ;;  %s8265_s18 = sphi %s8318_s18, %s8803_s18  }
   0x5   : > { %p27_p0 = scmp.ge.s32.totalorder %s26_s24, 2  ;;  %s29_s25 = sadd.s32 1, %s8277_s21 }
   0x6   : > { %p5211_p1 = scmp.ge.s32.totalorder %s8281_s22, 1  ;;  %p192_p2 = scmp.lt.s32.totalorder %s8281_s22, 5 }
   0x7   : > { %s8808_s24 = smov (%p27_p0, %s26_s24), 0  ;;  %s8810_s25 = smov (!%p27_p0, %s29_s25), %s8277_s21 }
   0x8   : > { %p8351_p3 = pnand %p5211_p1, %p192_p2  ;;  %p31_p4 = scmp.ge.s32.totalorder %s8810_s25, 2 }
   0x9   : > { %p8355_p5 = scmp.eq.s32.totalorder %s5209_s23, 0  ;;  %s203_s30 = sshll.u32 %s8796_s3, 4  ;;  %s204_s30 = int_to_ptr.hbm [resolvable:$true] %s203_s30 }
   0xa   : > { %p8119_p6 = pneg %p8351_p3  ;;  %s8812_s25 = smov (%p31_p4, %s8810_s25), 0 }
   0xb   : > { %s8283_s6 = smov [#allocation3]   ;;  %s8284_s8 = smov 128  }
   0xc   : > { %s205_s7 = sshll.u32 %s8283_s6, 4  ;;  %p8120_p7 = pnand %p8355_p5, %p8119_p6  ;;  %s206_s7 = int_to_ptr.vmem [resolvable:$true] %s205_s7 }
   0xd   : > { %s8285_s9 = smov 8   ;;  %s218_s12 = sshll.u32 %s8797_s4, 4  ;;  %s219_s12 = int_to_ptr.hbm [resolvable:$true] %s218_s12 }
   0xe   : > { %8122 = dma.hbm_to_vmem [thread:$0]  (!%p8120_p7), %s204_s30, 73728, %s206_s7, [#allocation4], %s8284_s8, %s8284_s8, %s8285_s9  }
   0xf   : > { %s8286_s13 = smov [#allocation5]   ;;  %273 = sbr.rel (%p8351_p3) target bundleno = 770 (0x302), region = 40 }
  0x10   : > { %s220_s14 = sshll.u32 %s8286_s13, 4  ;;  %s221_s14 = int_to_ptr.vmem [resolvable:$true] %s220_s14 }
  0x11   : > { %8125 = dma.hbm_to_vmem [thread:$0]  (!%p8120_p7), %s219_s12, 32, %s221_s14, [#allocation6]  }
  0x14   : > { %8256 = dma.done.wait (%p8355_p5), [#allocation4], 73728  }
  0x15   : > { %8258 = vsyncadd (%p8355_p5), [#allocation4], 4294893568 }
  0x16   : > { %8260 = dma.done.wait (%p8355_p5), [#allocation6], 32  }
  0x17   : > { %8262 = vsyncadd (%p8355_p5), [#allocation6], 4294967264  ;;  %v5287_v0 = vld [vmem:[#allocation3 + $0x70] sm:$0xf]  ;;  %v7550_v1 = vld [vmem:[#allocation3 + $0x74] sm:$0xf0] }
  0x18   : > { %v5351_v2 = vld [vmem:[#allocation3 + $0xf0] sm:$0xf]  ;;  %v5288_v3 = vor.u32 %v7550_v1, %v5287_v0  ;;  %v7566_v4 = vld [vmem:[#allocation3 + $0xf4] sm:$0xf0]  ;;  %v5279_v11 = vld [vmem:[#allocation3 + $0x60] sm:$0xf] }
  0x19   : > { %v5415_v5 = vld [vmem:[#allocation3 + $0x170] sm:$0xf]  ;;  %v7582_v6 = vld [vmem:[#allocation3 + $0x174] sm:$0xf0]  ;;  %v5352_v7 = vor.u32 %v7566_v4, %v5351_v2  ;;  %v7548_v13 = vld [vmem:[#allocation3 + $0x64] sm:$0xf0] }
  0x1a   : > { %v5416_v8 = vor.u32 %v7582_v6, %v5415_v5  ;;  %v5479_v9 = vld [vmem:[#allocation3 + $0x1f0] sm:$0xf]  ;;  %v7598_v10 = vld [vmem:[#allocation3 + $0x1f4] sm:$0xf0]  ;;  %770 = vmatpush.bf16.msra.mxu0 %v5288_v3  ;;  %v5343_v14 = vld [vmem:[#allocation3 + $0xe0] sm:$0xf]  ;;  %v5280_v16 = vor.u32 %v7548_v13, %v5279_v11 }
  0x1b   : > { %v5480_v12 = vor.u32 %v7598_v10, %v5479_v9  ;;  %v7564_v15 = vld [vmem:[#allocation3 + $0xe4] sm:$0xf0]  ;;  %783 = vmatpush.bf16.msra.mxu1 %v5352_v7  ;;  %v5407_v18 = vld [vmem:[#allocation3 + $0x160] sm:$0xf]  ;;  %v5271_v23 = vld [vmem:[#allocation3 + $0x50] sm:$0xf] }
  0x1c   : > { %796 = vmatpush.bf16.msra.mxu2 %v5416_v8  ;;  %v5344_v17 = vor.u32 %v7564_v15, %v5343_v14  ;;  %v7580_v19 = vld [vmem:[#allocation3 + $0x164] sm:$0xf0]  ;;  %v5471_v20 = vld [vmem:[#allocation3 + $0x1e0] sm:$0xf]  ;;  %v7546_v24 = vld [vmem:[#allocation3 + $0x54] sm:$0xf0] }
  0x1d   : > { %809 = vmatpush.bf16.msra.mxu3 %v5480_v12  ;;  %v5408_v21 = vor.u32 %v7580_v19, %v5407_v18  ;;  %v7596_v22 = vld [vmem:[#allocation3 + $0x1e4] sm:$0xf0]  ;;  %v5335_v26 = vld [vmem:[#allocation3 + $0xd0] sm:$0xf]  ;;  %v7562_v27 = vld [vmem:[#allocation3 + $0xd4] sm:$0xf0]  ;;  %v5272_v29 = vor.u32 %v7546_v24, %v5271_v23 }
  0x1e   : > { %v5472_v25 = vor.u32 %v7596_v22, %v5471_v20  ;;  %v5399_v28 = vld [vmem:[#allocation3 + $0x150] sm:$0xf]  ;;  %771 = vmatpush.bf16.msra.mxu0 %v5280_v16  ;;  %v7578_v30 = vld [vmem:[#allocation3 + $0x154] sm:$0xf0]  ;;  %v5336_v33 = vor.u32 %v7562_v27, %v5335_v26  ;;  %v5263_v35 = vld [vmem:[#allocation3 + $0x40] sm:$0xf] }
  0x1f   : > { %v5463_v31 = vld [vmem:[#allocation3 + $0x1d0] sm:$0xf]  ;;  %v7594_v32 = vld [vmem:[#allocation3 + $0x1d4] sm:$0xf0]  ;;  %784 = vmatpush.bf16.msra.mxu1 %v5344_v17  ;;  %v5400_v34 = vor.u32 %v7578_v30, %v5399_v28  ;;  %v7544_v36 = vld [vmem:[#allocation3 + $0x44] sm:$0xf0] }
  0x20   : > { %797 = vmatpush.bf16.msra.mxu2 %v5408_v21  ;;  %v5327_v37 = vld [vmem:[#allocation3 + $0xc0] sm:$0xf]  ;;  %v5464_v38 = vor.u32 %v7594_v32, %v5463_v31  ;;  %v7560_v39 = vld [vmem:[#allocation3 + $0xc4] sm:$0xf0]  ;;  %v5264_v44 = vor.u32 %v7544_v36, %v5263_v35  ;;  %v5255_v47 = vld [vmem:[#allocation3 + $0x30] sm:$0xf] }
  0x21   : > { %810 = vmatpush.bf16.msra.mxu3 %v5472_v25  ;;  %v5391_v40 = vld [vmem:[#allocation3 + $0x140] sm:$0xf]  ;;  %v7576_v41 = vld [vmem:[#allocation3 + $0x144] sm:$0xf0]  ;;  %v5328_v45 = vor.u32 %v7560_v39, %v5327_v37  ;;  %v7542_v48 = vld [vmem:[#allocation3 + $0x34] sm:$0xf0] }
  0x22   : > { %v5455_v42 = vld [vmem:[#allocation3 + $0x1c0] sm:$0xf]  ;;  %v7592_v43 = vld [vmem:[#allocation3 + $0x1c4] sm:$0xf0]  ;;  %772 = vmatpush.bf16.msra.mxu0 %v5272_v29  ;;  %v5392_v46 = vor.u32 %v7576_v41, %v5391_v40  ;;  %v5319_v49 = vld [vmem:[#allocation3 + $0xb0] sm:$0xf]  ;;  %v5256_v56 = vor.u32 %v7542_v48, %v5255_v47 }
  0x23   : > { %785 = vmatpush.bf16.msra.mxu1 %v5336_v33  ;;  %v5456_v50 = vor.u32 %v7592_v43, %v5455_v42  ;;  %v7558_v51 = vld [vmem:[#allocation3 + $0xb4] sm:$0xf0]  ;;  %v5383_v52 = vld [vmem:[#allocation3 + $0x130] sm:$0xf]  ;;  %p334_p8 = scmp.lt.s32.totalorder %s8269_s19, 1  ;;  %p336_p9 = scmp.lt.s32.totalorder %s8265_s18, 3 }
  0x24   : > { %798 = vmatpush.bf16.msra.mxu2 %v5400_v34  ;;  %v7574_v53 = vld [vmem:[#allocation3 + $0x134] sm:$0xf0]  ;;  %v5447_v54 = vld [vmem:[#allocation3 + $0x1b0] sm:$0xf]  ;;  %v5320_v57 = vor.u32 %v7558_v51, %v5319_v49  ;;  %v5247_v59 = vld [vmem:[#allocation3 + $0x20] sm:$0xf] }
  0x25   : > { %811 = vmatpush.bf16.msra.mxu3 %v5464_v38  ;;  %v7590_v55 = vld [vmem:[#allocation3 + $0x1b4] sm:$0xf0]  ;;  %v5384_v58 = vor.u32 %v7574_v53, %v5383_v52  ;;  %v7540_v60 = vld [vmem:[#allocation3 + $0x24] sm:$0xf0]  ;;  %v5311_v61 = vld [vmem:[#allocation3 + $0xa0] sm:$0xf] }
  0x26   : > { %773 = vmatpush.bf16.msra.mxu0 %v5264_v44  ;;  %v5448_v62 = vor.u32 %v7590_v55, %v5447_v54  ;;  %v7556_v63 = vld [vmem:[#allocation3 + $0xa4] sm:$0xf0]  ;;  %v5375_v0 = vld [vmem:[#allocation3 + $0x120] sm:$0xf]  ;;  %s8814_s19 = smov (!%p334_p8, %s8269_s19), 1  ;;  %v5248_v4 = vor.u32 %v7540_v60, %v5247_v59  ;;  %s343_s30 = sadd.s32 1, %s8265_s18 }
  0x27   : > { %786 = vmatpush.bf16.msra.mxu1 %v5328_v45  ;;  %v7572_v1 = vld [vmem:[#allocation3 + $0x124] sm:$0xf0]  ;;  %v5439_v2 = vld [vmem:[#allocation3 + $0x1a0] sm:$0xf]  ;;  %s8391_s15 = scalar_select %p336_p9, %s8265_s18, 3  ;;  %v5312_v5 = vor.u32 %v7556_v63, %v5311_v61  ;;  %vm877_vm0 = vcmask 1041408  }
  0x28   : > { %799 = vmatpush.bf16.msra.mxu2 %v5392_v46  ;;  %v7588_v3 = vld [vmem:[#allocation3 + $0x1a4] sm:$0xf0]  ;;  %v5376_v6 = vor.u32 %v7572_v1, %v5375_v0  ;;  %v5239_v7 = vld [vmem:[#allocation3 + $0x10] sm:$0xf]  ;;  %v7538_v8 = vld [vmem:[#allocation3 + $0x14] sm:$0xf0] }
  0x29   : > { %812 = vmatpush.bf16.msra.mxu3 %v5456_v50  ;;  %v5303_v9 = vld [vmem:[#allocation3 + $0x90] sm:$0xf]  ;;  %v5440_v10 = vor.u32 %v7588_v3, %v5439_v2  ;;  %v7554_v11 = vld [vmem:[#allocation3 + $0x94] sm:$0xf0]  ;;  %v5240_v16 = vor.u32 %v7538_v8, %v5239_v7  ;;  %v5231_v17 = vld [vmem:[#allocation3] sm:$0xf] }
  0x2a   : > { %774 = vmatpush.bf16.msra.mxu0 %v5256_v56  ;;  %v5367_v12 = vld [vmem:[#allocation3 + $0x110] sm:$0xf]  ;;  %v7570_v13 = vld [vmem:[#allocation3 + $0x114] sm:$0xf0]  ;;  %v7536_v18 = vld [vmem:[#allocation3 + $0x4] sm:$0xf0]  ;;  %v5304_v19 = vor.u32 %v7554_v11, %v5303_v9 }
  0x2b   : > { %787 = vmatpush.bf16.msra.mxu1 %v5320_v57  ;;  %v5431_v14 = vld [vmem:[#allocation3 + $0x190] sm:$0xf]  ;;  %v7586_v15 = vld [vmem:[#allocation3 + $0x194] sm:$0xf0]  ;;  %s5218_s16 = sshll.u32 %s8391_s15, 2  ;;  %s8395_s17 = sshll.u32 %s8814_s19, 4  ;;  %v5368_v20 = vor.u32 %v7570_v13, %v5367_v12  ;;  %v5232_v31 = vor.u32 %v7536_v18, %v5231_v17 }
  0x2c   : > { %800 = vmatpush.bf16.msra.mxu2 %v5384_v58  ;;  %v5295_v21 = vld [vmem:[#allocation3 + $0x80] sm:$0xf]  ;;  %v7552_v22 = vld [vmem:[#allocation3 + $0x84] sm:$0xf0]  ;;  %v5432_v24 = vor.u32 %v7586_v15, %v5431_v14  ;;  %v7549_v28 = vld [vmem:[#allocation3 + $0x74] sm:$0xf]  ;;  %s340_s23 = sadd.s32 %s8395_s17, %s5218_s16 }
  0x2d   : > { %813 = vmatpush.bf16.msra.mxu3 %v5448_v62  ;;  %v5359_v23 = vld [vmem:[#allocation3 + $0x100] sm:$0xf]  ;;  %v7568_v25 = vld [vmem:[#allocation3 + $0x104] sm:$0xf0]  ;;  %v5289_v29 = vld [vmem:[#allocation3 + $0x78] sm:$0xf0]  ;;  %v5296_v35 = vor.u32 %v7552_v22, %v5295_v21 }
  0x2e   : > { %775 = vmatpush.bf16.msra.mxu0 %v5248_v4  ;;  %v5423_v26 = vld [vmem:[#allocation3 + $0x180] sm:$0xf]  ;;  %v7584_v27 = vld [vmem:[#allocation3 + $0x184] sm:$0xf0]  ;;  %v7565_v30 = vld [vmem:[#allocation3 + $0xf4] sm:$0xf]  ;;  %v5360_v36 = vor.u32 %v7568_v25, %v5359_v23  ;;  %v5292_v40 = vor.u32 %v7549_v28, %v5289_v29 }
  0x2f   : > { %788 = vmatpush.bf16.msra.mxu1 %v5312_v5  ;;  %v5353_v32 = vld [vmem:[#allocation3 + $0xf8] sm:$0xf0]  ;;  %v7581_v33 = vld [vmem:[#allocation3 + $0x174] sm:$0xf]  ;;  %v5424_v39 = vor.u32 %v7584_v27, %v5423_v26  ;;  %v7547_v43 = vld [vmem:[#allocation3 + $0x64] sm:$0xf] }
  0x30   : > { %801 = vmatpush.bf16.msra.mxu2 %v5376_v6  ;;  %v5417_v34 = vld [vmem:[#allocation3 + $0x178] sm:$0xf0]  ;;  %v7597_v37 = vld [vmem:[#allocation3 + $0x1f4] sm:$0xf]  ;;  %v5356_v41 = vor.u32 %v7565_v30, %v5353_v32  ;;  %v5281_v44 = vld [vmem:[#allocation3 + $0x68] sm:$0xf0] }
  0x31   : > { %814 = vmatpush.bf16.msra.mxu3 %v5440_v10  ;;  %v5481_v38 = vld [vmem:[#allocation3 + $0x1f8] sm:$0xf0]  ;;  %v5420_v42 = vor.u32 %v7581_v33, %v5417_v34  ;;  %v7563_v45 = vld [vmem:[#allocation3 + $0xe4] sm:$0xf]  ;;  %v5345_v47 = vld [vmem:[#allocation3 + $0xe8] sm:$0xf0]  ;;  %v5284_v52 = vor.u32 %v7547_v43, %v5281_v44 }
  0x32   : > { %776 = vmatpush.bf16.msra.mxu0 %v5240_v16  ;;  %v5484_v46 = vor.u32 %v7597_v37, %v5481_v38  ;;  %v7579_v48 = vld [vmem:[#allocation3 + $0x164] sm:$0xf]  ;;  %v5409_v49 = vld [vmem:[#allocation3 + $0x168] sm:$0xf0]  ;;  %s5220_s26 = sshll.u32 %s340_s23, 1  ;;  %v5348_v55 = vor.u32 %v7563_v45, %v5345_v47  ;;  %p8439_p10 = scmp.lt.s32.totalorder %s343_s30, 3 }
  0x33   : > { %789 = vmatpush.bf16.msra.mxu1 %v5304_v19  ;;  %v7595_v50 = vld [vmem:[#allocation3 + $0x1e4] sm:$0xf]  ;;  %v5473_v51 = vld [vmem:[#allocation3 + $0x1e8] sm:$0xf0]  ;;  %v7545_v53 = vld [vmem:[#allocation3 + $0x54] sm:$0xf]  ;;  %s342_s29 = scalar_lea.vmem %s8793_s0, %s5220_s26  ;;  %v5412_v56 = vor.u32 %v7579_v48, %v5409_v49 }
  0x34   : > { %802 = vmatpush.bf16.msra.mxu2 %v5368_v20  ;;  %v5273_v54 = vld [vmem:[#allocation3 + $0x58] sm:$0xf0]  ;;  %v7561_v57 = vld [vmem:[#allocation3 + $0xd4] sm:$0xf]  ;;  %v5476_v60 = vor.u32 %v7595_v50, %v5473_v51  ;;  %v7543_v2 = vld [vmem:[#allocation3 + $0x44] sm:$0xf] }
  0x35   : > { %815 = vmatpush.bf16.msra.mxu3 %v5432_v24  ;;  %v5337_v58 = vld [vmem:[#allocation3 + $0xd8] sm:$0xf0]  ;;  %v8403_v59 = vld [vmem:[%s342_s29] sm:$0xff]  ;;  %v5276_v1 = vor.u32 %v7545_v53, %v5273_v54  ;;  %v5265_v5 = vld [vmem:[#allocation3 + $0x48] sm:$0xf0]  ;;  %s8816_s30 = smov (!%p8439_p10, %s343_s30), 3 }
  0x36   : > { %777 = vmatpush.bf16.msra.mxu0 %v5232_v31  ;;  %v7577_v61 = vld [vmem:[#allocation3 + $0x154] sm:$0xf]  ;;  %v5401_v62 = vld [vmem:[#allocation3 + $0x158] sm:$0xf0]  ;;  %441 = vst [vmem:[#allocation1] ss:$4 sm:$0xff] %v8403_v59  ;;  %v5340_v3 = vor.u32 %v7561_v57, %v5337_v58  ;;  %v5268_v15 = vor.u32 %v7543_v2, %v5265_v5 }
  0x37   : > { %790 = vmatpush.bf16.msra.mxu1 %v5296_v35  ;;  %v7593_v63 = vld [vmem:[#allocation3 + $0x1d4] sm:$0xf]  ;;  %v5465_v0 = vld [vmem:[#allocation3 + $0x1d8] sm:$0xf0]  ;;  %v5404_v4 = vor.u32 %v7577_v61, %v5401_v62  ;;  %v7559_v6 = vld [vmem:[#allocation3 + $0xc4] sm:$0xf] }
  0x38   : > { %803 = vmatpush.bf16.msra.mxu2 %v5360_v36  ;;  %v5329_v7 = vld [vmem:[#allocation3 + $0xc8] sm:$0xf0]  ;;  %v5468_v8 = vor.u32 %v7593_v63, %v5465_v0  ;;  %v7575_v9 = vld [vmem:[#allocation3 + $0x144] sm:$0xf]  ;;  %v7541_v13 = vld [vmem:[#allocation3 + $0x34] sm:$0xf] }
  0x39   : > { %816 = vmatpush.bf16.msra.mxu3 %v5424_v39  ;;  %v5393_v10 = vld [vmem:[#allocation3 + $0x148] sm:$0xf0]  ;;  %v7591_v11 = vld [vmem:[#allocation3 + $0x1c4] sm:$0xf]  ;;  %v5257_v14 = vld [vmem:[#allocation3 + $0x38] sm:$0xf0]  ;;  %v5332_v20 = vor.u32 %v7559_v6, %v5329_v7 }
  0x3a   : > { %822 = vmatpush.bf16.msrb.mxu0 %v5292_v40  ;;  %v5457_v12 = vld [vmem:[#allocation3 + $0x1c8] sm:$0xf0]  ;;  %v7557_v16 = vld [vmem:[#allocation3 + $0xb4] sm:$0xf]  ;;  %v5321_v17 = vld [vmem:[#allocation3 + $0xb8] sm:$0xf0]  ;;  %v5396_v21 = vor.u32 %v7575_v9, %v5393_v10  ;;  %v5260_v29 = vor.u32 %v7541_v13, %v5257_v14 }
  0x3b   : > { %835 = vmatpush.bf16.msrb.mxu1 %v5356_v41  ;;  %v7573_v18 = vld [vmem:[#allocation3 + $0x134] sm:$0xf]  ;;  %v5385_v19 = vld [vmem:[#allocation3 + $0x138] sm:$0xf0]  ;;  %v5460_v24 = vor.u32 %v7591_v11, %v5457_v12  ;;  %v5324_v30 = vor.u32 %v7557_v16, %v5321_v17  ;;  %v7539_v32 = vld [vmem:[#allocation3 + $0x24] sm:$0xf] }
  0x3c   : > { %848 = vmatpush.bf16.msrb.mxu2 %v5420_v42  ;;  %v7589_v25 = vld [vmem:[#allocation3 + $0x1b4] sm:$0xf]  ;;  %v5449_v27 = vld [vmem:[#allocation3 + $0x1b8] sm:$0xf0]  ;;  %v5388_v31 = vor.u32 %v7573_v18, %v5385_v19  ;;  %v5249_v33 = vld [vmem:[#allocation3 + $0x28] sm:$0xf0] }
  0x3d   : > { %861 = vmatpush.bf16.msrb.mxu3 %v5484_v46  ;;  %v8406_v22 = vld.sshfl [vmem:[#allocation1 + $0x10] sm:$0xff pattern:$0x73625140]  ;;  %v8408_v23 = vld.sshfl [vmem:[#allocation1 + $0x18] sm:$0xff pattern:$0x73625140]  ;;  %v5452_v35 = vor.u32 %v7589_v25, %v5449_v27  ;;  %v5252_v41 = vor.u32 %v7539_v32, %v5249_v33 }
  0x3e   : > { %823 = vmatpush.bf16.msrb.mxu0 %v5284_v52  ;;  %804 = vmatmul.bf16.vlgmr.msra.gmra.mxu2 %v8406_v22  ;;  %v8411_v26 = vld.sshfl [vmem:[#allocation1] sm:$0xff pattern:$0x73625140]  ;;  %v8415_v28 = vld.sshfl [vmem:[#allocation1 + $0x8] sm:$0xff pattern:$0x73625140] }
  0x3f   : > { %836 = vmatpush.bf16.msrb.mxu1 %v5348_v55  ;;  %817 = vmatmul.bf16.vlgmr.msra.gmra.mxu3 %v8408_v23  ;;  %948 = vst [vmem:[#allocation1] ss:$4 sm:$0xff] %v8403_v59  ;;  %v7555_v34 = vld [vmem:[#allocation3 + $0xa4] sm:$0xf]  ;;  %v5313_v36 = vld [vmem:[#allocation3 + $0xa8] sm:$0xf0] }
  0x40   : > { %849 = vmatpush.bf16.msrb.mxu2 %v5412_v56  ;;  %778 = vmatmul.bf16.vlgmr.msra.gmra.mxu0 %v8411_v26  ;;  %v7571_v37 = vld [vmem:[#allocation3 + $0x124] sm:$0xf]  ;;  %v5377_v38 = vld [vmem:[#allocation3 + $0x128] sm:$0xf0]  ;;  %v5316_v42 = vor.u32 %v7555_v34, %v5313_v36  ;;  %v7537_v44 = vld [vmem:[#allocation3 + $0x14] sm:$0xf] }
  0x41   : > { %862 = vmatpush.bf16.msrb.mxu3 %v5476_v60  ;;  %791 = vmatmul.bf16.vlgmr.msra.gmra.mxu1 %v8415_v28  ;;  %v7587_v39 = vld [vmem:[#allocation3 + $0x1a4] sm:$0xf]  ;;  %v5441_v40 = vld [vmem:[#allocation3 + $0x1a8] sm:$0xf0]  ;;  %v5380_v43 = vor.u32 %v7571_v37, %v5377_v38  ;;  %v5241_v45 = vld [vmem:[#allocation3 + $0x18] sm:$0xf0] }
  0x42   : > { %824 = vmatpush.bf16.msrb.mxu0 %v5276_v1  ;;  %v7553_v46 = vld [vmem:[#allocation3 + $0x94] sm:$0xf]  ;;  %v5444_v47 = vor.u32 %v7587_v39, %v5441_v40  ;;  %v5305_v48 = vld [vmem:[#allocation3 + $0x98] sm:$0xf0]  ;;  %v5244_v53 = vor.u32 %v7537_v44, %v5241_v45  ;;  %v7535_v54 = vld [vmem:[#allocation3 + $0x4] sm:$0xf] }
  0x43   : > { %837 = vmatpush.bf16.msrb.mxu1 %v5340_v3  ;;  %v7569_v49 = vld [vmem:[#allocation3 + $0x114] sm:$0xf]  ;;  %v5369_v50 = vld [vmem:[#allocation3 + $0x118] sm:$0xf0]  ;;  %v5233_v55 = vld [vmem:[#allocation3 + $0x8] sm:$0xf0]  ;;  %v5308_v56 = vor.u32 %v7553_v46, %v5305_v48 }
  0x44   : > { %850 = vmatpush.bf16.msrb.mxu2 %v5404_v4  ;;  %v7585_v51 = vld [vmem:[#allocation3 + $0x194] sm:$0xf]  ;;  %v5433_v52 = vld [vmem:[#allocation3 + $0x198] sm:$0xf0]  ;;  %v5372_v57 = vor.u32 %v7569_v49, %v5369_v50  ;;  %v7551_v58 = vld [vmem:[#allocation3 + $0x84] sm:$0xf]  ;;  %v5236_v5 = vor.u32 %v7535_v54, %v5233_v55 }
  0x45   : > { %863 = vmatpush.bf16.msrb.mxu3 %v5468_v8  ;;  %v5297_v60 = vld [vmem:[#allocation3 + $0x88] sm:$0xf0]  ;;  %v7567_v61 = vld [vmem:[#allocation3 + $0x104] sm:$0xf]  ;;  %v5436_v62 = vor.u32 %v7585_v51, %v5433_v52  ;;  %v5543_v2 = vld [vmem:[#allocation3 + $0x270] sm:$0xf] }
  0x46   : > { %825 = vmatpush.bf16.msrb.mxu0 %v5268_v15  ;;  %v5361_v63 = vld [vmem:[#allocation3 + $0x108] sm:$0xf0]  ;;  %v7583_v0 = vld [vmem:[#allocation3 + $0x184] sm:$0xf]  ;;  %v7614_v3 = vld [vmem:[#allocation3 + $0x274] sm:$0xf0]  ;;  %v5300_v9 = vor.u32 %v7551_v58, %v5297_v60 }
  0x47   : > { %838 = vmatpush.bf16.msrb.mxu1 %v5332_v20  ;;  %v5425_v1 = vld [vmem:[#allocation3 + $0x188] sm:$0xf0]  ;;  %v5607_v4 = vld [vmem:[#allocation3 + $0x2f0] sm:$0xf]  ;;  %v7630_v6 = vld [vmem:[#allocation3 + $0x2f4] sm:$0xf0]  ;;  %v5364_v10 = vor.u32 %v7567_v61, %v5361_v63  ;;  %v5544_v14 = vor.u32 %v7614_v3, %v5543_v2 }
  0x48   : > { %851 = vmatpush.bf16.msrb.mxu2 %v5396_v21  ;;  %v5671_v7 = vld [vmem:[#allocation3 + $0x370] sm:$0xf]  ;;  %v7646_v8 = vld [vmem:[#allocation3 + $0x374] sm:$0xf0]  ;;  %v5428_v13 = vor.u32 %v7583_v0, %v5425_v1  ;;  %v5608_v15 = vor.u32 %v7630_v6, %v5607_v4  ;;  %v5535_v17 = vld [vmem:[#allocation3 + $0x260] sm:$0xf] }
  0x49   : > { %864 = vmatpush.bf16.msrb.mxu3 %v5460_v24  ;;  %v5735_v11 = vld [vmem:[#allocation3 + $0x3f0] sm:$0xf]  ;;  %v7662_v12 = vld [vmem:[#allocation3 + $0x3f4] sm:$0xf0]  ;;  %v5672_v16 = vor.u32 %v7646_v8, %v5671_v7  ;;  %v7612_v18 = vld [vmem:[#allocation3 + $0x264] sm:$0xf0] }
  0x4a   : > { %826 = vmatpush.bf16.msrb.mxu0 %v5260_v29  ;;  %v5599_v19 = vld [vmem:[#allocation3 + $0x2e0] sm:$0xf]  ;;  %v5736_v20 = vor.u32 %v7662_v12, %v5735_v11  ;;  %v7628_v21 = vld [vmem:[#allocation3 + $0x2e4] sm:$0xf0]  ;;  %v5527_v33 = vld [vmem:[#allocation3 + $0x250] sm:$0xf] }
  0x4b   : > { %839 = vmatpush.bf16.msrb.mxu1 %v5324_v30  ;;  %v5663_v24 = vld [vmem:[#allocation3 + $0x360] sm:$0xf]  ;;  %v7644_v25 = vld [vmem:[#allocation3 + $0x364] sm:$0xf0]  ;;  %v5536_v30 = vor.u32 %v7612_v18, %v5535_v17  ;;  %v7610_v34 = vld [vmem:[#allocation3 + $0x254] sm:$0xf0] }
  0x4c   : > { %852 = vmatpush.bf16.msrb.mxu2 %v5388_v31  ;;  %v5727_v27 = vld [vmem:[#allocation3 + $0x3e0] sm:$0xf]  ;;  %v7660_v29 = vld [vmem:[#allocation3 + $0x3e4] sm:$0xf0]  ;;  %v5600_v31 = vor.u32 %v7628_v21, %v5599_v19  ;;  %v5664_v32 = vor.u32 %v7644_v25, %v5663_v24  ;;  %v7626_v37 = vld [vmem:[#allocation3 + $0x2d4] sm:$0xf0] }
  0x4d   : > { %865 = vmatpush.bf16.msrb.mxu3 %v5452_v35  ;;  %v5591_v35 = vld [vmem:[#allocation3 + $0x2d0] sm:$0xf]  ;;  %v5728_v36 = vor.u32 %v7660_v29, %v5727_v27  ;;  %v7642_v39 = vld [vmem:[#allocation3 + $0x354] sm:$0xf0]  ;;  %v5519_v45 = vld [vmem:[#allocation3 + $0x240] sm:$0xf] }
  0x4e   : > { %827 = vmatpush.bf16.msrb.mxu0 %v5252_v41  ;;  %v5655_v38 = vld [vmem:[#allocation3 + $0x350] sm:$0xf]  ;;  %v7658_v41 = vld [vmem:[#allocation3 + $0x3d4] sm:$0xf0]  ;;  %v5583_v46 = vld [vmem:[#allocation3 + $0x2c0] sm:$0xf] }
  0x4f   : > { %840 = vmatpush.bf16.msrb.mxu1 %v5316_v42  ;;  %v5719_v40 = vld [vmem:[#allocation3 + $0x3d0] sm:$0xf]  ;;  %v5528_v42 = vor.u32 %v7610_v34, %v5527_v33  ;;  %v5656_v44 = vor.u32 %v7642_v39, %v5655_v38  ;;  %v7624_v48 = vld [vmem:[#allocation3 + $0x2c4] sm:$0xf0]  ;;  %v5647_v49 = vld [vmem:[#allocation3 + $0x340] sm:$0xf] }
  0x50   : > { %853 = vmatpush.bf16.msrb.mxu2 %v5380_v43  ;;  %v5592_v43 = vor.u32 %v7626_v37, %v5591_v35  ;;  %v5711_v50 = vld [vmem:[#allocation3 + $0x3c0] sm:$0xf]  ;;  %v7606_v54 = vld [vmem:[#allocation3 + $0x234] sm:$0xf0]  ;;  %v5575_v55 = vld [vmem:[#allocation3 + $0x2b0] sm:$0xf] }
  0x51   : > { %866 = vmatpush.bf16.msrb.mxu3 %v5444_v47  ;;  %v5720_v47 = vor.u32 %v7658_v41, %v5719_v40  ;;  %v5639_v58 = vld [vmem:[#allocation3 + $0x330] sm:$0xf]  ;;  %v7638_v60 = vld [vmem:[#allocation3 + $0x334] sm:$0xf0]  ;;  %v5503_v0 = vld [vmem:[#allocation3 + $0x220] sm:$0xf] }
  0x52   : > { %828 = vmatpush.bf16.msrb.mxu0 %v5244_v53  ;;  %v5511_v53 = vld [vmem:[#allocation3 + $0x230] sm:$0xf]  ;;  %v5640_v2 = vor.u32 %v7638_v60, %v5639_v58  ;;  %v7604_v3 = vld [vmem:[#allocation3 + $0x224] sm:$0xf0]  ;;  %v5567_v4 = vld [vmem:[#allocation3 + $0x2a0] sm:$0xf] }
  0x53   : > { %841 = vmatpush.bf16.msrb.mxu1 %v5308_v56  ;;  %v5703_v61 = vld [vmem:[#allocation3 + $0x3b0] sm:$0xf]  ;;  %v5512_v63 = vor.u32 %v7606_v54, %v5511_v53  ;;  %v5631_v7 = vld [vmem:[#allocation3 + $0x320] sm:$0xf]  ;;  %v7636_v8 = vld [vmem:[#allocation3 + $0x324] sm:$0xf0] }
  0x54   : > { %854 = vmatpush.bf16.msrb.mxu2 %v5372_v57  ;;  %v7622_v57 = vld [vmem:[#allocation3 + $0x2b4] sm:$0xf0]  ;;  %v5495_v11 = vld [vmem:[#allocation3 + $0x210] sm:$0xf]  ;;  %v5632_v18 = vor.u32 %v7636_v8, %v5631_v7  ;;  %v5487_v25 = vld [vmem:[#allocation3 + $0x200] sm:$0xf] }
  0x55   : > { %867 = vmatpush.bf16.msrb.mxu3 %v5436_v62  ;;  %v7654_v62 = vld [vmem:[#allocation3 + $0x3b4] sm:$0xf0]  ;;  %v5576_v1 = vor.u32 %v7622_v57, %v5575_v55  ;;  %v951_v27 = vld.sshfl [vmem:[#allocation1 + $0x10] sm:$0xff pattern:$0x73625140]  ;;  %s5221_s7 = sshll.u32 %s8816_s30, 2 }
  0x56   : > { %829 = vmatpush.bf16.msrb.mxu0 %v5236_v5  ;;  %v7620_v5 = vld [vmem:[#allocation3 + $0x2a4] sm:$0xf0]  ;;  %v5704_v6 = vor.u32 %v7654_v62, %v5703_v61  ;;  %v7602_v12 = vld [vmem:[#allocation3 + $0x214] sm:$0xf0]  ;;  %v5615_v33 = vld [vmem:[#allocation3 + $0x300] sm:$0xf]  ;;  %s8454_s8 = sadd.s32 %s5221_s7, %s8395_s17 }
  0x57   : > { %842 = vmatpush.bf16.msrb.mxu1 %v5300_v9  ;;  %v5695_v9 = vld [vmem:[#allocation3 + $0x3a0] sm:$0xf]  ;;  %v5568_v17 = vor.u32 %v7620_v5, %v5567_v4  ;;  %v7634_v19 = vld [vmem:[#allocation3 + $0x314] sm:$0xf0]  ;;  %v7600_v29 = vld [vmem:[#allocation3 + $0x204] sm:$0xf0] }
  0x58   : > { %855 = vmatpush.bf16.msrb.mxu2 %v5364_v10  ;;  %v7652_v10 = vld [vmem:[#allocation3 + $0x3a4] sm:$0xf0]  ;;  %v7650_v21 = vld [vmem:[#allocation3 + $0x394] sm:$0xf0]  ;;  %v967_v35 = vshll.u32 %v951_v27, 16  ;;  %s5223_s9 = sshll.u32 %s8454_s8, 1 }
  0x59   : > { %868 = vmatpush.bf16.msrb.mxu3 %v5428_v13  ;;  %830 = vmatmul.bf16.vlgmr.msrb.gmra.mxu0 %v8411_v26  ;;  %v7656_v26 = vld [vmem:[#allocation3 + $0x3c4] sm:$0xf0]  ;;  %v5504_v13 = vor.u32 %v7604_v3, %v5503_v0  ;;  %v5696_v24 = vor.u32 %v7652_v10, %v5695_v9  ;;  %v5679_v38 = vld [vmem:[#allocation3 + $0x380] sm:$0xf]  ;;  %v7613_v40 = vld [vmem:[#allocation3 + $0x274] sm:$0xf]  ;;  %s352_s12 = scalar_lea.vmem %s8794_s1, %s5223_s9 }
  0x5a   : > { %1301 = vmatpush.bf16.msra.mxu0 %v5544_v14  ;;  %843 = vmatmul.bf16.vlgmr.msrb.gmra.mxu1 %v8415_v28  ;;  %v5584_v28 = vor.u32 %v7624_v48, %v5583_v46  ;;  %v5712_v56 = vor.u32 %v7656_v26, %v5711_v50  ;;  %v5559_v14 = vld [vmem:[#allocation3 + $0x290] sm:$0xf]  ;;  %v7632_v34 = vld [vmem:[#allocation3 + $0x304] sm:$0xf0]  ;;  %v5545_v41 = vld [vmem:[#allocation3 + $0x278] sm:$0xf0] }
  0x5b   : > { %1314 = vmatpush.bf16.msra.mxu1 %v5608_v15  ;;  %856 = vmatmul.bf16.vlgmr.msrb.gmra.mxu2 %v8406_v22  ;;  %v7608_v22 = vld [vmem:[#allocation3 + $0x244] sm:$0xf0]  ;;  %v7618_v15 = vld [vmem:[#allocation3 + $0x294] sm:$0xf0]  ;;  %v5673_v46 = vld [vmem:[#allocation3 + $0x378] sm:$0xf0]  ;;  %v5548_v62 = vor.u32 %v7613_v40, %v5545_v41 }
  0x5c   : > { %1327 = vmatpush.bf16.msra.mxu2 %v5672_v16  ;;  %869 = vmatmul.bf16.vlgmr.msrb.gmra.mxu3 %v8408_v23  ;;  %v7640_v23 = vld [vmem:[#allocation3 + $0x344] sm:$0xf0]  ;;  %v5520_v51 = vor.u32 %v7608_v22, %v5519_v45  ;;  %v5623_v16 = vld [vmem:[#allocation3 + $0x310] sm:$0xf]  ;;  %v5609_v45 = vld [vmem:[#allocation3 + $0x2f8] sm:$0xf0] }
  0x5d   : > { %1340 = vmatpush.bf16.msra.mxu3 %v5736_v20  ;;  %v5648_v52 = vor.u32 %v7640_v23, %v5647_v49  ;;  %v5687_v20 = vld [vmem:[#allocation3 + $0x390] sm:$0xf]  ;;  %v5624_v37 = vor.u32 %v7634_v19, %v5623_v16  ;;  %v7648_v39 = vld [vmem:[#allocation3 + $0x384] sm:$0xf0]  ;;  %v7645_v22 = vld [vmem:[#allocation3 + $0x374] sm:$0xf]  ;;  %v5488_v49 = vor.u32 %v7600_v29, %v5487_v25 }
  0x5e   : > { %1302 = vmatpush.bf16.msra.mxu0 %v5536_v30  ;;  %v5551_v30 = vld [vmem:[#allocation3 + $0x280] sm:$0xf]  ;;  %v949_v48 = vld.sshfl [vmem:[#allocation1] sm:$0xff pattern:$0x73625140]  ;;  %v969_v53 = vrot.slane %v967_v35, 1  ;;  %v5680_v61 = vor.u32 %v7648_v39, %v5679_v38 }
  0x5f   : > { %1315 = vmatpush.bf16.msra.mxu1 %v5600_v31  ;;  %v7616_v31 = vld [vmem:[#allocation3 + $0x284] sm:$0xf0]  ;;  %v7661_v50 = vld [vmem:[#allocation3 + $0x3f4] sm:$0xf]  ;;  %v955_v26 = vshll.u32 %v949_v48, 16  ;;  %v953_v58 = vshrl.u32 %v949_v48, 16 }
  0x60   : > { %1328 = vmatpush.bf16.msra.mxu2 %v5664_v32  ;;  %v5496_v32 = vor.u32 %v7602_v12, %v5495_v11  ;;  %v5552_v23 = vor.u32 %v7616_v31, %v5551_v30  ;;  %v5737_v55 = vld [vmem:[#allocation3 + $0x3f8] sm:$0xf0]  ;;  %v7611_v3 = vld [vmem:[#allocation3 + $0x264] sm:$0xf]  ;;  %v5537_v4 = vld [vmem:[#allocation3 + $0x268] sm:$0xf0] }
  0x61   : > { %1341 = vmatpush.bf16.msra.mxu3 %v5728_v36  ;;  %v5560_v36 = vor.u32 %v7618_v15, %v5559_v14  ;;  %v957_v60 = vrot.slane %v955_v26, 1  ;;  %v7627_v5 = vld [vmem:[#allocation3 + $0x2e4] sm:$0xf]  ;;  %v5665_v8 = vld [vmem:[#allocation3 + $0x368] sm:$0xf0]  ;;  %v5540_v14 = vor.u32 %v7611_v3, %v5537_v4  ;;  %s354_s13 = sadd.s32 2, %s8265_s18 }
  0x62   : > { %1303 = vmatpush.bf16.msra.mxu0 %v5528_v42  ;;  %v952_v42 = vld.sshfl [vmem:[#allocation1 + $0x18] sm:$0xff pattern:$0x73625140]  ;;  %v7643_v7 = vld [vmem:[#allocation3 + $0x364] sm:$0xf]  ;;  %p8578_p11 = scmp.lt.s32.totalorder %s354_s13, 3 }
  0x63   : > { %1316 = vmatpush.bf16.msra.mxu1 %v5592_v43  ;;  %v5688_v43 = vor.u32 %v7650_v21, %v5687_v20  ;;  %v7659_v10 = vld [vmem:[#allocation3 + $0x3e4] sm:$0xf]  ;;  %v5729_v11 = vld [vmem:[#allocation3 + $0x3e8] sm:$0xf0]  ;;  %v5529_v19 = vld [vmem:[#allocation3 + $0x258] sm:$0xf0] }
  0x64   : > { %1329 = vmatpush.bf16.msra.mxu2 %v5656_v44  ;;  %v7629_v44 = vld [vmem:[#allocation3 + $0x2f4] sm:$0xf]  ;;  %v5732_v21 = vor.u32 %v7659_v10, %v5729_v11  ;;  %v5721_v30 = vld [vmem:[#allocation3 + $0x3d8] sm:$0xf0]  ;;  %v5521_v35 = vld [vmem:[#allocation3 + $0x248] sm:$0xf0] }
  0x65   : > { %1342 = vmatpush.bf16.msra.mxu3 %v5720_v47  ;;  %v973_v47 = vshll.u32 %v952_v42, 16  ;;  %v7625_v20 = vld [vmem:[#allocation3 + $0x2d4] sm:$0xf]  ;;  %v5585_v38 = vld [vmem:[#allocation3 + $0x2c8] sm:$0xf0]  ;;  %s8818_s13 = smov (!%p8578_p11, %s354_s13), 3 }
  0x66   : > { %1304 = vmatpush.bf16.msra.mxu0 %v5520_v51  ;;  %v950_v51 = vld.sshfl [vmem:[#allocation1 + $0x8] sm:$0xff pattern:$0x73625140]  ;;  %v7641_v25 = vld [vmem:[#allocation3 + $0x354] sm:$0xf]  ;;  %s5224_s15 = sshll.u32 %s8818_s13, 2 }
  0x67   : > { %1317 = vmatpush.bf16.msra.mxu1 %v5584_v28  ;;  %v5616_v28 = vor.u32 %v7632_v34, %v5615_v33  ;;  %v961_v54 = vshll.u32 %v950_v51, 16  ;;  %1478 = vst [vmem:[#allocation1] ss:$4 sm:$0xff] %v8403_v59  ;;  %v975_v57 = vrot.slane %v973_v47, 1  ;;  %v5601_v59 = vld [vmem:[#allocation3 + $0x2e8] sm:$0xf0]  ;;  %s8593_s16 = sadd.s32 %s5224_s15, %s8395_s17 }
  0x68   : > { %1330 = vmatpush.bf16.msra.mxu2 %v5648_v52  ;;  %v965_v52 = vshrl.u32 %v951_v27, 16  ;;  %v5604_v16 = vor.u32 %v7627_v5, %v5601_v59  ;;  %v5657_v27 = vld [vmem:[#allocation3 + $0x358] sm:$0xf0]  ;;  %v7657_v29 = vld [vmem:[#allocation3 + $0x3d4] sm:$0xf]  ;;  %s5226_s23 = sshll.u32 %s8593_s16, 1 }
  0x69   : > { %1343 = vmatpush.bf16.msra.mxu3 %v5712_v56  ;;  %v971_v56 = vshrl.u32 %v952_v42, 16  ;;  %v963_v0 = vrot.slane %v961_v54, 1  ;;  %v5660_v33 = vor.u32 %v7641_v25, %v5657_v27  ;;  %v7607_v34 = vld [vmem:[#allocation3 + $0x244] sm:$0xf]  ;;  %v5649_v40 = vld [vmem:[#allocation3 + $0x348] sm:$0xf0]  ;;  %s363_s27 = scalar_lea.vmem %s8795_s2, %s5226_s23 }
  0x6a   : > { %1305 = vmatpush.bf16.msra.mxu0 %v5512_v63  ;;  %v959_v63 = vshrl.u32 %v950_v51, 16  ;;  %v8424_v9 = vor.u32 %v969_v53, %v965_v52  ;;  %v7639_v39 = vld [vmem:[#allocation3 + $0x344] sm:$0xf]  ;;  %v5713_v42 = vld [vmem:[#allocation3 + $0x3c8] sm:$0xf0]  ;;  %p367_p12 = scmp.lt.s32.totalorder %s8265_s18, 1 }
  0x6b   : > { %1318 = vmatpush.bf16.msra.mxu1 %v5576_v1  ;;  %v5612_v1 = vor.u32 %v7629_v44, %v5609_v45  ;;  %v8426_v12 = vor.u32 %v975_v57, %v971_v56  ;;  %v7655_v41 = vld [vmem:[#allocation3 + $0x3c4] sm:$0xf]  ;;  %v5652_v45 = vor.u32 %v7639_v39, %v5649_v40  ;;  %v7621_v47 = vld [vmem:[#allocation3 + $0x2b4] sm:$0xf]  ;;  %v5705_v51 = vld [vmem:[#allocation3 + $0x3b8] sm:$0xf0] }
  0x6c   : > { %1331 = vmatpush.bf16.msra.mxu2 %v5640_v2  ;;  %v5676_v2 = vor.u32 %v7645_v22, %v5673_v46  ;;  %v8430_v15 = vor.u32 %v963_v0, %v959_v63  ;;  %v7605_v22 = vld [vmem:[#allocation3 + $0x234] sm:$0xf]  ;;  %v5513_v46 = vld [vmem:[#allocation3 + $0x238] sm:$0xf0]  ;;  %v5716_v48 = vor.u32 %v7655_v41, %v5713_v42  ;;  %v7603_v54 = vld [vmem:[#allocation3 + $0x224] sm:$0xf] }
  0x6d   : > { %1344 = vmatpush.bf16.msra.mxu3 %v5704_v6  ;;  %v5740_v6 = vor.u32 %v7661_v50, %v5737_v55  ;;  %v5641_v50 = vld [vmem:[#allocation3 + $0x338] sm:$0xf0]  ;;  %v7653_v26 = vld [vmem:[#allocation3 + $0x3b4] sm:$0xf]  ;;  %v5505_v55 = vld [vmem:[#allocation3 + $0x228] sm:$0xf0] }
  0x6e   : > { %1306 = vmatpush.bf16.msra.mxu0 %v5504_v13  ;;  %v8428_v13 = vor.u32 %v957_v60, %v953_v58  ;;  %v7619_v56 = vld [vmem:[#allocation3 + $0x2a4] sm:$0xf]  ;;  %v5708_v57 = vor.u32 %v7653_v26, %v5705_v51  ;;  %v5569_v58 = vld [vmem:[#allocation3 + $0x2a8] sm:$0xf0]  ;;  %v5508_v0 = vor.u32 %v7603_v54, %v5505_v55  ;;  %v7601_v3 = vld [vmem:[#allocation3 + $0x214] sm:$0xf] }
  0x6f   : > { %1319 = vmatpush.bf16.msra.mxu1 %v5568_v17  ;;  %v5668_v17 = vor.u32 %v7643_v7, %v5665_v8  ;;  %v7635_v60 = vld [vmem:[#allocation3 + $0x324] sm:$0xf]  ;;  %v5697_v63 = vld [vmem:[#allocation3 + $0x3a8] sm:$0xf0]  ;;  %v5497_v4 = vld [vmem:[#allocation3 + $0x218] sm:$0xf0] }
  0x70   : > { %1332 = vmatpush.bf16.msra.mxu2 %v5632_v18  ;;  %v7609_v18 = vld [vmem:[#allocation3 + $0x254] sm:$0xf]  ;;  %v5561_v59 = vld [vmem:[#allocation3 + $0x298] sm:$0xf0]  ;;  %v5617_v27 = vld [vmem:[#allocation3 + $0x308] sm:$0xf0] }
  0x71   : > { %1345 = vmatpush.bf16.msra.mxu3 %v5696_v24  ;;  %v5593_v24 = vld [vmem:[#allocation3 + $0x2d8] sm:$0xf0]  ;;  %v5532_v31 = vor.u32 %v7609_v18, %v5529_v19  ;;  %v7617_v5 = vld [vmem:[#allocation3 + $0x294] sm:$0xf]  ;;  %v5991_v40 = vld [vmem:[#allocation3 + $0x5f0] sm:$0xf] }
  0x72   : > { %1307 = vmatpush.bf16.msra.mxu0 %v5496_v32  ;;  %v5596_v32 = vor.u32 %v7625_v20, %v5593_v24  ;;  %v7633_v7 = vld [vmem:[#allocation3 + $0x314] sm:$0xf]  ;;  %v5625_v8 = vld [vmem:[#allocation3 + $0x318] sm:$0xf0]  ;;  %v5564_v18 = vor.u32 %v7617_v5, %v5561_v59  ;;  %v7615_v20 = vld [vmem:[#allocation3 + $0x284] sm:$0xf] }
  0x73   : > { %1320 = vmatpush.bf16.msra.mxu1 %v5560_v36  ;;  %v7623_v36 = vld [vmem:[#allocation3 + $0x2c4] sm:$0xf]  ;;  %v7649_v10 = vld [vmem:[#allocation3 + $0x394] sm:$0xf]  ;;  %v5689_v11 = vld [vmem:[#allocation3 + $0x398] sm:$0xf0]  ;;  %v5628_v19 = vor.u32 %v7633_v7, %v5625_v8 }
  0x74   : > { %1333 = vmatpush.bf16.msra.mxu2 %v5624_v37  ;;  %v5724_v37 = vor.u32 %v7657_v29, %v5721_v30  ;;  %v5588_v44 = vor.u32 %v7623_v36, %v5585_v38  ;;  %v7631_v24 = vld [vmem:[#allocation3 + $0x304] sm:$0xf]  ;;  %v5692_v25 = vor.u32 %v7649_v10, %v5689_v11  ;;  %v5681_v30 = vld [vmem:[#allocation3 + $0x388] sm:$0xf0]  ;;  %v5927_v36 = vld [vmem:[#allocation3 + $0x570] sm:$0xf] }
  0x75   : > { %1346 = vmatpush.bf16.msra.mxu3 %v5688_v43  ;;  %v5524_v43 = vor.u32 %v7607_v34, %v5521_v35  ;;  %v7647_v29 = vld [vmem:[#allocation3 + $0x384] sm:$0xf]  ;;  %v7694_v35 = vld [vmem:[#allocation3 + $0x4f4] sm:$0xf0]  ;;  %v5620_v39 = vor.u32 %v7631_v24, %v5617_v27  ;;  %v5983_v26 = vld [vmem:[#allocation3 + $0x5e0] sm:$0xf] }
  0x76   : > { %1308 = vmatpush.bf16.msra.mxu0 %v5488_v49  ;;  %v5577_v49 = vld [vmem:[#allocation3 + $0x2b8] sm:$0xf0]  ;;  %v7726_v41 = vld [vmem:[#allocation3 + $0x5f4] sm:$0xf0]  ;;  %v5684_v42 = vor.u32 %v7647_v29, %v5681_v30  ;;  %v7724_v51 = vld [vmem:[#allocation3 + $0x5e4] sm:$0xf0] }
  0x77   : > { %1321 = vmatpush.bf16.msra.mxu1 %v5552_v23  ;;  %v7637_v23 = vld [vmem:[#allocation3 + $0x334] sm:$0xf]  ;;  %v5580_v52 = vor.u32 %v7621_v47, %v5577_v49  ;;  %v5855_v47 = vld [vmem:[#allocation3 + $0x4e0] sm:$0xf]  ;;  %v7692_v49 = vld [vmem:[#allocation3 + $0x4e4] sm:$0xf0] }
  0x78   : > { %1334 = vmatpush.bf16.msra.mxu2 %v5616_v28  ;;  %v5516_v28 = vor.u32 %v7605_v22, %v5513_v46  ;;  %v5644_v53 = vor.u32 %v7637_v23, %v5641_v50  ;;  %v5791_v22 = vld [vmem:[#allocation3 + $0x460] sm:$0xf]  ;;  %v7676_v46 = vld [vmem:[#allocation3 + $0x464] sm:$0xf0]  ;;  %v5783_v54 = vld [vmem:[#allocation3 + $0x450] sm:$0xf] }
  0x79   : > { %1347 = vmatpush.bf16.msra.mxu3 %v5680_v61  ;;  %1309 = vmatmul.bf16.vlgmr.msra.gmra.mxu0 %v8428_v13  ;;  %v5633_v61 = vld [vmem:[#allocation3 + $0x328] sm:$0xf0]  ;;  %v5919_v23 = vld [vmem:[#allocation3 + $0x560] sm:$0xf]  ;;  %v7708_v50 = vld [vmem:[#allocation3 + $0x564] sm:$0xf0] }
  0x7a   : > { %1353 = vmatpush.bf16.msrb.mxu0 %v5548_v62  ;;  %1322 = vmatmul.bf16.vlgmr.msra.gmra.mxu1 %v8430_v15  ;;  %v7651_v62 = vld [vmem:[#allocation3 + $0x3a4] sm:$0xf]  ;;  %v7674_v55 = vld [vmem:[#allocation3 + $0x454] sm:$0xf0]  ;;  %v7688_v5 = vld [vmem:[#allocation3 + $0x4c4] sm:$0xf0] }
  0x7b   : > { %1366 = vmatpush.bf16.msrb.mxu1 %v5612_v1  ;;  %1335 = vmatmul.bf16.vlgmr.msra.gmra.mxu2 %v8424_v9  ;;  %v5572_v1 = vor.u32 %v7619_v56, %v5569_v58  ;;  %v5847_v56 = vld [vmem:[#allocation3 + $0x4d0] sm:$0xf]  ;;  %v7690_v58 = vld [vmem:[#allocation3 + $0x4d4] sm:$0xf0]  ;;  %v5967_v59 = vld [vmem:[#allocation3 + $0x5c0] sm:$0xf] }
  0x7c   : > { %1379 = vmatpush.bf16.msrb.mxu2 %v5676_v2  ;;  %1348 = vmatmul.bf16.vlgmr.msra.gmra.mxu3 %v8426_v12  ;;  %v5636_v2 = vor.u32 %v7635_v60, %v5633_v61  ;;  %v5911_v60 = vld [vmem:[#allocation3 + $0x550] sm:$0xf]  ;;  %v7706_v61 = vld [vmem:[#allocation3 + $0x554] sm:$0xf0]  ;;  %v7720_v7 = vld [vmem:[#allocation3 + $0x5c4] sm:$0xf0] }
  0x7d   : > { %1392 = vmatpush.bf16.msrb.mxu3 %v5740_v6  ;;  %v5700_v6 = vor.u32 %v7651_v62, %v5697_v63  ;;  %v5975_v62 = vld [vmem:[#allocation3 + $0x5d0] sm:$0xf]  ;;  %v7722_v63 = vld [vmem:[#allocation3 + $0x5d4] sm:$0xf0]  ;;  %v5759_v27 = vld [vmem:[#allocation3 + $0x420] sm:$0xf] }
  0x7e   : > { %1354 = vmatpush.bf16.msrb.mxu0 %v5540_v14  ;;  %v5500_v14 = vor.u32 %v7601_v3, %v5497_v4  ;;  %v7672_v3 = vld [vmem:[#allocation3 + $0x444] sm:$0xf0]  ;;  %v5839_v4 = vld [vmem:[#allocation3 + $0x4c0] sm:$0xf]  ;;  %v5767_v11 = vld [vmem:[#allocation3 + $0x430] sm:$0xf] }
  0x7f   : > { %1367 = vmatpush.bf16.msrb.mxu1 %v5604_v16  ;;  %v7599_v16 = vld [vmem:[#allocation3 + $0x204] sm:$0xf]  ;;  %v7718_v24 = vld [vmem:[#allocation3 + $0x5b4] sm:$0xf0]  ;;  %s8820_s18 = smov (!%p367_p12, %s8265_s18), 1  ;;  %s5228_s29 = sshll.u32 %s8814_s19, 2 }
  0x80   : > { %1380 = vmatpush.bf16.msrb.mxu2 %v5668_v17  ;;  %v5489_v17 = vld [vmem:[#allocation3 + $0x208] sm:$0xf0]  ;;  %v8461_v29 = vld [vmem:[%s352_s12] sm:$0xff]  ;;  %s5227_s28 = sshll.u32 %s8820_s18, 1  ;;  %vm5049_vm1 = vcmask 1040384  }
  0x81   : > { %1393 = vmatpush.bf16.msrb.mxu3 %v5732_v21  ;;  %v5553_v21 = vld [vmem:[#allocation3 + $0x288] sm:$0xf0]  ;;  %v5492_v34 = vor.u32 %v7599_v16, %v5489_v17  ;;  %v5831_v16 = vld [vmem:[#allocation3 + $0x4b0] sm:$0xf]  ;;  %v5968_v17 = vor.u32 %v7720_v7, %v5967_v59  ;;  %v7725_v59 = vld [vmem:[#allocation3 + $0x5f4] sm:$0xf]  ;;  %s371_s30 = sadd.s32 %s5228_s29, %s5227_s28 }
  0x82   : > { %1355 = vmatpush.bf16.msrb.mxu0 %v5532_v31  ;;  %v5799_v31 = vld [vmem:[#allocation3 + $0x470] sm:$0xf]  ;;  %v5556_v38 = vor.u32 %v7615_v20, %v5553_v21  ;;  %v7702_v20 = vld [vmem:[#allocation3 + $0x534] sm:$0xf0]  ;;  %v5993_v7 = vld [vmem:[#allocation3 + $0x5f8] sm:$0xf0]  ;;  %s372_s8 = scalar_lea.vmem %s8798_s5, %s371_s30 }
  0x83   : > { %1368 = vmatpush.bf16.msrb.mxu1 %v5596_v32  ;;  %v7678_v32 = vld [vmem:[#allocation3 + $0x474] sm:$0xf0]  ;;  %v5959_v21 = vld [vmem:[#allocation3 + $0x5b0] sm:$0xf] }
  0x84   : > { %1381 = vmatpush.bf16.msrb.mxu2 %v5660_v33  ;;  %v5863_v33 = vld [vmem:[#allocation3 + $0x4f0] sm:$0xf] }
  0x85   : > { %1394 = vmatpush.bf16.msrb.mxu3 %v5724_v37  ;;  %v7710_v37 = vld [vmem:[#allocation3 + $0x574] sm:$0xf0] }
  0x86   : > { %1356 = vmatpush.bf16.msrb.mxu0 %v5524_v43  ;;  %v5800_v43 = vor.u32 %v7678_v32, %v5799_v31  ;;  %v7668_v32 = vld [vmem:[#allocation3 + $0x424] sm:$0xf0] }
  0x87   : > { %1369 = vmatpush.bf16.msrb.mxu1 %v5588_v44  ;;  %v5864_v44 = vor.u32 %v7694_v35, %v5863_v33  ;;  %v5823_v33 = vld [vmem:[#allocation3 + $0x4a0] sm:$0xf]  ;;  %v5960_v35 = vor.u32 %v7718_v24, %v5959_v21  ;;  %v5921_v21 = vld [vmem:[#allocation3 + $0x568] sm:$0xf0] }
  0x88   : > { %1382 = vmatpush.bf16.msrb.mxu2 %v5652_v45  ;;  %v5928_v45 = vor.u32 %v7710_v37, %v5927_v36  ;;  %v5887_v36 = vld [vmem:[#allocation3 + $0x520] sm:$0xf]  ;;  %v7700_v37 = vld [vmem:[#allocation3 + $0x524] sm:$0xf0] }
  0x89   : > { %1395 = vmatpush.bf16.msrb.mxu3 %v5716_v48  ;;  %v5992_v48 = vor.u32 %v7726_v41, %v5991_v40  ;;  %v5751_v40 = vld [vmem:[#allocation3 + $0x410] sm:$0xf]  ;;  %v7666_v41 = vld [vmem:[#allocation3 + $0x414] sm:$0xf0] }
  0x8a   : > { %1357 = vmatpush.bf16.msrb.mxu0 %v5516_v28  ;;  %v5792_v28 = vor.u32 %v7676_v46, %v5791_v22  ;;  %v8465_v22 = vld.sshfl [vmem:[#allocation1 + $0x18] sm:$0xff pattern:$0x73625140] }
  0x8b   : > { %1370 = vmatpush.bf16.msrb.mxu1 %v5580_v52  ;;  %v5856_v52 = vor.u32 %v7692_v49, %v5855_v47  ;;  %v5888_v47 = vor.u32 %v7700_v37, %v5887_v36  ;;  %v8469_v49 = vld.sshfl [vmem:[#allocation1 + $0x8] sm:$0xff pattern:$0x73625140]  ;;  %v7673_v36 = vld [vmem:[#allocation3 + $0x454] sm:$0xf] }
  0x8c   : > { %1383 = vmatpush.bf16.msrb.mxu2 %v5644_v53  ;;  %v5920_v53 = vor.u32 %v7708_v50, %v5919_v23  ;;  %v5879_v50 = vld [vmem:[#allocation3 + $0x510] sm:$0xf]  ;;  %v5785_v37 = vld [vmem:[#allocation3 + $0x458] sm:$0xf0] }
  0x8d   : > { %1396 = vmatpush.bf16.msrb.mxu3 %v5708_v57  ;;  %v5984_v57 = vor.u32 %v7724_v51, %v5983_v26  ;;  %v7698_v26 = vld [vmem:[#allocation3 + $0x514] sm:$0xf0]  ;;  %v5943_v51 = vld [vmem:[#allocation3 + $0x590] sm:$0xf] }
  0x8e   : > { %1358 = vmatpush.bf16.msrb.mxu0 %v5508_v0  ;;  %v5784_v0 = vor.u32 %v7674_v55, %v5783_v54  ;;  %v7664_v54 = vld [vmem:[#allocation3 + $0x404] sm:$0xf0] }
  0x8f   : > { %1371 = vmatpush.bf16.msrb.mxu1 %v5572_v1  ;;  %v5912_v1 = vor.u32 %v7706_v61, %v5911_v60  ;;  %v5871_v60 = vld [vmem:[#allocation3 + $0x500] sm:$0xf] }
  0x90   : > { %1384 = vmatpush.bf16.msrb.mxu2 %v5636_v2  ;;  %v5775_v2 = vld [vmem:[#allocation3 + $0x440] sm:$0xf] }
  0x91   : > { %1397 = vmatpush.bf16.msrb.mxu3 %v5700_v6  ;;  %v7704_v6 = vld [vmem:[#allocation3 + $0x544] sm:$0xf0]  ;;  %v5776_v8 = vor.u32 %v7672_v3, %v5775_v2  ;;  %v7693_v2 = vld [vmem:[#allocation3 + $0x4f4] sm:$0xf] }
  0x92   : > { %1359 = vmatpush.bf16.msrb.mxu0 %v5500_v14  ;;  %v7670_v14 = vld [vmem:[#allocation3 + $0x434] sm:$0xf0] }
  0x93   : > { %1372 = vmatpush.bf16.msrb.mxu1 %v5564_v18  ;;  %v7686_v18 = vld [vmem:[#allocation3 + $0x4b4] sm:$0xf0] }
  0x94   : > { %1385 = vmatpush.bf16.msrb.mxu2 %v5628_v19  ;;  %v5895_v19 = vld [vmem:[#allocation3 + $0x530] sm:$0xf]  ;;  %v5832_v30 = vor.u32 %v7686_v18, %v5831_v16  ;;  %v5793_v16 = vld [vmem:[#allocation3 + $0x468] sm:$0xf0] }
  0x95   : > { %1398 = vmatpush.bf16.msrb.mxu3 %v5692_v25  ;;  %v5768_v25 = vor.u32 %v7670_v14, %v5767_v11  ;;  %v5896_v31 = vor.u32 %v7702_v20, %v5895_v19  ;;  %v5857_v18 = vld [vmem:[#allocation3 + $0x4e8] sm:$0xf0]  ;;  %v5996_v19 = vor.u32 %v7725_v59, %v5993_v7  ;;  %v7707_v20 = vld [vmem:[#allocation3 + $0x564] sm:$0xf] }
  0x96   : > { %1360 = vmatpush.bf16.msrb.mxu0 %v5492_v34  ;;  %v7684_v34 = vld [vmem:[#allocation3 + $0x4a4] sm:$0xf0]  ;;  %v5761_v59 = vld [vmem:[#allocation3 + $0x428] sm:$0xf0]  ;;  %v7683_v7 = vld [vmem:[#allocation3 + $0x4a4] sm:$0xf] }
  0x97   : > { %1373 = vmatpush.bf16.msrb.mxu1 %v5556_v38  ;;  %v5951_v38 = vld [vmem:[#allocation3 + $0x5a0] sm:$0xf]  ;;  %v5824_v46 = vor.u32 %v7684_v34, %v5823_v33  ;;  %v1488_v33 = vrot.slane %v8469_v49, 1 }
  0x98   : > { %1386 = vmatpush.bf16.msrb.mxu2 %v5620_v39  ;;  %v7716_v39 = vld [vmem:[#allocation3 + $0x5a4] sm:$0xf0] }
  0x99   : > { %1399 = vmatpush.bf16.msrb.mxu3 %v5684_v42  ;;  %1361 = vmatmul.bf16.vlgmr.msrb.gmra.mxu0 %v8428_v13  ;;  %v5903_v13 = vld [vmem:[#allocation3 + $0x540] sm:$0xf]  ;;  %v5760_v42 = vor.u32 %v7668_v32, %v5759_v27  ;;  %v5952_v23 = vor.u32 %v7716_v39, %v5951_v38  ;;  %v5985_v27 = vld [vmem:[#allocation3 + $0x5e8] sm:$0xf0]  ;;  %v7689_v38 = vld [vmem:[#allocation3 + $0x4d4] sm:$0xf] }
  0x9a   : > { %1815 = vmatpush.bf16.msra.mxu0 %v5800_v43  ;;  %1374 = vmatmul.bf16.vlgmr.msrb.gmra.mxu1 %v8430_v15  ;;  %v5840_v15 = vor.u32 %v7688_v5, %v5839_v4  ;;  %v5904_v10 = vor.u32 %v7704_v6, %v5903_v13  ;;  %v5815_v43 = vld [vmem:[#allocation3 + $0x490] sm:$0xf]  ;;  %v5865_v4 = vld [vmem:[#allocation3 + $0x4f8] sm:$0xf0] }
  0x9b   : > { %1828 = vmatpush.bf16.msra.mxu1 %v5864_v44  ;;  %1387 = vmatmul.bf16.vlgmr.msrb.gmra.mxu2 %v8424_v9  ;;  %v5848_v9 = vor.u32 %v7690_v58, %v5847_v56  ;;  %v7682_v44 = vld [vmem:[#allocation3 + $0x494] sm:$0xf0]  ;;  %v5880_v56 = vor.u32 %v7698_v26, %v5879_v50  ;;  %v7680_v58 = vld [vmem:[#allocation3 + $0x484] sm:$0xf0]  ;;  %v5929_v5 = vld [vmem:[#allocation3 + $0x578] sm:$0xf0]  ;;  %v5868_v11 = vor.u32 %v7693_v2, %v5865_v4 }
  0x9c   : > { %1841 = vmatpush.bf16.msra.mxu2 %v5928_v45  ;;  %1400 = vmatmul.bf16.vlgmr.msrb.gmra.mxu3 %v8426_v12  ;;  %v5976_v12 = vor.u32 %v7722_v63, %v5975_v62  ;;  %v8463_v45 = vld.sshfl [vmem:[#allocation1 + $0x10] sm:$0xff pattern:$0x73625140]  ;;  %v5816_v55 = vor.u32 %v7682_v44, %v5815_v43  ;;  %v5935_v63 = vld [vmem:[#allocation3 + $0x580] sm:$0xf] }
  0x9d   : > { %1854 = vmatpush.bf16.msra.mxu3 %v5992_v48  ;;  %v8467_v48 = vld.sshfl [vmem:[#allocation1] sm:$0xff pattern:$0x73625140]  ;;  %v7696_v62 = vld [vmem:[#allocation3 + $0x504] sm:$0xf0]  ;;  %v1489_v24 = vrot.slane %v8463_v45, 1 }
  0x9e   : > { %1816 = vmatpush.bf16.msra.mxu0 %v5792_v28  ;;  %1994 = vst [vmem:[#allocation1] ss:$4 sm:$0xff] %v8461_v29  ;;  %v7714_v28 = vld [vmem:[#allocation3 + $0x594] sm:$0xf0]  ;;  %v5872_v6 = vor.u32 %v7696_v62, %v5871_v60  ;;  %v7721_v43 = vld [vmem:[#allocation3 + $0x5d4] sm:$0xf] }
  0x9f   : > { %1829 = vmatpush.bf16.msra.mxu1 %v5856_v52  ;;  %v5752_v52 = vor.u32 %v7666_v41, %v5751_v40  ;;  %v5944_v61 = vor.u32 %v7714_v28, %v5943_v51  ;;  %v5849_v40 = vld [vmem:[#allocation3 + $0x4d8] sm:$0xf0]  ;;  %v7705_v41 = vld [vmem:[#allocation3 + $0x554] sm:$0xf]  ;;  %v7671_v50 = vld [vmem:[#allocation3 + $0x444] sm:$0xf] }
  0xa0   : > { %1842 = vmatpush.bf16.msra.mxu2 %v5920_v53  ;;  %v5743_v53 = vld [vmem:[#allocation3 + $0x400] sm:$0xf]  ;;  %v5977_v44 = vld [vmem:[#allocation3 + $0x5d8] sm:$0xf0]  ;;  %v5777_v26 = vld [vmem:[#allocation3 + $0x448] sm:$0xf0] }
  0xa1   : > { %1855 = vmatpush.bf16.msra.mxu3 %v5984_v57  ;;  %v5807_v57 = vld [vmem:[#allocation3 + $0x480] sm:$0xf]  ;;  %v5744_v3 = vor.u32 %v7664_v54, %v5743_v53  ;;  %v7687_v51 = vld [vmem:[#allocation3 + $0x4c4] sm:$0xf]  ;;  %v5980_v28 = vor.u32 %v7721_v43, %v5977_v44  ;;  %v5905_v54 = vld [vmem:[#allocation3 + $0x548] sm:$0xf0] }
  0xa2   : > { %1817 = vmatpush.bf16.msra.mxu0 %v5784_v0  ;;  %v7712_v0 = vld [vmem:[#allocation3 + $0x584] sm:$0xf0]  ;;  %v5808_v13 = vor.u32 %v7680_v58, %v5807_v57  ;;  %v7703_v53 = vld [vmem:[#allocation3 + $0x544] sm:$0xf]  ;;  %v5780_v57 = vor.u32 %v7671_v50, %v5777_v26  ;;  %v5769_v62 = vld [vmem:[#allocation3 + $0x438] sm:$0xf0] }
  0xa3   : > { %1830 = vmatpush.bf16.msra.mxu1 %v5848_v9  ;;  %v7677_v9 = vld [vmem:[#allocation3 + $0x474] sm:$0xf]  ;;  %v5908_v60 = vor.u32 %v7703_v53, %v5905_v54  ;;  %v5897_v2 = vld [vmem:[#allocation3 + $0x538] sm:$0xf0]  ;;  %v5745_v43 = vld [vmem:[#allocation3 + $0x408] sm:$0xf0] }
  0xa4   : > { %1843 = vmatpush.bf16.msra.mxu2 %v5912_v1  ;;  %v5801_v1 = vld [vmem:[#allocation3 + $0x478] sm:$0xf0]  ;;  %v7695_v50 = vld [vmem:[#allocation3 + $0x504] sm:$0xf]  ;;  %v5937_v53 = vld [vmem:[#allocation3 + $0x588] sm:$0xf0] }
  0xa5   : > { %1856 = vmatpush.bf16.msra.mxu3 %v5976_v12  ;;  %v7709_v12 = vld [vmem:[#allocation3 + $0x574] sm:$0xf]  ;;  %v5961_v4 = vld [vmem:[#allocation3 + $0x5b8] sm:$0xf0] }
  0xa6   : > { %1818 = vmatpush.bf16.msra.mxu0 %v5776_v8  ;;  %v5936_v8 = vor.u32 %v7712_v0, %v5935_v63  ;;  %v5932_v14 = vor.u32 %v7709_v12, %v5929_v5  ;;  %v7685_v63 = vld [vmem:[#allocation3 + $0x4b4] sm:$0xf] }
  0xa7   : > { %1831 = vmatpush.bf16.msra.mxu1 %v5840_v15  ;;  %v5804_v15 = vor.u32 %v7677_v9, %v5801_v1  ;;  %v5833_v9 = vld [vmem:[#allocation3 + $0x4b8] sm:$0xf0]  ;;  %v7701_v1 = vld [vmem:[#allocation3 + $0x534] sm:$0xf] }
  0xa8   : > { %1844 = vmatpush.bf16.msra.mxu2 %v5904_v10  ;;  %v7675_v10 = vld [vmem:[#allocation3 + $0x464] sm:$0xf]  ;;  %v5836_v5 = vor.u32 %v7685_v63, %v5833_v9 }
  0xa9   : > { %1857 = vmatpush.bf16.msra.mxu3 %v5968_v17  ;;  %v7691_v17 = vld [vmem:[#allocation3 + $0x4e4] sm:$0xf]  ;;  %v5796_v32 = vor.u32 %v7675_v10, %v5793_v16  ;;  %v5953_v16 = vld [vmem:[#allocation3 + $0x5a8] sm:$0xf0] }
  0xaa   : > { %1819 = vmatpush.bf16.msra.mxu0 %v5768_v25  ;;  %v7723_v25 = vld [vmem:[#allocation3 + $0x5e4] sm:$0xf]  ;;  %v5860_v34 = vor.u32 %v7691_v17, %v5857_v18  ;;  %v7665_v18 = vld [vmem:[#allocation3 + $0x414] sm:$0xf] }
  0xab   : > { %1832 = vmatpush.bf16.msra.mxu1 %v5832_v30  ;;  %v1490_v30 = vrot.slane %v8465_v22, 1  ;;  %v5988_v39 = vor.u32 %v7723_v25, %v5985_v27  ;;  %v7699_v10 = vld [vmem:[#allocation3 + $0x524] sm:$0xf]  ;;  %v5753_v25 = vld [vmem:[#allocation3 + $0x418] sm:$0xf0] }
  0xac   : > { %1845 = vmatpush.bf16.msra.mxu2 %v5896_v31  ;;  %v1487_v31 = vrot.slane %v8467_v48, 1  ;;  %v7681_v27 = vld [vmem:[#allocation3 + $0x494] sm:$0xf]  ;;  %v7768_v48 = vld [vmem:[#allocation3 + $0x744] sm:$0xf0] }
  0xad   : > { %1858 = vmatpush.bf16.msra.mxu3 %v5960_v35  ;;  %v5924_v35 = vor.u32 %v7707_v20, %v5921_v21 }
  0xae   : > { %1820 = vmatpush.bf16.msra.mxu0 %v5760_v42  ;;  %v5913_v42 = vld [vmem:[#allocation3 + $0x558] sm:$0xf0] }
  0xaf   : > { %1833 = vmatpush.bf16.msra.mxu1 %v5824_v46  ;;  %v5788_v46 = vor.u32 %v7673_v36, %v5785_v37  ;;  %v5817_v36 = vld [vmem:[#allocation3 + $0x498] sm:$0xf0]  ;;  %v7697_v37 = vld [vmem:[#allocation3 + $0x514] sm:$0xf] }
  0xb0   : > { %1846 = vmatpush.bf16.msra.mxu2 %v5888_v47  ;;  %v5852_v47 = vor.u32 %v7689_v38, %v5849_v40  ;;  %v5881_v38 = vld [vmem:[#allocation3 + $0x518] sm:$0xf0]  ;;  %v5820_v44 = vor.u32 %v7681_v27, %v5817_v36  ;;  %v6039_v27 = vld [vmem:[#allocation3 + $0x650] sm:$0xf] }
  0xb1   : > { %1859 = vmatpush.bf16.msra.mxu3 %v5952_v23  ;;  %v5916_v23 = vor.u32 %v7705_v41, %v5913_v42  ;;  %v5945_v40 = vld [vmem:[#allocation3 + $0x598] sm:$0xf0]  ;;  %v5756_v41 = vor.u32 %v7665_v18, %v5753_v25  ;;  %v7663_v42 = vld [vmem:[#allocation3 + $0x404] sm:$0xf] }
  0xb2   : > { %1821 = vmatpush.bf16.msra.mxu0 %v5752_v52  ;;  %v5841_v52 = vld [vmem:[#allocation3 + $0x4c8] sm:$0xf0] }
  0xb3   : > { %1834 = vmatpush.bf16.msra.mxu1 %v5816_v55  ;;  %v7719_v55 = vld [vmem:[#allocation3 + $0x5c4] sm:$0xf]  ;;  %v5844_v58 = vor.u32 %v7687_v51, %v5841_v52 }
  0xb4   : > { %1847 = vmatpush.bf16.msra.mxu2 %v5880_v56  ;;  %v5969_v56 = vld [vmem:[#allocation3 + $0x5c8] sm:$0xf0]  ;;  %v7711_v52 = vld [vmem:[#allocation3 + $0x584] sm:$0xf] }
  0xb5   : > { %1860 = vmatpush.bf16.msra.mxu3 %v5944_v61  ;;  %v7669_v61 = vld [vmem:[#allocation3 + $0x434] sm:$0xf]  ;;  %v5972_v0 = vor.u32 %v7719_v55, %v5969_v56  ;;  %v6055_v55 = vld [vmem:[#allocation3 + $0x670] sm:$0xf]  ;;  %v7742_v56 = vld [vmem:[#allocation3 + $0x674] sm:$0xf0] }
  0xb6   : > { %1822 = vmatpush.bf16.msra.mxu0 %v5744_v3  ;;  %v7717_v3 = vld [vmem:[#allocation3 + $0x5b4] sm:$0xf]  ;;  %v5772_v12 = vor.u32 %v7669_v61, %v5769_v62  ;;  %v6183_v61 = vld [vmem:[#allocation3 + $0x770] sm:$0xf]  ;;  %v7774_v62 = vld [vmem:[#allocation3 + $0x774] sm:$0xf0] }
  0xb7   : > { %1835 = vmatpush.bf16.msra.mxu1 %v5808_v13  ;;  %v5900_v13 = vor.u32 %v7701_v1, %v5897_v2  ;;  %v6247_v1 = vld [vmem:[#allocation3 + $0x7f0] sm:$0xf]  ;;  %v7790_v2 = vld [vmem:[#allocation3 + $0x7f4] sm:$0xf0] }
  0xb8   : > { %1848 = vmatpush.bf16.msra.mxu2 %v5872_v6  ;;  %v7667_v6 = vld [vmem:[#allocation3 + $0x424] sm:$0xf] }
  0xb9   : > { %1861 = vmatpush.bf16.msra.mxu3 %v5936_v8  ;;  %1823 = vmatmul.bf16.vlgmr.msra.gmra.mxu0 %v1487_v31  ;;  %v5964_v8 = vor.u32 %v7717_v3, %v5961_v4  ;;  %v5764_v17 = vor.u32 %v7667_v6, %v5761_v59  ;;  %v5940_v4 = vor.u32 %v7711_v52, %v5937_v53  ;;  %v6047_v6 = vld [vmem:[#allocation3 + $0x660] sm:$0xf]  ;;  %v7740_v59 = vld [vmem:[#allocation3 + $0x664] sm:$0xf0]  ;;  %v6023_v52 = vld [vmem:[#allocation3 + $0x630] sm:$0xf] }
  0xba   : > { %1867 = vmatpush.bf16.msrb.mxu0 %v5804_v15  ;;  %1836 = vmatmul.bf16.vlgmr.msra.gmra.mxu1 %v1488_v33  ;;  %v5825_v15 = vld [vmem:[#allocation3 + $0x4a8] sm:$0xf0]  ;;  %v6048_v18 = vor.u32 %v7740_v59, %v6047_v6  ;;  %v7734_v53 = vld [vmem:[#allocation3 + $0x634] sm:$0xf0] }
  0xbb   : > { %1880 = vmatpush.bf16.msrb.mxu1 %v5868_v11  ;;  %1849 = vmatmul.bf16.vlgmr.msra.gmra.mxu2 %v1489_v24  ;;  %v5889_v11 = vld [vmem:[#allocation3 + $0x528] sm:$0xf0]  ;;  %v5828_v20 = vor.u32 %v7683_v7, %v5825_v15  ;;  %v6111_v7 = vld [vmem:[#allocation3 + $0x6e0] sm:$0xf]  ;;  %v7756_v15 = vld [vmem:[#allocation3 + $0x6e4] sm:$0xf0] }
  0xbc   : > { %1893 = vmatpush.bf16.msrb.mxu2 %v5932_v14  ;;  %1862 = vmatmul.bf16.vlgmr.msra.gmra.mxu3 %v1490_v30  ;;  %v7715_v14 = vld [vmem:[#allocation3 + $0x5a4] sm:$0xf]  ;;  %v5892_v21 = vor.u32 %v7699_v10, %v5889_v11  ;;  %v6175_v10 = vld [vmem:[#allocation3 + $0x760] sm:$0xf]  ;;  %v7772_v11 = vld [vmem:[#allocation3 + $0x764] sm:$0xf0] }
  0xbd   : > { %1906 = vmatpush.bf16.msrb.mxu3 %v5996_v19  ;;  %v8484_v19 = vpop.f32.mrf.mxu0  ;;  %v6176_v25 = vor.u32 %v7772_v11, %v6175_v10  ;;  %v7780_v10 = vld [vmem:[#allocation3 + $0x7a4] sm:$0xf0]  ;;  %v6007_v11 = vld [vmem:[#allocation3 + $0x610] sm:$0xf] }
  0xbe   : > { %1868 = vmatpush.bf16.msrb.mxu0 %v5796_v32  ;;  %v8486_v32 = vpop.f32.mrf.mxu1 }
  0xbf   : > { %1881 = vmatpush.bf16.msrb.mxu1 %v5860_v34  ;;  %v8287_v34 = vmov 0.0  }
  0xc0   : > { %1894 = vmatpush.bf16.msrb.mxu2 %v5924_v35  ;;  %373 = vst [vmem:[#allocation2] sm:$0xf] %v8287_v34  ;;  %v5956_v35 = vor.u32 %v7715_v14, %v5953_v16  ;;  %v6239_v14 = vld [vmem:[#allocation3 + $0x7e0] sm:$0xf]  ;;  %v7788_v16 = vld [vmem:[#allocation3 + $0x7e4] sm:$0xf0] }
  0xc1   : > { %1907 = vmatpush.bf16.msrb.mxu3 %v5988_v39  ;;  %v7713_v39 = vld [vmem:[#allocation3 + $0x594] sm:$0xf]  ;;  %v8488_v26 = vpop.f32.mrf.mxu2  ;;  %v7738_v34 = vld [vmem:[#allocation3 + $0x654] sm:$0xf0]  ;;  %v6240_v36 = vor.u32 %v7788_v16, %v6239_v14 }
  0xc2   : > { %1869 = vmatpush.bf16.msrb.mxu0 %v5788_v46  ;;  %v5884_v46 = vor.u32 %v7697_v37, %v5881_v38  ;;  %v5948_v51 = vor.u32 %v7713_v39, %v5945_v40  ;;  %v8490_v54 = vpop.f32.mrf.mxu3  ;;  %v7754_v37 = vld [vmem:[#allocation3 + $0x6d4] sm:$0xf0]  ;;  %v6167_v38 = vld [vmem:[#allocation3 + $0x750] sm:$0xf] }
  0xc3   : > { %1882 = vmatpush.bf16.msrb.mxu1 %v5852_v47  ;;  %v7679_v47 = vld [vmem:[#allocation3 + $0x484] sm:$0xf]  ;;  %v7770_v39 = vld [vmem:[#allocation3 + $0x754] sm:$0xf0]  ;;  %v6231_v40 = vld [vmem:[#allocation3 + $0x7d0] sm:$0xf] }
  0xc4   : > { %1895 = vmatpush.bf16.msrb.mxu2 %v5916_v23  ;;  %v5809_v23 = vld [vmem:[#allocation3 + $0x488] sm:$0xf0]  ;;  %v7730_v14 = vld [vmem:[#allocation3 + $0x614] sm:$0xf0] }
  0xc5   : > { %1908 = vmatpush.bf16.msrb.mxu3 %v5980_v28  ;;  %v5873_v28 = vld [vmem:[#allocation3 + $0x508] sm:$0xf0]  ;;  %v781_v63 = vpop.f32.mrf.mxu0 }
  0xc6   : > { %1870 = vmatpush.bf16.msrb.mxu0 %v5780_v57  ;;  %v6119_v57 = vld [vmem:[#allocation3 + $0x6f0] sm:$0xf]  ;;  %v5876_v9 = vor.u32 %v7695_v50, %v5873_v28  ;;  %v794_v3 = vpop.f32.mrf.mxu1 }
  0xc7   : > { %1883 = vmatpush.bf16.msrb.mxu1 %v5844_v58  ;;  %v5748_v58 = vor.u32 %v7663_v42, %v5745_v43  ;;  %v6040_v42 = vor.u32 %v7738_v34, %v6039_v27  ;;  %v6031_v43 = vld [vmem:[#allocation3 + $0x640] sm:$0xf]  ;;  %v6215_v63 = vld [vmem:[#allocation3 + $0x7b0] sm:$0xf] }
  0xc8   : > { %1896 = vmatpush.bf16.msrb.mxu2 %v5908_v60  ;;  %v7758_v60 = vld [vmem:[#allocation3 + $0x6f4] sm:$0xf0]  ;;  %v8503_v34 = vld.sshfl [vmem:[#allocation1 + $0x10] sm:$0xff pattern:$0x73625140] }
  0xc9   : > { %1909 = vmatpush.bf16.msrb.mxu3 %v5972_v0  ;;  %v5812_v0 = vor.u32 %v7679_v47, %v5809_v23  ;;  %v6159_v47 = vld [vmem:[#allocation3 + $0x740] sm:$0xf]  ;;  %v7784_v23 = vld [vmem:[#allocation3 + $0x7c4] sm:$0xf0] }
  0xca   : > { %1871 = vmatpush.bf16.msrb.mxu0 %v5772_v12  ;;  %v6056_v12 = vor.u32 %v7742_v56, %v6055_v55  ;;  %v6087_v55 = vld [vmem:[#allocation3 + $0x6b0] sm:$0xf]  ;;  %v793_v56 = vadd.f32 %v8486_v32, %v8484_v19  ;;  %v7748_v19 = vld [vmem:[#allocation3 + $0x6a4] sm:$0xf0] }
  0xcb   : > { %1884 = vmatpush.bf16.msrb.mxu1 %v5836_v5  ;;  %v6120_v5 = vor.u32 %v7758_v60, %v6119_v57  ;;  %v7750_v60 = vld [vmem:[#allocation3 + $0x6b4] sm:$0xf0] }
  0xcc   : > { %1897 = vmatpush.bf16.msrb.mxu2 %v5900_v13  ;;  %v6184_v13 = vor.u32 %v7774_v62, %v6183_v61  ;;  %v6151_v61 = vld [vmem:[#allocation3 + $0x730] sm:$0xf]  ;;  %v7766_v62 = vld [vmem:[#allocation3 + $0x734] sm:$0xf0]  ;;  %v806_v32 = vadd.f32 %v8488_v26, %v793_v56  ;;  %v6057_v56 = vld [vmem:[#allocation3 + $0x678] sm:$0xf0] }
  0xcd   : > { %1910 = vmatpush.bf16.msrb.mxu3 %v5964_v8  ;;  %v6248_v8 = vor.u32 %v7790_v2, %v6247_v1  ;;  %v6015_v1 = vld [vmem:[#allocation3 + $0x620] sm:$0xf]  ;;  %v6088_v2 = vor.u32 %v7750_v60, %v6087_v55  ;;  %v6152_v3 = vor.u32 %v7766_v62, %v6151_v61  ;;  %v8505_v26 = vld.sshfl [vmem:[#allocation1 + $0x18] sm:$0xff pattern:$0x73625140] }
  0xce   : > { %1872 = vmatpush.bf16.msrb.mxu0 %v5764_v17  ;;  %v807_v17 = vpop.f32.mrf.mxu2  ;;  %v6121_v60 = vld [vmem:[#allocation3 + $0x6f8] sm:$0xf0]  ;;  %v7773_v61 = vld [vmem:[#allocation3 + $0x774] sm:$0xf] }
  0xcf   : > { %1885 = vmatpush.bf16.msrb.mxu1 %v5828_v20  ;;  %v820_v20 = vpop.f32.mrf.mxu3  ;;  %v6185_v62 = vld [vmem:[#allocation3 + $0x778] sm:$0xf0] }
  0xd0   : > { %1898 = vmatpush.bf16.msrb.mxu2 %v5892_v21  ;;  %v6112_v21 = vor.u32 %v7756_v15, %v6111_v7  ;;  %v6143_v7 = vld [vmem:[#allocation3 + $0x720] sm:$0xf]  ;;  %v7746_v20 = vld [vmem:[#allocation3 + $0x694] sm:$0xf0] }
  0xd1   : > { %1911 = vmatpush.bf16.msrb.mxu3 %v5956_v35  ;;  %v6103_v35 = vld [vmem:[#allocation3 + $0x6d0] sm:$0xf]  ;;  %v6207_v15 = vld [vmem:[#allocation3 + $0x7a0] sm:$0xf] }
  0xd2   : > { %1873 = vmatpush.bf16.msrb.mxu0 %v5756_v41  ;;  %v7786_v41 = vld [vmem:[#allocation3 + $0x7d4] sm:$0xf0]  ;;  %v6104_v45 = vor.u32 %v7754_v37, %v6103_v35 }
  0xd3   : > { %1886 = vmatpush.bf16.msrb.mxu1 %v5820_v44  ;;  %v7736_v44 = vld [vmem:[#allocation3 + $0x644] sm:$0xf0]  ;;  %v6232_v22 = vor.u32 %v7786_v41, %v6231_v40  ;;  %v819_v40 = vadd.f32 %v8490_v54, %v806_v32  ;;  %v375_v41 = vld [vmem:[#allocation2] sm:$0xf]  ;;  %v7755_v32 = vld [vmem:[#allocation3 + $0x6e4] sm:$0xf] }
  0xd4   : > { %1899 = vmatpush.bf16.msrb.mxu2 %v5884_v46  ;;  %v6095_v46 = vld [vmem:[#allocation3 + $0x6c0] sm:$0xf]  ;;  %v6032_v50 = vor.u32 %v7736_v44, %v6031_v43  ;;  %v7778_v43 = vld [vmem:[#allocation3 + $0x794] sm:$0xf0] }
  0xd5   : > { %1912 = vmatpush.bf16.msrb.mxu3 %v5948_v51 }
  0xd6   : > { %1874 = vmatpush.bf16.msrb.mxu0 %v5748_v58  ;;  %v831_v51 = vpop.f32.mrf.mxu0 }
  0xd7   : > { %1887 = vmatpush.bf16.msrb.mxu1 %v5812_v0  ;;  %v844_v28 = vpop.f32.mrf.mxu1  ;;  %v7782_v0 = vld [vmem:[#allocation3 + $0x7b4] sm:$0xf0] }
  0xd8   : > { %1900 = vmatpush.bf16.msrb.mxu2 %v5876_v9  ;;  %v845_v58 = vadd.f32 %v844_v28, %v831_v51  ;;  %v6024_v9 = vor.u32 %v7734_v53, %v6023_v52  ;;  %v7760_v51 = vld [vmem:[#allocation3 + $0x704] sm:$0xf0]  ;;  %v6191_v28 = vld [vmem:[#allocation3 + $0x780] sm:$0xf]  ;;  %v7741_v53 = vld [vmem:[#allocation3 + $0x674] sm:$0xf] }
  0xd9   : > { %1913 = vmatpush.bf16.msrb.mxu3 %v5940_v4  ;;  %1875 = vmatmul.bf16.vlgmr.msrb.gmra.mxu0 %v1487_v31  ;;  %v6223_v31 = vld [vmem:[#allocation3 + $0x7c0] sm:$0xf]  ;;  %v7776_v52 = vld [vmem:[#allocation3 + $0x784] sm:$0xf0] }
  0xda   : > { %2323 = vmatpush.bf16.msra.mxu0 %v6056_v12  ;;  %1888 = vmatmul.bf16.vlgmr.msrb.gmra.mxu1 %v1488_v33  ;;  %v6160_v33 = vor.u32 %v7768_v48, %v6159_v47  ;;  %v6224_v57 = vor.u32 %v7784_v23, %v6223_v31  ;;  %v7732_v12 = vld [vmem:[#allocation3 + $0x624] sm:$0xf0]  ;;  %v6063_v47 = vld [vmem:[#allocation3 + $0x680] sm:$0xf] }
  0xdb   : > { %2336 = vmatpush.bf16.msra.mxu1 %v6120_v5  ;;  %1901 = vmatmul.bf16.vlgmr.msrb.gmra.mxu2 %v1489_v24  ;;  %v6168_v24 = vor.u32 %v7770_v39, %v6167_v38  ;;  %v6079_v5 = vld [vmem:[#allocation3 + $0x6a0] sm:$0xf]  ;;  %v6016_v17 = vor.u32 %v7732_v12, %v6015_v1  ;;  %v8507_v38 = vld.sshfl [vmem:[#allocation1] sm:$0xff pattern:$0x73625140]  ;;  %v6188_v12 = vor.u32 %v7773_v61, %v6185_v62 }
  0xdc   : > { %2349 = vmatpush.bf16.msra.mxu2 %v6184_v13  ;;  %1914 = vmatmul.bf16.vlgmr.msrb.gmra.mxu3 %v1490_v30  ;;  %v7752_v30 = vld [vmem:[#allocation3 + $0x6c4] sm:$0xf0]  ;;  %v6216_v13 = vor.u32 %v7782_v0, %v6215_v63  ;;  %v6080_v35 = vor.u32 %v7748_v19, %v6079_v5  ;;  %v8509_v39 = vld.sshfl [vmem:[#allocation1 + $0x8] sm:$0xff pattern:$0x73625140] }
  0xdd   : > { %2362 = vmatpush.bf16.msra.mxu3 %v6248_v8  ;;  %v6096_v49 = vor.u32 %v7752_v30, %v6095_v46  ;;  %v7764_v8 = vld [vmem:[#allocation3 + $0x724] sm:$0xf0]  ;;  %2500 = vst [vmem:[#allocation1] ss:$4 sm:$0xff] %v8461_v29  ;;  %v6008_v46 = vor.u32 %v7730_v14, %v6007_v11  ;;  %v6249_v1 = vld [vmem:[#allocation3 + $0x7f8] sm:$0xf0] }
  0xde   : > { %2324 = vmatpush.bf16.msra.mxu0 %v6048_v18  ;;  %v857_v4 = vpop.f32.mrf.mxu2  ;;  %v6071_v18 = vld [vmem:[#allocation3 + $0x690] sm:$0xf]  ;;  %v833_v27 = vpop.f32.mrf.mxu0  ;;  %v7728_v30 = vld [vmem:[#allocation3 + $0x604] sm:$0xf0]  ;;  %v7739_v5 = vld [vmem:[#allocation3 + $0x664] sm:$0xf] }
  0xdf   : > { %2337 = vmatpush.bf16.msra.mxu1 %v6112_v21  ;;  %v858_v6 = vadd.f32 %v857_v4, %v845_v58  ;;  %v870_v59 = vpop.f32.mrf.mxu3  ;;  %v6135_v21 = vld [vmem:[#allocation3 + $0x710] sm:$0xf]  ;;  %v846_v37 = vpop.f32.mrf.mxu1  ;;  %v6072_v31 = vor.u32 %v7746_v20, %v6071_v18  ;;  %v7744_v23 = vld [vmem:[#allocation3 + $0x684] sm:$0xf0]  ;;  %v6049_v19 = vld [vmem:[#allocation3 + $0x668] sm:$0xf0] }
  0xe0   : > { %2350 = vmatpush.bf16.msra.mxu2 %v6176_v25  ;;  %v7762_v25 = vld [vmem:[#allocation3 + $0x714] sm:$0xf0]  ;;  %v6064_v63 = vor.u32 %v7744_v23, %v6063_v47  ;;  %v7753_v18 = vld [vmem:[#allocation3 + $0x6d4] sm:$0xf]  ;;  %v6169_v27 = vld [vmem:[#allocation3 + $0x758] sm:$0xf0] }
  0xe1   : > { %2363 = vmatpush.bf16.msra.mxu3 %v6240_v36  ;;  %v871_v16 = vadd.f32 %v870_v59, %v858_v6  ;;  %v6144_v36 = vor.u32 %v7764_v8, %v6143_v7  ;;  %v6136_v54 = vor.u32 %v7762_v25, %v6135_v21  ;;  %v6113_v6 = vld [vmem:[#allocation3 + $0x6e8] sm:$0xf0]  ;;  %v7771_v59 = vld [vmem:[#allocation3 + $0x764] sm:$0xf]  ;;  %v6105_v21 = vld [vmem:[#allocation3 + $0x6d8] sm:$0xf0] }
  0xe2   : > { %2325 = vmatpush.bf16.msra.mxu0 %v6040_v42  ;;  %v6177_v7 = vld [vmem:[#allocation3 + $0x768] sm:$0xf0]  ;;  %v7787_v8 = vld [vmem:[#allocation3 + $0x7e4] sm:$0xf]  ;;  %v6116_v11 = vor.u32 %v7755_v32, %v6113_v6  ;;  %v7769_v25 = vld [vmem:[#allocation3 + $0x754] sm:$0xf] }
  0xe3   : > { %2338 = vmatpush.bf16.msra.mxu1 %v6104_v45  ;;  %v876_v42 = vrot.slane %v871_v16, 6  ;;  %v6208_v45 = vor.u32 %v7780_v10, %v6207_v15  ;;  %v6241_v15 = vld [vmem:[#allocation3 + $0x7e8] sm:$0xf0]  ;;  %v6052_v10 = vor.u32 %v7739_v5, %v6049_v19  ;;  %v6180_v14 = vor.u32 %v7771_v59, %v6177_v7  ;;  %v7737_v16 = vld [vmem:[#allocation3 + $0x654] sm:$0xf] }
  0xe4   : > { %2351 = vmatpush.bf16.msra.mxu2 %v6168_v24  ;;  %v6199_v24 = vld [vmem:[#allocation3 + $0x790] sm:$0xf]  ;;  %v6244_v20 = vor.u32 %v7787_v8, %v6241_v15  ;;  %v6225_v47 = vld [vmem:[#allocation3 + $0x7c8] sm:$0xf0]  ;;  %v7731_v62 = vld [vmem:[#allocation3 + $0x624] sm:$0xf] }
  0xe5   : > { %2364 = vmatpush.bf16.msra.mxu3 %v6232_v22  ;;  %v878_v44 = vsel %vm877_vm0, %v819_v40, %v876_v42  ;;  %v5999_v22 = vld [vmem:[#allocation3 + $0x600] sm:$0xf]  ;;  %v6108_v40 = vor.u32 %v7753_v18, %v6105_v21  ;;  %v7735_v42 = vld [vmem:[#allocation3 + $0x644] sm:$0xf]  ;;  %v6209_v19 = vld [vmem:[#allocation3 + $0x7a8] sm:$0xf0] }
  0xe6   : > { %2326 = vmatpush.bf16.msra.mxu0 %v6032_v50  ;;  %v880_v48 = vadd.f32 %v878_v44, %v375_v41  ;;  %v6127_v50 = vld [vmem:[#allocation3 + $0x700] sm:$0xf]  ;;  %v6000_v58 = vor.u32 %v7728_v30, %v5999_v22  ;;  %v6172_v41 = vor.u32 %v7769_v25, %v6169_v27  ;;  %v6097_v44 = vld [vmem:[#allocation3 + $0x6c8] sm:$0xf0]  ;;  %v7783_v30 = vld [vmem:[#allocation3 + $0x7c4] sm:$0xf] }
  0xe7   : > { %2339 = vmatpush.bf16.msra.mxu1 %v6096_v49  ;;  %v859_v49 = vpop.f32.mrf.mxu2  ;;  %v872_v55 = vpop.f32.mrf.mxu3  ;;  %v6128_v0 = vor.u32 %v7760_v51, %v6127_v50  ;;  %v6161_v22 = vld [vmem:[#allocation3 + $0x748] sm:$0xf0]  ;;  %v7733_v50 = vld [vmem:[#allocation3 + $0x634] sm:$0xf]  ;;  %v6025_v51 = vld [vmem:[#allocation3 + $0x638] sm:$0xf0] }
  0xe8   : > { %2352 = vmatpush.bf16.msra.mxu2 %v6160_v33  ;;  %v6200_v33 = vor.u32 %v7778_v43, %v6199_v24  ;;  %881 = vst [vmem:[#allocation2] sm:$0xf] %v880_v48  ;;  %v7751_v24 = vld [vmem:[#allocation3 + $0x6c4] sm:$0xf]  ;;  %v7749_v49 = vld [vmem:[#allocation3 + $0x6b4] sm:$0xf] }
  0xe9   : > { %2365 = vmatpush.bf16.msra.mxu3 %v6224_v57  ;;  %v7757_v57 = vld [vmem:[#allocation3 + $0x6f4] sm:$0xf]  ;;  %v6153_v55 = vld [vmem:[#allocation3 + $0x738] sm:$0xf0]  ;;  %v7779_v5 = vld [vmem:[#allocation3 + $0x7a4] sm:$0xf] }
  0xea   : > { %2327 = vmatpush.bf16.msra.mxu0 %v6024_v9  ;;  %v7789_v9 = vld [vmem:[#allocation3 + $0x7f4] sm:$0xf]  ;;  %v6124_v4 = vor.u32 %v7757_v57, %v6121_v60  ;;  %v6217_v57 = vld [vmem:[#allocation3 + $0x7b8] sm:$0xf0]  ;;  %v7727_v25 = vld [vmem:[#allocation3 + $0x604] sm:$0xf] }
  0xeb   : > { %2340 = vmatpush.bf16.msra.mxu1 %v6088_v2  ;;  %v6192_v2 = vor.u32 %v7776_v52, %v6191_v28  ;;  %v6228_v28 = vor.u32 %v7783_v30, %v6225_v47  ;;  %v6089_v52 = vld [vmem:[#allocation3 + $0x6b8] sm:$0xf0]  ;;  %v7729_v7 = vld [vmem:[#allocation3 + $0x614] sm:$0xf]  ;;  %v6001_v27 = vld [vmem:[#allocation3 + $0x608] sm:$0xf0] }
  0xec   : > { %2353 = vmatpush.bf16.msra.mxu2 %v6152_v3  ;;  %v6060_v3 = vor.u32 %v7741_v53, %v6057_v56  ;;  %v7765_v53 = vld [vmem:[#allocation3 + $0x734] sm:$0xf]  ;;  %v6092_v60 = vor.u32 %v7749_v49, %v6089_v52  ;;  %v6009_v8 = vld [vmem:[#allocation3 + $0x618] sm:$0xf0]  ;;  %v7806_v30 = vld [vmem:[#allocation3 + $0x874] sm:$0xf0] }
  0xed   : > { %2366 = vmatpush.bf16.msra.mxu3 %v6216_v13  ;;  %v6252_v13 = vor.u32 %v7789_v9, %v6249_v1  ;;  %v7781_v56 = vld [vmem:[#allocation3 + $0x7b4] sm:$0xf]  ;;  %v6156_v61 = vor.u32 %v7765_v53, %v6153_v55  ;;  %v6012_v21 = vor.u32 %v7729_v7, %v6009_v8  ;;  %v6375_v47 = vld [vmem:[#allocation3 + $0x8f0] sm:$0xf]  ;;  %v7854_v52 = vld [vmem:[#allocation3 + $0x9f4] sm:$0xf0] }
  0xee   : > { %2328 = vmatpush.bf16.msra.mxu0 %v6016_v17  ;;  %v6041_v17 = vld [vmem:[#allocation3 + $0x658] sm:$0xf0]  ;;  %v6220_v1 = vor.u32 %v7781_v56, %v6217_v57  ;;  %v7745_v15 = vld [vmem:[#allocation3 + $0x694] sm:$0xf]  ;;  %v7818_v7 = vld [vmem:[#allocation3 + $0x8d4] sm:$0xf0] }
  0xef   : > { %2341 = vmatpush.bf16.msra.mxu1 %v6080_v35  ;;  %v7785_v35 = vld [vmem:[#allocation3 + $0x7d4] sm:$0xf]  ;;  %v6044_v37 = vor.u32 %v7737_v16, %v6041_v17  ;;  %v6137_v17 = vld [vmem:[#allocation3 + $0x718] sm:$0xf0]  ;;  %v6423_v8 = vld [vmem:[#allocation3 + $0x950] sm:$0xf] }
  0xf0   : > { %2354 = vmatpush.bf16.msra.mxu2 %v6144_v36  ;;  %v6233_v36 = vld [vmem:[#allocation3 + $0x7d8] sm:$0xf0]  ;;  %v7761_v16 = vld [vmem:[#allocation3 + $0x714] sm:$0xf] }
  0xf1   : > { %2367 = vmatpush.bf16.msra.mxu3 %v6208_v45  ;;  %v6033_v45 = vld [vmem:[#allocation3 + $0x648] sm:$0xf0]  ;;  %v6236_v43 = vor.u32 %v7785_v35, %v6233_v36  ;;  %v7777_v18 = vld [vmem:[#allocation3 + $0x794] sm:$0xf]  ;;  %v6140_v36 = vor.u32 %v7761_v16, %v6137_v17 }
  0xf2   : > { %2329 = vmatpush.bf16.msra.mxu0 %v6008_v46  ;;  %v7767_v46 = vld [vmem:[#allocation3 + $0x744] sm:$0xf]  ;;  %v6036_v48 = vor.u32 %v7735_v42, %v6033_v45 }
  0xf3   : > { %2342 = vmatpush.bf16.msra.mxu1 %v6072_v31  ;;  %v6164_v23 = vor.u32 %v7767_v46, %v6161_v22  ;;  %v6311_v22 = vld [vmem:[#allocation3 + $0x870] sm:$0xf] }
  0xf4   : > { %2355 = vmatpush.bf16.msra.mxu2 %v6136_v54  ;;  %v6100_v54 = vor.u32 %v7751_v24, %v6097_v44  ;;  %v6129_v24 = vld [vmem:[#allocation3 + $0x708] sm:$0xf0]  ;;  %v6312_v55 = vor.u32 %v7806_v30, %v6311_v22  ;;  %v7814_v22 = vld [vmem:[#allocation3 + $0x8b4] sm:$0xf0]  ;;  %v6407_v30 = vld [vmem:[#allocation3 + $0x930] sm:$0xf] }
  0xf5   : > { %2368 = vmatpush.bf16.msra.mxu3 %v6200_v33  ;;  %v6193_v44 = vld [vmem:[#allocation3 + $0x788] sm:$0xf0] }
  0xf6   : > { %2330 = vmatpush.bf16.msra.mxu0 %v6000_v58  ;;  %v8518_v31 = vpop.f32.mrf.mxu0  ;;  %v6028_v58 = vor.u32 %v7733_v50, %v6025_v51  ;;  %v7838_v50 = vld [vmem:[#allocation3 + $0x974] sm:$0xf0] }
  0xf7   : > { %2343 = vmatpush.bf16.msra.mxu1 %v6064_v63  ;;  %v8520_v33 = vpop.f32.mrf.mxu1  ;;  %v6017_v63 = vld [vmem:[#allocation3 + $0x628] sm:$0xf0] }
  0xf8   : > { %2356 = vmatpush.bf16.msra.mxu2 %v6128_v0  ;;  %v7747_v0 = vld [vmem:[#allocation3 + $0x6a4] sm:$0xf]  ;;  %v6020_v32 = vor.u32 %v7731_v62, %v6017_v63  ;;  %v7820_v63 = vld [vmem:[#allocation3 + $0x8e4] sm:$0xf0] }
  0xf9   : > { %2369 = vmatpush.bf16.msra.mxu3 %v6192_v2  ;;  %2331 = vmatmul.bf16.vlgmr.msra.gmra.mxu0 %v8507_v38  ;;  %v6081_v2 = vld [vmem:[#allocation3 + $0x6a8] sm:$0xf0] }
  0xfa   : > { %2375 = vmatpush.bf16.msrb.mxu0 %v6060_v3  ;;  %2344 = vmatmul.bf16.vlgmr.msra.gmra.mxu1 %v8509_v39  ;;  %v7763_v3 = vld [vmem:[#allocation3 + $0x724] sm:$0xf]  ;;  %v6084_v6 = vor.u32 %v7747_v0, %v6081_v2  ;;  %v6431_v0 = vld [vmem:[#allocation3 + $0x960] sm:$0xf] }
  0xfb   : > { %2388 = vmatpush.bf16.msrb.mxu1 %v6124_v4  ;;  %2357 = vmatmul.bf16.vlgmr.msra.gmra.mxu2 %v8503_v34  ;;  %v6145_v4 = vld [vmem:[#allocation3 + $0x728] sm:$0xf0]  ;;  %v6495_v2 = vld [vmem:[#allocation3 + $0x9e0] sm:$0xf] }
  0xfc   : > { %2401 = vmatpush.bf16.msrb.mxu2 %v6188_v12  ;;  %2370 = vmatmul.bf16.vlgmr.msra.gmra.mxu3 %v8505_v26  ;;  %v6148_v59 = vor.u32 %v7763_v3, %v6145_v4  ;;  %v7852_v3 = vld [vmem:[#allocation3 + $0x9e4] sm:$0xf0] }
  0xfd   : > { %2414 = vmatpush.bf16.msrb.mxu3 %v6252_v13 }
  0xfe   : > { %2376 = vmatpush.bf16.msrb.mxu0 %v6052_v10  ;;  %v8522_v9 = vpop.f32.mrf.mxu2  ;;  %v1312_v13 = vpop.f32.mrf.mxu0 }
  0xff   : > { %2389 = vmatpush.bf16.msrb.mxu1 %v6116_v11  ;;  %v8524_v12 = vpop.f32.mrf.mxu3  ;;  %v1325_v10 = vpop.f32.mrf.mxu1  ;;  %v6212_v11 = vor.u32 %v7779_v5, %v6209_v19  ;;  %v7802_v13 = vld [vmem:[#allocation3 + $0x854] sm:$0xf0] }
 0x100   : > { %2402 = vmatpush.bf16.msrb.mxu2 %v6180_v14  ;;  %v6073_v14 = vld [vmem:[#allocation3 + $0x698] sm:$0xf0]  ;;  %v6487_v10 = vld [vmem:[#allocation3 + $0x9d0] sm:$0xf] }
 0x101   : > { %2415 = vmatpush.bf16.msrb.mxu3 %v6244_v20  ;;  %v6201_v20 = vld [vmem:[#allocation3 + $0x798] sm:$0xf0]  ;;  %v6076_v35 = vor.u32 %v7745_v15, %v6073_v14  ;;  %v7834_v15 = vld [vmem:[#allocation3 + $0x954] sm:$0xf0] }
 0x102   : > { %2377 = vmatpush.bf16.msrb.mxu0 %v6044_v37  ;;  %v7743_v37 = vld [vmem:[#allocation3 + $0x684] sm:$0xf]  ;;  %v6204_v45 = vor.u32 %v7777_v18, %v6201_v20  ;;  %v6424_v17 = vor.u32 %v7834_v15, %v6423_v8  ;;  %v6287_v18 = vld [vmem:[#allocation3 + $0x840] sm:$0xf]  ;;  %v7826_v8 = vld [vmem:[#allocation3 + $0x914] sm:$0xf0] }
 0x103   : > { %2390 = vmatpush.bf16.msrb.mxu1 %v6108_v40  ;;  %v6065_v40 = vld [vmem:[#allocation3 + $0x688] sm:$0xf0]  ;;  %v6351_v20 = vld [vmem:[#allocation3 + $0x8c0] sm:$0xf]  ;;  %v6455_v15 = vld [vmem:[#allocation3 + $0x990] sm:$0xf] }
 0x104   : > { %2403 = vmatpush.bf16.msrb.mxu2 %v6172_v41  ;;  %v7759_v41 = vld [vmem:[#allocation3 + $0x704] sm:$0xf]  ;;  %v6068_v51 = vor.u32 %v7743_v37, %v6065_v40 }
 0x105   : > { %2416 = vmatpush.bf16.msrb.mxu3 %v6236_v43  ;;  %v7775_v43 = vld [vmem:[#allocation3 + $0x784] sm:$0xf]  ;;  %v6132_v49 = vor.u32 %v7759_v41, %v6129_v24  ;;  %v6343_v24 = vld [vmem:[#allocation3 + $0x8b0] sm:$0xf] }
 0x106   : > { %2378 = vmatpush.bf16.msrb.mxu0 %v6036_v48  ;;  %v1338_v42 = vpop.f32.mrf.mxu2  ;;  %v6004_v48 = vor.u32 %v7727_v25, %v6001_v27  ;;  %v6196_v53 = vor.u32 %v7775_v43, %v6193_v44  ;;  %v7816_v25 = vld [vmem:[#allocation3 + $0x8c4] sm:$0xf0]  ;;  %v6415_v27 = vld [vmem:[#allocation3 + $0x940] sm:$0xf]  ;;  %v1324_v43 = vadd.f32 %v8520_v33, %v8518_v31 }
 0x107   : > { %2391 = vmatpush.bf16.msrb.mxu1 %v6100_v54  ;;  %v1351_v46 = vpop.f32.mrf.mxu3  ;;  %v7822_v54 = vld [vmem:[#allocation3 + $0x8f4] sm:$0xf0]  ;;  %v6279_v42 = vld [vmem:[#allocation3 + $0x830] sm:$0xf]  ;;  %v6399_v31 = vld [vmem:[#allocation3 + $0x920] sm:$0xf] }
 0x108   : > { %2404 = vmatpush.bf16.msrb.mxu2 %v6164_v23  ;;  %v6439_v23 = vld [vmem:[#allocation3 + $0x970] sm:$0xf]  ;;  %v6376_v56 = vor.u32 %v7822_v54, %v6375_v47  ;;  %v7830_v47 = vld [vmem:[#allocation3 + $0x934] sm:$0xf0]  ;;  %v1337_v33 = vadd.f32 %v8522_v9, %v1324_v43 }
 0x109   : > { %2417 = vmatpush.bf16.msrb.mxu3 %v6228_v28  ;;  %v6503_v28 = vld [vmem:[#allocation3 + $0x9f0] sm:$0xf]  ;;  %v6440_v57 = vor.u32 %v7838_v50, %v6439_v23  ;;  %v7846_v54 = vld [vmem:[#allocation3 + $0x9b4] sm:$0xf0]  ;;  %v6271_v50 = vld [vmem:[#allocation3 + $0x820] sm:$0xf] }
 0x10a   : > { %2379 = vmatpush.bf16.msrb.mxu0 %v6028_v58  ;;  %v6303_v58 = vld [vmem:[#allocation3 + $0x860] sm:$0xf]  ;;  %v6504_v62 = vor.u32 %v7854_v52, %v6503_v28  ;;  %v6408_v28 = vor.u32 %v7830_v47, %v6407_v30  ;;  %v6391_v9 = vld [vmem:[#allocation3 + $0x910] sm:$0xf] }
 0x10b   : > { %2392 = vmatpush.bf16.msrb.mxu1 %v6092_v60  ;;  %v7804_v60 = vld [vmem:[#allocation3 + $0x864] sm:$0xf0] }
 0x10c   : > { %2405 = vmatpush.bf16.msrb.mxu2 %v6156_v61  ;;  %v6367_v61 = vld [vmem:[#allocation3 + $0x8e0] sm:$0xf]  ;;  %v6304_v4 = vor.u32 %v7804_v60, %v6303_v58  ;;  %v7828_v60 = vld [vmem:[#allocation3 + $0x924] sm:$0xf0] }
 0x10d   : > { %2418 = vmatpush.bf16.msrb.mxu3 %v6220_v1  ;;  %v7836_v1 = vld [vmem:[#allocation3 + $0x964] sm:$0xf0]  ;;  %v6368_v5 = vor.u32 %v7820_v63, %v6367_v61  ;;  %v6463_v61 = vld [vmem:[#allocation3 + $0x9a0] sm:$0xf]  ;;  %v6263_v63 = vld [vmem:[#allocation3 + $0x810] sm:$0xf] }
 0x10e   : > { %2380 = vmatpush.bf16.msrb.mxu0 %v6020_v32  ;;  %v6432_v19 = vor.u32 %v7836_v1, %v6431_v0  ;;  %v6295_v32 = vld [vmem:[#allocation3 + $0x850] sm:$0xf]  ;;  %v7794_v0 = vld [vmem:[#allocation3 + $0x814] sm:$0xf0] }
 0x10f   : > { %2393 = vmatpush.bf16.msrb.mxu1 %v6084_v6  ;;  %v6359_v6 = vld [vmem:[#allocation3 + $0x8d0] sm:$0xf]  ;;  %v6296_v14 = vor.u32 %v7802_v13, %v6295_v32  ;;  %v8539_v13 = vld.sshfl [vmem:[#allocation1] sm:$0xff pattern:$0x73625140] }
 0x110   : > { %2406 = vmatpush.bf16.msrb.mxu2 %v6148_v59  ;;  %v6496_v59 = vor.u32 %v7852_v3, %v6495_v2  ;;  %v6360_v16 = vor.u32 %v7818_v7, %v6359_v6  ;;  %v8533_v1 = vld [vmem:[#allocation3 + $0x890] sm:$0xf]  ;;  %v7810_v2 = vld [vmem:[#allocation3 + $0x894] sm:$0xf0]  ;;  %v6400_v7 = vor.u32 %v7828_v60, %v6399_v31 }
 0x111   : > { %2419 = vmatpush.bf16.msrb.mxu3 %v6212_v11  ;;  %v7850_v11 = vld [vmem:[#allocation3 + $0x9d4] sm:$0xf0]  ;;  %v8535_v3 = vld.sshfl [vmem:[#allocation1 + $0x10] sm:$0xff pattern:$0x73625140] }
 0x112   : > { %2381 = vmatpush.bf16.msrb.mxu0 %v6012_v21  ;;  %v6488_v21 = vor.u32 %v7850_v11, %v6487_v10  ;;  %v8541_v6 = vld.sshfl [vmem:[#allocation1 + $0x8] sm:$0xff pattern:$0x73625140]  ;;  %v1350_v11 = vadd.f32 %v8524_v12, %v1337_v33  ;;  %v2505_v33 = vshrl.u32 %v8539_v13, 16 }
 0x113   : > { %2394 = vmatpush.bf16.msrb.mxu1 %v6076_v35  ;;  %v6479_v35 = vld [vmem:[#allocation3 + $0x9c0] sm:$0xf]  ;;  %v2513_v30 = vshll.u32 %v8541_v6, 16  ;;  %v2511_v60 = vshrl.u32 %v8541_v6, 16 }
 0x114   : > { %2407 = vmatpush.bf16.msrb.mxu2 %v6140_v36 }
 0x115   : > { %2420 = vmatpush.bf16.msrb.mxu3 %v6204_v45  ;;  %v7798_v45 = vld [vmem:[#allocation3 + $0x834] sm:$0xf0] }
 0x116   : > { %2382 = vmatpush.bf16.msrb.mxu0 %v6004_v48  ;;  %v1362_v37 = vpop.f32.mrf.mxu0  ;;  %v6471_v48 = vld [vmem:[#allocation3 + $0x9b0] sm:$0xf]  ;;  %v6280_v23 = vor.u32 %v7798_v45, %v6279_v42 }
 0x117   : > { %2395 = vmatpush.bf16.msrb.mxu1 %v6068_v51  ;;  %v1375_v41 = vpop.f32.mrf.mxu1  ;;  %v7796_v51 = vld [vmem:[#allocation3 + $0x824] sm:$0xf0] }
 0x118   : > { %2408 = vmatpush.bf16.msrb.mxu2 %v6132_v49  ;;  %v1376_v46 = vadd.f32 %v1375_v41, %v1362_v37  ;;  %v6344_v49 = vor.u32 %v7814_v22, %v6343_v24  ;;  %v6392_v37 = vor.u32 %v7826_v8, %v6391_v9  ;;  %v7805_v41 = vld [vmem:[#allocation3 + $0x874] sm:$0xf]  ;;  %v2507_v24 = vshll.u32 %v8539_v13, 16  ;;  %v6497_v13 = vld [vmem:[#allocation3 + $0x9e8] sm:$0xf0] }
 0x119   : > { %2421 = vmatpush.bf16.msrb.mxu3 %v6196_v53  ;;  %2383 = vmatmul.bf16.vlgmr.msrb.gmra.mxu0 %v8507_v38  ;;  %v7848_v38 = vld [vmem:[#allocation3 + $0x9c4] sm:$0xf0]  ;;  %v6335_v53 = vld [vmem:[#allocation3 + $0x8a0] sm:$0xf] }
 0x11a   : > { %2853 = vmatpush.bf16.msra.mxu0 %v6312_v55  ;;  %2396 = vmatmul.bf16.vlgmr.msrb.gmra.mxu1 %v8509_v39  ;;  %v6352_v39 = vor.u32 %v7816_v25, %v6351_v20  ;;  %v6480_v44 = vor.u32 %v7848_v38, %v6479_v35  ;;  %v7812_v55 = vld [vmem:[#allocation3 + $0x8a4] sm:$0xf0]  ;;  %v6328_v35 = vor.u32 %v7810_v2, %v8533_v1  ;;  %v6383_v38 = vld [vmem:[#allocation3 + $0x900] sm:$0xf]  ;;  %v6305_v1 = vld [vmem:[#allocation3 + $0x868] sm:$0xf0] }
 0x11b   : > { %2866 = vmatpush.bf16.msra.mxu1 %v6376_v56  ;;  %2409 = vmatmul.bf16.vlgmr.msrb.gmra.mxu2 %v8503_v34  ;;  %v7800_v34 = vld [vmem:[#allocation3 + $0x844] sm:$0xf0]  ;;  %v6472_v56 = vor.u32 %v7846_v54, %v6471_v48  ;;  %v6377_v48 = vld [vmem:[#allocation3 + $0x8f8] sm:$0xf0]  ;;  %v7837_v54 = vld [vmem:[#allocation3 + $0x974] sm:$0xf] }
 0x11c   : > { %2879 = vmatpush.bf16.msra.mxu2 %v6440_v57  ;;  %2422 = vmatmul.bf16.vlgmr.msrb.gmra.mxu3 %v8505_v26  ;;  %v7832_v26 = vld [vmem:[#allocation3 + $0x944] sm:$0xf0]  ;;  %v6288_v36 = vor.u32 %v7800_v34, %v6287_v18  ;;  %v7842_v18 = vld [vmem:[#allocation3 + $0x994] sm:$0xf0]  ;;  %v6255_v34 = vld [vmem:[#allocation3 + $0x800] sm:$0xf] }
 0x11d   : > { %2892 = vmatpush.bf16.msra.mxu3 %v6504_v62  ;;  %v6416_v40 = vor.u32 %v7832_v26, %v6415_v27  ;;  %v7844_v62 = vld [vmem:[#allocation3 + $0x9a4] sm:$0xf0]  ;;  %v6264_v26 = vor.u32 %v7794_v0, %v6263_v63  ;;  %v6456_v43 = vor.u32 %v7842_v18, %v6455_v15  ;;  %v7803_v0 = vld [vmem:[#allocation3 + $0x864] sm:$0xf]  ;;  %v6361_v18 = vld [vmem:[#allocation3 + $0x8d8] sm:$0xf0] }
 0x11e   : > { %2854 = vmatpush.bf16.msra.mxu0 %v6304_v4  ;;  %v1388_v52 = vpop.f32.mrf.mxu2  ;;  %v8537_v4 = vld.sshfl [vmem:[#allocation1 + $0x18] sm:$0xff pattern:$0x73625140]  ;;  %v1364_v32 = vpop.f32.mrf.mxu0  ;;  %v7792_v20 = vld [vmem:[#allocation3 + $0x804] sm:$0xf0] }
 0x11f   : > { %2867 = vmatpush.bf16.msra.mxu1 %v6368_v5  ;;  %v1389_v57 = vadd.f32 %v1388_v52, %v1376_v46  ;;  %v1401_v58 = vpop.f32.mrf.mxu3  ;;  %v1377_v10 = vpop.f32.mrf.mxu1  ;;  %3030 = vst [vmem:[#allocation1] ss:$4 sm:$0xff] %v8461_v29  ;;  %v7808_v25 = vld [vmem:[#allocation3 + $0x884] sm:$0xf0]  ;;  %v2519_v29 = vshll.u32 %v8535_v3, 16  ;;  %v2525_v45 = vshll.u32 %v8537_v4, 16  ;;  %v6256_v47 = vor.u32 %v7792_v20, %v6255_v34 }
 0x120   : > { %2880 = vmatpush.bf16.msra.mxu2 %v6432_v19  ;;  %v6272_v19 = vor.u32 %v7796_v51, %v6271_v50  ;;  %v7821_v46 = vld [vmem:[#allocation3 + $0x8f4] sm:$0xf]  ;;  %v6441_v51 = vld [vmem:[#allocation3 + $0x978] sm:$0xf0]  ;;  %v7819_v2 = vld [vmem:[#allocation3 + $0x8e4] sm:$0xf] }
 0x121   : > { %2893 = vmatpush.bf16.msra.mxu3 %v6496_v59  ;;  %v1402_v5 = vadd.f32 %v1401_v58, %v1389_v57  ;;  %v6336_v59 = vor.u32 %v7812_v55, %v6335_v53  ;;  %v2521_v52 = vrot.slane %v2519_v29, 1  ;;  %v6505_v53 = vld [vmem:[#allocation3 + $0x9f8] sm:$0xf0]  ;;  %v2523_v55 = vshrl.u32 %v8537_v4, 16  ;;  %v6433_v4 = vld [vmem:[#allocation3 + $0x968] sm:$0xf0] }
 0x122   : > { %2855 = vmatpush.bf16.msra.mxu0 %v6296_v14  ;;  %v882_v14 = vld [vmem:[#allocation2] sm:$0xf]  ;;  %v2527_v31 = vrot.slane %v2525_v45, 1  ;;  %v6444_v63 = vor.u32 %v7837_v54, %v6441_v51  ;;  %v7851_v32 = vld [vmem:[#allocation3 + $0x9e4] sm:$0xf] }
 0x123   : > { %2868 = vmatpush.bf16.msra.mxu1 %v6360_v16  ;;  %v1407_v16 = vrot.slane %v1402_v5, 6  ;;  %v6369_v5 = vld [vmem:[#allocation3 + $0x8e8] sm:$0xf0]  ;;  %v7833_v34 = vld [vmem:[#allocation3 + $0x954] sm:$0xf] }
 0x124   : > { %2881 = vmatpush.bf16.msra.mxu2 %v6424_v17  ;;  %v6464_v17 = vor.u32 %v7844_v62, %v6463_v61  ;;  %v2515_v61 = vrot.slane %v2513_v30, 1  ;;  %v6380_v62 = vor.u32 %v7821_v46, %v6377_v48  ;;  %v6372_v15 = vor.u32 %v7819_v2, %v6369_v5  ;;  %v6425_v20 = vld [vmem:[#allocation3 + $0x958] sm:$0xf0]  ;;  %v7815_v29 = vld [vmem:[#allocation3 + $0x8c4] sm:$0xf] }
 0x125   : > { %2894 = vmatpush.bf16.msra.mxu3 %v6488_v21  ;;  %v6319_v21 = vld [vmem:[#allocation3 + $0x880] sm:$0xf]  ;;  %v1408_v27 = vsel %vm877_vm0, %v1350_v11, %v1407_v16  ;;  %v7801_v11 = vld [vmem:[#allocation3 + $0x854] sm:$0xf]  ;;  %v6345_v54 = vld [vmem:[#allocation3 + $0x8b8] sm:$0xf0] }
 0x126   : > { %2856 = vmatpush.bf16.msra.mxu0 %v6288_v36  ;;  %v7824_v36 = vld [vmem:[#allocation3 + $0x904] sm:$0xf0]  ;;  %v1410_v12 = vadd.f32 %v1408_v27, %v882_v14  ;;  %v1390_v42 = vpop.f32.mrf.mxu2  ;;  %v8561_v8 = vor.u32 %v2515_v61, %v2511_v60  ;;  %v6297_v14 = vld [vmem:[#allocation3 + $0x858] sm:$0xf0]  ;;  %v7817_v16 = vld [vmem:[#allocation3 + $0x8d4] sm:$0xf] }
 0x127   : > { %2869 = vmatpush.bf16.msra.mxu1 %v6352_v39  ;;  %v6447_v39 = vld [vmem:[#allocation3 + $0x980] sm:$0xf]  ;;  %v1403_v22 = vpop.f32.mrf.mxu3  ;;  %v6384_v50 = vor.u32 %v7824_v36, %v6383_v38  ;;  %v6300_v27 = vor.u32 %v7801_v11, %v6297_v14  ;;  %v7799_v38 = vld [vmem:[#allocation3 + $0x844] sm:$0xf]  ;;  %v6289_v36 = vld [vmem:[#allocation3 + $0x848] sm:$0xf0] }
 0x128   : > { %2882 = vmatpush.bf16.msra.mxu2 %v6416_v40  ;;  %v7840_v40 = vld [vmem:[#allocation3 + $0x984] sm:$0xf0]  ;;  %1411 = vst [vmem:[#allocation2] sm:$0xf] %v1410_v12  ;;  %v6481_v42 = vld [vmem:[#allocation3 + $0x9c8] sm:$0xf0]  ;;  %v6292_v45 = vor.u32 %v7799_v38, %v6289_v36 }
 0x129   : > { %2895 = vmatpush.bf16.msra.mxu3 %v6480_v44  ;;  %v6313_v44 = vld [vmem:[#allocation3 + $0x878] sm:$0xf0]  ;;  %v6448_v57 = vor.u32 %v7840_v40, %v6447_v39  ;;  %v7831_v39 = vld [vmem:[#allocation3 + $0x944] sm:$0xf]  ;;  %v6417_v40 = vld [vmem:[#allocation3 + $0x948] sm:$0xf0] }
 0x12a   : > { %2857 = vmatpush.bf16.msra.mxu0 %v6280_v23  ;;  %v6320_v23 = vor.u32 %v7808_v25, %v6319_v21  ;;  %v6316_v58 = vor.u32 %v7805_v41, %v6313_v44  ;;  %v7849_v21 = vld [vmem:[#allocation3 + $0x9d4] sm:$0xf]  ;;  %v6489_v25 = vld [vmem:[#allocation3 + $0x9d8] sm:$0xf0]  ;;  %v7847_v41 = vld [vmem:[#allocation3 + $0x9c4] sm:$0xf]  ;;  %v6420_v44 = vor.u32 %v7831_v39, %v6417_v40 }
 0x12b   : > { %2870 = vmatpush.bf16.msra.mxu1 %v6344_v49  ;;  %v7853_v49 = vld [vmem:[#allocation3 + $0x9f4] sm:$0xf]  ;;  %v6492_v12 = vor.u32 %v7849_v21, %v6489_v25  ;;  %v6281_v22 = vld [vmem:[#allocation3 + $0x838] sm:$0xf0]  ;;  %v6484_v48 = vor.u32 %v7847_v41, %v6481_v42  ;;  %v7827_v60 = vld [vmem:[#allocation3 + $0x924] sm:$0xf] }
 0x12c   : > { %2883 = vmatpush.bf16.msra.mxu2 %v6408_v28  ;;  %v2517_v28 = vshrl.u32 %v8535_v3, 16  ;;  %v6508_v3 = vor.u32 %v7853_v49, %v6505_v53  ;;  %v7797_v46 = vld [vmem:[#allocation3 + $0x834] sm:$0xf]  ;;  %v6473_v49 = vld [vmem:[#allocation3 + $0x9b8] sm:$0xf0] }
 0x12d   : > { %2896 = vmatpush.bf16.msra.mxu3 %v6472_v56  ;;  %v2509_v56 = vrot.slane %v2507_v24, 1  ;;  %v7813_v30 = vld [vmem:[#allocation3 + $0x8b4] sm:$0xf]  ;;  %v6401_v61 = vld [vmem:[#allocation3 + $0x928] sm:$0xf0] }
 0x12e   : > { %2858 = vmatpush.bf16.msra.mxu0 %v6272_v19  ;;  %v7835_v19 = vld [vmem:[#allocation3 + $0x964] sm:$0xf]  ;;  %v8555_v9 = vor.u32 %v2521_v52, %v2517_v28  ;;  %v7845_v51 = vld [vmem:[#allocation3 + $0x9b4] sm:$0xf]  ;;  %v6284_v28 = vor.u32 %v7797_v46, %v6281_v22  ;;  %v6348_v52 = vor.u32 %v7813_v30, %v6345_v54  ;;  %v6404_v5 = vor.u32 %v7827_v60, %v6401_v61  ;;  %v6393_v11 = vld [vmem:[#allocation3 + $0x918] sm:$0xf0] }
 0x12f   : > { %2871 = vmatpush.bf16.msra.mxu1 %v6336_v59  ;;  %v8557_v59 = vor.u32 %v2527_v31, %v2523_v55  ;;  %v8559_v6 = vor.u32 %v2509_v56, %v2505_v33  ;;  %v6436_v10 = vor.u32 %v7835_v19, %v6433_v4  ;;  %v7795_v55 = vld [vmem:[#allocation3 + $0x824] sm:$0xf]  ;;  %v6273_v31 = vld [vmem:[#allocation3 + $0x828] sm:$0xf0]  ;;  %v7793_v19 = vld [vmem:[#allocation3 + $0x814] sm:$0xf] }
 0x130   : > { %2884 = vmatpush.bf16.msra.mxu2 %v6400_v7  ;;  %v6308_v7 = vor.u32 %v7803_v0, %v6305_v1  ;;  %v7811_v33 = vld [vmem:[#allocation3 + $0x8a4] sm:$0xf]  ;;  %v6465_v0 = vld [vmem:[#allocation3 + $0x9a8] sm:$0xf0]  ;;  %v6276_v1 = vor.u32 %v7795_v55, %v6273_v31  ;;  %v6265_v4 = vld [vmem:[#allocation3 + $0x818] sm:$0xf0] }
 0x131   : > { %2897 = vmatpush.bf16.msra.mxu3 %v6464_v17  ;;  %v6500_v17 = vor.u32 %v7851_v32, %v6497_v13  ;;  %v7809_v32 = vld [vmem:[#allocation3 + $0x894] sm:$0xf]  ;;  %v7807_v25 = vld [vmem:[#allocation3 + $0x884] sm:$0xf]  ;;  %v6385_v36 = vld [vmem:[#allocation3 + $0x908] sm:$0xf0] }
 0x132   : > { %2859 = vmatpush.bf16.msra.mxu0 %v6264_v26  ;;  %v6364_v26 = vor.u32 %v7817_v16, %v6361_v18  ;;  %v7841_v14 = vld [vmem:[#allocation3 + $0x994] sm:$0xf]  ;;  %v6457_v16 = vld [vmem:[#allocation3 + $0x998] sm:$0xf0]  ;;  %v7791_v18 = vld [vmem:[#allocation3 + $0x804] sm:$0xf] }
 0x133   : > { %2872 = vmatpush.bf16.msra.mxu1 %v6328_v35  ;;  %v6428_v35 = vor.u32 %v7833_v34, %v6425_v20  ;;  %v6257_v34 = vld [vmem:[#allocation3 + $0x808] sm:$0xf0]  ;;  %v6460_v38 = vor.u32 %v7841_v14, %v6457_v16  ;;  %v6567_v39 = vld [vmem:[#allocation3 + $0xa70] sm:$0xf]  ;;  %v7870_v40 = vld [vmem:[#allocation3 + $0xa74] sm:$0xf0] }
 0x134   : > { %2885 = vmatpush.bf16.msra.mxu2 %v6392_v37  ;;  %v6353_v37 = vld [vmem:[#allocation3 + $0x8c8] sm:$0xf0]  ;;  %v6631_v41 = vld [vmem:[#allocation3 + $0xaf0] sm:$0xf]  ;;  %v6260_v42 = vor.u32 %v7791_v18, %v6257_v34  ;;  %v7884_v55 = vld [vmem:[#allocation3 + $0xae4] sm:$0xf0] }
 0x135   : > { %2898 = vmatpush.bf16.msra.mxu3 %v6456_v43  ;;  %v6356_v43 = vor.u32 %v7815_v29, %v6353_v37  ;;  %v7839_v29 = vld [vmem:[#allocation3 + $0x984] sm:$0xf]  ;;  %v6759_v30 = vld [vmem:[#allocation3 + $0xbf0] sm:$0xf]  ;;  %v6687_v31 = vld [vmem:[#allocation3 + $0xb60] sm:$0xf] }
 0x136   : > { %2860 = vmatpush.bf16.msra.mxu0 %v6256_v47  ;;  %v8567_v24 = vpop.f32.mrf.mxu0  ;;  %v6607_v14 = vld [vmem:[#allocation3 + $0xac0] sm:$0xf]  ;;  %v7880_v16 = vld [vmem:[#allocation3 + $0xac4] sm:$0xf0] }
 0x137   : > { %2873 = vmatpush.bf16.msra.mxu1 %v6320_v23  ;;  %v8569_v47 = vpop.f32.mrf.mxu1  ;;  %v7829_v23 = vld [vmem:[#allocation3 + $0x934] sm:$0xf]  ;;  %v6735_v18 = vld [vmem:[#allocation3 + $0xbc0] sm:$0xf]  ;;  %v7912_v34 = vld [vmem:[#allocation3 + $0xbc4] sm:$0xf0] }
 0x138   : > { %2886 = vmatpush.bf16.msra.mxu2 %v6384_v50  ;;  %v6409_v50 = vld [vmem:[#allocation3 + $0x938] sm:$0xf0] }
 0x139   : > { %2899 = vmatpush.bf16.msra.mxu3 %v6448_v57  ;;  %2861 = vmatmul.bf16.vlgmr.msra.gmra.mxu0 %v8559_v6  ;;  %v6412_v53 = vor.u32 %v7829_v23, %v6409_v50  ;;  %v6476_v57 = vor.u32 %v7845_v51, %v6473_v49  ;;  %v6568_v23 = vor.u32 %v7870_v40, %v6567_v39  ;;  %v6559_v49 = vld [vmem:[#allocation3 + $0xa60] sm:$0xf]  ;;  %v6663_v39 = vld [vmem:[#allocation3 + $0xb30] sm:$0xf]  ;;  %v7894_v40 = vld [vmem:[#allocation3 + $0xb34] sm:$0xf0] }
 0x13a   : > { %2905 = vmatpush.bf16.msrb.mxu0 %v6316_v58  ;;  %2874 = vmatmul.bf16.vlgmr.msra.gmra.mxu1 %v8561_v8  ;;  %v6337_v58 = vld [vmem:[#allocation3 + $0x8a8] sm:$0xf0] }
 0x13b   : > { %2918 = vmatpush.bf16.msrb.mxu1 %v6380_v62  ;;  %2887 = vmatmul.bf16.vlgmr.msra.gmra.mxu2 %v8555_v9 }
 0x13c   : > { %2931 = vmatpush.bf16.msrb.mxu2 %v6444_v63  ;;  %2900 = vmatmul.bf16.vlgmr.msra.gmra.mxu3 %v8557_v59  ;;  %v7843_v63 = vld [vmem:[#allocation3 + $0x9a4] sm:$0xf] }
 0x13d   : > { %2944 = vmatpush.bf16.msrb.mxu3 %v6508_v3  ;;  %v6340_v3 = vor.u32 %v7811_v33, %v6337_v58  ;;  %v7900_v33 = vld [vmem:[#allocation3 + $0xb64] sm:$0xf0] }
 0x13e   : > { %2906 = vmatpush.bf16.msrb.mxu0 %v6308_v7  ;;  %v8571_v56 = vpop.f32.mrf.mxu2  ;;  %v1826_v2 = vpop.f32.mrf.mxu0  ;;  %v6468_v7 = vor.u32 %v7843_v63, %v6465_v0  ;;  %v7916_v58 = vld [vmem:[#allocation3 + $0xbe4] sm:$0xf0]  ;;  %v6688_v63 = vor.u32 %v7900_v33, %v6687_v31  ;;  %v6551_v0 = vld [vmem:[#allocation3 + $0xa50] sm:$0xf]  ;;  %v7858_v31 = vld [vmem:[#allocation3 + $0xa14] sm:$0xf0] }
 0x13f   : > { %2919 = vmatpush.bf16.msrb.mxu1 %v6372_v15  ;;  %v8573_v62 = vpop.f32.mrf.mxu3  ;;  %v1839_v13 = vpop.f32.mrf.mxu1  ;;  %v6329_v15 = vld [vmem:[#allocation3 + $0x898] sm:$0xf0]  ;;  %v6615_v2 = vld [vmem:[#allocation3 + $0xad0] sm:$0xf] }
 0x140   : > { %2932 = vmatpush.bf16.msrb.mxu2 %v6436_v10  ;;  %v7825_v10 = vld [vmem:[#allocation3 + $0x914] sm:$0xf]  ;;  %v6332_v20 = vor.u32 %v7809_v32, %v6329_v15  ;;  %v6743_v32 = vld [vmem:[#allocation3 + $0xbd0] sm:$0xf]  ;;  %v7914_v13 = vld [vmem:[#allocation3 + $0xbd4] sm:$0xf0] }
 0x141   : > { %2945 = vmatpush.bf16.msrb.mxu3 %v6500_v17  ;;  %v6268_v17 = vor.u32 %v7793_v19, %v6265_v4  ;;  %v6396_v21 = vor.u32 %v7825_v10, %v6393_v11  ;;  %v6679_v19 = vld [vmem:[#allocation3 + $0xb50] sm:$0xf]  ;;  %v7898_v4 = vld [vmem:[#allocation3 + $0xb54] sm:$0xf0]  ;;  %v6543_v10 = vld [vmem:[#allocation3 + $0xa40] sm:$0xf] }
 0x142   : > { %2907 = vmatpush.bf16.msrb.mxu0 %v6300_v27  ;;  %v6321_v27 = vld [vmem:[#allocation3 + $0x888] sm:$0xf0]  ;;  %v6680_v15 = vor.u32 %v7898_v4, %v6679_v19  ;;  %v7864_v11 = vld [vmem:[#allocation3 + $0xa44] sm:$0xf0] }
 0x143   : > { %2920 = vmatpush.bf16.msrb.mxu1 %v6364_v26  ;;  %v7823_v26 = vld [vmem:[#allocation3 + $0x904] sm:$0xf]  ;;  %v6324_v46 = vor.u32 %v7807_v25, %v6321_v27  ;;  %v8611_v19 = vld.sshfl [vmem:[#allocation1 + $0x8] sm:$0xff pattern:$0x73625140] }
 0x144   : > { %2933 = vmatpush.bf16.msrb.mxu2 %v6428_v35  ;;  %v6388_v22 = vor.u32 %v7823_v26, %v6385_v36  ;;  %v6535_v26 = vld [vmem:[#allocation3 + $0xa30] sm:$0xf]  ;;  %v1838_v36 = vadd.f32 %v8569_v47, %v8567_v24  ;;  %v6591_v24 = vld [vmem:[#allocation3 + $0xaa0] sm:$0xf]  ;;  %v7876_v47 = vld [vmem:[#allocation3 + $0xaa4] sm:$0xf0] }
 0x145   : > { %2946 = vmatpush.bf16.msrb.mxu3 %v6492_v12  ;;  %v6449_v12 = vld [vmem:[#allocation3 + $0x988] sm:$0xf0] }
 0x146   : > { %2908 = vmatpush.bf16.msrb.mxu0 %v6292_v45  ;;  %v1852_v35 = vpop.f32.mrf.mxu2  ;;  %v7886_v45 = vld [vmem:[#allocation3 + $0xaf4] sm:$0xf0]  ;;  %v6452_v54 = vor.u32 %v7839_v29, %v6449_v12  ;;  %v6736_v29 = vor.u32 %v7912_v34, %v6735_v18  ;;  %v7872_v34 = vld [vmem:[#allocation3 + $0xa84] sm:$0xf0] }
 0x147   : > { %2921 = vmatpush.bf16.msrb.mxu1 %v6356_v43  ;;  %v1865_v37 = vpop.f32.mrf.mxu3  ;;  %v6695_v43 = vld [vmem:[#allocation3 + $0xb70] sm:$0xf]  ;;  %v6632_v50 = vor.u32 %v7886_v45, %v6631_v41  ;;  %v7862_v35 = vld [vmem:[#allocation3 + $0xa34] sm:$0xf0] }
 0x148   : > { %2934 = vmatpush.bf16.msrb.mxu2 %v6420_v44  ;;  %v7902_v44 = vld [vmem:[#allocation3 + $0xb74] sm:$0xf0]  ;;  %v6727_v41 = vld [vmem:[#allocation3 + $0xbb0] sm:$0xf]  ;;  %v6536_v45 = vor.u32 %v7862_v35, %v6535_v26  ;;  %v7904_v26 = vld [vmem:[#allocation3 + $0xb84] sm:$0xf0] }
 0x149   : > { %2947 = vmatpush.bf16.msrb.mxu3 %v6484_v48  ;;  %v7918_v48 = vld [vmem:[#allocation3 + $0xbf4] sm:$0xf0]  ;;  %v6696_v51 = vor.u32 %v7902_v44, %v6695_v43  ;;  %v6527_v43 = vld [vmem:[#allocation3 + $0xa20] sm:$0xf]  ;;  %v7869_v35 = vld [vmem:[#allocation3 + $0xa74] sm:$0xf] }
 0x14a   : > { %2909 = vmatpush.bf16.msrb.mxu0 %v6284_v28  ;;  %v7868_v28 = vld [vmem:[#allocation3 + $0xa64] sm:$0xf0]  ;;  %v7878_v37 = vld [vmem:[#allocation3 + $0xab4] sm:$0xf0] }
 0x14b   : > { %2922 = vmatpush.bf16.msrb.mxu1 %v6348_v52  ;;  %v6623_v52 = vld [vmem:[#allocation3 + $0xae0] sm:$0xf]  ;;  %v6560_v60 = vor.u32 %v7868_v28, %v6559_v49  ;;  %v8602_v44 = vld [vmem:[%s363_s27] sm:$0xff]  ;;  %v7892_v28 = vld [vmem:[#allocation3 + $0xb24] sm:$0xf0] }
 0x14c   : > { %2935 = vmatpush.bf16.msrb.mxu2 %v6412_v53  ;;  %v6760_v53 = vor.u32 %v7918_v48, %v6759_v30  ;;  %v6624_v61 = vor.u32 %v7884_v55, %v6623_v52  ;;  %v7860_v48 = vld [vmem:[#allocation3 + $0xa24] sm:$0xf0]  ;;  %v6655_v49 = vld [vmem:[#allocation3 + $0xb20] sm:$0xf]  ;;  %v6519_v55 = vld [vmem:[#allocation3 + $0xa10] sm:$0xf] }
 0x14d   : > { %2948 = vmatpush.bf16.msrb.mxu3 %v6476_v57  ;;  %v6751_v57 = vld [vmem:[#allocation3 + $0xbe0] sm:$0xf] }
 0x14e   : > { %2910 = vmatpush.bf16.msrb.mxu0 %v6276_v1  ;;  %v7866_v1 = vld [vmem:[#allocation3 + $0xa54] sm:$0xf0]  ;;  %v6719_v52 = vld [vmem:[#allocation3 + $0xba0] sm:$0xf] }
 0x14f   : > { %2923 = vmatpush.bf16.msrb.mxu1 %v6340_v3  ;;  %v6752_v3 = vor.u32 %v7916_v58, %v6751_v57  ;;  %v6528_v57 = vor.u32 %v7860_v48, %v6527_v43  ;;  %v6583_v58 = vld [vmem:[#allocation3 + $0xa90] sm:$0xf]  ;;  %v6761_v43 = vld [vmem:[#allocation3 + $0xbf8] sm:$0xf0] }
 0x150   : > { %2936 = vmatpush.bf16.msrb.mxu2 %v6404_v5  ;;  %v7882_v5 = vld [vmem:[#allocation3 + $0xad4] sm:$0xf0] }
 0x151   : > { %2949 = vmatpush.bf16.msrb.mxu3 %v6468_v7  ;;  %v6552_v7 = vor.u32 %v7866_v1, %v6551_v0  ;;  %v8605_v0 = vld.sshfl [vmem:[#allocation1 + $0x10] sm:$0xff pattern:$0x73625140]  ;;  %v6592_v1 = vor.u32 %v7876_v47, %v6591_v24  ;;  %v6561_v47 = vld [vmem:[#allocation3 + $0xa68] sm:$0xf0] }
 0x152   : > { %2911 = vmatpush.bf16.msrb.mxu0 %v6268_v17  ;;  %v7896_v17 = vld [vmem:[#allocation3 + $0xb44] sm:$0xf0] }
 0x153   : > { %2924 = vmatpush.bf16.msrb.mxu1 %v6332_v20  ;;  %v6544_v20 = vor.u32 %v7864_v11, %v6543_v10  ;;  %v7906_v10 = vld [vmem:[#allocation3 + $0xb94] sm:$0xf0] }
 0x154   : > { %2937 = vmatpush.bf16.msrb.mxu2 %v6396_v21 }
 0x155   : > { %2950 = vmatpush.bf16.msrb.mxu3 %v6460_v38  ;;  %v6599_v38 = vld [vmem:[#allocation3 + $0xab0] sm:$0xf] }
 0x156   : > { %2912 = vmatpush.bf16.msrb.mxu0 %v6260_v42  ;;  %v1876_v21 = vpop.f32.mrf.mxu0  ;;  %v7910_v42 = vld [vmem:[#allocation3 + $0xbb4] sm:$0xf0] }
 0x157   : > { %2925 = vmatpush.bf16.msrb.mxu1 %v6324_v46  ;;  %v1889_v27 = vpop.f32.mrf.mxu1  ;;  %v6600_v46 = vor.u32 %v7878_v37, %v6599_v38  ;;  %v6633_v37 = vld [vmem:[#allocation3 + $0xaf8] sm:$0xf0] }
 0x158   : > { %2938 = vmatpush.bf16.msrb.mxu2 %v6388_v22  ;;  %v1890_v12 = vadd.f32 %v1889_v27, %v1876_v21  ;;  %v6664_v22 = vor.u32 %v7894_v40, %v6663_v39  ;;  %v7888_v21 = vld [vmem:[#allocation3 + $0xb04] sm:$0xf0]  ;;  %v6703_v27 = vld [vmem:[#allocation3 + $0xb80] sm:$0xf]  ;;  %v7901_v39 = vld [vmem:[#allocation3 + $0xb74] sm:$0xf] }
 0x159   : > { %2951 = vmatpush.bf16.msrb.mxu3 %v6452_v54  ;;  %2913 = vmatmul.bf16.vlgmr.msrb.gmra.mxu0 %v8559_v6  ;;  %v6671_v6 = vld [vmem:[#allocation3 + $0xb40] sm:$0xf]  ;;  %v1851_v54 = vadd.f32 %v8571_v56, %v1838_v36  ;;  %v8607_v56 = vld.sshfl [vmem:[#allocation1 + $0x18] sm:$0xff pattern:$0x73625140] }
 0x15a   : > { %3367 = vmatpush.bf16.msra.mxu0 %v6568_v23  ;;  %2926 = vmatmul.bf16.vlgmr.msrb.gmra.mxu1 %v8561_v8  ;;  %v6608_v8 = vor.u32 %v7880_v16, %v6607_v14  ;;  %v6672_v25 = vor.u32 %v7896_v17, %v6671_v6  ;;  %v6728_v23 = vor.u32 %v7910_v42, %v6727_v41  ;;  %v7856_v16 = vld [vmem:[#allocation3 + $0xa04] sm:$0xf0]  ;;  %v6575_v6 = vld [vmem:[#allocation3 + $0xa80] sm:$0xf]  ;;  %v6569_v36 = vld [vmem:[#allocation3 + $0xa78] sm:$0xf0] }
 0x15b   : > { %3380 = vmatpush.bf16.msra.mxu1 %v6632_v50  ;;  %2939 = vmatmul.bf16.vlgmr.msrb.gmra.mxu2 %v8555_v9  ;;  %v6616_v9 = vor.u32 %v7882_v5, %v6615_v2  ;;  %v6656_v2 = vor.u32 %v7892_v28, %v6655_v49  ;;  %v8609_v5 = vld.sshfl [vmem:[#allocation1] sm:$0xff pattern:$0x73625140]  ;;  %v1864_v4 = vadd.f32 %v8573_v62, %v1851_v54  ;;  %v6697_v40 = vld [vmem:[#allocation3 + $0xb78] sm:$0xf0]  ;;  %v3041_v28 = vrot.slane %v8605_v0, 1 }
 0x15c   : > { %3393 = vmatpush.bf16.msra.mxu2 %v6696_v51  ;;  %2952 = vmatmul.bf16.vlgmr.msrb.gmra.mxu3 %v8557_v59  ;;  %v6744_v59 = vor.u32 %v7914_v13, %v6743_v32  ;;  %3546 = vst [vmem:[#allocation1] ss:$4 sm:$0xff] %v8602_v44  ;;  %v6520_v14 = vor.u32 %v7858_v31, %v6519_v55  ;;  %v7883_v54 = vld [vmem:[#allocation3 + $0xae4] sm:$0xf]  ;;  %v6689_v49 = vld [vmem:[#allocation3 + $0xb68] sm:$0xf0] }
 0x15d   : > { %3406 = vmatpush.bf16.msra.mxu3 %v6760_v53  ;;  %v7908_v53 = vld [vmem:[#allocation3 + $0xba4] sm:$0xf0]  ;;  %v6576_v41 = vor.u32 %v7872_v34, %v6575_v6  ;;  %v6700_v24 = vor.u32 %v7901_v39, %v6697_v40  ;;  %v3042_v55 = vrot.slane %v8607_v56, 1  ;;  %v3039_v31 = vrot.slane %v8609_v5, 1  ;;  %v6609_v6 = vld [vmem:[#allocation3 + $0xac8] sm:$0xf0] }
 0x15e   : > { %3368 = vmatpush.bf16.msra.mxu0 %v6560_v60  ;;  %v1902_v30 = vpop.f32.mrf.mxu2  ;;  %v7874_v60 = vld [vmem:[#allocation3 + $0xa94] sm:$0xf0]  ;;  %v6720_v13 = vor.u32 %v7908_v53, %v6719_v52  ;;  %v7915_v52 = vld [vmem:[#allocation3 + $0xbe4] sm:$0xf]  ;;  %v6753_v53 = vld [vmem:[#allocation3 + $0xbe8] sm:$0xf0] }
 0x15f   : > { %3381 = vmatpush.bf16.msra.mxu1 %v6624_v61  ;;  %v1903_v50 = vadd.f32 %v1902_v30, %v1890_v12  ;;  %v1915_v51 = vpop.f32.mrf.mxu3  ;;  %v6647_v61 = vld [vmem:[#allocation3 + $0xb10] sm:$0xf]  ;;  %v6584_v62 = vor.u32 %v7874_v60, %v6583_v58  ;;  %v7867_v30 = vld [vmem:[#allocation3 + $0xa64] sm:$0xf]  ;;  %v6737_v34 = vld [vmem:[#allocation3 + $0xbc8] sm:$0xf0] }
 0x160   : > { %3394 = vmatpush.bf16.msra.mxu2 %v6688_v63  ;;  %v1878_v63 = vpop.f32.mrf.mxu0  ;;  %v7909_v39 = vld [vmem:[#allocation3 + $0xbb4] sm:$0xf]  ;;  %v6729_v40 = vld [vmem:[#allocation3 + $0xbb8] sm:$0xf0]  ;;  %v7960_v5 = vld [vmem:[#allocation3 + $0xd44] sm:$0xf0] }
 0x161   : > { %3407 = vmatpush.bf16.msra.mxu3 %v6752_v3  ;;  %v1916_v33 = vadd.f32 %v1915_v51, %v1903_v50  ;;  %v1891_v3 = vpop.f32.mrf.mxu1  ;;  %v7899_v51 = vld [vmem:[#allocation3 + $0xb64] sm:$0xf]  ;;  %v6553_v63 = vld [vmem:[#allocation3 + $0xa58] sm:$0xf0] }
 0x162   : > { %3369 = vmatpush.bf16.msra.mxu0 %v6552_v7  ;;  %v7890_v7 = vld [vmem:[#allocation3 + $0xb14] sm:$0xf0]  ;;  %v6692_v60 = vor.u32 %v7899_v51, %v6689_v49  ;;  %v6617_v3 = vld [vmem:[#allocation3 + $0xad8] sm:$0xf0]  ;;  %v6721_v51 = vld [vmem:[#allocation3 + $0xba8] sm:$0xf0] }
 0x163   : > { %3382 = vmatpush.bf16.msra.mxu1 %v6616_v9  ;;  %v1921_v32 = vrot.slane %v1916_v33, 6  ;;  %v1412_v9 = vld [vmem:[#allocation2] sm:$0xf]  ;;  %v6648_v18 = vor.u32 %v7890_v7, %v6647_v61  ;;  %v6564_v33 = vor.u32 %v7867_v30, %v6561_v47  ;;  %v7865_v61 = vld [vmem:[#allocation3 + $0xa54] sm:$0xf] }
 0x164   : > { %3395 = vmatpush.bf16.msra.mxu2 %v6680_v15  ;;  %v6711_v15 = vld [vmem:[#allocation3 + $0xb90] sm:$0xf]  ;;  %v6745_v7 = vld [vmem:[#allocation3 + $0xbd8] sm:$0xf0]  ;;  %v7891_v47 = vld [vmem:[#allocation3 + $0xb24] sm:$0xf] }
 0x165   : > { %3408 = vmatpush.bf16.msra.mxu3 %v6744_v59  ;;  %v1922_v11 = vsel %vm877_vm0, %v1864_v4, %v1921_v32  ;;  %v6511_v59 = vld [vmem:[#allocation3 + $0xa00] sm:$0xf]  ;;  %v7897_v4 = vld [vmem:[#allocation3 + $0xb54] sm:$0xf]  ;;  %v6681_v32 = vld [vmem:[#allocation3 + $0xb58] sm:$0xf0] }
 0x166   : > { %3370 = vmatpush.bf16.msra.mxu0 %v6544_v20  ;;  %v1924_v17 = vadd.f32 %v1922_v11, %v1412_v9  ;;  %v6639_v20 = vld [vmem:[#allocation3 + $0xb00] sm:$0xf]  ;;  %v6512_v12 = vor.u32 %v7856_v16, %v6511_v59  ;;  %v6556_v9 = vor.u32 %v7865_v61, %v6553_v63  ;;  %v7863_v11 = vld [vmem:[#allocation3 + $0xa44] sm:$0xf]  ;;  %v7873_v61 = vld [vmem:[#allocation3 + $0xa94] sm:$0xf] }
 0x167   : > { %3383 = vmatpush.bf16.msra.mxu1 %v6608_v8  ;;  %v1904_v8 = vpop.f32.mrf.mxu2  ;;  %v1917_v38 = vpop.f32.mrf.mxu3  ;;  %v6640_v42 = vor.u32 %v7888_v21, %v6639_v20  ;;  %v7879_v59 = vld [vmem:[#allocation3 + $0xac4] sm:$0xf] }
 0x168   : > { %3396 = vmatpush.bf16.msra.mxu2 %v6672_v25  ;;  %v6712_v25 = vor.u32 %v7906_v10, %v6711_v15  ;;  %1925 = vst [vmem:[#allocation2] sm:$0xf] %v1924_v17  ;;  %v6684_v10 = vor.u32 %v7897_v4, %v6681_v32  ;;  %v7895_v17 = vld [vmem:[#allocation3 + $0xb44] sm:$0xf]  ;;  %v6612_v8 = vor.u32 %v7879_v59, %v6609_v6  ;;  %v6649_v4 = vld [vmem:[#allocation3 + $0xb18] sm:$0xf0] }
 0x169   : > { %3409 = vmatpush.bf16.msra.mxu3 %v6736_v29  ;;  %v7885_v29 = vld [vmem:[#allocation3 + $0xaf4] sm:$0xf]  ;;  %v6577_v59 = vld [vmem:[#allocation3 + $0xa88] sm:$0xf0] }
 0x16a   : > { %3371 = vmatpush.bf16.msra.mxu0 %v6536_v45  ;;  %v7917_v45 = vld [vmem:[#allocation3 + $0xbf4] sm:$0xf]  ;;  %v6636_v48 = vor.u32 %v7885_v29, %v6633_v37  ;;  %v6601_v29 = vld [vmem:[#allocation3 + $0xab8] sm:$0xf0] }
 0x16b   : > { %3384 = vmatpush.bf16.msra.mxu1 %v6600_v46  ;;  %v6704_v46 = vor.u32 %v7904_v26, %v6703_v27  ;;  %v6764_v50 = vor.u32 %v7917_v45, %v6761_v43  ;;  %v7861_v27 = vld [vmem:[#allocation3 + $0xa34] sm:$0xf]  ;;  %v6537_v26 = vld [vmem:[#allocation3 + $0xa38] sm:$0xf0]  ;;  %v7859_v43 = vld [vmem:[#allocation3 + $0xa24] sm:$0xf] }
 0x16c   : > { %3397 = vmatpush.bf16.msra.mxu2 %v6664_v22  ;;  %v6572_v22 = vor.u32 %v7869_v35, %v6569_v36  ;;  %v7877_v35 = vld [vmem:[#allocation3 + $0xab4] sm:$0xf]  ;;  %v6665_v37 = vld [vmem:[#allocation3 + $0xb38] sm:$0xf0] }
 0x16d   : > { %3410 = vmatpush.bf16.msra.mxu3 %v6728_v23  ;;  %v6625_v23 = vld [vmem:[#allocation3 + $0xae8] sm:$0xf0]  ;;  %v7905_v32 = vld [vmem:[#allocation3 + $0xb94] sm:$0xf] }
 0x16e   : > { %3372 = vmatpush.bf16.msra.mxu0 %v6528_v57  ;;  %v3040_v57 = vrot.slane %v8611_v19, 1  ;;  %v6628_v58 = vor.u32 %v7883_v54, %v6625_v23  ;;  %v6657_v54 = vld [vmem:[#allocation3 + $0xb28] sm:$0xf0] }
 0x16f   : > { %3385 = vmatpush.bf16.msra.mxu1 %v6592_v1  ;;  %v7881_v1 = vld [vmem:[#allocation3 + $0xad4] sm:$0xf] }
 0x170   : > { %3398 = vmatpush.bf16.msra.mxu2 %v6656_v2  ;;  %v6756_v2 = vor.u32 %v7915_v52, %v6753_v53  ;;  %v6620_v15 = vor.u32 %v7881_v1, %v6617_v3  ;;  %v7889_v3 = vld [vmem:[#allocation3 + $0xb14] sm:$0xf] }
 0x171   : > { %3411 = vmatpush.bf16.msra.mxu3 %v6720_v13  ;;  %v7913_v13 = vld [vmem:[#allocation3 + $0xbd4] sm:$0xf] }
 0x172   : > { %3373 = vmatpush.bf16.msra.mxu0 %v6520_v14  ;;  %v6545_v14 = vld [vmem:[#allocation3 + $0xa48] sm:$0xf0]  ;;  %v6748_v16 = vor.u32 %v7913_v13, %v6745_v7  ;;  %v6713_v13 = vld [vmem:[#allocation3 + $0xb98] sm:$0xf0] }
 0x173   : > { %3386 = vmatpush.bf16.msra.mxu1 %v6584_v62  ;;  %v6673_v62 = vld [vmem:[#allocation3 + $0xb48] sm:$0xf0]  ;;  %v6548_v20 = vor.u32 %v7863_v11, %v6545_v14  ;;  %v6652_v11 = vor.u32 %v7889_v3, %v6649_v4  ;;  %v7871_v14 = vld [vmem:[#allocation3 + $0xa84] sm:$0xf]  ;;  %v7962_v3 = vld [vmem:[#allocation3 + $0xd54] sm:$0xf0] }
 0x174   : > { %3399 = vmatpush.bf16.msra.mxu2 %v6648_v18  ;;  %v7911_v18 = vld [vmem:[#allocation3 + $0xbc4] sm:$0xf]  ;;  %v6999_v4 = vld [vmem:[#allocation3 + $0xdd0] sm:$0xf] }
 0x175   : > { %3412 = vmatpush.bf16.msra.mxu3 %v6712_v25  ;;  %v6676_v25 = vor.u32 %v7895_v17, %v6673_v62  ;;  %v6740_v36 = vor.u32 %v7911_v18, %v6737_v34  ;;  %v6716_v17 = vor.u32 %v7905_v32, %v6713_v13  ;;  %v6641_v62 = vld [vmem:[#allocation3 + $0xb08] sm:$0xf0]  ;;  %v7903_v18 = vld [vmem:[#allocation3 + $0xb84] sm:$0xf]  ;;  %v7978_v32 = vld [vmem:[#allocation3 + $0xdd4] sm:$0xf0] }
 0x176   : > { %3374 = vmatpush.bf16.msra.mxu0 %v6512_v12  ;;  %v8628_v21 = vpop.f32.mrf.mxu0  ;;  %v7893_v12 = vld [vmem:[#allocation3 + $0xb34] sm:$0xf]  ;;  %v6705_v34 = vld [vmem:[#allocation3 + $0xb88] sm:$0xf0]  ;;  %v7000_v56 = vor.u32 %v7978_v32, %v6999_v4 }
 0x177   : > { %3387 = vmatpush.bf16.msra.mxu1 %v6576_v41  ;;  %v8630_v38 = vpop.f32.mrf.mxu1  ;;  %v6540_v41 = vor.u32 %v7861_v27, %v6537_v26  ;;  %v6668_v45 = vor.u32 %v7893_v12, %v6665_v37  ;;  %v6887_v27 = vld [vmem:[#allocation3 + $0xcf0] sm:$0xf]  ;;  %v6580_v12 = vor.u32 %v7871_v14, %v6577_v59 }
 0x178   : > { %3400 = vmatpush.bf16.msra.mxu2 %v6640_v42  ;;  %v6604_v42 = vor.u32 %v7877_v35, %v6601_v29  ;;  %v7950_v35 = vld [vmem:[#allocation3 + $0xcf4] sm:$0xf0] }
 0x179   : > { %3413 = vmatpush.bf16.msra.mxu3 %v6704_v46  ;;  %3375 = vmatmul.bf16.vlgmr.msra.gmra.mxu0 %v3039_v31  ;;  %v6529_v46 = vld [vmem:[#allocation3 + $0xa28] sm:$0xf0]  ;;  %v7966_v29 = vld [vmem:[#allocation3 + $0xd74] sm:$0xf0] }
 0x17a   : > { %3419 = vmatpush.bf16.msrb.mxu0 %v6572_v22  ;;  %3388 = vmatmul.bf16.vlgmr.msra.gmra.mxu1 %v3040_v57  ;;  %v7875_v22 = vld [vmem:[#allocation3 + $0xaa4] sm:$0xf]  ;;  %v6532_v49 = vor.u32 %v7859_v43, %v6529_v46  ;;  %v6815_v46 = vld [vmem:[#allocation3 + $0xc60] sm:$0xf] }
 0x17b   : > { %3432 = vmatpush.bf16.msrb.mxu1 %v6636_v48  ;;  %3401 = vmatmul.bf16.vlgmr.msra.gmra.mxu2 %v3041_v28  ;;  %v6732_v48 = vor.u32 %v7909_v39, %v6729_v40  ;;  %v7015_v39 = vld [vmem:[#allocation3 + $0xdf0] sm:$0xf]  ;;  %v7982_v40 = vld [vmem:[#allocation3 + $0xdf4] sm:$0xf0] }
 0x17c   : > { %3445 = vmatpush.bf16.msrb.mxu2 %v6700_v24  ;;  %3414 = vmatmul.bf16.vlgmr.msra.gmra.mxu3 %v3042_v55  ;;  %v6593_v24 = vld [vmem:[#allocation3 + $0xaa8] sm:$0xf0] }
 0x17d   : > { %3458 = vmatpush.bf16.msrb.mxu3 %v6764_v50  ;;  %v7907_v50 = vld [vmem:[#allocation3 + $0xba4] sm:$0xf]  ;;  %v6596_v53 = vor.u32 %v7875_v22, %v6593_v24  ;;  %v7932_v22 = vld [vmem:[#allocation3 + $0xc64] sm:$0xf0]  ;;  %v7016_v24 = vor.u32 %v7982_v40, %v7015_v39 }
 0x17e   : > { %3420 = vmatpush.bf16.msrb.mxu0 %v6564_v33  ;;  %v8632_v30 = vpop.f32.mrf.mxu2  ;;  %v2334_v52 = vpop.f32.mrf.mxu0  ;;  %v6660_v33 = vor.u32 %v7891_v47, %v6657_v54  ;;  %v6724_v1 = vor.u32 %v7907_v50, %v6721_v51  ;;  %v7948_v47 = vld [vmem:[#allocation3 + $0xce4] sm:$0xf0]  ;;  %v6943_v54 = vld [vmem:[#allocation3 + $0xd60] sm:$0xf] }
 0x17f   : > { %3433 = vmatpush.bf16.msrb.mxu1 %v6628_v58  ;;  %v8634_v23 = vpop.f32.mrf.mxu3  ;;  %v7857_v58 = vld [vmem:[#allocation3 + $0xa14] sm:$0xf]  ;;  %v2347_v63 = vpop.f32.mrf.mxu1  ;;  %v7964_v50 = vld [vmem:[#allocation3 + $0xd64] sm:$0xf0]  ;;  %v7007_v51 = vld [vmem:[#allocation3 + $0xde0] sm:$0xf]  ;;  %v6816_v52 = vor.u32 %v7932_v22, %v6815_v46 }
 0x180   : > { %3446 = vmatpush.bf16.msrb.mxu2 %v6692_v60  ;;  %v6521_v60 = vld [vmem:[#allocation3 + $0xa18] sm:$0xf0]  ;;  %v7924_v40 = vld [vmem:[#allocation3 + $0xc24] sm:$0xf0]  ;;  %v6911_v46 = vld [vmem:[#allocation3 + $0xd20] sm:$0xf] }
 0x181   : > { %3459 = vmatpush.bf16.msrb.mxu3 %v6756_v2  ;;  %v6585_v2 = vld [vmem:[#allocation3 + $0xa98] sm:$0xf0]  ;;  %v6524_v7 = vor.u32 %v7857_v58, %v6521_v60  ;;  %v6807_v58 = vld [vmem:[#allocation3 + $0xc50] sm:$0xf]  ;;  %v7930_v60 = vld [vmem:[#allocation3 + $0xc54] sm:$0xf0] }
 0x182   : > { %3421 = vmatpush.bf16.msrb.mxu0 %v6556_v9  ;;  %v7855_v9 = vld [vmem:[#allocation3 + $0xa04] sm:$0xf]  ;;  %v6808_v13 = vor.u32 %v7930_v60, %v6807_v58  ;;  %v7956_v22 = vld [vmem:[#allocation3 + $0xd24] sm:$0xf0] }
 0x183   : > { %3434 = vmatpush.bf16.msrb.mxu1 %v6620_v15  ;;  %v6513_v15 = vld [vmem:[#allocation3 + $0xa08] sm:$0xf0]  ;;  %v8647_v58 = vld.sshfl [vmem:[#allocation1 + $0x10] sm:$0xff pattern:$0x73625140] }
 0x184   : > { %3447 = vmatpush.bf16.msrb.mxu2 %v6684_v10  ;;  %v6588_v10 = vor.u32 %v7873_v61, %v6585_v2  ;;  %v6516_v26 = vor.u32 %v7855_v9, %v6513_v15  ;;  %v6871_v61 = vld [vmem:[#allocation3 + $0xcd0] sm:$0xf]  ;;  %v7928_v9 = vld [vmem:[#allocation3 + $0xc44] sm:$0xf0]  ;;  %v6863_v15 = vld [vmem:[#allocation3 + $0xcc0] sm:$0xf] }
 0x185   : > { %3460 = vmatpush.bf16.msrb.mxu3 %v6748_v16  ;;  %v7887_v16 = vld [vmem:[#allocation3 + $0xb04] sm:$0xf]  ;;  %v6935_v2 = vld [vmem:[#allocation3 + $0xd50] sm:$0xf] }
 0x186   : > { %3422 = vmatpush.bf16.msrb.mxu0 %v6548_v20  ;;  %v2360_v6 = vpop.f32.mrf.mxu2  ;;  %v6644_v37 = vor.u32 %v7887_v16, %v6641_v62  ;;  %v6855_v62 = vld [vmem:[#allocation3 + $0xcb0] sm:$0xf] }
 0x187   : > { %3435 = vmatpush.bf16.msrb.mxu1 %v6612_v8  ;;  %v2373_v20 = vpop.f32.mrf.mxu3  ;;  %v6823_v8 = vld [vmem:[#allocation3 + $0xc70] sm:$0xf] }
 0x188   : > { %3448 = vmatpush.bf16.msrb.mxu2 %v6676_v25  ;;  %v7934_v25 = vld [vmem:[#allocation3 + $0xc74] sm:$0xf0]  ;;  %v6791_v6 = vld [vmem:[#allocation3 + $0xc30] sm:$0xf] }
 0x189   : > { %3461 = vmatpush.bf16.msrb.mxu3 %v6740_v36  ;;  %v6951_v36 = vld [vmem:[#allocation3 + $0xd70] sm:$0xf] }
 0x18a   : > { %3423 = vmatpush.bf16.msrb.mxu0 %v6540_v41  ;;  %v6708_v41 = vor.u32 %v7903_v18, %v6705_v34  ;;  %v6952_v43 = vor.u32 %v7966_v29, %v6951_v36  ;;  %v2346_v18 = vadd.f32 %v8630_v38, %v8628_v21  ;;  %v6783_v29 = vld [vmem:[#allocation3 + $0xc20] sm:$0xf] }
 0x18b   : > { %3436 = vmatpush.bf16.msrb.mxu1 %v6604_v42  ;;  %v6824_v42 = vor.u32 %v7934_v25, %v6823_v8  ;;  %v7942_v8 = vld [vmem:[#allocation3 + $0xcb4] sm:$0xf0]  ;;  %v6919_v25 = vld [vmem:[#allocation3 + $0xd30] sm:$0xf] }
 0x18c   : > { %3449 = vmatpush.bf16.msrb.mxu2 %v6668_v45  ;;  %v6888_v45 = vor.u32 %v7950_v35, %v6887_v27  ;;  %v7958_v27 = vld [vmem:[#allocation3 + $0xd34] sm:$0xf0]  ;;  %v2359_v21 = vadd.f32 %v8632_v30, %v2346_v18  ;;  %v8649_v30 = vld.sshfl [vmem:[#allocation1 + $0x18] sm:$0xff pattern:$0x73625140] }
 0x18d   : > { %3462 = vmatpush.bf16.msrb.mxu3 %v6732_v48  ;;  %v6879_v48 = vld [vmem:[#allocation3 + $0xce0] sm:$0xf]  ;;  %v7974_v35 = vld [vmem:[#allocation3 + $0xdb4] sm:$0xf0]  ;;  %v6825_v18 = vld [vmem:[#allocation3 + $0xc78] sm:$0xf0] }
 0x18e   : > { %3424 = vmatpush.bf16.msrb.mxu0 %v6532_v49  ;;  %v7980_v49 = vld [vmem:[#allocation3 + $0xde4] sm:$0xf0] }
 0x18f   : > { %3437 = vmatpush.bf16.msrb.mxu1 %v6596_v53  ;;  %v6880_v53 = vor.u32 %v7948_v47, %v6879_v48  ;;  %v7008_v63 = vor.u32 %v7980_v49, %v7007_v51  ;;  %v6975_v48 = vld [vmem:[#allocation3 + $0xda0] sm:$0xf]  ;;  %v6775_v47 = vld [vmem:[#allocation3 + $0xc10] sm:$0xf]  ;;  %v6784_v51 = vor.u32 %v7924_v40, %v6783_v29  ;;  %v7017_v29 = vld [vmem:[#allocation3 + $0xdf8] sm:$0xf0] }
 0x190   : > { %3450 = vmatpush.bf16.msrb.mxu2 %v6660_v33  ;;  %v6944_v33 = vor.u32 %v7964_v50, %v6943_v54  ;;  %v7922_v54 = vld [vmem:[#allocation3 + $0xc14] sm:$0xf0]  ;;  %v6839_v49 = vld [vmem:[#allocation3 + $0xc90] sm:$0xf] }
 0x191   : > { %3463 = vmatpush.bf16.msrb.mxu3 %v6724_v1  ;;  %v7946_v1 = vld [vmem:[#allocation3 + $0xcd4] sm:$0xf0] }
 0x192   : > { %3425 = vmatpush.bf16.msrb.mxu0 %v6524_v7  ;;  %v6872_v0 = vor.u32 %v7946_v1, %v6871_v61  ;;  %v6799_v7 = vld [vmem:[#allocation3 + $0xc40] sm:$0xf]  ;;  %v6912_v61 = vor.u32 %v7956_v22, %v6911_v46  ;;  %v8651_v1 = vld.sshfl [vmem:[#allocation1] sm:$0xff pattern:$0x73625140] }
 0x193   : > { %3438 = vmatpush.bf16.msrb.mxu1 %v6588_v10  ;;  %v6927_v10 = vld [vmem:[#allocation3 + $0xd40] sm:$0xf]  ;;  %v6800_v14 = vor.u32 %v7928_v9, %v6799_v7  ;;  %v7970_v7 = vld [vmem:[#allocation3 + $0xd94] sm:$0xf0]  ;;  %v6945_v46 = vld [vmem:[#allocation3 + $0xd68] sm:$0xf0] }
 0x194   : > { %3451 = vmatpush.bf16.msrb.mxu2 %v6652_v11  ;;  %v7976_v11 = vld [vmem:[#allocation3 + $0xdc4] sm:$0xf0]  ;;  %v7979_v22 = vld [vmem:[#allocation3 + $0xde4] sm:$0xf] }
 0x195   : > { %3464 = vmatpush.bf16.msrb.mxu3 %v6716_v17  ;;  %v7926_v17 = vld [vmem:[#allocation3 + $0xc34] sm:$0xf0] }
 0x196   : > { %3426 = vmatpush.bf16.msrb.mxu0 %v6516_v26  ;;  %v2384_v59 = vpop.f32.mrf.mxu0  ;;  %v6983_v26 = vld [vmem:[#allocation3 + $0xdb0] sm:$0xf]  ;;  %v6792_v36 = vor.u32 %v7926_v17, %v6791_v6  ;;  %v7968_v6 = vld [vmem:[#allocation3 + $0xd84] sm:$0xf0]  ;;  %v7933_v17 = vld [vmem:[#allocation3 + $0xc74] sm:$0xf] }
 0x197   : > { %3439 = vmatpush.bf16.msrb.mxu1 %v6580_v12  ;;  %v2397_v16 = vpop.f32.mrf.mxu1  ;;  %v6856_v12 = vor.u32 %v7942_v8, %v6855_v62  ;;  %v6984_v38 = vor.u32 %v7974_v35, %v6983_v26  ;;  %v6889_v8 = vld [vmem:[#allocation3 + $0xcf8] sm:$0xf0] }
 0x198   : > { %3452 = vmatpush.bf16.msrb.mxu2 %v6644_v37  ;;  %v2398_v20 = vadd.f32 %v2397_v16, %v2384_v59  ;;  %v6920_v37 = vor.u32 %v7958_v27, %v6919_v25  ;;  %v7952_v59 = vld [vmem:[#allocation3 + $0xd04] sm:$0xf0]  ;;  %v6959_v16 = vld [vmem:[#allocation3 + $0xd80] sm:$0xf]  ;;  %v7965_v25 = vld [vmem:[#allocation3 + $0xd74] sm:$0xf] }
 0x199   : > { %3465 = vmatpush.bf16.msrb.mxu3 %v6708_v41  ;;  %3427 = vmatmul.bf16.vlgmr.msrb.gmra.mxu0 %v3039_v31  ;;  %v6991_v31 = vld [vmem:[#allocation3 + $0xdc0] sm:$0xf]  ;;  %v6953_v27 = vld [vmem:[#allocation3 + $0xd78] sm:$0xf0] }
 0x19a   : > { %3875 = vmatpush.bf16.msra.mxu0 %v6824_v42  ;;  %3440 = vmatmul.bf16.vlgmr.msrb.gmra.mxu1 %v3040_v57  ;;  %v6928_v57 = vor.u32 %v7960_v5, %v6927_v10  ;;  %v6992_v34 = vor.u32 %v7976_v11, %v6991_v31  ;;  %v6847_v41 = vld [vmem:[#allocation3 + $0xca0] sm:$0xf]  ;;  %v7940_v42 = vld [vmem:[#allocation3 + $0xca4] sm:$0xf0]  ;;  %v6956_v40 = vor.u32 %v7965_v25, %v6953_v27  ;;  %v7923_v27 = vld [vmem:[#allocation3 + $0xc24] sm:$0xf] }
 0x19b   : > { %3888 = vmatpush.bf16.msra.mxu1 %v6888_v45  ;;  %3453 = vmatmul.bf16.vlgmr.msrb.gmra.mxu2 %v3041_v28  ;;  %v6936_v28 = vor.u32 %v7962_v3, %v6935_v2  ;;  %v6848_v60 = vor.u32 %v7940_v42, %v6847_v41  ;;  %v8653_v2 = vld.sshfl [vmem:[#allocation1 + $0x8] sm:$0xff pattern:$0x73625140]  ;;  %v2372_v3 = vadd.f32 %v8634_v23, %v2359_v21  ;;  %v7936_v11 = vld [vmem:[#allocation3 + $0xc84] sm:$0xf0] }
 0x19c   : > { %3901 = vmatpush.bf16.msra.mxu2 %v6952_v43  ;;  %3466 = vmatmul.bf16.vlgmr.msrb.gmra.mxu3 %v3042_v55  ;;  %v7944_v55 = vld [vmem:[#allocation3 + $0xcc4] sm:$0xf0]  ;;  %4052 = vst [vmem:[#allocation1] ss:$4 sm:$0xff] %v8602_v44  ;;  %v6831_v10 = vld [vmem:[#allocation3 + $0xc80] sm:$0xf] }
 0x19d   : > { %3914 = vmatpush.bf16.msra.mxu3 %v7016_v24  ;;  %v6864_v19 = vor.u32 %v7944_v55, %v6863_v15  ;;  %v7972_v24 = vld [vmem:[#allocation3 + $0xda4] sm:$0xf0]  ;;  %v6776_v15 = vor.u32 %v7922_v54, %v6775_v47  ;;  %v6832_v26 = vor.u32 %v7936_v11, %v6831_v10  ;;  %v7931_v41 = vld [vmem:[#allocation3 + $0xc64] sm:$0xf]  ;;  %v6817_v42 = vld [vmem:[#allocation3 + $0xc68] sm:$0xf0] }
 0x19e   : > { %3876 = vmatpush.bf16.msra.mxu0 %v6816_v52  ;;  %v2410_v39 = vpop.f32.mrf.mxu2  ;;  %v7938_v52 = vld [vmem:[#allocation3 + $0xc94] sm:$0xf0]  ;;  %v6976_v32 = vor.u32 %v7972_v24, %v6975_v48  ;;  %v7920_v55 = vld [vmem:[#allocation3 + $0xc04] sm:$0xf0]  ;;  %v7947_v21 = vld [vmem:[#allocation3 + $0xce4] sm:$0xf]  ;;  %v6820_v24 = vor.u32 %v7931_v41, %v6817_v42 }
 0x19f   : > { %3889 = vmatpush.bf16.msra.mxu1 %v6880_v53  ;;  %v2411_v45 = vadd.f32 %v2410_v39, %v2398_v20  ;;  %v2423_v43 = vpop.f32.mrf.mxu3  ;;  %v6903_v53 = vld [vmem:[#allocation3 + $0xd10] sm:$0xf]  ;;  %v6840_v23 = vor.u32 %v7938_v52, %v6839_v49  ;;  %v7009_v48 = vld [vmem:[#allocation3 + $0xde8] sm:$0xf0]  ;;  %v7945_v49 = vld [vmem:[#allocation3 + $0xcd4] sm:$0xf] }
 0x1a0   : > { %3902 = vmatpush.bf16.msra.mxu2 %v6944_v33  ;;  %v2386_v33 = vpop.f32.mrf.mxu0  ;;  %v7012_v52 = vor.u32 %v7979_v22, %v7009_v48  ;;  %v6993_v10 = vld [vmem:[#allocation3 + $0xdc8] sm:$0xf0]  ;;  %v7971_v41 = vld [vmem:[#allocation3 + $0xda4] sm:$0xf]  ;;  %v6777_v22 = vld [vmem:[#allocation3 + $0xc18] sm:$0xf0] }
 0x1a1   : > { %3915 = vmatpush.bf16.msra.mxu3 %v7008_v63  ;;  %v2424_v50 = vadd.f32 %v2423_v43, %v2411_v45  ;;  %v2399_v63 = vpop.f32.mrf.mxu1  ;;  %v6881_v45 = vld [vmem:[#allocation3 + $0xce8] sm:$0xf0]  ;;  %v7963_v43 = vld [vmem:[#allocation3 + $0xd64] sm:$0xf]  ;;  %v7961_v33 = vld [vmem:[#allocation3 + $0xd54] sm:$0xf] }
 0x1a2   : > { %3877 = vmatpush.bf16.msra.mxu0 %v6808_v13  ;;  %v7954_v13 = vld [vmem:[#allocation3 + $0xd14] sm:$0xf0]  ;;  %v6884_v47 = vor.u32 %v7947_v21, %v6881_v45  ;;  %v6948_v54 = vor.u32 %v7963_v43, %v6945_v46  ;;  %v7001_v63 = vld [vmem:[#allocation3 + $0xdd8] sm:$0xf0]  ;;  %v6977_v42 = vld [vmem:[#allocation3 + $0xda8] sm:$0xf0] }
 0x1a3   : > { %3890 = vmatpush.bf16.msra.mxu1 %v6872_v0  ;;  %v2429_v4 = vrot.slane %v2424_v50, 6  ;;  %v1927_v0 = vld [vmem:[#allocation2] sm:$0xf]  ;;  %v6904_v31 = vor.u32 %v7954_v13, %v6903_v53  ;;  %v7929_v50 = vld [vmem:[#allocation3 + $0xc54] sm:$0xf] }
 0x1a4   : > { %3903 = vmatpush.bf16.msra.mxu2 %v6936_v28  ;;  %v6967_v28 = vld [vmem:[#allocation3 + $0xd90] sm:$0xf]  ;;  %v6873_v53 = vld [vmem:[#allocation3 + $0xcd8] sm:$0xf0]  ;;  %v7927_v13 = vld [vmem:[#allocation3 + $0xc44] sm:$0xf] }
 0x1a5   : > { %3916 = vmatpush.bf16.msra.mxu3 %v7000_v56  ;;  %v2430_v9 = vsel %vm877_vm0, %v2372_v3, %v2429_v4  ;;  %v6767_v56 = vld [vmem:[#allocation3 + $0xc00] sm:$0xf]  ;;  %v6876_v4 = vor.u32 %v7945_v49, %v6873_v53  ;;  %v7921_v46 = vld [vmem:[#allocation3 + $0xc14] sm:$0xf] }
 0x1a6   : > { %3878 = vmatpush.bf16.msra.mxu0 %v6800_v14  ;;  %v2432_v5 = vadd.f32 %v2430_v9, %v1927_v0  ;;  %v6895_v14 = vld [vmem:[#allocation3 + $0xd00] sm:$0xf]  ;;  %v6768_v20 = vor.u32 %v7920_v55, %v6767_v56  ;;  %v6801_v0 = vld [vmem:[#allocation3 + $0xc48] sm:$0xf0]  ;;  %v7975_v55 = vld [vmem:[#allocation3 + $0xdc4] sm:$0xf]  ;;  %v6780_v53 = vor.u32 %v7921_v46, %v6777_v22 }
 0x1a7   : > { %3891 = vmatpush.bf16.msra.mxu1 %v6864_v19  ;;  %v2412_v19 = vpop.f32.mrf.mxu2  ;;  %v2425_v62 = vpop.f32.mrf.mxu3  ;;  %v6896_v35 = vor.u32 %v7952_v59, %v6895_v14  ;;  %v6865_v9 = vld [vmem:[#allocation3 + $0xcc8] sm:$0xf0]  ;;  %v7925_v14 = vld [vmem:[#allocation3 + $0xc34] sm:$0xf]  ;;  %v6793_v59 = vld [vmem:[#allocation3 + $0xc38] sm:$0xf0] }
 0x1a8   : > { %3904 = vmatpush.bf16.msra.mxu2 %v6928_v57  ;;  %v6968_v57 = vor.u32 %v7970_v7, %v6967_v28  ;;  %2433 = vst [vmem:[#allocation2] sm:$0xf] %v2432_v5  ;;  %v7943_v28 = vld [vmem:[#allocation3 + $0xcc4] sm:$0xf]  ;;  %v6929_v56 = vld [vmem:[#allocation3 + $0xd48] sm:$0xf0]  ;;  %v6804_v5 = vor.u32 %v7927_v13, %v6801_v0 }
 0x1a9   : > { %3917 = vmatpush.bf16.msra.mxu3 %v6992_v34  ;;  %v7949_v34 = vld [vmem:[#allocation3 + $0xcf4] sm:$0xf]  ;;  %v6921_v62 = vld [vmem:[#allocation3 + $0xd38] sm:$0xf0]  ;;  %v8010_v46 = vld [vmem:[#allocation3 + $0xed4] sm:$0xf0] }
 0x1aa   : > { %3879 = vmatpush.bf16.msra.mxu0 %v6792_v36  ;;  %v7981_v36 = vld [vmem:[#allocation3 + $0xdf4] sm:$0xf]  ;;  %v6892_v39 = vor.u32 %v7949_v34, %v6889_v8  ;;  %v6985_v34 = vld [vmem:[#allocation3 + $0xdb8] sm:$0xf0]  ;;  %v7191_v22 = vld [vmem:[#allocation3 + $0xf50] sm:$0xf] }
 0x1ab   : > { %3892 = vmatpush.bf16.msra.mxu1 %v6856_v12  ;;  %v6960_v12 = vor.u32 %v7968_v6, %v6959_v16  ;;  %v7941_v19 = vld [vmem:[#allocation3 + $0xcb4] sm:$0xf]  ;;  %v6996_v16 = vor.u32 %v7975_v55, %v6993_v10  ;;  %v6857_v6 = vld [vmem:[#allocation3 + $0xcb8] sm:$0xf0]  ;;  %v7998_v55 = vld [vmem:[#allocation3 + $0xe74] sm:$0xf0] }
 0x1ac   : > { %3905 = vmatpush.bf16.msra.mxu2 %v6920_v37  ;;  %v6828_v37 = vor.u32 %v7933_v17, %v6825_v18  ;;  %v7957_v17 = vld [vmem:[#allocation3 + $0xd34] sm:$0xf]  ;;  %v6860_v8 = vor.u32 %v7941_v19, %v6857_v6  ;;  %v7143_v10 = vld [vmem:[#allocation3 + $0xef0] sm:$0xf]  ;;  %v8046_v6 = vld [vmem:[#allocation3 + $0xff4] sm:$0xf0] }
 0x1ad   : > { %3918 = vmatpush.bf16.msra.mxu3 %v6984_v38  ;;  %v7020_v38 = vor.u32 %v7981_v36, %v7017_v29  ;;  %v7973_v18 = vld [vmem:[#allocation3 + $0xdb4] sm:$0xf]  ;;  %v6924_v25 = vor.u32 %v7957_v17, %v6921_v62 }
 0x1ae   : > { %3880 = vmatpush.bf16.msra.mxu0 %v6784_v51  ;;  %v6809_v51 = vld [vmem:[#allocation3 + $0xc58] sm:$0xf0]  ;;  %v6988_v29 = vor.u32 %v7973_v18, %v6985_v34  ;;  %v7937_v48 = vld [vmem:[#allocation3 + $0xc94] sm:$0xf] }
 0x1af   : > { %3893 = vmatpush.bf16.msra.mxu1 %v6848_v60  ;;  %v6937_v60 = vld [vmem:[#allocation3 + $0xd58] sm:$0xf0]  ;;  %v6812_v3 = vor.u32 %v7929_v50, %v6809_v51  ;;  %v7953_v50 = vld [vmem:[#allocation3 + $0xd14] sm:$0xf] }
 0x1b0   : > { %3906 = vmatpush.bf16.msra.mxu2 %v6912_v61  ;;  %v7977_v61 = vld [vmem:[#allocation3 + $0xdd4] sm:$0xf]  ;;  %v6905_v51 = vld [vmem:[#allocation3 + $0xd18] sm:$0xf0] }
 0x1b1   : > { %3919 = vmatpush.bf16.msra.mxu3 %v6976_v32  ;;  %v6940_v32 = vor.u32 %v7961_v33, %v6937_v60  ;;  %v7004_v7 = vor.u32 %v7977_v61, %v7001_v63  ;;  %v7969_v49 = vld [vmem:[#allocation3 + $0xd94] sm:$0xf]  ;;  %v7919_v33 = vld [vmem:[#allocation3 + $0xc04] sm:$0xf]  ;;  %v6769_v60 = vld [vmem:[#allocation3 + $0xc08] sm:$0xf0]  ;;  %v6908_v63 = vor.u32 %v7953_v50, %v6905_v51 }
 0x1b2   : > { %3881 = vmatpush.bf16.msra.mxu0 %v6776_v15  ;;  %v7959_v15 = vld [vmem:[#allocation3 + $0xd44] sm:$0xf] }
 0x1b3   : > { %3894 = vmatpush.bf16.msra.mxu1 %v6840_v23  ;;  %v6932_v11 = vor.u32 %v7959_v15, %v6929_v56  ;;  %v7079_v56 = vld [vmem:[#allocation3 + $0xe70] sm:$0xf] }
 0x1b4   : > { %3907 = vmatpush.bf16.msra.mxu2 %v6904_v31  ;;  %v6868_v31 = vor.u32 %v7943_v28, %v6865_v9  ;;  %v6897_v28 = vld [vmem:[#allocation3 + $0xd08] sm:$0xf0]  ;;  %v7080_v62 = vor.u32 %v7998_v55, %v7079_v56  ;;  %v8006_v56 = vld [vmem:[#allocation3 + $0xeb4] sm:$0xf0]  ;;  %v7175_v55 = vld [vmem:[#allocation3 + $0xf30] sm:$0xf] }
 0x1b5   : > { %3920 = vmatpush.bf16.msra.mxu3 %v6968_v57  ;;  %v6961_v9 = vld [vmem:[#allocation3 + $0xd88] sm:$0xf0] }
 0x1b6   : > { %3882 = vmatpush.bf16.msra.mxu0 %v6768_v20  ;;  %v8662_v23 = vpop.f32.mrf.mxu0  ;;  %v6796_v20 = vor.u32 %v7925_v14, %v6793_v59  ;;  %v8030_v14 = vld [vmem:[#allocation3 + $0xf74] sm:$0xf0] }
 0x1b7   : > { %3895 = vmatpush.bf16.msra.mxu1 %v6832_v26  ;;  %v8664_v57 = vpop.f32.mrf.mxu1  ;;  %v6785_v26 = vld [vmem:[#allocation3 + $0xc28] sm:$0xf0] }
 0x1b8   : > { %3908 = vmatpush.bf16.msra.mxu2 %v6896_v35  ;;  %v7939_v35 = vld [vmem:[#allocation3 + $0xca4] sm:$0xf]  ;;  %v6788_v21 = vor.u32 %v7923_v27, %v6785_v26  ;;  %v8012_v26 = vld [vmem:[#allocation3 + $0xee4] sm:$0xf0] }
 0x1b9   : > { %3921 = vmatpush.bf16.msra.mxu3 %v6960_v12  ;;  %3883 = vmatmul.bf16.vlgmr.msra.gmra.mxu0 %v8651_v1  ;;  %v6849_v12 = vld [vmem:[#allocation3 + $0xca8] sm:$0xf0] }
 0x1ba   : > { %3927 = vmatpush.bf16.msrb.mxu0 %v6828_v37  ;;  %3896 = vmatmul.bf16.vlgmr.msra.gmra.mxu1 %v8653_v2  ;;  %v7955_v37 = vld [vmem:[#allocation3 + $0xd24] sm:$0xf]  ;;  %v6852_v45 = vor.u32 %v7939_v35, %v6849_v12  ;;  %v7199_v35 = vld [vmem:[#allocation3 + $0xf60] sm:$0xf] }
 0x1bb   : > { %3940 = vmatpush.bf16.msrb.mxu1 %v6892_v39  ;;  %3909 = vmatmul.bf16.vlgmr.msra.gmra.mxu2 %v8647_v58  ;;  %v6913_v39 = vld [vmem:[#allocation3 + $0xd28] sm:$0xf0]  ;;  %v7263_v12 = vld [vmem:[#allocation3 + $0xfe0] sm:$0xf] }
 0x1bc   : > { %3953 = vmatpush.bf16.msrb.mxu2 %v6956_v40  ;;  %3922 = vmatmul.bf16.vlgmr.msra.gmra.mxu3 %v8649_v30  ;;  %v6916_v43 = vor.u32 %v7955_v37, %v6913_v39  ;;  %v8044_v37 = vld [vmem:[#allocation3 + $0xfe4] sm:$0xf0] }
 0x1bd   : > { %3966 = vmatpush.bf16.msrb.mxu3 %v7020_v38 }
 0x1be   : > { %3928 = vmatpush.bf16.msrb.mxu0 %v6820_v24  ;;  %v8666_v36 = vpop.f32.mrf.mxu2  ;;  %v2864_v38 = vpop.f32.mrf.mxu0 }
 0x1bf   : > { %3941 = vmatpush.bf16.msrb.mxu1 %v6884_v47  ;;  %v8668_v40 = vpop.f32.mrf.mxu3  ;;  %v2877_v24 = vpop.f32.mrf.mxu1  ;;  %v6980_v47 = vor.u32 %v7971_v41, %v6977_v42  ;;  %v7994_v38 = vld [vmem:[#allocation3 + $0xe54] sm:$0xf0] }
 0x1c0   : > { %3954 = vmatpush.bf16.msrb.mxu2 %v6948_v54  ;;  %v6841_v54 = vld [vmem:[#allocation3 + $0xc98] sm:$0xf0]  ;;  %v7255_v24 = vld [vmem:[#allocation3 + $0xfd0] sm:$0xf] }
 0x1c1   : > { %3967 = vmatpush.bf16.msrb.mxu3 %v7012_v52  ;;  %v6969_v52 = vld [vmem:[#allocation3 + $0xd98] sm:$0xf0]  ;;  %v6844_v61 = vor.u32 %v7937_v48, %v6841_v54  ;;  %v8026_v48 = vld [vmem:[#allocation3 + $0xf54] sm:$0xf0] }
 0x1c2   : > { %3929 = vmatpush.bf16.msrb.mxu0 %v6812_v3  ;;  %v7935_v3 = vld [vmem:[#allocation3 + $0xc84] sm:$0xf]  ;;  %v6972_v0 = vor.u32 %v7969_v49, %v6969_v52  ;;  %v7192_v51 = vor.u32 %v8026_v48, %v7191_v22  ;;  %v7055_v49 = vld [vmem:[#allocation3 + $0xe40] sm:$0xf]  ;;  %v8018_v22 = vld [vmem:[#allocation3 + $0xf14] sm:$0xf0] }
 0x1c3   : > { %3942 = vmatpush.bf16.msrb.mxu1 %v6876_v4  ;;  %v6833_v4 = vld [vmem:[#allocation3 + $0xc88] sm:$0xf0]  ;;  %v7119_v52 = vld [vmem:[#allocation3 + $0xec0] sm:$0xf]  ;;  %v7223_v48 = vld [vmem:[#allocation3 + $0xf90] sm:$0xf] }
 0x1c4   : > { %3955 = vmatpush.bf16.msrb.mxu2 %v6940_v32  ;;  %v7951_v32 = vld [vmem:[#allocation3 + $0xd04] sm:$0xf]  ;;  %v6836_v59 = vor.u32 %v7935_v3, %v6833_v4 }
 0x1c5   : > { %3968 = vmatpush.bf16.msrb.mxu3 %v7004_v7  ;;  %v7967_v7 = vld [vmem:[#allocation3 + $0xd84] sm:$0xf]  ;;  %v6900_v19 = vor.u32 %v7951_v32, %v6897_v28  ;;  %v7111_v28 = vld [vmem:[#allocation3 + $0xeb0] sm:$0xf] }
 0x1c6   : > { %3930 = vmatpush.bf16.msrb.mxu0 %v6804_v5  ;;  %v2890_v13 = vpop.f32.mrf.mxu2  ;;  %v6772_v5 = vor.u32 %v7919_v33, %v6769_v60  ;;  %v6964_v17 = vor.u32 %v7967_v7, %v6961_v9  ;;  %v8008_v33 = vld [vmem:[#allocation3 + $0xec4] sm:$0xf0]  ;;  %v7183_v60 = vld [vmem:[#allocation3 + $0xf40] sm:$0xf]  ;;  %v2876_v7 = vadd.f32 %v8664_v57, %v8662_v23 }
 0x1c7   : > { %3943 = vmatpush.bf16.msrb.mxu1 %v6868_v31  ;;  %v2903_v15 = vpop.f32.mrf.mxu3  ;;  %v8014_v31 = vld [vmem:[#allocation3 + $0xef4] sm:$0xf0]  ;;  %v7047_v13 = vld [vmem:[#allocation3 + $0xe30] sm:$0xf]  ;;  %v7167_v23 = vld [vmem:[#allocation3 + $0xf20] sm:$0xf] }
 0x1c8   : > { %3956 = vmatpush.bf16.msrb.mxu2 %v6932_v11  ;;  %v7207_v11 = vld [vmem:[#allocation3 + $0xf70] sm:$0xf]  ;;  %v7144_v18 = vor.u32 %v8014_v31, %v7143_v10  ;;  %v8022_v10 = vld [vmem:[#allocation3 + $0xf34] sm:$0xf0]  ;;  %v2889_v57 = vadd.f32 %v8666_v36, %v2876_v7 }
 0x1c9   : > { %3969 = vmatpush.bf16.msrb.mxu3 %v6996_v16  ;;  %v7271_v16 = vld [vmem:[#allocation3 + $0xff0] sm:$0xf]  ;;  %v7208_v34 = vor.u32 %v8030_v14, %v7207_v11  ;;  %v8038_v31 = vld [vmem:[#allocation3 + $0xfb4] sm:$0xf0]  ;;  %v7039_v14 = vld [vmem:[#allocation3 + $0xe20] sm:$0xf] }
 0x1ca   : > { %3931 = vmatpush.bf16.msrb.mxu0 %v6796_v20  ;;  %v7071_v20 = vld [vmem:[#allocation3 + $0xe60] sm:$0xf]  ;;  %v7272_v27 = vor.u32 %v8046_v6, %v7271_v16  ;;  %v7176_v16 = vor.u32 %v8022_v10, %v7175_v55  ;;  %v7159_v36 = vld [vmem:[#allocation3 + $0xf10] sm:$0xf] }
 0x1cb   : > { %3944 = vmatpush.bf16.msrb.mxu1 %v6860_v8  ;;  %v7996_v8 = vld [vmem:[#allocation3 + $0xe64] sm:$0xf0] }
 0x1cc   : > { %3957 = vmatpush.bf16.msrb.mxu2 %v6924_v25  ;;  %v7135_v25 = vld [vmem:[#allocation3 + $0xee0] sm:$0xf]  ;;  %v7072_v39 = vor.u32 %v7996_v8, %v7071_v20  ;;  %v8020_v8 = vld [vmem:[#allocation3 + $0xf24] sm:$0xf0] }
 0x1cd   : > { %3970 = vmatpush.bf16.msrb.mxu3 %v6988_v29  ;;  %v8028_v29 = vld [vmem:[#allocation3 + $0xf64] sm:$0xf0]  ;;  %v7136_v41 = vor.u32 %v8012_v26, %v7135_v25  ;;  %v7231_v25 = vld [vmem:[#allocation3 + $0xfa0] sm:$0xf]  ;;  %v7031_v26 = vld [vmem:[#allocation3 + $0xe10] sm:$0xf] }
 0x1ce   : > { %3932 = vmatpush.bf16.msrb.mxu0 %v6788_v21  ;;  %v7200_v42 = vor.u32 %v8028_v29, %v7199_v35  ;;  %v7063_v21 = vld [vmem:[#allocation3 + $0xe50] sm:$0xf]  ;;  %v7986_v35 = vld [vmem:[#allocation3 + $0xe14] sm:$0xf0] }
 0x1cf   : > { %3945 = vmatpush.bf16.msrb.mxu1 %v6852_v45  ;;  %v7127_v45 = vld [vmem:[#allocation3 + $0xed0] sm:$0xf]  ;;  %v7064_v54 = vor.u32 %v7994_v38, %v7063_v21  ;;  %v8683_v38 = vld.sshfl [vmem:[#allocation1] sm:$0xff pattern:$0x73625140] }
 0x1d0   : > { %3958 = vmatpush.bf16.msrb.mxu2 %v6916_v43  ;;  %v7264_v43 = vor.u32 %v8044_v37, %v7263_v12  ;;  %v7128_v50 = vor.u32 %v8010_v46, %v7127_v45  ;;  %v8677_v29 = vld [vmem:[#allocation3 + $0xe90] sm:$0xf]  ;;  %v8002_v12 = vld [vmem:[#allocation3 + $0xe94] sm:$0xf0]  ;;  %v7168_v46 = vor.u32 %v8020_v8, %v7167_v23 }
 0x1d1   : > { %3971 = vmatpush.bf16.msrb.mxu3 %v6980_v47  ;;  %v8042_v47 = vld [vmem:[#allocation3 + $0xfd4] sm:$0xf0]  ;;  %v8679_v37 = vld.sshfl [vmem:[#allocation1 + $0x10] sm:$0xff pattern:$0x73625140] }
 0x1d2   : > { %3933 = vmatpush.bf16.msrb.mxu0 %v6780_v53  ;;  %v7256_v53 = vor.u32 %v8042_v47, %v7255_v24  ;;  %v8685_v45 = vld.sshfl [vmem:[#allocation1 + $0x8] sm:$0xff pattern:$0x73625140]  ;;  %v2902_v47 = vadd.f32 %v8668_v40, %v2889_v57  ;;  %v4057_v57 = vshrl.u32 %v8683_v38, 16 }
 0x1d3   : > { %3946 = vmatpush.bf16.msrb.mxu1 %v6844_v61  ;;  %v7247_v61 = vld [vmem:[#allocation3 + $0xfc0] sm:$0xf]  ;;  %v4065_v55 = vshll.u32 %v8685_v45, 16  ;;  %v4063_v8 = vshrl.u32 %v8685_v45, 16 }
 0x1d4   : > { %3959 = vmatpush.bf16.msrb.mxu2 %v6908_v63 }
 0x1d5   : > { %3972 = vmatpush.bf16.msrb.mxu3 %v6972_v0  ;;  %v7990_v0 = vld [vmem:[#allocation3 + $0xe34] sm:$0xf0] }
 0x1d6   : > { %3934 = vmatpush.bf16.msrb.mxu0 %v6772_v5  ;;  %v2914_v3 = vpop.f32.mrf.mxu0  ;;  %v7239_v5 = vld [vmem:[#allocation3 + $0xfb0] sm:$0xf]  ;;  %v7048_v11 = vor.u32 %v7990_v0, %v7047_v13 }
 0x1d7   : > { %3947 = vmatpush.bf16.msrb.mxu1 %v6836_v59  ;;  %v2927_v32 = vpop.f32.mrf.mxu1  ;;  %v7988_v59 = vld [vmem:[#allocation3 + $0xe24] sm:$0xf0] }
 0x1d8   : > { %3960 = vmatpush.bf16.msrb.mxu2 %v6900_v19  ;;  %v2928_v15 = vadd.f32 %v2927_v32, %v2914_v3  ;;  %v7112_v19 = vor.u32 %v8006_v56, %v7111_v28  ;;  %v7160_v3 = vor.u32 %v8018_v22, %v7159_v36  ;;  %v7997_v32 = vld [vmem:[#allocation3 + $0xe74] sm:$0xf]  ;;  %v4059_v28 = vshll.u32 %v8683_v38, 16  ;;  %v7265_v38 = vld [vmem:[#allocation3 + $0xfe8] sm:$0xf0] }
 0x1d9   : > { %3973 = vmatpush.bf16.msrb.mxu3 %v6964_v17  ;;  %3935 = vmatmul.bf16.vlgmr.msrb.gmra.mxu0 %v8651_v1  ;;  %v8040_v1 = vld [vmem:[#allocation3 + $0xfc4] sm:$0xf0]  ;;  %v7103_v17 = vld [vmem:[#allocation3 + $0xea0] sm:$0xf] }
 0x1da   : > { %4405 = vmatpush.bf16.msra.mxu0 %v7080_v62  ;;  %3948 = vmatmul.bf16.vlgmr.msrb.gmra.mxu1 %v8653_v2  ;;  %v7120_v2 = vor.u32 %v8008_v33, %v7119_v52  ;;  %v7248_v9 = vor.u32 %v8040_v1, %v7247_v61  ;;  %v8004_v62 = vld [vmem:[#allocation3 + $0xea4] sm:$0xf0]  ;;  %v7096_v61 = vor.u32 %v8002_v12, %v8677_v29  ;;  %v7151_v1 = vld [vmem:[#allocation3 + $0xf00] sm:$0xf]  ;;  %v7073_v29 = vld [vmem:[#allocation3 + $0xe68] sm:$0xf0] }
 0x1db   : > { %4418 = vmatpush.bf16.msra.mxu1 %v7144_v18  ;;  %3961 = vmatmul.bf16.vlgmr.msrb.gmra.mxu2 %v8647_v58  ;;  %v7992_v58 = vld [vmem:[#allocation3 + $0xe44] sm:$0xf0]  ;;  %v7240_v18 = vor.u32 %v8038_v31, %v7239_v5  ;;  %v7145_v5 = vld [vmem:[#allocation3 + $0xef8] sm:$0xf0]  ;;  %v8029_v31 = vld [vmem:[#allocation3 + $0xf74] sm:$0xf] }
 0x1dc   : > { %4431 = vmatpush.bf16.msra.mxu2 %v7208_v34  ;;  %3974 = vmatmul.bf16.vlgmr.msrb.gmra.mxu3 %v8649_v30  ;;  %v8024_v30 = vld [vmem:[#allocation3 + $0xf44] sm:$0xf0]  ;;  %v7056_v63 = vor.u32 %v7992_v58, %v7055_v49  ;;  %v8034_v49 = vld [vmem:[#allocation3 + $0xf94] sm:$0xf0]  ;;  %v7023_v58 = vld [vmem:[#allocation3 + $0xe00] sm:$0xf] }
 0x1dd   : > { %4444 = vmatpush.bf16.msra.mxu3 %v7272_v27  ;;  %v7184_v4 = vor.u32 %v8024_v30, %v7183_v60  ;;  %v8036_v27 = vld [vmem:[#allocation3 + $0xfa4] sm:$0xf0]  ;;  %v7032_v30 = vor.u32 %v7986_v35, %v7031_v26  ;;  %v7224_v7 = vor.u32 %v8034_v49, %v7223_v48  ;;  %v7995_v35 = vld [vmem:[#allocation3 + $0xe64] sm:$0xf]  ;;  %v7129_v49 = vld [vmem:[#allocation3 + $0xed8] sm:$0xf0] }
 0x1de   : > { %4406 = vmatpush.bf16.msra.mxu0 %v7072_v39  ;;  %v2940_v6 = vpop.f32.mrf.mxu2  ;;  %v8681_v39 = vld.sshfl [vmem:[#allocation1 + $0x18] sm:$0xff pattern:$0x73625140]  ;;  %v2916_v21 = vpop.f32.mrf.mxu0  ;;  %v7984_v52 = vld [vmem:[#allocation3 + $0xe04] sm:$0xf0] }
 0x1df   : > { %4419 = vmatpush.bf16.msra.mxu1 %v7136_v41  ;;  %v2941_v34 = vadd.f32 %v2940_v6, %v2928_v15  ;;  %v2953_v20 = vpop.f32.mrf.mxu3  ;;  %v2929_v24 = vpop.f32.mrf.mxu1  ;;  %4582 = vst [vmem:[#allocation1] ss:$4 sm:$0xff] %v8602_v44  ;;  %v8000_v33 = vld [vmem:[#allocation3 + $0xe84] sm:$0xf0]  ;;  %v4071_v44 = vshll.u32 %v8679_v37, 16  ;;  %v4077_v0 = vshll.u32 %v8681_v39, 16  ;;  %v7024_v10 = vor.u32 %v7984_v52, %v7023_v58 }
 0x1e0   : > { %4432 = vmatpush.bf16.msra.mxu2 %v7200_v42  ;;  %v7040_v42 = vor.u32 %v7988_v59, %v7039_v14  ;;  %v8013_v15 = vld [vmem:[#allocation3 + $0xef4] sm:$0xf]  ;;  %v7209_v59 = vld [vmem:[#allocation3 + $0xf78] sm:$0xf0]  ;;  %v8011_v12 = vld [vmem:[#allocation3 + $0xee4] sm:$0xf] }
 0x1e1   : > { %4445 = vmatpush.bf16.msra.mxu3 %v7264_v43  ;;  %v2954_v41 = vadd.f32 %v2953_v20, %v2941_v34  ;;  %v7104_v43 = vor.u32 %v8004_v62, %v7103_v17  ;;  %v4073_v6 = vrot.slane %v4071_v44, 1  ;;  %v7273_v17 = vld [vmem:[#allocation3 + $0xff8] sm:$0xf0]  ;;  %v4075_v62 = vshrl.u32 %v8681_v39, 16  ;;  %v7201_v39 = vld [vmem:[#allocation3 + $0xf68] sm:$0xf0] }
 0x1e2   : > { %4407 = vmatpush.bf16.msra.mxu0 %v7064_v54  ;;  %v2434_v54 = vld [vmem:[#allocation2] sm:$0xf]  ;;  %v4079_v23 = vrot.slane %v4077_v0, 1  ;;  %v7212_v26 = vor.u32 %v8029_v31, %v7209_v59  ;;  %v8043_v21 = vld [vmem:[#allocation3 + $0xfe4] sm:$0xf] }
 0x1e3   : > { %4420 = vmatpush.bf16.msra.mxu1 %v7128_v50  ;;  %v2959_v50 = vrot.slane %v2954_v41, 6  ;;  %v7137_v41 = vld [vmem:[#allocation3 + $0xee8] sm:$0xf0]  ;;  %v8025_v58 = vld [vmem:[#allocation3 + $0xf54] sm:$0xf] }
 0x1e4   : > { %4433 = vmatpush.bf16.msra.mxu2 %v7192_v51  ;;  %v7232_v51 = vor.u32 %v8036_v27, %v7231_v25  ;;  %v4067_v25 = vrot.slane %v4065_v55, 1  ;;  %v7148_v27 = vor.u32 %v8013_v15, %v7145_v5  ;;  %v7140_v48 = vor.u32 %v8011_v12, %v7137_v41  ;;  %v7193_v52 = vld [vmem:[#allocation3 + $0xf58] sm:$0xf0]  ;;  %v8007_v44 = vld [vmem:[#allocation3 + $0xec4] sm:$0xf] }
 0x1e5   : > { %4446 = vmatpush.bf16.msra.mxu3 %v7256_v53  ;;  %v7087_v53 = vld [vmem:[#allocation3 + $0xe80] sm:$0xf]  ;;  %v2960_v60 = vsel %vm877_vm0, %v2902_v47, %v2959_v50  ;;  %v7993_v47 = vld [vmem:[#allocation3 + $0xe54] sm:$0xf]  ;;  %v7113_v31 = vld [vmem:[#allocation3 + $0xeb8] sm:$0xf0] }
 0x1e6   : > { %4408 = vmatpush.bf16.msra.mxu0 %v7056_v63  ;;  %v8016_v63 = vld [vmem:[#allocation3 + $0xf04] sm:$0xf0]  ;;  %v2962_v40 = vadd.f32 %v2960_v60, %v2434_v54  ;;  %v2942_v13 = vpop.f32.mrf.mxu2  ;;  %v8705_v22 = vor.u32 %v4067_v25, %v4063_v8  ;;  %v7065_v54 = vld [vmem:[#allocation3 + $0xe58] sm:$0xf0]  ;;  %v8009_v50 = vld [vmem:[#allocation3 + $0xed4] sm:$0xf] }
 0x1e7   : > { %4421 = vmatpush.bf16.msra.mxu1 %v7120_v2  ;;  %v7215_v2 = vld [vmem:[#allocation3 + $0xf80] sm:$0xf]  ;;  %v2955_v56 = vpop.f32.mrf.mxu3  ;;  %v7152_v14 = vor.u32 %v8016_v63, %v7151_v1  ;;  %v7068_v60 = vor.u32 %v7993_v47, %v7065_v54  ;;  %v7991_v1 = vld [vmem:[#allocation3 + $0xe44] sm:$0xf]  ;;  %v7057_v63 = vld [vmem:[#allocation3 + $0xe48] sm:$0xf0] }
 0x1e8   : > { %4434 = vmatpush.bf16.msra.mxu2 %v7184_v4  ;;  %v8032_v4 = vld [vmem:[#allocation3 + $0xf84] sm:$0xf0]  ;;  %2963 = vst [vmem:[#allocation2] sm:$0xf] %v2962_v40  ;;  %v7249_v13 = vld [vmem:[#allocation3 + $0xfc8] sm:$0xf0]  ;;  %v7060_v0 = vor.u32 %v7991_v1, %v7057_v63 }
 0x1e9   : > { %4447 = vmatpush.bf16.msra.mxu3 %v7248_v9  ;;  %v7081_v9 = vld [vmem:[#allocation3 + $0xe78] sm:$0xf0]  ;;  %v7216_v34 = vor.u32 %v8032_v4, %v7215_v2  ;;  %v8023_v2 = vld [vmem:[#allocation3 + $0xf44] sm:$0xf]  ;;  %v7185_v4 = vld [vmem:[#allocation3 + $0xf48] sm:$0xf0] }
 0x1ea   : > { %4409 = vmatpush.bf16.msra.mxu0 %v7048_v11  ;;  %v7088_v11 = vor.u32 %v8000_v33, %v7087_v53  ;;  %v7084_v20 = vor.u32 %v7997_v32, %v7081_v9  ;;  %v8041_v53 = vld [vmem:[#allocation3 + $0xfd4] sm:$0xf]  ;;  %v7257_v33 = vld [vmem:[#allocation3 + $0xfd8] sm:$0xf0]  ;;  %v8039_v32 = vld [vmem:[#allocation3 + $0xfc4] sm:$0xf]  ;;  %v7188_v9 = vor.u32 %v8023_v2, %v7185_v4 }
 0x1eb   : > { %4422 = vmatpush.bf16.msra.mxu1 %v7112_v19  ;;  %v8045_v19 = vld [vmem:[#allocation3 + $0xff4] sm:$0xf]  ;;  %v7260_v40 = vor.u32 %v8041_v53, %v7257_v33  ;;  %v7049_v56 = vld [vmem:[#allocation3 + $0xe38] sm:$0xf0]  ;;  %v7252_v5 = vor.u32 %v8039_v32, %v7249_v13  ;;  %v8019_v8 = vld [vmem:[#allocation3 + $0xf24] sm:$0xf] }
 0x1ec   : > { %4435 = vmatpush.bf16.msra.mxu2 %v7176_v16  ;;  %v4069_v16 = vshrl.u32 %v8679_v37, 16  ;;  %v7276_v37 = vor.u32 %v8045_v19, %v7273_v17  ;;  %v7989_v15 = vld [vmem:[#allocation3 + $0xe34] sm:$0xf]  ;;  %v7241_v19 = vld [vmem:[#allocation3 + $0xfb8] sm:$0xf0] }
 0x1ed   : > { %4448 = vmatpush.bf16.msra.mxu3 %v7240_v18  ;;  %v4061_v18 = vrot.slane %v4059_v28, 1  ;;  %v8005_v55 = vld [vmem:[#allocation3 + $0xeb4] sm:$0xf]  ;;  %v7169_v25 = vld [vmem:[#allocation3 + $0xf28] sm:$0xf0] }
 0x1ee   : > { %4410 = vmatpush.bf16.msra.mxu0 %v7040_v42  ;;  %v8027_v42 = vld [vmem:[#allocation3 + $0xf64] sm:$0xf]  ;;  %v8699_v36 = vor.u32 %v4073_v6, %v4069_v16  ;;  %v8037_v59 = vld [vmem:[#allocation3 + $0xfb4] sm:$0xf]  ;;  %v7052_v16 = vor.u32 %v7989_v15, %v7049_v56  ;;  %v7116_v6 = vor.u32 %v8005_v55, %v7113_v31  ;;  %v7172_v41 = vor.u32 %v8019_v8, %v7169_v25  ;;  %v7161_v47 = vld [vmem:[#allocation3 + $0xf18] sm:$0xf0] }
 0x1ef   : > { %4423 = vmatpush.bf16.msra.mxu1 %v7104_v43  ;;  %v8701_v43 = vor.u32 %v4079_v23, %v4075_v62  ;;  %v8703_v45 = vor.u32 %v4061_v18, %v4057_v57  ;;  %v7204_v24 = vor.u32 %v8027_v42, %v7201_v39  ;;  %v7987_v62 = vld [vmem:[#allocation3 + $0xe24] sm:$0xf]  ;;  %v7041_v23 = vld [vmem:[#allocation3 + $0xe28] sm:$0xf0]  ;;  %v7985_v42 = vld [vmem:[#allocation3 + $0xe14] sm:$0xf] }
 0x1f0   : > { %4436 = vmatpush.bf16.msra.mxu2 %v7168_v46  ;;  %v7076_v46 = vor.u32 %v7995_v35, %v7073_v29  ;;  %v8003_v57 = vld [vmem:[#allocation3 + $0xea4] sm:$0xf]  ;;  %v7233_v35 = vld [vmem:[#allocation3 + $0xfa8] sm:$0xf0]  ;;  %v7044_v29 = vor.u32 %v7987_v62, %v7041_v23  ;;  %v7033_v39 = vld [vmem:[#allocation3 + $0xe18] sm:$0xf0] }
 0x1f1   : > { %4449 = vmatpush.bf16.msra.mxu3 %v7232_v51  ;;  %v7268_v51 = vor.u32 %v8043_v21, %v7265_v38  ;;  %v8001_v21 = vld [vmem:[#allocation3 + $0xe94] sm:$0xf]  ;;  %v7999_v33 = vld [vmem:[#allocation3 + $0xe84] sm:$0xf]  ;;  %v7153_v63 = vld [vmem:[#allocation3 + $0xf08] sm:$0xf0] }
 0x1f2   : > { %4411 = vmatpush.bf16.msra.mxu0 %v7032_v30  ;;  %v7132_v30 = vor.u32 %v8009_v50, %v7129_v49  ;;  %v8033_v54 = vld [vmem:[#allocation3 + $0xf94] sm:$0xf]  ;;  %v7225_v50 = vld [vmem:[#allocation3 + $0xf98] sm:$0xf0]  ;;  %v7983_v49 = vld [vmem:[#allocation3 + $0xe04] sm:$0xf] }
 0x1f3   : > { %4424 = vmatpush.bf16.msra.mxu1 %v7096_v61  ;;  %v7196_v61 = vor.u32 %v8025_v58, %v7193_v52  ;;  %v7025_v58 = vld [vmem:[#allocation3 + $0xe08] sm:$0xf0]  ;;  %v7228_v1 = vor.u32 %v8033_v54, %v7225_v50  ;;  %v7335_v2 = vld [vmem:[#allocation3 + $0x1070] sm:$0xf]  ;;  %v8062_v4 = vld [vmem:[#allocation3 + $0x1074] sm:$0xf0] }
 0x1f4   : > { %4437 = vmatpush.bf16.msra.mxu2 %v7160_v3  ;;  %v7121_v3 = vld [vmem:[#allocation3 + $0xec8] sm:$0xf0]  ;;  %v7399_v32 = vld [vmem:[#allocation3 + $0x10f0] sm:$0xf]  ;;  %v7028_v13 = vor.u32 %v7983_v49, %v7025_v58  ;;  %v8076_v62 = vld [vmem:[#allocation3 + $0x10e4] sm:$0xf0] }
 0x1f5   : > { %4450 = vmatpush.bf16.msra.mxu3 %v7224_v7  ;;  %v7124_v7 = vor.u32 %v8007_v44, %v7121_v3  ;;  %v8031_v44 = vld [vmem:[#allocation3 + $0xf84] sm:$0xf]  ;;  %v7527_v55 = vld [vmem:[#allocation3 + $0x11f0] sm:$0xf]  ;;  %v7455_v23 = vld [vmem:[#allocation3 + $0x1160] sm:$0xf] }
 0x1f6   : > { %4412 = vmatpush.bf16.msra.mxu0 %v7024_v10  ;;  %v8711_v28 = vpop.f32.mrf.mxu0  ;;  %v7375_v54 = vld [vmem:[#allocation3 + $0x10c0] sm:$0xf] }
 0x1f7   : > { %4425 = vmatpush.bf16.msra.mxu1 %v7088_v11  ;;  %v8713_v10 = vpop.f32.mrf.mxu1  ;;  %v8021_v11 = vld [vmem:[#allocation3 + $0xf34] sm:$0xf]  ;;  %v7439_v49 = vld [vmem:[#allocation3 + $0x1140] sm:$0xf] }
 0x1f8   : > { %4438 = vmatpush.bf16.msra.mxu2 %v7152_v14  ;;  %v7177_v14 = vld [vmem:[#allocation3 + $0xf38] sm:$0xf0]  ;;  %v7503_v58 = vld [vmem:[#allocation3 + $0x11c0] sm:$0xf] }
 0x1f9   : > { %4451 = vmatpush.bf16.msra.mxu3 %v7216_v34  ;;  %4413 = vmatmul.bf16.vlgmr.msra.gmra.mxu0 %v8703_v45  ;;  %v7180_v17 = vor.u32 %v8021_v11, %v7177_v14  ;;  %v7244_v34 = vor.u32 %v8037_v59, %v7241_v19  ;;  %v7336_v11 = vor.u32 %v8062_v4, %v7335_v2  ;;  %v7327_v19 = vld [vmem:[#allocation3 + $0x1060] sm:$0xf]  ;;  %v7431_v2 = vld [vmem:[#allocation3 + $0x1130] sm:$0xf]  ;;  %v8086_v4 = vld [vmem:[#allocation3 + $0x1134] sm:$0xf0] }
 0x1fa   : > { %4457 = vmatpush.bf16.msrb.mxu0 %v7084_v20  ;;  %4426 = vmatmul.bf16.vlgmr.msra.gmra.mxu1 %v8705_v22  ;;  %v7105_v20 = vld [vmem:[#allocation3 + $0xea8] sm:$0xf0] }
 0x1fb   : > { %4470 = vmatpush.bf16.msrb.mxu1 %v7148_v27  ;;  %4439 = vmatmul.bf16.vlgmr.msra.gmra.mxu2 %v8699_v36 }
 0x1fc   : > { %4483 = vmatpush.bf16.msrb.mxu2 %v7212_v26  ;;  %4452 = vmatmul.bf16.vlgmr.msra.gmra.mxu3 %v8701_v43  ;;  %v8035_v26 = vld [vmem:[#allocation3 + $0xfa4] sm:$0xf] }
 0x1fd   : > { %4496 = vmatpush.bf16.msrb.mxu3 %v7276_v37  ;;  %v7108_v37 = vor.u32 %v8003_v57, %v7105_v20  ;;  %v8092_v57 = vld [vmem:[#allocation3 + $0x1164] sm:$0xf0] }
 0x1fe   : > { %4458 = vmatpush.bf16.msrb.mxu0 %v7076_v46  ;;  %v8715_v18 = vpop.f32.mrf.mxu2  ;;  %v3378_v12 = vpop.f32.mrf.mxu0  ;;  %v7236_v46 = vor.u32 %v8035_v26, %v7233_v35  ;;  %v8108_v20 = vld [vmem:[#allocation3 + $0x11e4] sm:$0xf0]  ;;  %v7456_v26 = vor.u32 %v8092_v57, %v7455_v23  ;;  %v7319_v35 = vld [vmem:[#allocation3 + $0x1050] sm:$0xf]  ;;  %v8050_v57 = vld [vmem:[#allocation3 + $0x1014] sm:$0xf0] }
 0x1ff   : > { %4471 = vmatpush.bf16.msrb.mxu1 %v7140_v48  ;;  %v8717_v27 = vpop.f32.mrf.mxu3  ;;  %v3391_v38 = vpop.f32.mrf.mxu1  ;;  %v7097_v48 = vld [vmem:[#allocation3 + $0xe98] sm:$0xf0]  ;;  %v7383_v12 = vld [vmem:[#allocation3 + $0x10d0] sm:$0xf] }
 0x200   : > { %4484 = vmatpush.bf16.msrb.mxu2 %v7204_v24  ;;  %v8017_v24 = vld [vmem:[#allocation3 + $0xf14] sm:$0xf]  ;;  %v7100_v52 = vor.u32 %v8001_v21, %v7097_v48  ;;  %v7511_v21 = vld [vmem:[#allocation3 + $0x11d0] sm:$0xf]  ;;  %v8106_v38 = vld [vmem:[#allocation3 + $0x11d4] sm:$0xf0] }
 0x201   : > { %4497 = vmatpush.bf16.msrb.mxu3 %v7268_v51  ;;  %v7036_v51 = vor.u32 %v7985_v42, %v7033_v39  ;;  %v7164_v53 = vor.u32 %v8017_v24, %v7161_v47  ;;  %v7447_v42 = vld [vmem:[#allocation3 + $0x1150] sm:$0xf]  ;;  %v8090_v39 = vld [vmem:[#allocation3 + $0x1154] sm:$0xf0]  ;;  %v7311_v47 = vld [vmem:[#allocation3 + $0x1040] sm:$0xf]  ;;  %v7512_v50 = vor.u32 %v8106_v38, %v7511_v21 }
 0x202   : > { %4459 = vmatpush.bf16.msrb.mxu0 %v7068_v60  ;;  %v7089_v60 = vld [vmem:[#allocation3 + $0xe88] sm:$0xf0]  ;;  %v7448_v24 = vor.u32 %v8090_v39, %v7447_v42  ;;  %v7287_v23 = vld [vmem:[#allocation3 + $0x1010] sm:$0xf]  ;;  %v8082_v42 = vld [vmem:[#allocation3 + $0x1114] sm:$0xf0] }
 0x203   : > { %4472 = vmatpush.bf16.msrb.mxu1 %v7132_v30  ;;  %v8015_v30 = vld [vmem:[#allocation3 + $0xf04] sm:$0xf]  ;;  %v7092_v15 = vor.u32 %v7999_v33, %v7089_v60  ;;  %v7479_v39 = vld [vmem:[#allocation3 + $0x1190] sm:$0xf]  ;;  %v8098_v21 = vld [vmem:[#allocation3 + $0x1194] sm:$0xf0] }
 0x204   : > { %4485 = vmatpush.bf16.msrb.mxu2 %v7196_v61  ;;  %v7156_v56 = vor.u32 %v8015_v30, %v7153_v63  ;;  %v7303_v30 = vld [vmem:[#allocation3 + $0x1030] sm:$0xf]  ;;  %v3390_v63 = vadd.f32 %v8713_v10, %v8711_v28  ;;  %v7279_v38 = vld [vmem:[#allocation3 + $0x1000] sm:$0xf] }
 0x205   : > { %4498 = vmatpush.bf16.msrb.mxu3 %v7260_v40  ;;  %v7217_v40 = vld [vmem:[#allocation3 + $0xf88] sm:$0xf0] }
 0x206   : > { %4460 = vmatpush.bf16.msrb.mxu0 %v7060_v0  ;;  %v3404_v61 = vpop.f32.mrf.mxu2  ;;  %v8078_v0 = vld [vmem:[#allocation3 + $0x10f4] sm:$0xf0]  ;;  %v7220_v31 = vor.u32 %v8031_v44, %v7217_v40  ;;  %v3403_v28 = vadd.f32 %v8715_v18, %v3390_v63  ;;  %v7351_v18 = vld [vmem:[#allocation3 + $0x1090] sm:$0xf]  ;;  %v7465_v63 = vld [vmem:[#allocation3 + $0x1178] sm:$0xf0] }
 0x207   : > { %4473 = vmatpush.bf16.msrb.mxu1 %v7124_v7  ;;  %v3417_v3 = vpop.f32.mrf.mxu3  ;;  %v7463_v7 = vld [vmem:[#allocation3 + $0x1170] sm:$0xf]  ;;  %v7400_v14 = vor.u32 %v8078_v0, %v7399_v32  ;;  %v8054_v61 = vld [vmem:[#allocation3 + $0x1034] sm:$0xf0] }
 0x208   : > { %4486 = vmatpush.bf16.msrb.mxu2 %v7188_v9  ;;  %v8094_v9 = vld [vmem:[#allocation3 + $0x1174] sm:$0xf0]  ;;  %v7495_v32 = vld [vmem:[#allocation3 + $0x11b0] sm:$0xf]  ;;  %v7304_v0 = vor.u32 %v8054_v61, %v7303_v30  ;;  %v7401_v30 = vld [vmem:[#allocation3 + $0x10f8] sm:$0xf0] }
 0x209   : > { %4499 = vmatpush.bf16.msrb.mxu3 %v7252_v5  ;;  %v8110_v5 = vld [vmem:[#allocation3 + $0x11f4] sm:$0xf0]  ;;  %v7464_v59 = vor.u32 %v8094_v9, %v7463_v7  ;;  %v7432_v9 = vor.u32 %v8086_v4, %v7431_v2  ;;  %v8093_v61 = vld [vmem:[#allocation3 + $0x1174] sm:$0xf]  ;;  %v8059_v4 = vld [vmem:[#allocation3 + $0x1064] sm:$0xf] }
 0x20a   : > { %4461 = vmatpush.bf16.msrb.mxu0 %v7052_v16  ;;  %v8060_v16 = vld [vmem:[#allocation3 + $0x1064] sm:$0xf0]  ;;  %v8070_v3 = vld [vmem:[#allocation3 + $0x10b4] sm:$0xf0] }
 0x20b   : > { %4474 = vmatpush.bf16.msrb.mxu1 %v7116_v6  ;;  %v7391_v6 = vld [vmem:[#allocation3 + $0x10e0] sm:$0xf]  ;;  %v7328_v8 = vor.u32 %v8060_v16, %v7327_v19  ;;  %v8084_v19 = vld [vmem:[#allocation3 + $0x1124] sm:$0xf0] }
 0x20c   : > { %4487 = vmatpush.bf16.msrb.mxu2 %v7180_v17  ;;  %v7528_v17 = vor.u32 %v8110_v5, %v7527_v55  ;;  %v7392_v25 = vor.u32 %v8076_v62, %v7391_v6  ;;  %v8052_v55 = vld [vmem:[#allocation3 + $0x1024] sm:$0xf0]  ;;  %v7359_v5 = vld [vmem:[#allocation3 + $0x10a0] sm:$0xf] }
 0x20d   : > { %4500 = vmatpush.bf16.msrb.mxu3 %v7244_v34  ;;  %v7519_v34 = vld [vmem:[#allocation3 + $0x11e0] sm:$0xf]  ;;  %v8100_v6 = vld [vmem:[#allocation3 + $0x11a4] sm:$0xf0] }
 0x20e   : > { %4462 = vmatpush.bf16.msrb.mxu0 %v7044_v29  ;;  %v8058_v29 = vld [vmem:[#allocation3 + $0x1054] sm:$0xf0]  ;;  %v7487_v16 = vld [vmem:[#allocation3 + $0x11a0] sm:$0xf] }
 0x20f   : > { %4475 = vmatpush.bf16.msrb.mxu1 %v7108_v37  ;;  %v7520_v37 = vor.u32 %v8108_v20, %v7519_v34 }
 0x210   : > { %4488 = vmatpush.bf16.msrb.mxu2 %v7172_v41  ;;  %v8074_v41 = vld [vmem:[#allocation3 + $0x10d4] sm:$0xf0] }
 0x211   : > { %4501 = vmatpush.bf16.msrb.mxu3 %v7236_v46  ;;  %v7320_v46 = vor.u32 %v8058_v29, %v7319_v35  ;;  %v7384_v48 = vor.u32 %v8074_v41, %v7383_v12  ;;  %v3416_v29 = vadd.f32 %v8717_v27, %v3403_v28  ;;  %v2964_v12 = vld [vmem:[#allocation2] sm:$0xf]  ;;  %v7488_v41 = vor.u32 %v8100_v6, %v7487_v16  ;;  %v7393_v28 = vld [vmem:[#allocation3 + $0x10e8] sm:$0xf0] }
 0x212   : > { %4463 = vmatpush.bf16.msrb.mxu0 %v7036_v51  ;;  %v8072_v51 = vld [vmem:[#allocation3 + $0x10c4] sm:$0xf0]  ;;  %v7521_v16 = vld [vmem:[#allocation3 + $0x11e8] sm:$0xf0] }
 0x213   : > { %4476 = vmatpush.bf16.msrb.mxu1 %v7100_v52 }
 0x214   : > { %4489 = vmatpush.bf16.msrb.mxu2 %v7164_v53 }
 0x215   : > { %4502 = vmatpush.bf16.msrb.mxu3 %v7228_v1  ;;  %v7367_v1 = vld [vmem:[#allocation3 + $0x10b0] sm:$0xf] }
 0x216   : > { %4464 = vmatpush.bf16.msrb.mxu0 %v7028_v13  ;;  %v3428_v53 = vpop.f32.mrf.mxu0  ;;  %v8102_v13 = vld [vmem:[#allocation3 + $0x11b4] sm:$0xf0]  ;;  %v7368_v7 = vor.u32 %v8070_v3, %v7367_v1 }
 0x217   : > { %4477 = vmatpush.bf16.msrb.mxu1 %v7092_v15  ;;  %v3441_v60 = vpop.f32.mrf.mxu1  ;;  %v7496_v10 = vor.u32 %v8102_v13, %v7495_v32  ;;  %v7329_v32 = vld [vmem:[#allocation3 + $0x1068] sm:$0xf0]  ;;  %v8728_v13 = vld.sshfl [vmem:[#allocation1 + $0x10] sm:$0xff pattern:$0x73625140] }
 0x218   : > { %4490 = vmatpush.bf16.msrb.mxu2 %v7156_v56  ;;  %v3442_v40 = vadd.f32 %v3441_v60, %v3428_v53  ;;  %v7295_v56 = vld [vmem:[#allocation3 + $0x1020] sm:$0xf]  ;;  %v8061_v53 = vld [vmem:[#allocation3 + $0x1074] sm:$0xf] }
 0x219   : > { %4503 = vmatpush.bf16.msrb.mxu3 %v7220_v31  ;;  %4465 = vmatmul.bf16.vlgmr.msrb.gmra.mxu0 %v8703_v45  ;;  %v8104_v45 = vld [vmem:[#allocation3 + $0x11c4] sm:$0xf0]  ;;  %v7296_v62 = vor.u32 %v8052_v55, %v7295_v56  ;;  %v8732_v56 = vld.sshfl [vmem:[#allocation1] sm:$0xff pattern:$0x73625140] }
 0x21a   : > { %4919 = vmatpush.bf16.msra.mxu0 %v7336_v11  ;;  %4478 = vmatmul.bf16.vlgmr.msrb.gmra.mxu1 %v8705_v22  ;;  %v7376_v22 = vor.u32 %v8072_v51, %v7375_v54  ;;  %v7504_v44 = vor.u32 %v8104_v45, %v7503_v58  ;;  %v7407_v54 = vld [vmem:[#allocation3 + $0x1100] sm:$0xf]  ;;  %v8096_v58 = vld [vmem:[#allocation3 + $0x1184] sm:$0xf0] }
 0x21b   : > { %4932 = vmatpush.bf16.msra.mxu1 %v7400_v14  ;;  %4491 = vmatmul.bf16.vlgmr.msrb.gmra.mxu2 %v8699_v36  ;;  %v8056_v36 = vld [vmem:[#allocation3 + $0x1044] sm:$0xf0] }
 0x21c   : > { %4945 = vmatpush.bf16.msra.mxu2 %v7464_v59  ;;  %4504 = vmatmul.bf16.vlgmr.msrb.gmra.mxu3 %v8701_v43  ;;  %v8088_v43 = vld [vmem:[#allocation3 + $0x1144] sm:$0xf0]  ;;  %v7312_v52 = vor.u32 %v8056_v36, %v7311_v47  ;;  %v7423_v59 = vld [vmem:[#allocation3 + $0x1120] sm:$0xf] }
 0x21d   : > { %4958 = vmatpush.bf16.msra.mxu3 %v7528_v17  ;;  %v7440_v33 = vor.u32 %v8088_v43, %v7439_v49  ;;  %v8068_v14 = vld [vmem:[#allocation3 + $0x10a4] sm:$0xf0]  ;;  %v7343_v47 = vld [vmem:[#allocation3 + $0x1080] sm:$0xf] }
 0x21e   : > { %4920 = vmatpush.bf16.msra.mxu0 %v7328_v8  ;;  %v3454_v15 = vpop.f32.mrf.mxu2  ;;  %v3430_v34 = vpop.f32.mrf.mxu0  ;;  %v7360_v20 = vor.u32 %v8068_v14, %v7359_v5  ;;  %v7424_v8 = vor.u32 %v8084_v19, %v7423_v59  ;;  %v8064_v36 = vld [vmem:[#allocation3 + $0x1084] sm:$0xf0]  ;;  %v7471_v43 = vld [vmem:[#allocation3 + $0x1180] sm:$0xf]  ;;  %v7468_v5 = vor.u32 %v8093_v61, %v7465_v63  ;;  %v7457_v14 = vld [vmem:[#allocation3 + $0x1168] sm:$0xf0] }
 0x21f   : > { %4933 = vmatpush.bf16.msra.mxu1 %v7392_v25  ;;  %v3455_v31 = vadd.f32 %v3454_v15, %v3442_v40  ;;  %v3467_v11 = vpop.f32.mrf.mxu3  ;;  %v8066_v25 = vld [vmem:[#allocation3 + $0x1094] sm:$0xf0]  ;;  %v3443_v35 = vpop.f32.mrf.mxu1  ;;  %v8080_v49 = vld [vmem:[#allocation3 + $0x1104] sm:$0xf0]  ;;  %v7529_v40 = vld [vmem:[#allocation3 + $0x11f8] sm:$0xf0]  ;;  %v7344_v3 = vor.u32 %v8064_v36, %v7343_v47 }
 0x220   : > { %4946 = vmatpush.bf16.msra.mxu2 %v7456_v26  ;;  %v7415_v26 = vld [vmem:[#allocation3 + $0x1110] sm:$0xf]  ;;  %v7352_v27 = vor.u32 %v8066_v25, %v7351_v18  ;;  %v7408_v2 = vor.u32 %v8080_v49, %v7407_v54  ;;  %v4593_v59 = vrot.slane %v8728_v13, 1  ;;  %v8107_v19 = vld [vmem:[#allocation3 + $0x11e4] sm:$0xf] }
 0x221   : > { %4959 = vmatpush.bf16.msra.mxu3 %v7520_v37  ;;  %v3468_v17 = vadd.f32 %v3467_v11, %v3455_v31  ;;  %v7416_v51 = vor.u32 %v8082_v42, %v7415_v26  ;;  %v8730_v15 = vld.sshfl [vmem:[#allocation1 + $0x18] sm:$0xff pattern:$0x73625140]  ;;  %v8091_v11 = vld [vmem:[#allocation3 + $0x1164] sm:$0xf]  ;;  %v7524_v25 = vor.u32 %v8107_v19, %v7521_v16 }
 0x222   : > { %4921 = vmatpush.bf16.msra.mxu0 %v7320_v46  ;;  %v8048_v46 = vld [vmem:[#allocation3 + $0x1004] sm:$0xf0]  ;;  %v4594_v6 = vrot.slane %v8730_v15, 1  ;;  %v7460_v34 = vor.u32 %v8091_v11, %v7457_v14  ;;  %v8073_v18 = vld [vmem:[#allocation3 + $0x10d4] sm:$0xf] }
 0x223   : > { %4934 = vmatpush.bf16.msra.mxu1 %v7384_v48  ;;  %v3473_v37 = vrot.slane %v3468_v17, 6  ;;  %v7280_v1 = vor.u32 %v8048_v46, %v7279_v38  ;;  %v4591_v17 = vrot.slane %v8732_v56, 1  ;;  %v7385_v26 = vld [vmem:[#allocation3 + $0x10d8] sm:$0xf0]  ;;  %v8089_v35 = vld [vmem:[#allocation3 + $0x1154] sm:$0xf] }
 0x224   : > { %4947 = vmatpush.bf16.msra.mxu2 %v7448_v24  ;;  %v7288_v24 = vor.u32 %v8050_v57, %v7287_v23  ;;  %v7388_v42 = vor.u32 %v8073_v18, %v7385_v26  ;;  %v7313_v38 = vld [vmem:[#allocation3 + $0x1048] sm:$0xf0]  ;;  %v8071_v46 = vld [vmem:[#allocation3 + $0x10c4] sm:$0xf]  ;;  %v8101_v61 = vld [vmem:[#allocation3 + $0x11b4] sm:$0xf] }
 0x225   : > { %4960 = vmatpush.bf16.msra.mxu3 %v7512_v50  ;;  %v3474_v48 = vsel %vm877_vm0, %v3416_v29, %v3473_v37  ;;  %v7449_v29 = vld [vmem:[#allocation3 + $0x1158] sm:$0xf0]  ;;  %v8087_v47 = vld [vmem:[#allocation3 + $0x1144] sm:$0xf]  ;;  %v7441_v36 = vld [vmem:[#allocation3 + $0x1148] sm:$0xf0] }
 0x226   : > { %4922 = vmatpush.bf16.msra.mxu0 %v7312_v52  ;;  %v3476_v50 = vadd.f32 %v3474_v48, %v2964_v12  ;;  %v3456_v45 = vpop.f32.mrf.mxu2  ;;  %v7480_v52 = vor.u32 %v8098_v21, %v7479_v39  ;;  %v8105_v12 = vld [vmem:[#allocation3 + $0x11d4] sm:$0xf]  ;;  %v7513_v37 = vld [vmem:[#allocation3 + $0x11d8] sm:$0xf0]  ;;  %v7452_v39 = vor.u32 %v8089_v35, %v7449_v29  ;;  %v8055_v21 = vld [vmem:[#allocation3 + $0x1044] sm:$0xf] }
 0x227   : > { %4935 = vmatpush.bf16.msra.mxu1 %v7376_v22  ;;  %v7337_v22 = vld [vmem:[#allocation3 + $0x1078] sm:$0xf0]  ;;  %v3469_v60 = vpop.f32.mrf.mxu3  ;;  %v7516_v48 = vor.u32 %v8105_v12, %v7513_v37  ;;  %v8103_v54 = vld [vmem:[#allocation3 + $0x11c4] sm:$0xf]  ;;  %v8097_v35 = vld [vmem:[#allocation3 + $0x1194] sm:$0xf] }
 0x228   : > { %4948 = vmatpush.bf16.msra.mxu2 %v7440_v33  ;;  %v8077_v33 = vld [vmem:[#allocation3 + $0x10f4] sm:$0xf]  ;;  %3477 = vst [vmem:[#allocation2] sm:$0xf] %v3476_v50  ;;  %v7505_v50 = vld [vmem:[#allocation3 + $0x11c8] sm:$0xf0] }
 0x229   : > { %4961 = vmatpush.bf16.msra.mxu3 %v7504_v44  ;;  %v8109_v44 = vld [vmem:[#allocation3 + $0x11f4] sm:$0xf]  ;;  %v7404_v55 = vor.u32 %v8077_v33, %v7401_v30  ;;  %v7305_v45 = vld [vmem:[#allocation3 + $0x1038] sm:$0xf0] }
 0x22a   : > { %4923 = vmatpush.bf16.msra.mxu0 %v7304_v0  ;;  %v7472_v0 = vor.u32 %v8096_v58, %v7471_v43  ;;  %v7532_v31 = vor.u32 %v8109_v44, %v7529_v40  ;;  %v7444_v43 = vor.u32 %v8087_v47, %v7441_v36  ;;  %v8053_v58 = vld [vmem:[#allocation3 + $0x1034] sm:$0xf]  ;;  %v7369_v33 = vld [vmem:[#allocation3 + $0x10b8] sm:$0xf0]  ;;  %v7409_v47 = vld [vmem:[#allocation3 + $0x1108] sm:$0xf0] }
 0x22b   : > { %4936 = vmatpush.bf16.msra.mxu1 %v7368_v7  ;;  %v7340_v7 = vor.u32 %v8061_v53, %v7337_v22  ;;  %v7508_v22 = vor.u32 %v8103_v54, %v7505_v50  ;;  %v8085_v60 = vld [vmem:[#allocation3 + $0x1134] sm:$0xf]  ;;  %v7433_v30 = vld [vmem:[#allocation3 + $0x1138] sm:$0xf0]  ;;  %v7308_v63 = vor.u32 %v8053_v58, %v7305_v45  ;;  %v8095_v54 = vld [vmem:[#allocation3 + $0x1184] sm:$0xf] }
 0x22c   : > { %4949 = vmatpush.bf16.msra.mxu2 %v7432_v9  ;;  %v8075_v9 = vld [vmem:[#allocation3 + $0x10e4] sm:$0xf]  ;;  %v7436_v40 = vor.u32 %v8085_v60, %v7433_v30  ;;  %v7353_v18 = vld [vmem:[#allocation3 + $0x1098] sm:$0xf0]  ;;  %v7473_v50 = vld [vmem:[#allocation3 + $0x1188] sm:$0xf0] }
 0x22d   : > { %4962 = vmatpush.bf16.msra.mxu3 %v7496_v10  ;;  %v8734_v10 = vld.sshfl [vmem:[#allocation1 + $0x8] sm:$0xff pattern:$0x73625140]  ;;  %v7396_v57 = vor.u32 %v8075_v9, %v7393_v28  ;;  %v8083_v9 = vld [vmem:[#allocation3 + $0x1124] sm:$0xf]  ;;  %v7476_v58 = vor.u32 %v8095_v54, %v7473_v50 }
 0x22e   : > { %4924 = vmatpush.bf16.msra.mxu0 %v7296_v62  ;;  %v7332_v62 = vor.u32 %v8059_v4, %v7329_v32  ;;  %v4592_v23 = vrot.slane %v8734_v10, 1  ;;  %v8067_v4 = vld [vmem:[#allocation3 + $0x10a4] sm:$0xf]  ;;  %v7417_v26 = vld [vmem:[#allocation3 + $0x1118] sm:$0xf0] }
 0x22f   : > { %4937 = vmatpush.bf16.msra.mxu1 %v7360_v20  ;;  %v8057_v20 = vld [vmem:[#allocation3 + $0x1054] sm:$0xf]  ;;  %v8099_v28 = vld [vmem:[#allocation3 + $0x11a4] sm:$0xf]  ;;  %v7481_v29 = vld [vmem:[#allocation3 + $0x1198] sm:$0xf0] }
 0x230   : > { %4950 = vmatpush.bf16.msra.mxu2 %v7424_v8  ;;  %v7321_v8 = vld [vmem:[#allocation3 + $0x1058] sm:$0xf0] }
 0x231   : > { %4963 = vmatpush.bf16.msra.mxu3 %v7488_v41  ;;  %v7324_v41 = vor.u32 %v8057_v20, %v7321_v8 }
 0x232   : > { %4925 = vmatpush.bf16.msra.mxu0 %v7288_v24  ;;  %v7377_v24 = vld [vmem:[#allocation3 + $0x10c8] sm:$0xf0] }
 0x233   : > { %4938 = vmatpush.bf16.msra.mxu1 %v7352_v27  ;;  %v7316_v27 = vor.u32 %v8055_v21, %v7313_v38  ;;  %v7380_v49 = vor.u32 %v8071_v46, %v7377_v24  ;;  %v8063_v21 = vld [vmem:[#allocation3 + $0x1084] sm:$0xf]  ;;  %v7484_v46 = vor.u32 %v8097_v35, %v7481_v29 }
 0x234   : > { %4951 = vmatpush.bf16.msra.mxu2 %v7416_v51  ;;  %v8079_v24 = vld [vmem:[#allocation3 + $0x1104] sm:$0xf] }
 0x235   : > { %4964 = vmatpush.bf16.msra.mxu3 %v7480_v52  ;;  %v8069_v52 = vld [vmem:[#allocation3 + $0x10b4] sm:$0xf] }
 0x236   : > { %4926 = vmatpush.bf16.msra.mxu0 %v7280_v1  ;;  %v8748_v51 = vpop.f32.mrf.mxu0  ;;  %v7497_v1 = vld [vmem:[#allocation3 + $0x11b8] sm:$0xf0]  ;;  %v7372_v44 = vor.u32 %v8069_v52, %v7369_v33 }
 0x237   : > { %4939 = vmatpush.bf16.msra.mxu1 %v7344_v3  ;;  %v8750_v53 = vpop.f32.mrf.mxu1  ;;  %v8051_v3 = vld [vmem:[#allocation3 + $0x1024] sm:$0xf] }
 0x238   : > { %4952 = vmatpush.bf16.msra.mxu2 %v7408_v2  ;;  %v7297_v2 = vld [vmem:[#allocation3 + $0x1028] sm:$0xf0] }
 0x239   : > { %4965 = vmatpush.bf16.msra.mxu3 %v7472_v0  ;;  %4927 = vmatmul.bf16.vlgmr.msra.gmra.mxu0 %v4591_v17  ;;  %v7500_v0 = vor.u32 %v8101_v61, %v7497_v1  ;;  %v7300_v11 = vor.u32 %v8051_v3, %v7297_v2  ;;  %v3479_v1 = vld [vmem:[#allocation2] sm:$0xf] }
 0x23a   : > { %4971 = vmatpush.bf16.msrb.mxu0 %v7340_v7  ;;  %4940 = vmatmul.bf16.vlgmr.msra.gmra.mxu1 %v4592_v23  ;;  %v7361_v7 = vld [vmem:[#allocation3 + $0x10a8] sm:$0xf0] }
 0x23b   : > { %4984 = vmatpush.bf16.msrb.mxu1 %v7404_v55  ;;  %4953 = vmatmul.bf16.vlgmr.msra.gmra.mxu2 %v4593_v59  ;;  %v7425_v55 = vld [vmem:[#allocation3 + $0x1128] sm:$0xf0]  ;;  %v7364_v19 = vor.u32 %v8067_v4, %v7361_v7 }
 0x23c   : > { %4997 = vmatpush.bf16.msrb.mxu2 %v7468_v5  ;;  %4966 = vmatmul.bf16.vlgmr.msra.gmra.mxu3 %v4594_v6  ;;  %v7428_v16 = vor.u32 %v8083_v9, %v7425_v55 }
 0x23d   : > { %5010 = vmatpush.bf16.msrb.mxu3 %v7532_v31  ;;  %v7489_v31 = vld [vmem:[#allocation3 + $0x11a8] sm:$0xf0] }
 0x23e   : > { %4972 = vmatpush.bf16.msrb.mxu0 %v7332_v62  ;;  %v8752_v32 = vpop.f32.mrf.mxu2  ;;  %v3886_v14 = vpop.f32.mrf.mxu0  ;;  %v8049_v62 = vld [vmem:[#allocation3 + $0x1014] sm:$0xf]  ;;  %v7492_v8 = vor.u32 %v8099_v28, %v7489_v31 }
 0x23f   : > { %4985 = vmatpush.bf16.msrb.mxu1 %v7396_v57  ;;  %v8754_v5 = vpop.f32.mrf.mxu3  ;;  %v7289_v57 = vld [vmem:[#allocation3 + $0x1018] sm:$0xf0]  ;;  %v3899_v20 = vpop.f32.mrf.mxu1 }
 0x240   : > { %4998 = vmatpush.bf16.msrb.mxu2 %v7460_v34  ;;  %v8065_v34 = vld [vmem:[#allocation3 + $0x1094] sm:$0xf]  ;;  %v7292_v12 = vor.u32 %v8049_v62, %v7289_v57 }
 0x241   : > { %5011 = vmatpush.bf16.msrb.mxu3 %v7524_v25  ;;  %v8081_v25 = vld [vmem:[#allocation3 + $0x1114] sm:$0xf]  ;;  %v7356_v37 = vor.u32 %v8065_v34, %v7353_v18 }
 0x242   : > { %4973 = vmatpush.bf16.msrb.mxu0 %v7324_v41  ;;  %v7420_v41 = vor.u32 %v8081_v25, %v7417_v26 }
 0x243   : > { %4986 = vmatpush.bf16.msrb.mxu1 %v7388_v42  ;;  %v8047_v42 = vld [vmem:[#allocation3 + $0x1004] sm:$0xf] }
 0x244   : > { %4999 = vmatpush.bf16.msrb.mxu2 %v7452_v39  ;;  %v7281_v39 = vld [vmem:[#allocation3 + $0x1008] sm:$0xf0] }
 0x245   : > { %5012 = vmatpush.bf16.msrb.mxu3 %v7516_v48  ;;  %v7345_v48 = vld [vmem:[#allocation3 + $0x1088] sm:$0xf0] }
 0x246   : > { %4974 = vmatpush.bf16.msrb.mxu0 %v7316_v27  ;;  %v3912_v38 = vpop.f32.mrf.mxu2  ;;  %v7284_v27 = vor.u32 %v8047_v42, %v7281_v39 }
 0x247   : > { %4987 = vmatpush.bf16.msrb.mxu1 %v7380_v49  ;;  %v3925_v36 = vpop.f32.mrf.mxu3  ;;  %v7348_v49 = vor.u32 %v8063_v21, %v7345_v48 }
 0x248   : > { %5000 = vmatpush.bf16.msrb.mxu2 %v7444_v43  ;;  %v7412_v43 = vor.u32 %v8079_v24, %v7409_v47 }
 0x249   : > { %5013 = vmatpush.bf16.msrb.mxu3 %v7508_v22  ;;  %v3898_v22 = vadd.f32 %v8750_v53, %v8748_v51 }
 0x24a   : > { %4975 = vmatpush.bf16.msrb.mxu0 %v7308_v63 }
 0x24b   : > { %4988 = vmatpush.bf16.msrb.mxu1 %v7372_v44  ;;  %v3911_v30 = vadd.f32 %v8752_v32, %v3898_v22 }
 0x24c   : > { %5001 = vmatpush.bf16.msrb.mxu2 %v7436_v40 }
 0x24d   : > { %5014 = vmatpush.bf16.msrb.mxu3 %v7500_v0  ;;  %v3924_v13 = vadd.f32 %v8754_v5, %v3911_v30 }
 0x24e   : > { %4976 = vmatpush.bf16.msrb.mxu0 %v7300_v11 }
 0x24f   : > { %4989 = vmatpush.bf16.msrb.mxu1 %v7364_v19 }
 0x250   : > { %5002 = vmatpush.bf16.msrb.mxu2 %v7428_v16 }
 0x251   : > { %5015 = vmatpush.bf16.msrb.mxu3 %v7492_v8 }
 0x252   : > { %4977 = vmatpush.bf16.msrb.mxu0 %v7292_v12 }
 0x253   : > { %4990 = vmatpush.bf16.msrb.mxu1 %v7356_v37 }
 0x254   : > { %5003 = vmatpush.bf16.msrb.mxu2 %v7420_v41 }
 0x255   : > { %5016 = vmatpush.bf16.msrb.mxu3 %v7484_v46 }
 0x256   : > { %4978 = vmatpush.bf16.msrb.mxu0 %v7284_v27  ;;  %v3936_v45 = vpop.f32.mrf.mxu0 }
 0x257   : > { %4991 = vmatpush.bf16.msrb.mxu1 %v7348_v49  ;;  %v3949_v52 = vpop.f32.mrf.mxu1 }
 0x258   : > { %5004 = vmatpush.bf16.msrb.mxu2 %v7412_v43  ;;  %v3950_v33 = vadd.f32 %v3949_v52, %v3936_v45 }
 0x259   : > { %5017 = vmatpush.bf16.msrb.mxu3 %v7476_v58  ;;  %4979 = vmatmul.bf16.vlgmr.msrb.gmra.mxu0 %v4591_v17  ;;  %v5031_v58 = vld [vmem:[#allocation5] sm:$0x3] }
 0x25a   : > { %4992 = vmatmul.bf16.vlgmr.msrb.gmra.mxu1 %v4592_v23  ;;  %v5034_v22 = vperm.slane %v5031_v58, 1 }
 0x25b   : > { %5005 = vmatmul.bf16.vlgmr.msrb.gmra.mxu2 %v4593_v59 }
 0x25c   : > { %5018 = vmatmul.bf16.vlgmr.msrb.gmra.mxu3 %v4594_v6 }
 0x25e   : > { %v3962_v60 = vpop.f32.mrf.mxu2  ;;  %v3938_v10 = vpop.f32.mrf.mxu0 }
 0x25f   : > { %v3963_v56 = vadd.f32 %v3962_v60, %v3950_v33  ;;  %v3975_v17 = vpop.f32.mrf.mxu3  ;;  %v3951_v23 = vpop.f32.mrf.mxu1  ;;  %v5035_v10 = vrot.slane %v5034_v22, 6 }
 0x261   : > { %v3976_v61 = vadd.f32 %v3975_v17, %v3963_v56 }
 0x263   : > { %v3981_v59 = vrot.slane %v3976_v61, 6  ;;  %v5033_v61 = vperm.slane %v5031_v58, 0 }
 0x265   : > { %v3982_v15 = vsel %vm877_vm0, %v3924_v13, %v3981_v59  ;;  %v5036_v23 = vsel %vm877_vm0, %v5033_v61, %v5035_v10 }
 0x266   : > { %v3984_v6 = vadd.f32 %v3982_v15, %v3479_v1  ;;  %v3964_v63 = vpop.f32.mrf.mxu2 }
 0x267   : > { %v3977_v44 = vpop.f32.mrf.mxu3 }
 0x268   : > { %3985 = vst [vmem:[#allocation2] sm:$0xf] %v3984_v6 }
 0x26f   : > { %v3986_v20 = vld [vmem:[#allocation2] sm:$0xf] }
 0x276   : > { %v4414_v51 = vpop.f32.mrf.mxu0 }
 0x277   : > { %v4427_v53 = vpop.f32.mrf.mxu1 }
 0x278   : > { %v4428_v55 = vadd.f32 %v4427_v53, %v4414_v51 }
 0x27e   : > { %v4440_v40 = vpop.f32.mrf.mxu2  ;;  %v4416_v2 = vpop.f32.mrf.mxu0 }
 0x27f   : > { %v4453_v3 = vpop.f32.mrf.mxu3  ;;  %v4429_v4 = vpop.f32.mrf.mxu1  ;;  %v4441_v31 = vadd.f32 %v4440_v40, %v4428_v55 }
 0x281   : > { %v4454_v57 = vadd.f32 %v4453_v3, %v4441_v31 }
 0x286   : > { %v4442_v32 = vpop.f32.mrf.mxu2 }
 0x287   : > { %v4455_v0 = vpop.f32.mrf.mxu3 }
 0x296   : > { %v4466_v7 = vpop.f32.mrf.mxu0 }
 0x297   : > { %v4479_v9 = vpop.f32.mrf.mxu1 }
 0x298   : > { %v4480_v5 = vadd.f32 %v4479_v9, %v4466_v7 }
 0x29e   : > { %v4492_v28 = vpop.f32.mrf.mxu2  ;;  %v4468_v16 = vpop.f32.mrf.mxu0 }
 0x29f   : > { %v4493_v11 = vadd.f32 %v4492_v28, %v4480_v5  ;;  %v4505_v14 = vpop.f32.mrf.mxu3  ;;  %v4481_v62 = vpop.f32.mrf.mxu1 }
 0x2a1   : > { %v4506_v19 = vadd.f32 %v4505_v14, %v4493_v11 }
 0x2a3   : > { %v4511_v34 = vrot.slane %v4506_v19, 6 }
 0x2a5   : > { %v4512_v8 = vsel %vm877_vm0, %v4454_v57, %v4511_v34 }
 0x2a6   : > { %v4514_v18 = vadd.f32 %v4512_v8, %v3986_v20  ;;  %v4494_v25 = vpop.f32.mrf.mxu2 }
 0x2a7   : > { %v4507_v26 = vpop.f32.mrf.mxu3 }
 0x2a8   : > { %4515 = vst [vmem:[#allocation2] sm:$0xf] %v4514_v18 }
 0x2af   : > { %v4516_v33 = vld [vmem:[#allocation2] sm:$0xf] }
 0x2b6   : > { %v4928_v35 = vpop.f32.mrf.mxu0 }
 0x2b7   : > { %v4941_v29 = vpop.f32.mrf.mxu1 }
 0x2b8   : > { %v4942_v48 = vadd.f32 %v4941_v29, %v4928_v35 }
 0x2be   : > { %v4954_v12 = vpop.f32.mrf.mxu2  ;;  %v4930_v41 = vpop.f32.mrf.mxu0 }
 0x2bf   : > { %v4967_v37 = vpop.f32.mrf.mxu3  ;;  %v4943_v42 = vpop.f32.mrf.mxu1  ;;  %v4955_v36 = vadd.f32 %v4954_v12, %v4942_v48 }
 0x2c1   : > { %v4968_v45 = vadd.f32 %v4967_v37, %v4955_v36 }
 0x2c6   : > { %v4956_v39 = vpop.f32.mrf.mxu2 }
 0x2c7   : > { %v4969_v21 = vpop.f32.mrf.mxu3 }
 0x2d6   : > { %v4980_v38 = vpop.f32.mrf.mxu0 }
 0x2d7   : > { %v4993_v46 = vpop.f32.mrf.mxu1 }
 0x2d8   : > { %v4994_v24 = vadd.f32 %v4993_v46, %v4980_v38 }
 0x2de   : > { %v5006_v47 = vpop.f32.mrf.mxu2  ;;  %v4982_v27 = vpop.f32.mrf.mxu0 }
 0x2df   : > { %v5007_v54 = vadd.f32 %v5006_v47, %v4994_v24  ;;  %v5019_v50 = vpop.f32.mrf.mxu3  ;;  %v4995_v49 = vpop.f32.mrf.mxu1 }
 0x2e1   : > { %v5020_v43 = vadd.f32 %v5019_v50, %v5007_v54 }
 0x2e3   : > { %v5025_v52 = vrot.slane %v5020_v43, 6 }
 0x2e5   : > { %v5026_v60 = vsel %vm877_vm0, %v4968_v45, %v5025_v52 }
 0x2e6   : > { %v5028_v30 = vadd.f32 %v5026_v60, %v4516_v33  ;;  %v5008_v56 = vpop.f32.mrf.mxu2 }
 0x2e7   : > { %v5021_v17 = vpop.f32.mrf.mxu3 }
 0x2e8   : > { %5029 = vst [vmem:[#allocation2] sm:$0xf] %v5028_v30 }
 0x2ef   : > { %v5030_v13 = vld [vmem:[#allocation2] sm:$0xf] }
 0x2f0   : > { %v5038_v59 = vadd.f32 %v5036_v23, %v5030_v13 }
 0x2f2   : > { %v5039_v1 = vmax.f32 %v5038_v59, 0.0 }
 0x2f4   : > { %5041 = vst [vmem:[#allocation1] ss:$4 sm:$0xff] %v5039_v1 }
 0x2fb   : > { %v5042_v15 = vld.sshfl [vmem:[#allocation1] sm:$0xff pattern:$0x73625140]  ;;  %v5043_v6 = vld.sshfl [vmem:[#allocation1 + $0x8] sm:$0xff pattern:$0x73625140] }
 0x2fc   : > { %v5046_v63 = vpack.c.bf16 %v5043_v6, %v5042_v15 }
 0x2fe   : > { %v5048_v44 = vrot.slane %v5046_v63, 3 }
 0x300   : > { %v5052_v51 = vsel %vm5049_vm1, %v5046_v63, %v5048_v44 }
 0x301   : > { %5054 = vst [vmem:[%s372_s8] sm:$0x3] %v5052_v51 }
 0x302 PF: > { %s17_s22 = sadd.s32 1, %s8281_s22   ;;  %s8803_s18 = smov %s8273_s20 }
 0x303   : > { %p14_p13 = scmp.ge.s32.totalorder %s17_s22, 6   ;;  %s8804_s19 = smov %s8277_s21 }
 0x304   : > { %s8805_s20 = smov %s8808_s24  ;;  %s8806_s21 = smov %s8812_s25 }
 0x305   :  { %16 = sbr.rel (!%p14_p13) target bundleno = 4 (0x4), region = 93 }
 0x30a   :  { %5082 = vsyncpa [#allocation4], 1 }
 0x30b   :  { %5084 = vsyncpa [#allocation4 + $0x1], 1 }
 0x30c   :  { %5085 = vsyncpa [#allocation6], 1 }

</bundles_post_ra>
